<compile_context>
chip_gen: v7x
topology: tpu7x:2x2x1
jax: 0.10.0
libtpu: 0.0.40
codegen_flags: <defaults>
</compile_context>

<pallas_src>
import jax
import jax.numpy as jnp
from jax.experimental import pallas as pl
from jax.experimental.pallas import tpu as pltpu

EMBEDDING_DIM = 8
N_EMB = 9
IN_DIM = N_EMB * EMBEDDING_DIM          # 72
VOCAB = 50                               # synthetic *_range for all 9 used tables
BN_EPS = 1e-5

# FC_1_1: 72->400->600->600->600->600->1   (BN+ReLU+Dropout after all but last)
DIMS_1_1 = [IN_DIM, 400, 600, 600, 600, 600, 1]
# FC_1_2: 72->400->600->600->600->1
DIMS_1_2 = [IN_DIM, 400, 600, 600, 600, 1]
N1 = len(DIMS_1_1) - 1                   # 6 linear layers
N2 = len(DIMS_1_2) - 1                   # 5 linear layers
NS1 = N1 - 1                             # 5 streamed weights (all but final (600,1))
NS2 = N2 - 1                             # 4 streamed weights
NSTREAM = NS1 + NS2                      # 9

TILE_B_MAX = 512

# concat order of the embedding lookups and their source columns in x.
_COLS = [2, 4, 5, 6, 7, 8, 9, 10, 11]


def _round_up(x, m):
    return (x + m - 1) // m * m


# ---------------------------------------------------------------------------
# Fused Pallas kernel: embedding gather + FC_1_1 + FC_1_2 in one call.
# ---------------------------------------------------------------------------
def _fused_kernel(idx_ref, emb_ref, *refs):
    """Argument layout (after idx_ref, emb_ref):
       refs[0:NSTREAM]                   streamed weight HBM refs (pl.ANY), bf16 (in,out)
       refs[NSTREAM], refs[NSTREAM+1]    final-layer weights (600,1) bf16 (VMEM)
       refs[NSTREAM+2 : NSTREAM+2+11]    biases (1,out) f32, chain1 b0..b5 then chain2 b0..b4
       refs[NSTREAM+2+11]                out_ref (tile_b, 2) f32
       scratch: NSTREAM VMEM bf16 weight buffers, then one DMA semaphore array.
    """
    nb = N1 + N2
    w_hbm = refs[0:NSTREAM]
    wlast1_ref = refs[NSTREAM]
    wlast2_ref = refs[NSTREAM + 1]
    b_refs = refs[NSTREAM + 2: NSTREAM + 2 + nb]
    out_ref = refs[NSTREAM + 2 + nb]
    w_vmem = refs[NSTREAM + 3 + nb: NSTREAM + 3 + nb + NSTREAM]
    sem = refs[-1]

    step = pl.program_id(0)
    copies = [pltpu.make_async_copy(w_hbm[i], w_vmem[i], sem.at[i])
              for i in range(NSTREAM)]

    # Kick off ALL weight DMAs up-front on the first grid step only; the VMEM
    # scratch persists across batch tiles so later tiles reuse the resident
    # copies.  Each layer below waits only for its own weight, overlapping
    # layer-i compute with layer-(i+1..) transfers.
    @pl.when(step == 0)
    def _start_all():
        for c in copies:
            c.start()

    def wait_weight(i):
        @pl.when(step == 0)
        def _():
            copies[i].wait()

    # ---- embedding gather + concat as a one-hot MXU matmul (exact) ----
    tb = idx_ref.shape[0]
    idx = idx_ref[...]                                    # (tb, 9) int32, pre-offset per table
    iota_v = jax.lax.broadcasted_iota(jnp.int32, (tb, N_EMB * VOCAB), 1)
    hit = iota_v == idx[:, 0:1]
    for t in range(1, N_EMB):
        hit = jnp.logical_or(hit, iota_v == idx[:, t:t + 1])
    onehot = jnp.where(hit, 1.0, 0.0).astype(jnp.bfloat16)  # (tb, 450)
    x = jnp.dot(onehot, emb_ref[...],
                preferred_element_type=jnp.float32)          # (tb, 72) exact bf16 values
    x_bf = x.astype(jnp.bfloat16)

    def run_chain(first_w, n_stream, bias_off, wlast_ref):
        h = x_bf
        for li in range(n_stream):
            wi = first_w + li
            wait_weight(wi)
            acc = jnp.dot(h, w_vmem[wi][...], preferred_element_type=jnp.float32)
            acc = acc + b_refs[bias_off + li][...]           # bias + ReLU in f32 (v5e-safe)
            h = jnp.maximum(acc, 0.0).astype(jnp.bfloat16)   # carry bf16 into next dot
        o = jnp.dot(h, wlast_ref[...], preferred_element_type=jnp.float32)
        return o + b_refs[bias_off + n_stream][...]

    o1 = run_chain(0, NS1, 0, wlast1_ref)        # (tb, 1) f32
    o2 = run_chain(NS1, NS2, N1, wlast2_ref)     # (tb, 1) f32

    # Direct column stores (no cross-lane concatenate).
    out_ref[:, 0:1] = o1.astype(out_ref.dtype)
    out_ref[:, 1:2] = o2.astype(out_ref.dtype)


def fused_forward(idx_global, kp):
    """idx_global: (B, 9) int32, table t's ids offset into [t*VOCAB, (t+1)*VOCAB).
    kp: packed kernel params.  Returns (out_FC_1_1 (B,1), out_FC_1_2 (B,1)) f32."""
    B = idx_global.shape[0]

    # Balanced batch tiling: minimize last-tile padding instead of padding to
    # a fixed power-of-two tile (e.g. B=300 -> one 304-row tile, not 512).
    n_tiles = max(1, pl.cdiv(B, TILE_B_MAX))
    tile_b = _round_up(pl.cdiv(B, n_tiles), 8)
    Bp = tile_b * n_tiles
    if Bp != B:
        idx_global = jnp.pad(idx_global, ((0, Bp - B), (0, 0)))

    emb_block = kp["emb_block"]       # (450, 72) bf16
    stream_ws = kp["stream_ws"]       # 9 x bf16 (in, out)
    wlast = kp["wlast"]               # 2 x (600, 1) bf16
    biases = kp["biases"]             # 11 x (1, out) f32

    def const2d(shape):
        return pl.BlockSpec(shape, lambda i: (0, 0))

    in_specs = (
        [pl.BlockSpec((tile_b, N_EMB), lambda i: (i, 0)),   # indices, blocked on batch
         const2d(emb_block.shape)]                          # packed embedding tables
        + [pl.BlockSpec(memory_space=pl.ANY)] * NSTREAM     # streamed weights stay in HBM
        + [const2d(w.shape) for w in wlast]
        + [const2d(b.shape) for b in biases]
    )
    args = [idx_global, emb_block] + list(stream_ws) + list(wlast) + list(biases)

    scratch = ([pltpu.VMEM(w.shape, jnp.bfloat16) for w in stream_ws]
               + [pltpu.SemaphoreType.DMA((NSTREAM,))])

    flops = 2 * Bp * (sum(a * b for a, b in zip(DIMS_1_1[:-1], DIMS_1_1[1:]))
                      + sum(a * b for a, b in zip(DIMS_1_2[:-1], DIMS_1_2[1:]))
                      + N_EMB * VOCAB * IN_DIM)
    bytes_accessed = (sum(int(w.size) * 2 for w in stream_ws)
                      + sum(int(w.size) * 2 for w in wlast)
                      + sum(int(b.size) * 4 for b in biases)
                      + int(emb_block.size) * 2
                      + Bp * N_EMB * 4 + Bp * 2 * 4)

    out = pl.pallas_call(
        _fused_kernel,
        out_shape=jax.ShapeDtypeStruct((Bp, 2), jnp.float32),
        grid=(n_tiles,),
        in_specs=in_specs,
        out_specs=pl.BlockSpec((tile_b, 2), lambda i: (i, 0)),
        scratch_shapes=scratch,
        compiler_params=pltpu.CompilerParams(
            # "arbitrary": the weight DMAs are gated on program_id==0, so the
            # batch axis must run on one core (megacore would skip step 0 on
            # core 1).  At the small-B latency regime there is one tile anyway.
            dimension_semantics=("arbitrary",),
            vmem_limit_bytes=48 * 1024 * 1024,
        ),
        cost_estimate=pl.CostEstimate(flops=int(flops), transcendentals=0,
                                      bytes_accessed=int(bytes_accessed)),
    )(*args)

    return out[:B, 0:1], out[:B, 1:2]


# ---------------------------------------------------------------------------
# Parameter construction (deterministic, mirrors the PyTorch __init__ shapes)
# ---------------------------------------------------------------------------
def _xavier_normal(key, shape):
    fan_out, fan_in = shape              # PyTorch Linear weight is (out, in)
    std = (2.0 / (fan_in + fan_out)) ** 0.5
    return jax.random.normal(key, shape, dtype=jnp.float32) * std


def build_params(key):
    """f32 'master' params for the parts of Network used by forward()."""
    keys = jax.random.split(key, N_EMB + N1 + N2)
    k = iter(keys)
    # nn.Embedding default init: N(0, 1)
    tables = [jax.random.normal(next(k), (VOCAB, EMBEDDING_DIM), dtype=jnp.float32)
              for _ in range(N_EMB)]

    def build_stack(dims):
        layers = []
        n = len(dims) - 1
        for li in range(n):
            w = _xavier_normal(next(k), (dims[li + 1], dims[li]))
            b = jnp.zeros((dims[li + 1],), jnp.float32)       # constant_(bias, 0)
            w_t = w.T                                         # (in, out)
            if li < n - 1:
                # Fold eval-mode BatchNorm1d with fresh stats (gamma=1, beta=0,
                # mean=0, var=1): y_bn = y / sqrt(1 + eps).
                # TODO(synk): fold real gamma/beta/running stats for trained checkpoints.
                s = 1.0 / jnp.sqrt(jnp.float32(1.0 + BN_EPS))
                w_t = w_t * s
                b = b * s
            layers.append((w_t, b))
        return layers

    return {"tables": tables,
            "fc_1_1": build_stack(DIMS_1_1),
            "fc_1_2": build_stack(DIMS_1_2)}


def pack_kernel_params(params):
    """Pack f32 params into the bf16 layout the kernel consumes."""
    # Block-diagonal embedding matrix: rows [t*V,(t+1)*V) x cols [t*8,(t+1)*8) = table_t.
    emb_block = jnp.zeros((N_EMB * VOCAB, IN_DIM), jnp.float32)
    for t, tab in enumerate(params["tables"]):
        emb_block = emb_block.at[t * VOCAB:(t + 1) * VOCAB,
                                 t * EMBEDDING_DIM:(t + 1) * EMBEDDING_DIM].set(tab)

    stream_ws, wlast, biases = [], [], []
    for stack, ns in ((params["fc_1_1"], NS1), (params["fc_1_2"], NS2)):
        for li, (w_t, _) in enumerate(stack):
            (stream_ws if li < ns else wlast).append(w_t.astype(jnp.bfloat16))
    for stack in (params["fc_1_1"], params["fc_1_2"]):
        biases.extend(b.reshape(1, -1).astype(jnp.float32) for (_, b) in stack)

    return {"emb_block": emb_block.astype(jnp.bfloat16),
            "stream_ws": stream_ws, "wlast": wlast, "biases": biases}


# ---------------------------------------------------------------------------
# Forward pass
# ---------------------------------------------------------------------------
@jax.jit
def network_forward(x, kernel_params):
    """x: (B, 12) int32 index matrix.  Returns (output_FC_1_1, output_FC_1_2)."""
    cols = jnp.asarray(_COLS, dtype=jnp.int32)
    offs = (jnp.arange(N_EMB, dtype=jnp.int32) * VOCAB)[None, :]
    idx_global = x[:, cols].astype(jnp.int32) + offs      # (B, 9)
    return fused_forward(idx_global, kernel_params)


# ---------------------------------------------------------------------------
# References
# ---------------------------------------------------------------------------
def _reference_bf16(x, params):
    """Pure-JAX reference mirroring the kernel math exactly (bf16 weights &
    activations, f32 accumulation)."""
    parts = [jnp.take(params["tables"][t], x[:, c], axis=0)
             for t, c in enumerate(_COLS)]
    h0 = jnp.concatenate(parts, axis=1).astype(jnp.bfloat16)

    def run(stack):
        h = h0
        for li, (w_t, b) in enumerate(stack):
            acc = jnp.dot(h, w_t.astype(jnp.bfloat16),
                          preferred_element_type=jnp.float32) + b[None, :]
            h = jnp.maximum(acc, 0.0).astype(jnp.bfloat16) if li < len(stack) - 1 else acc
        return h

    return run(params["fc_1_1"]), run(params["fc_1_2"])


def _reference_f32(x, params):
    """Full-f32 reference (bounds bf16 drift vs the true PyTorch model)."""
    parts = [jnp.take(params["tables"][t], x[:, c], axis=0)
             for t, c in enumerate(_COLS)]
    h0 = jnp.concatenate(parts, axis=1)

    def run(stack):
        h = h0
        for li, (w_t, b) in enumerate(stack):
            y = h @ w_t + b[None, :]
            h = jnp.maximum(y, 0.0) if li < len(stack) - 1 else y
        return h

    return run(params["fc_1_1"]), run(params["fc_1_2"])


if __name__ == "__main__":
    key = jax.random.PRNGKey(0)
    pkey, xkey = jax.random.split(key)

    params = build_params(pkey)
    kparams = pack_kernel_params(params)

    B = 16
    x = jax.random.randint(xkey, (B, 12), 0, VOCAB, dtype=jnp.int32)

    out_1_1, out_1_2 = network_forward(x, kparams)
    jax.block_until_ready((out_1_1, out_1_2))

    assert out_1_1.shape == (B, 1) and out_1_2.shape == (B, 1)

    # Exact-math reference (same bf16 weights/activations, f32 accumulation).
    ref_1_1, ref_1_2 = _reference_bf16(x, params)
    assert jnp.allclose(out_1_1, ref_1_1, atol=2e-3, rtol=2e-3)
    assert jnp.allclose(out_1_2, ref_1_2, atol=2e-3, rtol=2e-3)

    # Drift guard vs the full-f32 model.
    f32_1_1, f32_1_2 = _reference_f32(x, params)
    assert jnp.allclose(out_1_1, f32_1_1, atol=5e-2, rtol=5e-2)
    assert jnp.allclose(out_1_2, f32_1_2, atol=5e-2, rtol=5e-2)

    print("KERNEL_OK")
</pallas_src>

<mosaic_0001>
module attributes {stable_mosaic.version = 11 : i64} {
  func.func @_fused_kernel(%arg0: i32, %arg1: memref<16x9xi32, #tpu.memory_space<vmem>>, %arg2: memref<450x72xbf16, #tpu.memory_space<vmem>>, %arg3: memref<72x400xbf16, #tpu.memory_space<any>>, %arg4: memref<400x600xbf16, #tpu.memory_space<any>>, %arg5: memref<600x600xbf16, #tpu.memory_space<any>>, %arg6: memref<600x600xbf16, #tpu.memory_space<any>>, %arg7: memref<600x600xbf16, #tpu.memory_space<any>>, %arg8: memref<72x400xbf16, #tpu.memory_space<any>>, %arg9: memref<400x600xbf16, #tpu.memory_space<any>>, %arg10: memref<600x600xbf16, #tpu.memory_space<any>>, %arg11: memref<600x600xbf16, #tpu.memory_space<any>>, %arg12: memref<600x1xbf16, #tpu.memory_space<vmem>>, %arg13: memref<600x1xbf16, #tpu.memory_space<vmem>>, %arg14: memref<1x400xf32, #tpu.memory_space<vmem>>, %arg15: memref<1x600xf32, #tpu.memory_space<vmem>>, %arg16: memref<1x600xf32, #tpu.memory_space<vmem>>, %arg17: memref<1x600xf32, #tpu.memory_space<vmem>>, %arg18: memref<1x600xf32, #tpu.memory_space<vmem>>, %arg19: memref<1x1xf32, #tpu.memory_space<vmem>>, %arg20: memref<1x400xf32, #tpu.memory_space<vmem>>, %arg21: memref<1x600xf32, #tpu.memory_space<vmem>>, %arg22: memref<1x600xf32, #tpu.memory_space<vmem>>, %arg23: memref<1x600xf32, #tpu.memory_space<vmem>>, %arg24: memref<1x1xf32, #tpu.memory_space<vmem>>, %arg25: memref<16x2xf32, #tpu.memory_space<vmem>>, %arg26: memref<72x400xbf16, #tpu.memory_space<vmem>>, %arg27: memref<400x600xbf16, #tpu.memory_space<vmem>>, %arg28: memref<600x600xbf16, #tpu.memory_space<vmem>>, %arg29: memref<600x600xbf16, #tpu.memory_space<vmem>>, %arg30: memref<600x600xbf16, #tpu.memory_space<vmem>>, %arg31: memref<72x400xbf16, #tpu.memory_space<vmem>>, %arg32: memref<400x600xbf16, #tpu.memory_space<vmem>>, %arg33: memref<600x600xbf16, #tpu.memory_space<vmem>>, %arg34: memref<600x600xbf16, #tpu.memory_space<vmem>>, %arg35: memref<9x!tpu.dma_semaphore, #tpu.memory_space<semaphore_mem>>) attributes {dimension_semantics = [#tpu.dimension_semantics<arbitrary>], iteration_bounds = array<i64: 1>, scalar_prefetch = 0 : i64, scratch_operands = 10 : i64, tpu.core_type = #tpu.core_type<tc>, window_params = [{transform_indices = @transform_0, window_bounds = array<i64: 16, 9>}, {pipeline_mode = #tpu.pipeline_mode<synchronous>, transform_indices = @transform_1, window_bounds = array<i64: 450, 72>}, {}, {}, {}, {}, {}, {}, {}, {}, {}, {pipeline_mode = #tpu.pipeline_mode<synchronous>, transform_indices = @transform_11, window_bounds = array<i64: 600, 1>}, {pipeline_mode = #tpu.pipeline_mode<synchronous>, transform_indices = @transform_12, window_bounds = array<i64: 600, 1>}, {pipeline_mode = #tpu.pipeline_mode<synchronous>, transform_indices = @transform_13, window_bounds = array<i64: 1, 400>}, {pipeline_mode = #tpu.pipeline_mode<synchronous>, transform_indices = @transform_14, window_bounds = array<i64: 1, 600>}, {pipeline_mode = #tpu.pipeline_mode<synchronous>, transform_indices = @transform_15, window_bounds = array<i64: 1, 600>}, {pipeline_mode = #tpu.pipeline_mode<synchronous>, transform_indices = @transform_16, window_bounds = array<i64: 1, 600>}, {pipeline_mode = #tpu.pipeline_mode<synchronous>, transform_indices = @transform_17, window_bounds = array<i64: 1, 600>}, {pipeline_mode = #tpu.pipeline_mode<synchronous>, transform_indices = @transform_18, window_bounds = array<i64: 1, 1>}, {pipeline_mode = #tpu.pipeline_mode<synchronous>, transform_indices = @transform_19, window_bounds = array<i64: 1, 400>}, {pipeline_mode = #tpu.pipeline_mode<synchronous>, transform_indices = @transform_20, window_bounds = array<i64: 1, 600>}, {pipeline_mode = #tpu.pipeline_mode<synchronous>, transform_indices = @transform_21, window_bounds = array<i64: 1, 600>}, {pipeline_mode = #tpu.pipeline_mode<synchronous>, transform_indices = @transform_22, window_bounds = array<i64: 1, 600>}, {pipeline_mode = #tpu.pipeline_mode<synchronous>, transform_indices = @transform_23, window_bounds = array<i64: 1, 1>}, {transform_indices = @transform_24, window_bounds = array<i64: 16, 2>}]} {
    %c0_i32 = arith.constant 0 : i32
    %0 = arith.cmpi eq, %arg0, %c0_i32 : i32
    %1 = arith.extui %0 : i1 to i32
    %c0_i32_0 = arith.constant 0 : i32
    %c1_i32 = arith.constant 1 : i32
    %c2_i32 = arith.constant 2 : i32
    %c3_i32 = arith.constant 3 : i32
    %c4_i32 = arith.constant 4 : i32
    %c5_i32 = arith.constant 5 : i32
    %c6_i32 = arith.constant 6 : i32
    %c7_i32 = arith.constant 7 : i32
    %c8_i32 = arith.constant 8 : i32
    %c0_i32_1 = arith.constant 0 : i32
    %2 = arith.cmpi ne, %1, %c0_i32_1 : i32
    scf.if %2 {
      %158 = tpu.memref_slice %arg35[%c0_i32_0] : memref<9x!tpu.dma_semaphore, #tpu.memory_space<semaphore_mem>> -> memref<1x!tpu.dma_semaphore, #tpu.memory_space<semaphore_mem>>
      %159 = tpu.memref_squeeze %158 : memref<1x!tpu.dma_semaphore, #tpu.memory_space<semaphore_mem>> -> memref<!tpu.dma_semaphore, #tpu.memory_space<semaphore_mem>>
      tpu.enqueue_dma source(%arg3 : memref<72x400xbf16, #tpu.memory_space<any>>) target(%arg26 : memref<72x400xbf16, #tpu.memory_space<vmem>>) target_semaphore(%159 : memref<!tpu.dma_semaphore, #tpu.memory_space<semaphore_mem>>)
      %160 = tpu.memref_slice %arg35[%c1_i32] : memref<9x!tpu.dma_semaphore, #tpu.memory_space<semaphore_mem>> -> memref<1x!tpu.dma_semaphore, #tpu.memory_space<semaphore_mem>>
      %161 = tpu.memref_squeeze %160 : memref<1x!tpu.dma_semaphore, #tpu.memory_space<semaphore_mem>> -> memref<!tpu.dma_semaphore, #tpu.memory_space<semaphore_mem>>
      tpu.enqueue_dma source(%arg4 : memref<400x600xbf16, #tpu.memory_space<any>>) target(%arg27 : memref<400x600xbf16, #tpu.memory_space<vmem>>) target_semaphore(%161 : memref<!tpu.dma_semaphore, #tpu.memory_space<semaphore_mem>>)
      %162 = tpu.memref_slice %arg35[%c2_i32] : memref<9x!tpu.dma_semaphore, #tpu.memory_space<semaphore_mem>> -> memref<1x!tpu.dma_semaphore, #tpu.memory_space<semaphore_mem>>
      %163 = tpu.memref_squeeze %162 : memref<1x!tpu.dma_semaphore, #tpu.memory_space<semaphore_mem>> -> memref<!tpu.dma_semaphore, #tpu.memory_space<semaphore_mem>>
      tpu.enqueue_dma source(%arg5 : memref<600x600xbf16, #tpu.memory_space<any>>) target(%arg28 : memref<600x600xbf16, #tpu.memory_space<vmem>>) target_semaphore(%163 : memref<!tpu.dma_semaphore, #tpu.memory_space<semaphore_mem>>)
      %164 = tpu.memref_slice %arg35[%c3_i32] : memref<9x!tpu.dma_semaphore, #tpu.memory_space<semaphore_mem>> -> memref<1x!tpu.dma_semaphore, #tpu.memory_space<semaphore_mem>>
      %165 = tpu.memref_squeeze %164 : memref<1x!tpu.dma_semaphore, #tpu.memory_space<semaphore_mem>> -> memref<!tpu.dma_semaphore, #tpu.memory_space<semaphore_mem>>
      tpu.enqueue_dma source(%arg6 : memref<600x600xbf16, #tpu.memory_space<any>>) target(%arg29 : memref<600x600xbf16, #tpu.memory_space<vmem>>) target_semaphore(%165 : memref<!tpu.dma_semaphore, #tpu.memory_space<semaphore_mem>>)
      %166 = tpu.memref_slice %arg35[%c4_i32] : memref<9x!tpu.dma_semaphore, #tpu.memory_space<semaphore_mem>> -> memref<1x!tpu.dma_semaphore, #tpu.memory_space<semaphore_mem>>
      %167 = tpu.memref_squeeze %166 : memref<1x!tpu.dma_semaphore, #tpu.memory_space<semaphore_mem>> -> memref<!tpu.dma_semaphore, #tpu.memory_space<semaphore_mem>>
      tpu.enqueue_dma source(%arg7 : memref<600x600xbf16, #tpu.memory_space<any>>) target(%arg30 : memref<600x600xbf16, #tpu.memory_space<vmem>>) target_semaphore(%167 : memref<!tpu.dma_semaphore, #tpu.memory_space<semaphore_mem>>)
      %168 = tpu.memref_slice %arg35[%c5_i32] : memref<9x!tpu.dma_semaphore, #tpu.memory_space<semaphore_mem>> -> memref<1x!tpu.dma_semaphore, #tpu.memory_space<semaphore_mem>>
      %169 = tpu.memref_squeeze %168 : memref<1x!tpu.dma_semaphore, #tpu.memory_space<semaphore_mem>> -> memref<!tpu.dma_semaphore, #tpu.memory_space<semaphore_mem>>
      tpu.enqueue_dma source(%arg8 : memref<72x400xbf16, #tpu.memory_space<any>>) target(%arg31 : memref<72x400xbf16, #tpu.memory_space<vmem>>) target_semaphore(%169 : memref<!tpu.dma_semaphore, #tpu.memory_space<semaphore_mem>>)
      %170 = tpu.memref_slice %arg35[%c6_i32] : memref<9x!tpu.dma_semaphore, #tpu.memory_space<semaphore_mem>> -> memref<1x!tpu.dma_semaphore, #tpu.memory_space<semaphore_mem>>
      %171 = tpu.memref_squeeze %170 : memref<1x!tpu.dma_semaphore, #tpu.memory_space<semaphore_mem>> -> memref<!tpu.dma_semaphore, #tpu.memory_space<semaphore_mem>>
      tpu.enqueue_dma source(%arg9 : memref<400x600xbf16, #tpu.memory_space<any>>) target(%arg32 : memref<400x600xbf16, #tpu.memory_space<vmem>>) target_semaphore(%171 : memref<!tpu.dma_semaphore, #tpu.memory_space<semaphore_mem>>)
      %172 = tpu.memref_slice %arg35[%c7_i32] : memref<9x!tpu.dma_semaphore, #tpu.memory_space<semaphore_mem>> -> memref<1x!tpu.dma_semaphore, #tpu.memory_space<semaphore_mem>>
      %173 = tpu.memref_squeeze %172 : memref<1x!tpu.dma_semaphore, #tpu.memory_space<semaphore_mem>> -> memref<!tpu.dma_semaphore, #tpu.memory_space<semaphore_mem>>
      tpu.enqueue_dma source(%arg10 : memref<600x600xbf16, #tpu.memory_space<any>>) target(%arg33 : memref<600x600xbf16, #tpu.memory_space<vmem>>) target_semaphore(%173 : memref<!tpu.dma_semaphore, #tpu.memory_space<semaphore_mem>>)
      %174 = tpu.memref_slice %arg35[%c8_i32] : memref<9x!tpu.dma_semaphore, #tpu.memory_space<semaphore_mem>> -> memref<1x!tpu.dma_semaphore, #tpu.memory_space<semaphore_mem>>
      %175 = tpu.memref_squeeze %174 : memref<1x!tpu.dma_semaphore, #tpu.memory_space<semaphore_mem>> -> memref<!tpu.dma_semaphore, #tpu.memory_space<semaphore_mem>>
      tpu.enqueue_dma source(%arg11 : memref<600x600xbf16, #tpu.memory_space<any>>) target(%arg34 : memref<600x600xbf16, #tpu.memory_space<vmem>>) target_semaphore(%175 : memref<!tpu.dma_semaphore, #tpu.memory_space<semaphore_mem>>)
    } else {
    }
    %c0 = arith.constant 0 : index
    %c0_2 = arith.constant 0 : index
    %3 = vector.load %arg1[%c0, %c0_2] : memref<16x9xi32, #tpu.memory_space<vmem>>, vector<16x9xi32>
    %4 = tpu.iota {dimensions = array<i32: 1>} : vector<16x450xi32>
    %5 = vector.extract_strided_slice %3 {offsets = [0, 0], sizes = [16, 1], strides = [1, 1]} : vector<16x9xi32> to vector<16x1xi32>
    %6 = vector.broadcast %5 : vector<16x1xi32> to vector<16x450xi32>
    %7 = arith.cmpi eq, %4, %6 : vector<16x450xi32>
    %8 = vector.extract_strided_slice %3 {offsets = [0, 1], sizes = [16, 1], strides = [1, 1]} : vector<16x9xi32> to vector<16x1xi32>
    %9 = vector.broadcast %8 : vector<16x1xi32> to vector<16x450xi32>
    %10 = arith.cmpi eq, %4, %9 : vector<16x450xi32>
    %11 = arith.ori %7, %10 : vector<16x450xi1>
    %12 = vector.extract_strided_slice %3 {offsets = [0, 2], sizes = [16, 1], strides = [1, 1]} : vector<16x9xi32> to vector<16x1xi32>
    %13 = vector.broadcast %12 : vector<16x1xi32> to vector<16x450xi32>
    %14 = arith.cmpi eq, %4, %13 : vector<16x450xi32>
    %15 = arith.ori %11, %14 : vector<16x450xi1>
    %16 = vector.extract_strided_slice %3 {offsets = [0, 3], sizes = [16, 1], strides = [1, 1]} : vector<16x9xi32> to vector<16x1xi32>
    %17 = vector.broadcast %16 : vector<16x1xi32> to vector<16x450xi32>
    %18 = arith.cmpi eq, %4, %17 : vector<16x450xi32>
    %19 = arith.ori %15, %18 : vector<16x450xi1>
    %20 = vector.extract_strided_slice %3 {offsets = [0, 4], sizes = [16, 1], strides = [1, 1]} : vector<16x9xi32> to vector<16x1xi32>
    %21 = vector.broadcast %20 : vector<16x1xi32> to vector<16x450xi32>
    %22 = arith.cmpi eq, %4, %21 : vector<16x450xi32>
    %23 = arith.ori %19, %22 : vector<16x450xi1>
    %24 = vector.extract_strided_slice %3 {offsets = [0, 5], sizes = [16, 1], strides = [1, 1]} : vector<16x9xi32> to vector<16x1xi32>
    %25 = vector.broadcast %24 : vector<16x1xi32> to vector<16x450xi32>
    %26 = arith.cmpi eq, %4, %25 : vector<16x450xi32>
    %27 = arith.ori %23, %26 : vector<16x450xi1>
    %28 = vector.extract_strided_slice %3 {offsets = [0, 6], sizes = [16, 1], strides = [1, 1]} : vector<16x9xi32> to vector<16x1xi32>
    %29 = vector.broadcast %28 : vector<16x1xi32> to vector<16x450xi32>
    %30 = arith.cmpi eq, %4, %29 : vector<16x450xi32>
    %31 = arith.ori %27, %30 : vector<16x450xi1>
    %32 = vector.extract_strided_slice %3 {offsets = [0, 7], sizes = [16, 1], strides = [1, 1]} : vector<16x9xi32> to vector<16x1xi32>
    %33 = vector.broadcast %32 : vector<16x1xi32> to vector<16x450xi32>
    %34 = arith.cmpi eq, %4, %33 : vector<16x450xi32>
    %35 = arith.ori %31, %34 : vector<16x450xi1>
    %36 = vector.extract_strided_slice %3 {offsets = [0, 8], sizes = [16, 1], strides = [1, 1]} : vector<16x9xi32> to vector<16x1xi32>
    %37 = vector.broadcast %36 : vector<16x1xi32> to vector<16x450xi32>
    %38 = arith.cmpi eq, %4, %37 : vector<16x450xi32>
    %39 = arith.ori %35, %38 : vector<16x450xi1>
    %cst = arith.constant 1.000000e+00 : f32
    %cst_3 = arith.constant 0.000000e+00 : f32
    %40 = vector.broadcast %cst : f32 to vector<16x450xf32>
    %41 = vector.broadcast %cst_3 : f32 to vector<16x450xf32>
    %42 = arith.select %39, %40, %41 : vector<16x450xi1>, vector<16x450xf32>
    %43 = arith.truncf %42 : vector<16x450xf32> to vector<16x450xbf16>
    %c0_4 = arith.constant 0 : index
    %c0_5 = arith.constant 0 : index
    %44 = vector.load %arg2[%c0_4, %c0_5] : memref<450x72xbf16, #tpu.memory_space<vmem>>, vector<450x72xbf16>
    %cst_6 = arith.constant dense<0.000000e+00> : vector<16x72xf32>
    %45 = tpu.matmul %43, %44, %cst_6 {dimension_numbers = #tpu.dot_dimension_numbers<[1], [0], [0], [1], [0, 0, 1, 1], [], []>} : vector<16x450xbf16>, vector<450x72xbf16>, vector<16x72xf32> -> vector<16x72xf32>
    %46 = arith.truncf %45 : vector<16x72xf32> to vector<16x72xbf16>
    %c0_i32_7 = arith.constant 0 : i32
    %47 = arith.cmpi eq, %arg0, %c0_i32_7 : i32
    %48 = arith.extui %47 : i1 to i32
    %c0_i32_8 = arith.constant 0 : i32
    %c0_i32_9 = arith.constant 0 : i32
    %49 = arith.cmpi ne, %48, %c0_i32_9 : i32
    scf.if %49 {
      %158 = tpu.memref_slice %arg35[%c0_i32_8] : memref<9x!tpu.dma_semaphore, #tpu.memory_space<semaphore_mem>> -> memref<1x!tpu.dma_semaphore, #tpu.memory_space<semaphore_mem>>
      %159 = tpu.memref_squeeze %158 : memref<1x!tpu.dma_semaphore, #tpu.memory_space<semaphore_mem>> -> memref<!tpu.dma_semaphore, #tpu.memory_space<semaphore_mem>>
      tpu.wait_dma2 semaphore(%159 : memref<!tpu.dma_semaphore, #tpu.memory_space<semaphore_mem>>) src(%arg3 : memref<72x400xbf16, #tpu.memory_space<any>>) dst(%arg26 : memref<72x400xbf16, #tpu.memory_space<vmem>>)
    } else {
    }
    %c0_10 = arith.constant 0 : index
    %c0_11 = arith.constant 0 : index
    %50 = vector.load %arg26[%c0_10, %c0_11] : memref<72x400xbf16, #tpu.memory_space<vmem>>, vector<72x400xbf16>
    %cst_12 = arith.constant dense<0.000000e+00> : vector<16x400xf32>
    %51 = tpu.matmul %46, %50, %cst_12 {dimension_numbers = #tpu.dot_dimension_numbers<[1], [0], [0], [1], [0, 0, 1, 1], [], []>} : vector<16x72xbf16>, vector<72x400xbf16>, vector<16x400xf32> -> vector<16x400xf32>
    %c0_13 = arith.constant 0 : index
    %c0_14 = arith.constant 0 : index
    %52 = vector.load %arg14[%c0_13, %c0_14] : memref<1x400xf32, #tpu.memory_space<vmem>>, vector<1x400xf32>
    %53 = vector.broadcast %52 : vector<1x400xf32> to vector<16x400xf32>
    %54 = arith.addf %51, %53 : vector<16x400xf32>
    %cst_15 = arith.constant 0.000000e+00 : f32
    %55 = vector.broadcast %cst_15 : f32 to vector<16x400xf32>
    %56 = arith.maximumf %54, %55 : vector<16x400xf32>
    %57 = arith.truncf %56 : vector<16x400xf32> to vector<16x400xbf16>
    %c0_i32_16 = arith.constant 0 : i32
    %58 = arith.cmpi eq, %arg0, %c0_i32_16 : i32
    %59 = arith.extui %58 : i1 to i32
    %c1_i32_17 = arith.constant 1 : i32
    %c0_i32_18 = arith.constant 0 : i32
    %60 = arith.cmpi ne, %59, %c0_i32_18 : i32
    scf.if %60 {
      %158 = tpu.memref_slice %arg35[%c1_i32_17] : memref<9x!tpu.dma_semaphore, #tpu.memory_space<semaphore_mem>> -> memref<1x!tpu.dma_semaphore, #tpu.memory_space<semaphore_mem>>
      %159 = tpu.memref_squeeze %158 : memref<1x!tpu.dma_semaphore, #tpu.memory_space<semaphore_mem>> -> memref<!tpu.dma_semaphore, #tpu.memory_space<semaphore_mem>>
      tpu.wait_dma2 semaphore(%159 : memref<!tpu.dma_semaphore, #tpu.memory_space<semaphore_mem>>) src(%arg4 : memref<400x600xbf16, #tpu.memory_space<any>>) dst(%arg27 : memref<400x600xbf16, #tpu.memory_space<vmem>>)
    } else {
    }
    %c0_19 = arith.constant 0 : index
    %c0_20 = arith.constant 0 : index
    %61 = vector.load %arg27[%c0_19, %c0_20] : memref<400x600xbf16, #tpu.memory_space<vmem>>, vector<400x600xbf16>
    %cst_21 = arith.constant dense<0.000000e+00> : vector<16x600xf32>
    %62 = tpu.matmul %57, %61, %cst_21 {dimension_numbers = #tpu.dot_dimension_numbers<[1], [0], [0], [1], [0, 0, 1, 1], [], []>} : vector<16x400xbf16>, vector<400x600xbf16>, vector<16x600xf32> -> vector<16x600xf32>
    %c0_22 = arith.constant 0 : index
    %c0_23 = arith.constant 0 : index
    %63 = vector.load %arg15[%c0_22, %c0_23] : memref<1x600xf32, #tpu.memory_space<vmem>>, vector<1x600xf32>
    %64 = vector.broadcast %63 : vector<1x600xf32> to vector<16x600xf32>
    %65 = arith.addf %62, %64 : vector<16x600xf32>
    %cst_24 = arith.constant 0.000000e+00 : f32
    %66 = vector.broadcast %cst_24 : f32 to vector<16x600xf32>
    %67 = arith.maximumf %65, %66 : vector<16x600xf32>
    %68 = arith.truncf %67 : vector<16x600xf32> to vector<16x600xbf16>
    %c0_i32_25 = arith.constant 0 : i32
    %69 = arith.cmpi eq, %arg0, %c0_i32_25 : i32
    %70 = arith.extui %69 : i1 to i32
    %c2_i32_26 = arith.constant 2 : i32
    %c0_i32_27 = arith.constant 0 : i32
    %71 = arith.cmpi ne, %70, %c0_i32_27 : i32
    scf.if %71 {
      %158 = tpu.memref_slice %arg35[%c2_i32_26] : memref<9x!tpu.dma_semaphore, #tpu.memory_space<semaphore_mem>> -> memref<1x!tpu.dma_semaphore, #tpu.memory_space<semaphore_mem>>
      %159 = tpu.memref_squeeze %158 : memref<1x!tpu.dma_semaphore, #tpu.memory_space<semaphore_mem>> -> memref<!tpu.dma_semaphore, #tpu.memory_space<semaphore_mem>>
      tpu.wait_dma2 semaphore(%159 : memref<!tpu.dma_semaphore, #tpu.memory_space<semaphore_mem>>) src(%arg5 : memref<600x600xbf16, #tpu.memory_space<any>>) dst(%arg28 : memref<600x600xbf16, #tpu.memory_space<vmem>>)
    } else {
    }
    %c0_28 = arith.constant 0 : index
    %c0_29 = arith.constant 0 : index
    %72 = vector.load %arg28[%c0_28, %c0_29] : memref<600x600xbf16, #tpu.memory_space<vmem>>, vector<600x600xbf16>
    %cst_30 = arith.constant dense<0.000000e+00> : vector<16x600xf32>
    %73 = tpu.matmul %68, %72, %cst_30 {dimension_numbers = #tpu.dot_dimension_numbers<[1], [0], [0], [1], [0, 0, 1, 1], [], []>} : vector<16x600xbf16>, vector<600x600xbf16>, vector<16x600xf32> -> vector<16x600xf32>
    %c0_31 = arith.constant 0 : index
    %c0_32 = arith.constant 0 : index
    %74 = vector.load %arg16[%c0_31, %c0_32] : memref<1x600xf32, #tpu.memory_space<vmem>>, vector<1x600xf32>
    %75 = vector.broadcast %74 : vector<1x600xf32> to vector<16x600xf32>
    %76 = arith.addf %73, %75 : vector<16x600xf32>
    %cst_33 = arith.constant 0.000000e+00 : f32
    %77 = vector.broadcast %cst_33 : f32 to vector<16x600xf32>
    %78 = arith.maximumf %76, %77 : vector<16x600xf32>
    %79 = arith.truncf %78 : vector<16x600xf32> to vector<16x600xbf16>
    %c0_i32_34 = arith.constant 0 : i32
    %80 = arith.cmpi eq, %arg0, %c0_i32_34 : i32
    %81 = arith.extui %80 : i1 to i32
    %c3_i32_35 = arith.constant 3 : i32
    %c0_i32_36 = arith.constant 0 : i32
    %82 = arith.cmpi ne, %81, %c0_i32_36 : i32
    scf.if %82 {
      %158 = tpu.memref_slice %arg35[%c3_i32_35] : memref<9x!tpu.dma_semaphore, #tpu.memory_space<semaphore_mem>> -> memref<1x!tpu.dma_semaphore, #tpu.memory_space<semaphore_mem>>
      %159 = tpu.memref_squeeze %158 : memref<1x!tpu.dma_semaphore, #tpu.memory_space<semaphore_mem>> -> memref<!tpu.dma_semaphore, #tpu.memory_space<semaphore_mem>>
      tpu.wait_dma2 semaphore(%159 : memref<!tpu.dma_semaphore, #tpu.memory_space<semaphore_mem>>) src(%arg6 : memref<600x600xbf16, #tpu.memory_space<any>>) dst(%arg29 : memref<600x600xbf16, #tpu.memory_space<vmem>>)
    } else {
    }
    %c0_37 = arith.constant 0 : index
    %c0_38 = arith.constant 0 : index
    %83 = vector.load %arg29[%c0_37, %c0_38] : memref<600x600xbf16, #tpu.memory_space<vmem>>, vector<600x600xbf16>
    %cst_39 = arith.constant dense<0.000000e+00> : vector<16x600xf32>
    %84 = tpu.matmul %79, %83, %cst_39 {dimension_numbers = #tpu.dot_dimension_numbers<[1], [0], [0], [1], [0, 0, 1, 1], [], []>} : vector<16x600xbf16>, vector<600x600xbf16>, vector<16x600xf32> -> vector<16x600xf32>
    %c0_40 = arith.constant 0 : index
    %c0_41 = arith.constant 0 : index
    %85 = vector.load %arg17[%c0_40, %c0_41] : memref<1x600xf32, #tpu.memory_space<vmem>>, vector<1x600xf32>
    %86 = vector.broadcast %85 : vector<1x600xf32> to vector<16x600xf32>
    %87 = arith.addf %84, %86 : vector<16x600xf32>
    %cst_42 = arith.constant 0.000000e+00 : f32
    %88 = vector.broadcast %cst_42 : f32 to vector<16x600xf32>
    %89 = arith.maximumf %87, %88 : vector<16x600xf32>
    %90 = arith.truncf %89 : vector<16x600xf32> to vector<16x600xbf16>
    %c0_i32_43 = arith.constant 0 : i32
    %91 = arith.cmpi eq, %arg0, %c0_i32_43 : i32
    %92 = arith.extui %91 : i1 to i32
    %c4_i32_44 = arith.constant 4 : i32
    %c0_i32_45 = arith.constant 0 : i32
    %93 = arith.cmpi ne, %92, %c0_i32_45 : i32
    scf.if %93 {
      %158 = tpu.memref_slice %arg35[%c4_i32_44] : memref<9x!tpu.dma_semaphore, #tpu.memory_space<semaphore_mem>> -> memref<1x!tpu.dma_semaphore, #tpu.memory_space<semaphore_mem>>
      %159 = tpu.memref_squeeze %158 : memref<1x!tpu.dma_semaphore, #tpu.memory_space<semaphore_mem>> -> memref<!tpu.dma_semaphore, #tpu.memory_space<semaphore_mem>>
      tpu.wait_dma2 semaphore(%159 : memref<!tpu.dma_semaphore, #tpu.memory_space<semaphore_mem>>) src(%arg7 : memref<600x600xbf16, #tpu.memory_space<any>>) dst(%arg30 : memref<600x600xbf16, #tpu.memory_space<vmem>>)
    } else {
    }
    %c0_46 = arith.constant 0 : index
    %c0_47 = arith.constant 0 : index
    %94 = vector.load %arg30[%c0_46, %c0_47] : memref<600x600xbf16, #tpu.memory_space<vmem>>, vector<600x600xbf16>
    %cst_48 = arith.constant dense<0.000000e+00> : vector<16x600xf32>
    %95 = tpu.matmul %90, %94, %cst_48 {dimension_numbers = #tpu.dot_dimension_numbers<[1], [0], [0], [1], [0, 0, 1, 1], [], []>} : vector<16x600xbf16>, vector<600x600xbf16>, vector<16x600xf32> -> vector<16x600xf32>
    %c0_49 = arith.constant 0 : index
    %c0_50 = arith.constant 0 : index
    %96 = vector.load %arg18[%c0_49, %c0_50] : memref<1x600xf32, #tpu.memory_space<vmem>>, vector<1x600xf32>
    %97 = vector.broadcast %96 : vector<1x600xf32> to vector<16x600xf32>
    %98 = arith.addf %95, %97 : vector<16x600xf32>
    %cst_51 = arith.constant 0.000000e+00 : f32
    %99 = vector.broadcast %cst_51 : f32 to vector<16x600xf32>
    %100 = arith.maximumf %98, %99 : vector<16x600xf32>
    %101 = arith.truncf %100 : vector<16x600xf32> to vector<16x600xbf16>
    %c0_52 = arith.constant 0 : index
    %c0_53 = arith.constant 0 : index
    %102 = vector.load %arg12[%c0_52, %c0_53] : memref<600x1xbf16, #tpu.memory_space<vmem>>, vector<600x1xbf16>
    %cst_54 = arith.constant dense<0.000000e+00> : vector<16x1xf32>
    %103 = tpu.matmul %101, %102, %cst_54 {dimension_numbers = #tpu.dot_dimension_numbers<[1], [0], [0], [1], [0, 0, 1, 1], [], []>} : vector<16x600xbf16>, vector<600x1xbf16>, vector<16x1xf32> -> vector<16x1xf32>
    %c0_55 = arith.constant 0 : index
    %c0_56 = arith.constant 0 : index
    %104 = vector.load %arg19[%c0_55, %c0_56] : memref<1x1xf32, #tpu.memory_space<vmem>>, vector<1x1xf32>
    %105 = vector.broadcast %104 : vector<1x1xf32> to vector<16x1xf32>
    %106 = arith.addf %103, %105 : vector<16x1xf32>
    %c0_i32_57 = arith.constant 0 : i32
    %107 = arith.cmpi eq, %arg0, %c0_i32_57 : i32
    %108 = arith.extui %107 : i1 to i32
    %c5_i32_58 = arith.constant 5 : i32
    %c0_i32_59 = arith.constant 0 : i32
    %109 = arith.cmpi ne, %108, %c0_i32_59 : i32
    scf.if %109 {
      %158 = tpu.memref_slice %arg35[%c5_i32_58] : memref<9x!tpu.dma_semaphore, #tpu.memory_space<semaphore_mem>> -> memref<1x!tpu.dma_semaphore, #tpu.memory_space<semaphore_mem>>
      %159 = tpu.memref_squeeze %158 : memref<1x!tpu.dma_semaphore, #tpu.memory_space<semaphore_mem>> -> memref<!tpu.dma_semaphore, #tpu.memory_space<semaphore_mem>>
      tpu.wait_dma2 semaphore(%159 : memref<!tpu.dma_semaphore, #tpu.memory_space<semaphore_mem>>) src(%arg8 : memref<72x400xbf16, #tpu.memory_space<any>>) dst(%arg31 : memref<72x400xbf16, #tpu.memory_space<vmem>>)
    } else {
    }
    %c0_60 = arith.constant 0 : index
    %c0_61 = arith.constant 0 : index
    %110 = vector.load %arg31[%c0_60, %c0_61] : memref<72x400xbf16, #tpu.memory_space<vmem>>, vector<72x400xbf16>
    %cst_62 = arith.constant dense<0.000000e+00> : vector<16x400xf32>
    %111 = tpu.matmul %46, %110, %cst_62 {dimension_numbers = #tpu.dot_dimension_numbers<[1], [0], [0], [1], [0, 0, 1, 1], [], []>} : vector<16x72xbf16>, vector<72x400xbf16>, vector<16x400xf32> -> vector<16x400xf32>
    %c0_63 = arith.constant 0 : index
    %c0_64 = arith.constant 0 : index
    %112 = vector.load %arg20[%c0_63, %c0_64] : memref<1x400xf32, #tpu.memory_space<vmem>>, vector<1x400xf32>
    %113 = vector.broadcast %112 : vector<1x400xf32> to vector<16x400xf32>
    %114 = arith.addf %111, %113 : vector<16x400xf32>
    %cst_65 = arith.constant 0.000000e+00 : f32
    %115 = vector.broadcast %cst_65 : f32 to vector<16x400xf32>
    %116 = arith.maximumf %114, %115 : vector<16x400xf32>
    %117 = arith.truncf %116 : vector<16x400xf32> to vector<16x400xbf16>
    %c0_i32_66 = arith.constant 0 : i32
    %118 = arith.cmpi eq, %arg0, %c0_i32_66 : i32
    %119 = arith.extui %118 : i1 to i32
    %c6_i32_67 = arith.constant 6 : i32
    %c0_i32_68 = arith.constant 0 : i32
    %120 = arith.cmpi ne, %119, %c0_i32_68 : i32
    scf.if %120 {
      %158 = tpu.memref_slice %arg35[%c6_i32_67] : memref<9x!tpu.dma_semaphore, #tpu.memory_space<semaphore_mem>> -> memref<1x!tpu.dma_semaphore, #tpu.memory_space<semaphore_mem>>
      %159 = tpu.memref_squeeze %158 : memref<1x!tpu.dma_semaphore, #tpu.memory_space<semaphore_mem>> -> memref<!tpu.dma_semaphore, #tpu.memory_space<semaphore_mem>>
      tpu.wait_dma2 semaphore(%159 : memref<!tpu.dma_semaphore, #tpu.memory_space<semaphore_mem>>) src(%arg9 : memref<400x600xbf16, #tpu.memory_space<any>>) dst(%arg32 : memref<400x600xbf16, #tpu.memory_space<vmem>>)
    } else {
    }
    %c0_69 = arith.constant 0 : index
    %c0_70 = arith.constant 0 : index
    %121 = vector.load %arg32[%c0_69, %c0_70] : memref<400x600xbf16, #tpu.memory_space<vmem>>, vector<400x600xbf16>
    %cst_71 = arith.constant dense<0.000000e+00> : vector<16x600xf32>
    %122 = tpu.matmul %117, %121, %cst_71 {dimension_numbers = #tpu.dot_dimension_numbers<[1], [0], [0], [1], [0, 0, 1, 1], [], []>} : vector<16x400xbf16>, vector<400x600xbf16>, vector<16x600xf32> -> vector<16x600xf32>
    %c0_72 = arith.constant 0 : index
    %c0_73 = arith.constant 0 : index
    %123 = vector.load %arg21[%c0_72, %c0_73] : memref<1x600xf32, #tpu.memory_space<vmem>>, vector<1x600xf32>
    %124 = vector.broadcast %123 : vector<1x600xf32> to vector<16x600xf32>
    %125 = arith.addf %122, %124 : vector<16x600xf32>
    %cst_74 = arith.constant 0.000000e+00 : f32
    %126 = vector.broadcast %cst_74 : f32 to vector<16x600xf32>
    %127 = arith.maximumf %125, %126 : vector<16x600xf32>
    %128 = arith.truncf %127 : vector<16x600xf32> to vector<16x600xbf16>
    %c0_i32_75 = arith.constant 0 : i32
    %129 = arith.cmpi eq, %arg0, %c0_i32_75 : i32
    %130 = arith.extui %129 : i1 to i32
    %c7_i32_76 = arith.constant 7 : i32
    %c0_i32_77 = arith.constant 0 : i32
    %131 = arith.cmpi ne, %130, %c0_i32_77 : i32
    scf.if %131 {
      %158 = tpu.memref_slice %arg35[%c7_i32_76] : memref<9x!tpu.dma_semaphore, #tpu.memory_space<semaphore_mem>> -> memref<1x!tpu.dma_semaphore, #tpu.memory_space<semaphore_mem>>
      %159 = tpu.memref_squeeze %158 : memref<1x!tpu.dma_semaphore, #tpu.memory_space<semaphore_mem>> -> memref<!tpu.dma_semaphore, #tpu.memory_space<semaphore_mem>>
      tpu.wait_dma2 semaphore(%159 : memref<!tpu.dma_semaphore, #tpu.memory_space<semaphore_mem>>) src(%arg10 : memref<600x600xbf16, #tpu.memory_space<any>>) dst(%arg33 : memref<600x600xbf16, #tpu.memory_space<vmem>>)
    } else {
    }
    %c0_78 = arith.constant 0 : index
    %c0_79 = arith.constant 0 : index
    %132 = vector.load %arg33[%c0_78, %c0_79] : memref<600x600xbf16, #tpu.memory_space<vmem>>, vector<600x600xbf16>
    %cst_80 = arith.constant dense<0.000000e+00> : vector<16x600xf32>
    %133 = tpu.matmul %128, %132, %cst_80 {dimension_numbers = #tpu.dot_dimension_numbers<[1], [0], [0], [1], [0, 0, 1, 1], [], []>} : vector<16x600xbf16>, vector<600x600xbf16>, vector<16x600xf32> -> vector<16x600xf32>
    %c0_81 = arith.constant 0 : index
    %c0_82 = arith.constant 0 : index
    %134 = vector.load %arg22[%c0_81, %c0_82] : memref<1x600xf32, #tpu.memory_space<vmem>>, vector<1x600xf32>
    %135 = vector.broadcast %134 : vector<1x600xf32> to vector<16x600xf32>
    %136 = arith.addf %133, %135 : vector<16x600xf32>
    %cst_83 = arith.constant 0.000000e+00 : f32
    %137 = vector.broadcast %cst_83 : f32 to vector<16x600xf32>
    %138 = arith.maximumf %136, %137 : vector<16x600xf32>
    %139 = arith.truncf %138 : vector<16x600xf32> to vector<16x600xbf16>
    %c0_i32_84 = arith.constant 0 : i32
    %140 = arith.cmpi eq, %arg0, %c0_i32_84 : i32
    %141 = arith.extui %140 : i1 to i32
    %c8_i32_85 = arith.constant 8 : i32
    %c0_i32_86 = arith.constant 0 : i32
    %142 = arith.cmpi ne, %141, %c0_i32_86 : i32
    scf.if %142 {
      %158 = tpu.memref_slice %arg35[%c8_i32_85] : memref<9x!tpu.dma_semaphore, #tpu.memory_space<semaphore_mem>> -> memref<1x!tpu.dma_semaphore, #tpu.memory_space<semaphore_mem>>
      %159 = tpu.memref_squeeze %158 : memref<1x!tpu.dma_semaphore, #tpu.memory_space<semaphore_mem>> -> memref<!tpu.dma_semaphore, #tpu.memory_space<semaphore_mem>>
      tpu.wait_dma2 semaphore(%159 : memref<!tpu.dma_semaphore, #tpu.memory_space<semaphore_mem>>) src(%arg11 : memref<600x600xbf16, #tpu.memory_space<any>>) dst(%arg34 : memref<600x600xbf16, #tpu.memory_space<vmem>>)
    } else {
    }
    %c0_87 = arith.constant 0 : index
    %c0_88 = arith.constant 0 : index
    %143 = vector.load %arg34[%c0_87, %c0_88] : memref<600x600xbf16, #tpu.memory_space<vmem>>, vector<600x600xbf16>
    %cst_89 = arith.constant dense<0.000000e+00> : vector<16x600xf32>
    %144 = tpu.matmul %139, %143, %cst_89 {dimension_numbers = #tpu.dot_dimension_numbers<[1], [0], [0], [1], [0, 0, 1, 1], [], []>} : vector<16x600xbf16>, vector<600x600xbf16>, vector<16x600xf32> -> vector<16x600xf32>
    %c0_90 = arith.constant 0 : index
    %c0_91 = arith.constant 0 : index
    %145 = vector.load %arg23[%c0_90, %c0_91] : memref<1x600xf32, #tpu.memory_space<vmem>>, vector<1x600xf32>
    %146 = vector.broadcast %145 : vector<1x600xf32> to vector<16x600xf32>
    %147 = arith.addf %144, %146 : vector<16x600xf32>
    %cst_92 = arith.constant 0.000000e+00 : f32
    %148 = vector.broadcast %cst_92 : f32 to vector<16x600xf32>
    %149 = arith.maximumf %147, %148 : vector<16x600xf32>
    %150 = arith.truncf %149 : vector<16x600xf32> to vector<16x600xbf16>
    %c0_93 = arith.constant 0 : index
    %c0_94 = arith.constant 0 : index
    %151 = vector.load %arg13[%c0_93, %c0_94] : memref<600x1xbf16, #tpu.memory_space<vmem>>, vector<600x1xbf16>
    %cst_95 = arith.constant dense<0.000000e+00> : vector<16x1xf32>
    %152 = tpu.matmul %150, %151, %cst_95 {dimension_numbers = #tpu.dot_dimension_numbers<[1], [0], [0], [1], [0, 0, 1, 1], [], []>} : vector<16x600xbf16>, vector<600x1xbf16>, vector<16x1xf32> -> vector<16x1xf32>
    %c0_96 = arith.constant 0 : index
    %c0_97 = arith.constant 0 : index
    %153 = vector.load %arg24[%c0_96, %c0_97] : memref<1x1xf32, #tpu.memory_space<vmem>>, vector<1x1xf32>
    %154 = vector.broadcast %153 : vector<1x1xf32> to vector<16x1xf32>
    %155 = arith.addf %152, %154 : vector<16x1xf32>
    %c0_98 = arith.constant 0 : index
    %c0_99 = arith.constant 0 : index
    %156 = vector.load %arg25[%c0_98, %c0_99] : memref<16x2xf32, #tpu.memory_space<vmem>>, vector<16x1xf32>
    tpu.vector_store %arg25[%c0_98, %c0_99], %106 {strides = array<i32>} : memref<16x2xf32, #tpu.memory_space<vmem>>, vector<16x1xf32>,
    %c0_100 = arith.constant 0 : index
    %c1 = arith.constant 1 : index
    %157 = vector.load %arg25[%c0_100, %c1] : memref<16x2xf32, #tpu.memory_space<vmem>>, vector<16x1xf32>
    tpu.vector_store %arg25[%c0_100, %c1], %155 {strides = array<i32>} : memref<16x2xf32, #tpu.memory_space<vmem>>, vector<16x1xf32>,
    return
  }
  func.func @transform_0(%arg0: i32) -> (i32, i32) {
    %c0_i32 = arith.constant 0 : i32
    %c0_i32_0 = arith.constant 0 : i32
    return %arg0, %c0_i32 : i32, i32
  }
  func.func @transform_1(%arg0: i32) -> (i32, i32) {
    %c0_i32 = arith.constant 0 : i32
    %c0_i32_0 = arith.constant 0 : i32
    %c0_i32_1 = arith.constant 0 : i32
    return %c0_i32, %c0_i32_0 : i32, i32
  }
  func.func @transform_11(%arg0: i32) -> (i32, i32) {
    %c0_i32 = arith.constant 0 : i32
    %c0_i32_0 = arith.constant 0 : i32
    %c0_i32_1 = arith.constant 0 : i32
    return %c0_i32, %c0_i32_0 : i32, i32
  }
  func.func @transform_12(%arg0: i32) -> (i32, i32) {
    %c0_i32 = arith.constant 0 : i32
    %c0_i32_0 = arith.constant 0 : i32
    %c0_i32_1 = arith.constant 0 : i32
    return %c0_i32, %c0_i32_0 : i32, i32
  }
  func.func @transform_13(%arg0: i32) -> (i32, i32) {
    %c0_i32 = arith.constant 0 : i32
    %c0_i32_0 = arith.constant 0 : i32
    %c0_i32_1 = arith.constant 0 : i32
    return %c0_i32, %c0_i32_0 : i32, i32
  }
  func.func @transform_14(%arg0: i32) -> (i32, i32) {
    %c0_i32 = arith.constant 0 : i32
    %c0_i32_0 = arith.constant 0 : i32
    %c0_i32_1 = arith.constant 0 : i32
    return %c0_i32, %c0_i32_0 : i32, i32
  }
  func.func @transform_15(%arg0: i32) -> (i32, i32) {
    %c0_i32 = arith.constant 0 : i32
    %c0_i32_0 = arith.constant 0 : i32
    %c0_i32_1 = arith.constant 0 : i32
    return %c0_i32, %c0_i32_0 : i32, i32
  }
  func.func @transform_16(%arg0: i32) -> (i32, i32) {
    %c0_i32 = arith.constant 0 : i32
    %c0_i32_0 = arith.constant 0 : i32
    %c0_i32_1 = arith.constant 0 : i32
    return %c0_i32, %c0_i32_0 : i32, i32
  }
  func.func @transform_17(%arg0: i32) -> (i32, i32) {
    %c0_i32 = arith.constant 0 : i32
    %c0_i32_0 = arith.constant 0 : i32
    %c0_i32_1 = arith.constant 0 : i32
    return %c0_i32, %c0_i32_0 : i32, i32
  }
  func.func @transform_18(%arg0: i32) -> (i32, i32) {
    %c0_i32 = arith.constant 0 : i32
    %c0_i32_0 = arith.constant 0 : i32
    %c0_i32_1 = arith.constant 0 : i32
    return %c0_i32, %c0_i32_0 : i32, i32
  }
  func.func @transform_19(%arg0: i32) -> (i32, i32) {
    %c0_i32 = arith.constant 0 : i32
    %c0_i32_0 = arith.constant 0 : i32
    %c0_i32_1 = arith.constant 0 : i32
    return %c0_i32, %c0_i32_0 : i32, i32
  }
  func.func @transform_20(%arg0: i32) -> (i32, i32) {
    %c0_i32 = arith.constant 0 : i32
    %c0_i32_0 = arith.constant 0 : i32
    %c0_i32_1 = arith.constant 0 : i32
    return %c0_i32, %c0_i32_0 : i32, i32
  }
  func.func @transform_21(%arg0: i32) -> (i32, i32) {
    %c0_i32 = arith.constant 0 : i32
    %c0_i32_0 = arith.constant 0 : i32
    %c0_i32_1 = arith.constant 0 : i32
    return %c0_i32, %c0_i32_0 : i32, i32
  }
  func.func @transform_22(%arg0: i32) -> (i32, i32) {
    %c0_i32 = arith.constant 0 : i32
    %c0_i32_0 = arith.constant 0 : i32
    %c0_i32_1 = arith.constant 0 : i32
    return %c0_i32, %c0_i32_0 : i32, i32
  }
  func.func @transform_23(%arg0: i32) -> (i32, i32) {
    %c0_i32 = arith.constant 0 : i32
    %c0_i32_0 = arith.constant 0 : i32
    %c0_i32_1 = arith.constant 0 : i32
    return %c0_i32, %c0_i32_0 : i32, i32
  }
  func.func @transform_24(%arg0: i32) -> (i32, i32) {
    %c0_i32 = arith.constant 0 : i32
    %c0_i32_0 = arith.constant 0 : i32
    return %arg0, %c0_i32 : i32, i32
  }
}

</mosaic_0001>

<bundles_post_ra>
// kernel: network_forward.1
= control target key start
LH: loop header
LB: loop body
LE: loop exit
PB: predicated region body
PF: predicated region fallthrough
CT: control target
= control target key end

     0   :  { %s18620_s0 = inlined_call_operand.vmem [shape: s32[16,9], index: 0, kind: input, shape index: {}]   ;;  %s18621_s1 = inlined_call_operand.vmem [shape: bf16[450,72], index: 1, kind: input, shape index: {}]   ;;  %s18622_s2 = inlined_call_operand.vmem [shape: bf16[72,400], index: 2, kind: input, shape index: {}]   ;;  %s18623_s3 = inlined_call_operand.vmem [shape: bf16[400,600], index: 3, kind: input, shape index: {}]   ;;  %s18624_s4 = inlined_call_operand.hbm [shape: bf16[600,600], index: 4, kind: input, shape index: {}]   ;;  %s18625_s5 = inlined_call_operand.hbm [shape: bf16[600,600], index: 5, kind: input, shape index: {}]   ;;  %s18626_s6 = inlined_call_operand.hbm [shape: bf16[600,600], index: 6, kind: input, shape index: {}]   ;;  %s18627_s7 = inlined_call_operand.vmem [shape: bf16[72,400], index: 7, kind: input, shape index: {}]   ;;  %s18628_s8 = inlined_call_operand.hbm [shape: bf16[400,600], index: 8, kind: input, shape index: {}]   ;;  %s18629_s9 = inlined_call_operand.hbm [shape: bf16[600,600], index: 9, kind: input, shape index: {}]   ;;  %s18630_s10 = inlined_call_operand.hbm [shape: bf16[600,600], index: 10, kind: input, shape index: {}]   ;;  %s18631_s11 = inlined_call_operand.vmem [shape: bf16[600,1], index: 11, kind: input, shape index: {}]   ;;  %s18632_s12 = inlined_call_operand.vmem [shape: bf16[600,1], index: 12, kind: input, shape index: {}]   ;;  %s18633_s13 = inlined_call_operand.hbm [shape: f32[1,400], index: 13, kind: input, shape index: {}]   ;;  %s18634_s14 = inlined_call_operand.hbm [shape: f32[1,600], index: 14, kind: input, shape index: {}]   ;;  %s18635_s15 = inlined_call_operand.hbm [shape: f32[1,600], index: 15, kind: input, shape index: {}]   ;;  %s18636_s16 = inlined_call_operand.hbm [shape: f32[1,600], index: 16, kind: input, shape index: {}]   ;;  %s18637_s17 = inlined_call_operand.hbm [shape: f32[1,600], index: 17, kind: input, shape index: {}]   ;;  %s18638_s18 = inlined_call_operand.<no memory space> [shape: f32[1,1], index: 18, kind: input, shape index: {}]   ;;  %s18639_s19 = inlined_call_operand.hbm [shape: f32[1,400], index: 19, kind: input, shape index: {}]   ;;  %s18640_s20 = inlined_call_operand.hbm [shape: f32[1,600], index: 20, kind: input, shape index: {}]   ;;  %s18641_s21 = inlined_call_operand.hbm [shape: f32[1,600], index: 21, kind: input, shape index: {}]   ;;  %s18642_s22 = inlined_call_operand.hbm [shape: f32[1,600], index: 22, kind: input, shape index: {}]   ;;  %s18643_s24 = inlined_call_operand.vmem [shape: f32[16,2], index: 24, kind: output, shape index: {}]   ;;  %s18644_s23 = inlined_call_operand.<no memory space> [shape: f32[1,1], index: 23, kind: input, shape index: {}]  }
   0x1   :  { %18653 = sst [smem:[#allocation59_spill]] %s18620_s0  ;;  %v29_v0 = vstv %s18638_s18  ;;  %v31_v1 = vstv %s18644_s23 }
   0x2   :  { %18654 = sst [smem:[#allocation60_spill]] %s18621_s1  ;;  %30 = vst [vmem:[#allocation12] sm:$0x1] %v29_v0  ;;  %32 = vst [vmem:[#allocation13] sm:$0x1] %v31_v1 }
   0x3   :  { %18655 = sst [smem:[#allocation61_spill]] %s18622_s2 }
   0x4   :  { %18656 = sst [smem:[#allocation62_spill]] %s18623_s3 }
   0x5   :  { %18657 = sst [smem:[#allocation63_spill]] %s18624_s4 }
   0x6   :  { %18658 = sst [smem:[#allocation64_spill]] %s18625_s5 }
   0x7   :  { %18659 = sst [smem:[#allocation65_spill]] %s18626_s6 }
   0x8   :  { %18660 = sst [smem:[#allocation66_spill]] %s18627_s7 }
   0x9   :  { %18661 = sst [smem:[#allocation67_spill]] %s18628_s8 }
   0xa   :  { %33 = vsyncpa [#allocation15], 0 }
   0xb   :  { %34 = vsyncpa [#allocation17], 0 }
   0xc   :  { %35 = vsyncpa [#allocation20], 0 }
   0xd   :  { %36 = vsyncpa [#allocation23], 0 }
   0xe   :  { %37 = vsyncpa [#allocation26], 0  ;;  %s16244_s6 = smov [#allocation16]   ;;  %s16245_s29 = smov [#allocation19]  }
   0xf   :  { %s62_s2 = sshll.u32 %s16244_s6, 4  ;;  %s82_s0 = sshll.u32 %s16245_s29, 4  ;;  %s63_s2 = int_to_ptr.vmem [resolvable:$true] %s62_s2  ;;  %s83_s0 = int_to_ptr.vmem [resolvable:$true] %s82_s0 }
  0x10   :  { %s15908_s18 = scalar_lea.hbm %s18634_s14, 80 }
  0x11   :  { %p15909_p0 = scmp.ne.s32.totalorder %s18634_s14, %s15908_s18  ;;  %p15912_p1 = scmp.lt.u32.totalorder %s15908_s18, %s18634_s14 }
  0x13   :  { %p15914_p2 = pnand %p15912_p1, %p15909_p0 }
  0x15   :  { %15917 = shalt.err (!%p15914_p2)
}
  0x16   :  { %s15918_s4 = scalar_lea.vmem %s63_s2, 80  ;;  %s15922_s1 = scalar_lea.vmem %s63_s2, 96 }
  0x17   :  { %p15919_p3 = scmp.ne.s32.totalorder %s63_s2, %s15918_s4  ;;  %p15923_p4 = scmp.lt.s32.totalorder %s63_s2, %s63_s2 }
  0x18   :  { %p15924_p5 = scmp.lt.s32.totalorder %s15922_s1, %s15918_s4 }
  0x1a   :  { %p15925_p6 = por %p15924_p5, %p15923_p4 }
  0x1c   :  { %p15926_p7 = pnand %p15925_p6, %p15919_p3 }
  0x1e   :  { %15929 = shalt.err (!%p15926_p7)
}
  0x1f   :  { %65 = dma.hbm_to_vmem [thread:$0]  %s18634_s14, 80, %s63_s2, [#allocation17]  }
  0x20   :  { %s15930_s6 = scalar_lea.hbm %s18636_s16, 80 }
  0x21   :  { %p15931_p8 = scmp.ne.s32.totalorder %s18636_s16, %s15930_s6  ;;  %p15934_p9 = scmp.lt.u32.totalorder %s15930_s6, %s18636_s16 }
  0x23   :  { %p15936_p10 = pnand %p15934_p9, %p15931_p8 }
  0x25   :  { %15939 = shalt.err (!%p15936_p10)
}
  0x26   :  { %s15940_s3 = scalar_lea.vmem %s83_s0, 80  ;;  %s15944_s25 = scalar_lea.vmem %s83_s0, 96 }
  0x27   :  { %p15941_p11 = scmp.ne.s32.totalorder %s83_s0, %s15940_s3  ;;  %p15945_p12 = scmp.lt.s32.totalorder %s83_s0, %s83_s0 }
  0x28   :  { %p15946_p13 = scmp.lt.s32.totalorder %s15944_s25, %s15940_s3 }
  0x2a   :  { %p15947_p0 = por %p15946_p13, %p15945_p12 }
  0x2c   :  { %p15948_p1 = pnand %p15947_p0, %p15941_p11 }
  0x2e   :  { %15951 = shalt.err (!%p15948_p1)
}
  0x2f   :  { %85 = dma.hbm_to_vmem [thread:$0]  %s18636_s16, 80, %s83_s0, [#allocation20]  }
  0x30   :  { %s16246_s23 = smov [#allocation22]   ;;  %s16247_s4 = smov [#allocation25]  }
  0x31   :  { %s104_s8 = sshll.u32 %s16246_s23, 4  ;;  %s124_s1 = sshll.u32 %s16247_s4, 4  ;;  %s105_s8 = int_to_ptr.vmem [resolvable:$true] %s104_s8  ;;  %s125_s1 = int_to_ptr.vmem [resolvable:$true] %s124_s1 }
  0x32   :  { %s15952_s27 = scalar_lea.hbm %s18639_s19, 64 }
  0x33   :  { %p15953_p2 = scmp.ne.s32.totalorder %s18639_s19, %s15952_s27  ;;  %p15956_p3 = scmp.lt.u32.totalorder %s15952_s27, %s18639_s19 }
  0x35   :  { %p15958_p4 = pnand %p15956_p3, %p15953_p2 }
  0x37   :  { %15961 = shalt.err (!%p15958_p4)
}
  0x38   :  { %s15962_s16 = scalar_lea.vmem %s105_s8, 64  ;;  %p15967_p6 = scmp.lt.s32.totalorder %s105_s8, %s105_s8 }
  0x39   :  { %p15963_p5 = scmp.ne.s32.totalorder %s105_s8, %s15962_s16  ;;  %p15968_p7 = scmp.lt.s32.totalorder %s15962_s16, %s15962_s16 }
  0x3b   :  { %p15969_p8 = por %p15968_p7, %p15967_p6 }
  0x3d   :  { %p15970_p9 = pnand %p15969_p8, %p15963_p5 }
  0x3f   :  { %15973 = shalt.err (!%p15970_p9)
}
  0x40   :  { %107 = dma.hbm_to_vmem [thread:$0]  %s18639_s19, 64, %s105_s8, [#allocation23]  }
  0x41   :  { %s15974_s25 = scalar_lea.hbm %s18641_s21, 80 }
  0x42   :  { %p15975_p10 = scmp.ne.s32.totalorder %s18641_s21, %s15974_s25  ;;  %p15978_p11 = scmp.lt.u32.totalorder %s15974_s25, %s18641_s21 }
  0x44   :  { %p15980_p12 = pnand %p15978_p11, %p15975_p10 }
  0x46   :  { %15983 = shalt.err (!%p15980_p12)
}
  0x47   :  { %s15984_s5 = scalar_lea.vmem %s125_s1, 80  ;;  %s15988_s26 = scalar_lea.vmem %s125_s1, 96 }
  0x48   :  { %p15985_p13 = scmp.ne.s32.totalorder %s125_s1, %s15984_s5  ;;  %p15989_p0 = scmp.lt.s32.totalorder %s125_s1, %s125_s1 }
  0x49   :  { %p15990_p1 = scmp.lt.s32.totalorder %s15988_s26, %s15984_s5 }
  0x4b   :  { %p15991_p2 = por %p15990_p1, %p15989_p0 }
  0x4d   :  { %p15992_p3 = pnand %p15991_p2, %p15985_p13 }
  0x4f   :  { %15995 = shalt.err (!%p15992_p3)
}
  0x50   :  { %127 = dma.hbm_to_vmem [thread:$0]  %s18641_s21, 80, %s125_s1, [#allocation26]  }
  0x51   :  { %s16248_s27 = smov [#allocation14]   ;;  %s16249_s6 = smov [#allocation18]  }
  0x52   :  { %s52_s28 = sshll.u32 %s16248_s27, 4  ;;  %s72_s29 = sshll.u32 %s16249_s6, 4  ;;  %s53_s28 = int_to_ptr.vmem [resolvable:$true] %s52_s28  ;;  %s73_s29 = int_to_ptr.vmem [resolvable:$true] %s72_s29 }
  0x53   :  { %s15996_s0 = scalar_lea.hbm %s18633_s13, 64 }
  0x54   :  { %p15997_p4 = scmp.ne.s32.totalorder %s18633_s13, %s15996_s0  ;;  %p16000_p5 = scmp.lt.u32.totalorder %s15996_s0, %s18633_s13 }
  0x56   :  { %p16002_p6 = pnand %p16000_p5, %p15997_p4 }
  0x58   :  { %16005 = shalt.err (!%p16002_p6)
}
  0x59   :  { %s16006_s21 = scalar_lea.vmem %s53_s28, 64  ;;  %p16011_p8 = scmp.lt.s32.totalorder %s53_s28, %s53_s28 }
  0x5a   :  { %p16007_p7 = scmp.ne.s32.totalorder %s53_s28, %s16006_s21  ;;  %p16012_p9 = scmp.lt.s32.totalorder %s16006_s21, %s16006_s21 }
  0x5c   :  { %p16013_p10 = por %p16012_p9, %p16011_p8 }
  0x5e   :  { %p16014_p11 = pnand %p16013_p10, %p16007_p7 }
  0x60   :  { %16017 = shalt.err (!%p16014_p11)
}
  0x61   :  { %55 = dma.hbm_to_vmem [thread:$0]  %s18633_s13, 64, %s53_s28, [#allocation15]  }
  0x62   :  { %s16018_s4 = scalar_lea.hbm %s18635_s15, 80 }
  0x63   :  { %p16019_p12 = scmp.ne.s32.totalorder %s18635_s15, %s16018_s4  ;;  %p16022_p13 = scmp.lt.u32.totalorder %s16018_s4, %s18635_s15 }
  0x65   :  { %p16024_p0 = pnand %p16022_p13, %p16019_p12 }
  0x67   :  { %16027 = shalt.err (!%p16024_p0)
}
  0x68   :  { %s16028_s27 = scalar_lea.vmem %s73_s29, 80  ;;  %s16032_s6 = scalar_lea.vmem %s73_s29, 96 }
  0x69   :  { %p16029_p1 = scmp.ne.s32.totalorder %s73_s29, %s16028_s27  ;;  %p16033_p2 = scmp.lt.s32.totalorder %s73_s29, %s73_s29 }
  0x6a   :  { %p16034_p3 = scmp.lt.s32.totalorder %s16032_s6, %s16028_s27 }
  0x6c   :  { %p16035_p4 = por %p16034_p3, %p16033_p2 }
  0x6e   :  { %p16036_p5 = pnand %p16035_p4, %p16029_p1 }
  0x70   :  { %16039 = shalt.err (!%p16036_p5)
}
  0x71   :  { %75 = dma.hbm_to_vmem [thread:$0]  %s18635_s15, 80, %s73_s29, [#allocation17]  }
  0x72   :  { %s16250_s7 = smov [#allocation21]   ;;  %s16251_s0 = smov [#allocation24]  }
  0x73   :  { %s92_s16 = sshll.u32 %s16250_s7, 4  ;;  %s114_s30 = sshll.u32 %s16251_s0, 4  ;;  %s93_s16 = int_to_ptr.vmem [resolvable:$true] %s92_s16  ;;  %s115_s30 = int_to_ptr.vmem [resolvable:$true] %s114_s30 }
  0x74   :  { %s16040_s25 = scalar_lea.hbm %s18637_s17, 80 }
  0x75   :  { %p16041_p6 = scmp.ne.s32.totalorder %s18637_s17, %s16040_s25  ;;  %p16044_p7 = scmp.lt.u32.totalorder %s16040_s25, %s18637_s17 }
  0x77   :  { %p16046_p8 = pnand %p16044_p7, %p16041_p6 }
  0x79   :  { %16049 = shalt.err (!%p16046_p8)
}
  0x7a   :  { %s16050_s15 = scalar_lea.vmem %s93_s16, 80  ;;  %s16054_s29 = scalar_lea.vmem %s93_s16, 96 }
  0x7b   :  { %p16051_p9 = scmp.ne.s32.totalorder %s93_s16, %s16050_s15  ;;  %p16055_p10 = scmp.lt.s32.totalorder %s93_s16, %s93_s16 }
  0x7c   :  { %p16056_p11 = scmp.lt.s32.totalorder %s16054_s29, %s16050_s15 }
  0x7e   :  { %p16057_p12 = por %p16056_p11, %p16055_p10 }
  0x80   :  { %p16058_p13 = pnand %p16057_p12, %p16051_p9 }
  0x82   :  { %16061 = shalt.err (!%p16058_p13)
}
  0x83   :  { %95 = dma.hbm_to_vmem [thread:$0]  %s18637_s17, 80, %s93_s16, [#allocation20]  }
  0x84   :  { %s16062_s19 = scalar_lea.hbm %s18640_s20, 80 }
  0x85   :  { %p16063_p0 = scmp.ne.s32.totalorder %s18640_s20, %s16062_s19  ;;  %p16066_p1 = scmp.lt.u32.totalorder %s16062_s19, %s18640_s20 }
  0x87   :  { %p16068_p2 = pnand %p16066_p1, %p16063_p0 }
  0x89   :  { %16071 = shalt.err (!%p16068_p2)
}
  0x8a   :  { %s16072_s28 = scalar_lea.vmem %s115_s30, 80  ;;  %s16076_s7 = scalar_lea.vmem %s115_s30, 96 }
  0x8b   :  { %p16073_p3 = scmp.ne.s32.totalorder %s115_s30, %s16072_s28  ;;  %p16077_p4 = scmp.lt.s32.totalorder %s115_s30, %s115_s30 }
  0x8c   :  { %p16078_p5 = scmp.lt.s32.totalorder %s16076_s7, %s16072_s28 }
  0x8e   :  { %p16079_p6 = por %p16078_p5, %p16077_p4 }
  0x90   :  { %p16080_p7 = pnand %p16079_p6, %p16073_p3 }
  0x92   :  { %16083 = shalt.err (!%p16080_p7)
}
  0x93   :  { %117 = dma.hbm_to_vmem [thread:$0]  %s18640_s20, 80, %s115_s30, [#allocation23]  }
  0x94   :  { %s16252_s0 = smov [#allocation27]   ;;  %s16084_s21 = scalar_lea.hbm %s18642_s22, 80 }
  0x95   :  { %s134_s18 = sshll.u32 %s16252_s0, 4  ;;  %p16085_p8 = scmp.ne.s32.totalorder %s18642_s22, %s16084_s21  ;;  %s135_s18 = int_to_ptr.vmem [resolvable:$true] %s134_s18 }
  0x96   :  { %p16088_p9 = scmp.lt.u32.totalorder %s16084_s21, %s18642_s22 }
  0x98   :  { %p16090_p10 = pnand %p16088_p9, %p16085_p8 }
  0x9a   :  { %16093 = shalt.err (!%p16090_p10)
}
  0x9b   :  { %s16094_s29 = scalar_lea.vmem %s135_s18, 80  ;;  %s16098_s20 = scalar_lea.vmem %s135_s18, 96 }
  0x9c   :  { %p16095_p11 = scmp.ne.s32.totalorder %s135_s18, %s16094_s29  ;;  %p16099_p12 = scmp.lt.s32.totalorder %s135_s18, %s135_s18 }
  0x9d   :  { %p16100_p13 = scmp.lt.s32.totalorder %s16098_s20, %s16094_s29 }
  0x9f   :  { %p16101_p0 = por %p16100_p13, %p16099_p12 }
  0xa1   :  { %p16102_p1 = pnand %p16101_p0, %p16095_p11 }
  0xa3   :  { %16105 = shalt.err (!%p16102_p1)
}
  0xa4   :  { %137 = dma.hbm_to_vmem [thread:$0]  %s18642_s22, 80, %s135_s18, [#allocation26]  }
  0xa5   :  { %16216 = dma.done.wait [#allocation15], 64  }
  0xa6   :  { %16217 = vsyncadd [#allocation15], 4294967232 }
  0xa7   :  { %16218 = dma.done.wait [#allocation17], 160  }
  0xa8   :  { %16219 = vsyncadd [#allocation17], 4294967136 }
  0xa9   :  { %16220 = dma.done.wait [#allocation20], 160  }
  0xaa   :  { %16221 = vsyncadd [#allocation20], 4294967136 }
  0xab   :  { %16222 = dma.done.wait [#allocation23], 144  }
  0xac   :  { %16223 = vsyncadd [#allocation23], 4294967152 }
  0xad   :  { %16224 = dma.done.wait [#allocation26], 160  }
  0xae   :  { %16225 = vsyncadd [#allocation26], 4294967136 }
  0xaf   :  { %s18662_s26 = sld [smem:[#allocation61_spill]] }
  0xb5   :  { %v16522_v2 = vld [vmem:[%s18662_s26] sm:$0xff]  ;;  %v16527_v3 = vld [vmem:[%s18662_s26 + $0x8] sm:$0xff]  ;;  %v16532_v4 = vld [vmem:[%s18662_s26 + $0x10] sm:$0xff] }
  0xb6   :  { %v16537_v5 = vld [vmem:[%s18662_s26 + $0x18] sm:$0xff]  ;;  %v16542_v6 = vld [vmem:[%s18662_s26 + $0x20] sm:$0xff]  ;;  %v16547_v7 = vld [vmem:[%s18662_s26 + $0x28] sm:$0xff] }
  0xb7   :  { %v16552_v8 = vld [vmem:[%s18662_s26 + $0x30] sm:$0xff]  ;;  %v16557_v9 = vld [vmem:[%s18662_s26 + $0x38] sm:$0xff]  ;;  %v16562_v10 = vld [vmem:[%s18662_s26 + $0x40] sm:$0xff] }
  0xb8   :  { %v16567_v11 = vld [vmem:[%s18662_s26 + $0x48] sm:$0xff]  ;;  %v16572_v12 = vld [vmem:[%s18662_s26 + $0x50] sm:$0xff]  ;;  %v16577_v13 = vld [vmem:[%s18662_s26 + $0x58] sm:$0xff] }
  0xb9   :  { %v16582_v14 = vld [vmem:[%s18662_s26 + $0x60] sm:$0xff]  ;;  %v16587_v15 = vld [vmem:[%s18662_s26 + $0x68] sm:$0xff]  ;;  %v16592_v16 = vld [vmem:[%s18662_s26 + $0x70] sm:$0xff] }
  0xba   :  { %v16597_v17 = vld [vmem:[%s18662_s26 + $0x78] sm:$0xff]  ;;  %v16602_v18 = vld [vmem:[%s18662_s26 + $0x80] sm:$0xff]  ;;  %v16607_v19 = vld [vmem:[%s18662_s26 + $0x88] sm:$0xff] }
  0xbb   :  { %247 = vsyncadd [#allocation11], 2304  ;;  %s18663_s18 = sld [smem:[#allocation62_spill]] }
  0xc1   :  { %v266_v20 = vld [vmem:[%s18663_s18] sm:$0xf]  ;;  %v268_v21 = vld [vmem:[%s18663_s18 + $0x14] sm:$0xf]  ;;  %v270_v22 = vld [vmem:[%s18663_s18 + $0x4] sm:$0xf] }
  0xc2   :  { %267 = vst [vmem:[#allocation3] sm:$0xf] %v266_v20  ;;  %269 = vst [vmem:[#allocation3 + $0x4] sm:$0xf] %v268_v21  ;;  %v272_v23 = vld [vmem:[%s18663_s18 + $0x18] sm:$0xf] }
  0xc3   :  { %v274_v24 = vld [vmem:[%s18663_s18 + $0x8] sm:$0xf]  ;;  %271 = vst [vmem:[#allocation3 + $0x8] sm:$0xf] %v270_v22  ;;  %273 = vst [vmem:[#allocation3 + $0xc] sm:$0xf] %v272_v23 }
  0xc4   :  { %275 = vst [vmem:[#allocation3 + $0x10] sm:$0xf] %v274_v24  ;;  %v276_v25 = vld [vmem:[%s18663_s18 + $0x1c] sm:$0xf]  ;;  %v278_v26 = vld [vmem:[%s18663_s18 + $0xc] sm:$0xf] }
  0xc5   :  { %v280_v27 = vld [vmem:[%s18663_s18 + $0x20] sm:$0xf]  ;;  %277 = vst [vmem:[#allocation3 + $0x14] sm:$0xf] %v276_v25  ;;  %279 = vst [vmem:[#allocation3 + $0x18] sm:$0xf] %v278_v26 }
  0xc6   :  { %281 = vst [vmem:[#allocation3 + $0x1c] sm:$0xf] %v280_v27  ;;  %v282_v28 = vld [vmem:[%s18663_s18 + $0x10] sm:$0xf]  ;;  %v284_v29 = vld [vmem:[%s18663_s18 + $0x24] sm:$0xff]   ;;  %v324_v47 = vld [vmem:[%s18663_s18 + $0x74] sm:$0xff]  }
  0xc7   :  { %v288_v30 = vld [vmem:[%s18663_s18 + $0x3c] sm:$0xf]  ;;  %283 = vst [vmem:[#allocation3 + $0x20] sm:$0xf] %v282_v28  ;;  %285 = vst [vmem:[#allocation3 + $0x24] sm:$0xff] %v284_v29   ;;  %v304_v38 = vld [vmem:[%s18663_s18 + $0x4c] sm:$0xff]  }
  0xc8   :  { %289 = vst [vmem:[#allocation3 + $0x2c] sm:$0xf] %v288_v30  ;;  %v290_v31 = vld [vmem:[%s18663_s18 + $0x2c] sm:$0xf]  ;;  %v292_v32 = vld [vmem:[%s18663_s18 + $0x40] sm:$0xf] }
  0xc9   :  { %v294_v33 = vld [vmem:[%s18663_s18 + $0x30] sm:$0xf]  ;;  %291 = vst [vmem:[#allocation3 + $0x30] sm:$0xf] %v290_v31  ;;  %293 = vst [vmem:[#allocation3 + $0x34] sm:$0xf] %v292_v32 }
  0xca   :  { %295 = vst [vmem:[#allocation3 + $0x38] sm:$0xf] %v294_v33  ;;  %v296_v34 = vld [vmem:[%s18663_s18 + $0x44] sm:$0xf]  ;;  %v298_v35 = vld [vmem:[%s18663_s18 + $0x34] sm:$0xf] }
  0xcb   :  { %v300_v36 = vld [vmem:[%s18663_s18 + $0x48] sm:$0xf]  ;;  %297 = vst [vmem:[#allocation3 + $0x3c] sm:$0xf] %v296_v34  ;;  %299 = vst [vmem:[#allocation3 + $0x40] sm:$0xf] %v298_v35 }
  0xcc   :  { %301 = vst [vmem:[#allocation3 + $0x44] sm:$0xf] %v300_v36  ;;  %v302_v37 = vld [vmem:[%s18663_s18 + $0x38] sm:$0xf]  ;;  %v308_v39 = vld [vmem:[%s18663_s18 + $0x64] sm:$0xf] }
  0xcd   :  { %303 = vst [vmem:[#allocation3 + $0x48] sm:$0xf] %v302_v37  ;;  %305 = vst [vmem:[#allocation3 + $0x4c] sm:$0xff] %v304_v38   ;;  %v310_v40 = vld [vmem:[%s18663_s18 + $0x54] sm:$0xf]  ;;  %v344_v56 = vld [vmem:[%s18663_s18 + $0x9c] sm:$0xff]  }
  0xce   :  { %309 = vst [vmem:[#allocation3 + $0x54] sm:$0xf] %v308_v39  ;;  %v312_v41 = vld [vmem:[%s18663_s18 + $0x68] sm:$0xf]  ;;  %v314_v42 = vld [vmem:[%s18663_s18 + $0x58] sm:$0xf] }
  0xcf   :  { %311 = vst [vmem:[#allocation3 + $0x58] sm:$0xf] %v310_v40  ;;  %313 = vst [vmem:[#allocation3 + $0x5c] sm:$0xf] %v312_v41  ;;  %v316_v43 = vld [vmem:[%s18663_s18 + $0x6c] sm:$0xf] }
  0xd0   :  { %315 = vst [vmem:[#allocation3 + $0x60] sm:$0xf] %v314_v42  ;;  %v318_v44 = vld [vmem:[%s18663_s18 + $0x5c] sm:$0xf]  ;;  %v320_v45 = vld [vmem:[%s18663_s18 + $0x70] sm:$0xf] }
  0xd1   :  { %317 = vst [vmem:[#allocation3 + $0x64] sm:$0xf] %v316_v43  ;;  %319 = vst [vmem:[#allocation3 + $0x68] sm:$0xf] %v318_v44  ;;  %v322_v46 = vld [vmem:[%s18663_s18 + $0x60] sm:$0xf] }
  0xd2   :  { %321 = vst [vmem:[#allocation3 + $0x6c] sm:$0xf] %v320_v45  ;;  %v328_v48 = vld [vmem:[%s18663_s18 + $0x8c] sm:$0xf]  ;;  %323 = vst [vmem:[#allocation3 + $0x70] sm:$0xf] %v322_v46 }
  0xd3   :  { %325 = vst [vmem:[#allocation3 + $0x74] sm:$0xff] %v324_v47   ;;  %329 = vst [vmem:[#allocation3 + $0x7c] sm:$0xf] %v328_v48  ;;  %v330_v49 = vld [vmem:[%s18663_s18 + $0x7c] sm:$0xf]  ;;  %v364_v1 = vld [vmem:[%s18663_s18 + $0xc4] sm:$0xff]  }
  0xd4   :  { %v332_v50 = vld [vmem:[%s18663_s18 + $0x90] sm:$0xf]  ;;  %v334_v51 = vld [vmem:[%s18663_s18 + $0x80] sm:$0xf]  ;;  %331 = vst [vmem:[#allocation3 + $0x80] sm:$0xf] %v330_v49 }
  0xd5   :  { %333 = vst [vmem:[#allocation3 + $0x84] sm:$0xf] %v332_v50  ;;  %335 = vst [vmem:[#allocation3 + $0x88] sm:$0xf] %v334_v51  ;;  %v336_v52 = vld [vmem:[%s18663_s18 + $0x94] sm:$0xf] }
  0xd6   :  { %v338_v53 = vld [vmem:[%s18663_s18 + $0x84] sm:$0xf]  ;;  %v340_v54 = vld [vmem:[%s18663_s18 + $0x98] sm:$0xf]  ;;  %337 = vst [vmem:[#allocation3 + $0x8c] sm:$0xf] %v336_v52 }
  0xd7   :  { %339 = vst [vmem:[#allocation3 + $0x90] sm:$0xf] %v338_v53  ;;  %341 = vst [vmem:[#allocation3 + $0x94] sm:$0xf] %v340_v54  ;;  %v342_v55 = vld [vmem:[%s18663_s18 + $0x88] sm:$0xf] }
  0xd8   :  { %v348_v57 = vld [vmem:[%s18663_s18 + $0xb4] sm:$0xf]  ;;  %343 = vst [vmem:[#allocation3 + $0x98] sm:$0xf] %v342_v55  ;;  %345 = vst [vmem:[#allocation3 + $0x9c] sm:$0xff] %v344_v56   ;;  %v384_v28 = vld [vmem:[%s18663_s18 + $0xec] sm:$0xff]  }
  0xd9   :  { %349 = vst [vmem:[#allocation3 + $0xa4] sm:$0xf] %v348_v57  ;;  %v350_v58 = vld [vmem:[%s18663_s18 + $0xa4] sm:$0xf]  ;;  %v352_v59 = vld [vmem:[%s18663_s18 + $0xb8] sm:$0xf] }
  0xda   :  { %v354_v60 = vld [vmem:[%s18663_s18 + $0xa8] sm:$0xf]  ;;  %351 = vst [vmem:[#allocation3 + $0xa8] sm:$0xf] %v350_v58  ;;  %353 = vst [vmem:[#allocation3 + $0xac] sm:$0xf] %v352_v59 }
  0xdb   :  { %355 = vst [vmem:[#allocation3 + $0xb0] sm:$0xf] %v354_v60  ;;  %v356_v61 = vld [vmem:[%s18663_s18 + $0xbc] sm:$0xf]  ;;  %v358_v62 = vld [vmem:[%s18663_s18 + $0xac] sm:$0xf] }
  0xdc   :  { %v360_v63 = vld [vmem:[%s18663_s18 + $0xc0] sm:$0xf]  ;;  %357 = vst [vmem:[#allocation3 + $0xb4] sm:$0xf] %v356_v61  ;;  %359 = vst [vmem:[#allocation3 + $0xb8] sm:$0xf] %v358_v62 }
  0xdd   :  { %361 = vst [vmem:[#allocation3 + $0xbc] sm:$0xf] %v360_v63  ;;  %v362_v0 = vld [vmem:[%s18663_s18 + $0xb0] sm:$0xf]  ;;  %v368_v20 = vld [vmem:[%s18663_s18 + $0xdc] sm:$0xf] }
  0xde   :  { %363 = vst [vmem:[#allocation3 + $0xc0] sm:$0xf] %v362_v0  ;;  %365 = vst [vmem:[#allocation3 + $0xc4] sm:$0xff] %v364_v1   ;;  %v370_v21 = vld [vmem:[%s18663_s18 + $0xcc] sm:$0xf]  ;;  %v404_v37 = vld [vmem:[%s18663_s18 + $0x114] sm:$0xff]  }
  0xdf   :  { %369 = vst [vmem:[#allocation3 + $0xcc] sm:$0xf] %v368_v20  ;;  %v372_v22 = vld [vmem:[%s18663_s18 + $0xe0] sm:$0xf]  ;;  %v374_v23 = vld [vmem:[%s18663_s18 + $0xd0] sm:$0xf] }
  0xe0   :  { %371 = vst [vmem:[#allocation3 + $0xd0] sm:$0xf] %v370_v21  ;;  %373 = vst [vmem:[#allocation3 + $0xd4] sm:$0xf] %v372_v22  ;;  %v376_v24 = vld [vmem:[%s18663_s18 + $0xe4] sm:$0xf] }
  0xe1   :  { %375 = vst [vmem:[#allocation3 + $0xd8] sm:$0xf] %v374_v23  ;;  %v378_v25 = vld [vmem:[%s18663_s18 + $0xd4] sm:$0xf]  ;;  %v380_v26 = vld [vmem:[%s18663_s18 + $0xe8] sm:$0xf] }
  0xe2   :  { %377 = vst [vmem:[#allocation3 + $0xdc] sm:$0xf] %v376_v24  ;;  %379 = vst [vmem:[#allocation3 + $0xe0] sm:$0xf] %v378_v25  ;;  %v382_v27 = vld [vmem:[%s18663_s18 + $0xd8] sm:$0xf] }
  0xe3   :  { %381 = vst [vmem:[#allocation3 + $0xe4] sm:$0xf] %v380_v26  ;;  %v388_v29 = vld [vmem:[%s18663_s18 + $0x104] sm:$0xf]  ;;  %383 = vst [vmem:[#allocation3 + $0xe8] sm:$0xf] %v382_v27 }
  0xe4   :  { %385 = vst [vmem:[#allocation3 + $0xec] sm:$0xff] %v384_v28   ;;  %389 = vst [vmem:[#allocation3 + $0xf4] sm:$0xf] %v388_v29  ;;  %v390_v30 = vld [vmem:[%s18663_s18 + $0xf4] sm:$0xf]  ;;  %v424_v46 = vld [vmem:[%s18663_s18 + $0x13c] sm:$0xff]  }
  0xe5   :  { %v392_v31 = vld [vmem:[%s18663_s18 + $0x108] sm:$0xf]  ;;  %v394_v32 = vld [vmem:[%s18663_s18 + $0xf8] sm:$0xf]  ;;  %391 = vst [vmem:[#allocation3 + $0xf8] sm:$0xf] %v390_v30 }
  0xe6   :  { %393 = vst [vmem:[#allocation3 + $0xfc] sm:$0xf] %v392_v31  ;;  %395 = vst [vmem:[#allocation3 + $0x100] sm:$0xf] %v394_v32  ;;  %v396_v33 = vld [vmem:[%s18663_s18 + $0x10c] sm:$0xf] }
  0xe7   :  { %v398_v34 = vld [vmem:[%s18663_s18 + $0xfc] sm:$0xf]  ;;  %v400_v35 = vld [vmem:[%s18663_s18 + $0x110] sm:$0xf]  ;;  %397 = vst [vmem:[#allocation3 + $0x104] sm:$0xf] %v396_v33 }
  0xe8   :  { %399 = vst [vmem:[#allocation3 + $0x108] sm:$0xf] %v398_v34  ;;  %401 = vst [vmem:[#allocation3 + $0x10c] sm:$0xf] %v400_v35  ;;  %v402_v36 = vld [vmem:[%s18663_s18 + $0x100] sm:$0xf] }
  0xe9   :  { %v408_v38 = vld [vmem:[%s18663_s18 + $0x12c] sm:$0xf]  ;;  %403 = vst [vmem:[#allocation3 + $0x110] sm:$0xf] %v402_v36  ;;  %405 = vst [vmem:[#allocation3 + $0x114] sm:$0xff] %v404_v37   ;;  %v444_v55 = vld [vmem:[%s18663_s18 + $0x164] sm:$0xff]  }
  0xea   :  { %409 = vst [vmem:[#allocation3 + $0x11c] sm:$0xf] %v408_v38  ;;  %v410_v39 = vld [vmem:[%s18663_s18 + $0x11c] sm:$0xf]  ;;  %v412_v40 = vld [vmem:[%s18663_s18 + $0x130] sm:$0xf] }
  0xeb   :  { %v414_v41 = vld [vmem:[%s18663_s18 + $0x120] sm:$0xf]  ;;  %411 = vst [vmem:[#allocation3 + $0x120] sm:$0xf] %v410_v39  ;;  %413 = vst [vmem:[#allocation3 + $0x124] sm:$0xf] %v412_v40 }
  0xec   :  { %415 = vst [vmem:[#allocation3 + $0x128] sm:$0xf] %v414_v41  ;;  %v416_v42 = vld [vmem:[%s18663_s18 + $0x134] sm:$0xf]  ;;  %v418_v43 = vld [vmem:[%s18663_s18 + $0x124] sm:$0xf] }
  0xed   :  { %v420_v44 = vld [vmem:[%s18663_s18 + $0x138] sm:$0xf]  ;;  %417 = vst [vmem:[#allocation3 + $0x12c] sm:$0xf] %v416_v42  ;;  %419 = vst [vmem:[#allocation3 + $0x130] sm:$0xf] %v418_v43 }
  0xee   :  { %421 = vst [vmem:[#allocation3 + $0x134] sm:$0xf] %v420_v44  ;;  %v422_v45 = vld [vmem:[%s18663_s18 + $0x128] sm:$0xf]  ;;  %v428_v47 = vld [vmem:[%s18663_s18 + $0x154] sm:$0xf] }
  0xef   :  { %423 = vst [vmem:[#allocation3 + $0x138] sm:$0xf] %v422_v45  ;;  %425 = vst [vmem:[#allocation3 + $0x13c] sm:$0xff] %v424_v46   ;;  %v430_v48 = vld [vmem:[%s18663_s18 + $0x144] sm:$0xf]  ;;  %v464_v0 = vld [vmem:[%s18663_s18 + $0x18c] sm:$0xff]  }
  0xf0   :  { %429 = vst [vmem:[#allocation3 + $0x144] sm:$0xf] %v428_v47  ;;  %v432_v49 = vld [vmem:[%s18663_s18 + $0x158] sm:$0xf]  ;;  %v434_v50 = vld [vmem:[%s18663_s18 + $0x148] sm:$0xf] }
  0xf1   :  { %431 = vst [vmem:[#allocation3 + $0x148] sm:$0xf] %v430_v48  ;;  %433 = vst [vmem:[#allocation3 + $0x14c] sm:$0xf] %v432_v49  ;;  %v436_v51 = vld [vmem:[%s18663_s18 + $0x15c] sm:$0xf] }
  0xf2   :  { %435 = vst [vmem:[#allocation3 + $0x150] sm:$0xf] %v434_v50  ;;  %v438_v52 = vld [vmem:[%s18663_s18 + $0x14c] sm:$0xf]  ;;  %v440_v53 = vld [vmem:[%s18663_s18 + $0x160] sm:$0xf] }
  0xf3   :  { %437 = vst [vmem:[#allocation3 + $0x154] sm:$0xf] %v436_v51  ;;  %439 = vst [vmem:[#allocation3 + $0x158] sm:$0xf] %v438_v52  ;;  %v442_v54 = vld [vmem:[%s18663_s18 + $0x150] sm:$0xf] }
  0xf4   :  { %441 = vst [vmem:[#allocation3 + $0x15c] sm:$0xf] %v440_v53  ;;  %v448_v56 = vld [vmem:[%s18663_s18 + $0x17c] sm:$0xf]  ;;  %443 = vst [vmem:[#allocation3 + $0x160] sm:$0xf] %v442_v54 }
  0xf5   :  { %445 = vst [vmem:[#allocation3 + $0x164] sm:$0xff] %v444_v55   ;;  %449 = vst [vmem:[#allocation3 + $0x16c] sm:$0xf] %v448_v56  ;;  %v450_v57 = vld [vmem:[%s18663_s18 + $0x16c] sm:$0xf]  ;;  %v484_v27 = vld [vmem:[%s18663_s18 + $0x1b4] sm:$0xff]  }
  0xf6   :  { %v452_v58 = vld [vmem:[%s18663_s18 + $0x180] sm:$0xf]  ;;  %v454_v59 = vld [vmem:[%s18663_s18 + $0x170] sm:$0xf]  ;;  %451 = vst [vmem:[#allocation3 + $0x170] sm:$0xf] %v450_v57 }
  0xf7   :  { %453 = vst [vmem:[#allocation3 + $0x174] sm:$0xf] %v452_v58  ;;  %455 = vst [vmem:[#allocation3 + $0x178] sm:$0xf] %v454_v59  ;;  %v456_v60 = vld [vmem:[%s18663_s18 + $0x184] sm:$0xf] }
  0xf8   :  { %v458_v61 = vld [vmem:[%s18663_s18 + $0x174] sm:$0xf]  ;;  %v460_v62 = vld [vmem:[%s18663_s18 + $0x188] sm:$0xf]  ;;  %457 = vst [vmem:[#allocation3 + $0x17c] sm:$0xf] %v456_v60 }
  0xf9   :  { %459 = vst [vmem:[#allocation3 + $0x180] sm:$0xf] %v458_v61  ;;  %461 = vst [vmem:[#allocation3 + $0x184] sm:$0xf] %v460_v62  ;;  %v462_v63 = vld [vmem:[%s18663_s18 + $0x178] sm:$0xf] }
  0xfa   :  { %v468_v1 = vld [vmem:[%s18663_s18 + $0x1a4] sm:$0xf]  ;;  %463 = vst [vmem:[#allocation3 + $0x188] sm:$0xf] %v462_v63  ;;  %465 = vst [vmem:[#allocation3 + $0x18c] sm:$0xff] %v464_v0   ;;  %v504_v36 = vld [vmem:[%s18663_s18 + $0x1dc] sm:$0xff]  }
  0xfb   :  { %469 = vst [vmem:[#allocation3 + $0x194] sm:$0xf] %v468_v1  ;;  %v470_v20 = vld [vmem:[%s18663_s18 + $0x194] sm:$0xf]  ;;  %v472_v21 = vld [vmem:[%s18663_s18 + $0x1a8] sm:$0xf] }
  0xfc   :  { %v474_v22 = vld [vmem:[%s18663_s18 + $0x198] sm:$0xf]  ;;  %471 = vst [vmem:[#allocation3 + $0x198] sm:$0xf] %v470_v20  ;;  %473 = vst [vmem:[#allocation3 + $0x19c] sm:$0xf] %v472_v21 }
  0xfd   :  { %475 = vst [vmem:[#allocation3 + $0x1a0] sm:$0xf] %v474_v22  ;;  %v476_v23 = vld [vmem:[%s18663_s18 + $0x1ac] sm:$0xf]  ;;  %v478_v24 = vld [vmem:[%s18663_s18 + $0x19c] sm:$0xf] }
  0xfe   :  { %v480_v25 = vld [vmem:[%s18663_s18 + $0x1b0] sm:$0xf]  ;;  %477 = vst [vmem:[#allocation3 + $0x1a4] sm:$0xf] %v476_v23  ;;  %479 = vst [vmem:[#allocation3 + $0x1a8] sm:$0xf] %v478_v24 }
  0xff   :  { %481 = vst [vmem:[#allocation3 + $0x1ac] sm:$0xf] %v480_v25  ;;  %v482_v26 = vld [vmem:[%s18663_s18 + $0x1a0] sm:$0xf]  ;;  %v488_v28 = vld [vmem:[%s18663_s18 + $0x1cc] sm:$0xf] }
 0x100   :  { %483 = vst [vmem:[#allocation3 + $0x1b0] sm:$0xf] %v482_v26  ;;  %485 = vst [vmem:[#allocation3 + $0x1b4] sm:$0xff] %v484_v27   ;;  %v490_v29 = vld [vmem:[%s18663_s18 + $0x1bc] sm:$0xf]  ;;  %v524_v45 = vld [vmem:[%s18663_s18 + $0x204] sm:$0xff]  }
 0x101   :  { %489 = vst [vmem:[#allocation3 + $0x1bc] sm:$0xf] %v488_v28  ;;  %v492_v30 = vld [vmem:[%s18663_s18 + $0x1d0] sm:$0xf]  ;;  %v494_v31 = vld [vmem:[%s18663_s18 + $0x1c0] sm:$0xf] }
 0x102   :  { %491 = vst [vmem:[#allocation3 + $0x1c0] sm:$0xf] %v490_v29  ;;  %493 = vst [vmem:[#allocation3 + $0x1c4] sm:$0xf] %v492_v30  ;;  %v496_v32 = vld [vmem:[%s18663_s18 + $0x1d4] sm:$0xf] }
 0x103   :  { %495 = vst [vmem:[#allocation3 + $0x1c8] sm:$0xf] %v494_v31  ;;  %v498_v33 = vld [vmem:[%s18663_s18 + $0x1c4] sm:$0xf]  ;;  %v500_v34 = vld [vmem:[%s18663_s18 + $0x1d8] sm:$0xf] }
 0x104   :  { %497 = vst [vmem:[#allocation3 + $0x1cc] sm:$0xf] %v496_v32  ;;  %499 = vst [vmem:[#allocation3 + $0x1d0] sm:$0xf] %v498_v33  ;;  %v502_v35 = vld [vmem:[%s18663_s18 + $0x1c8] sm:$0xf] }
 0x105   :  { %501 = vst [vmem:[#allocation3 + $0x1d4] sm:$0xf] %v500_v34  ;;  %v508_v37 = vld [vmem:[%s18663_s18 + $0x1f4] sm:$0xf]  ;;  %503 = vst [vmem:[#allocation3 + $0x1d8] sm:$0xf] %v502_v35 }
 0x106   :  { %505 = vst [vmem:[#allocation3 + $0x1dc] sm:$0xff] %v504_v36   ;;  %509 = vst [vmem:[#allocation3 + $0x1e4] sm:$0xf] %v508_v37  ;;  %v510_v38 = vld [vmem:[%s18663_s18 + $0x1e4] sm:$0xf]  ;;  %v544_v54 = vld [vmem:[%s18663_s18 + $0x22c] sm:$0xff]  }
 0x107   :  { %v512_v39 = vld [vmem:[%s18663_s18 + $0x1f8] sm:$0xf]  ;;  %v514_v40 = vld [vmem:[%s18663_s18 + $0x1e8] sm:$0xf]  ;;  %511 = vst [vmem:[#allocation3 + $0x1e8] sm:$0xf] %v510_v38 }
 0x108   :  { %513 = vst [vmem:[#allocation3 + $0x1ec] sm:$0xf] %v512_v39  ;;  %515 = vst [vmem:[#allocation3 + $0x1f0] sm:$0xf] %v514_v40  ;;  %v516_v41 = vld [vmem:[%s18663_s18 + $0x1fc] sm:$0xf] }
 0x109   :  { %v518_v42 = vld [vmem:[%s18663_s18 + $0x1ec] sm:$0xf]  ;;  %v520_v43 = vld [vmem:[%s18663_s18 + $0x200] sm:$0xf]  ;;  %517 = vst [vmem:[#allocation3 + $0x1f4] sm:$0xf] %v516_v41 }
 0x10a   :  { %519 = vst [vmem:[#allocation3 + $0x1f8] sm:$0xf] %v518_v42  ;;  %521 = vst [vmem:[#allocation3 + $0x1fc] sm:$0xf] %v520_v43  ;;  %v522_v44 = vld [vmem:[%s18663_s18 + $0x1f0] sm:$0xf] }
 0x10b   :  { %v528_v46 = vld [vmem:[%s18663_s18 + $0x21c] sm:$0xf]  ;;  %523 = vst [vmem:[#allocation3 + $0x200] sm:$0xf] %v522_v44  ;;  %525 = vst [vmem:[#allocation3 + $0x204] sm:$0xff] %v524_v45   ;;  %v564_v63 = vld [vmem:[%s18663_s18 + $0x254] sm:$0xff]  }
 0x10c   :  { %529 = vst [vmem:[#allocation3 + $0x20c] sm:$0xf] %v528_v46  ;;  %v530_v47 = vld [vmem:[%s18663_s18 + $0x20c] sm:$0xf]  ;;  %v532_v48 = vld [vmem:[%s18663_s18 + $0x220] sm:$0xf] }
 0x10d   :  { %v534_v49 = vld [vmem:[%s18663_s18 + $0x210] sm:$0xf]  ;;  %531 = vst [vmem:[#allocation3 + $0x210] sm:$0xf] %v530_v47  ;;  %533 = vst [vmem:[#allocation3 + $0x214] sm:$0xf] %v532_v48 }
 0x10e   :  { %535 = vst [vmem:[#allocation3 + $0x218] sm:$0xf] %v534_v49  ;;  %v536_v50 = vld [vmem:[%s18663_s18 + $0x224] sm:$0xf]  ;;  %v538_v51 = vld [vmem:[%s18663_s18 + $0x214] sm:$0xf] }
 0x10f   :  { %v540_v52 = vld [vmem:[%s18663_s18 + $0x228] sm:$0xf]  ;;  %537 = vst [vmem:[#allocation3 + $0x21c] sm:$0xf] %v536_v50  ;;  %539 = vst [vmem:[#allocation3 + $0x220] sm:$0xf] %v538_v51 }
 0x110   :  { %541 = vst [vmem:[#allocation3 + $0x224] sm:$0xf] %v540_v52  ;;  %v542_v53 = vld [vmem:[%s18663_s18 + $0x218] sm:$0xf]  ;;  %v548_v55 = vld [vmem:[%s18663_s18 + $0x244] sm:$0xf] }
 0x111   :  { %543 = vst [vmem:[#allocation3 + $0x228] sm:$0xf] %v542_v53  ;;  %545 = vst [vmem:[#allocation3 + $0x22c] sm:$0xff] %v544_v54   ;;  %v550_v56 = vld [vmem:[%s18663_s18 + $0x234] sm:$0xf]  ;;  %v584_v26 = vld [vmem:[%s18663_s18 + $0x27c] sm:$0xff]  }
 0x112   :  { %549 = vst [vmem:[#allocation3 + $0x234] sm:$0xf] %v548_v55  ;;  %v552_v57 = vld [vmem:[%s18663_s18 + $0x248] sm:$0xf]  ;;  %v554_v58 = vld [vmem:[%s18663_s18 + $0x238] sm:$0xf] }
 0x113   :  { %551 = vst [vmem:[#allocation3 + $0x238] sm:$0xf] %v550_v56  ;;  %553 = vst [vmem:[#allocation3 + $0x23c] sm:$0xf] %v552_v57  ;;  %v556_v59 = vld [vmem:[%s18663_s18 + $0x24c] sm:$0xf] }
 0x114   :  { %555 = vst [vmem:[#allocation3 + $0x240] sm:$0xf] %v554_v58  ;;  %v558_v60 = vld [vmem:[%s18663_s18 + $0x23c] sm:$0xf]  ;;  %v560_v61 = vld [vmem:[%s18663_s18 + $0x250] sm:$0xf] }
 0x115   :  { %557 = vst [vmem:[#allocation3 + $0x244] sm:$0xf] %v556_v59  ;;  %559 = vst [vmem:[#allocation3 + $0x248] sm:$0xf] %v558_v60  ;;  %v562_v62 = vld [vmem:[%s18663_s18 + $0x240] sm:$0xf] }
 0x116   :  { %561 = vst [vmem:[#allocation3 + $0x24c] sm:$0xf] %v560_v61  ;;  %v568_v0 = vld [vmem:[%s18663_s18 + $0x26c] sm:$0xf]  ;;  %563 = vst [vmem:[#allocation3 + $0x250] sm:$0xf] %v562_v62 }
 0x117   :  { %565 = vst [vmem:[#allocation3 + $0x254] sm:$0xff] %v564_v63   ;;  %569 = vst [vmem:[#allocation3 + $0x25c] sm:$0xf] %v568_v0  ;;  %v570_v1 = vld [vmem:[%s18663_s18 + $0x25c] sm:$0xf]  ;;  %v604_v35 = vld [vmem:[%s18663_s18 + $0x2a4] sm:$0xff]  }
 0x118   :  { %v572_v20 = vld [vmem:[%s18663_s18 + $0x270] sm:$0xf]  ;;  %v574_v21 = vld [vmem:[%s18663_s18 + $0x260] sm:$0xf]  ;;  %571 = vst [vmem:[#allocation3 + $0x260] sm:$0xf] %v570_v1 }
 0x119   :  { %573 = vst [vmem:[#allocation3 + $0x264] sm:$0xf] %v572_v20  ;;  %575 = vst [vmem:[#allocation3 + $0x268] sm:$0xf] %v574_v21  ;;  %v576_v22 = vld [vmem:[%s18663_s18 + $0x274] sm:$0xf] }
 0x11a   :  { %v578_v23 = vld [vmem:[%s18663_s18 + $0x264] sm:$0xf]  ;;  %v580_v24 = vld [vmem:[%s18663_s18 + $0x278] sm:$0xf]  ;;  %577 = vst [vmem:[#allocation3 + $0x26c] sm:$0xf] %v576_v22 }
 0x11b   :  { %579 = vst [vmem:[#allocation3 + $0x270] sm:$0xf] %v578_v23  ;;  %581 = vst [vmem:[#allocation3 + $0x274] sm:$0xf] %v580_v24  ;;  %v582_v25 = vld [vmem:[%s18663_s18 + $0x268] sm:$0xf] }
 0x11c   :  { %v588_v27 = vld [vmem:[%s18663_s18 + $0x294] sm:$0xf]  ;;  %583 = vst [vmem:[#allocation3 + $0x278] sm:$0xf] %v582_v25  ;;  %585 = vst [vmem:[#allocation3 + $0x27c] sm:$0xff] %v584_v26   ;;  %v624_v44 = vld [vmem:[%s18663_s18 + $0x2cc] sm:$0xff]  }
 0x11d   :  { %589 = vst [vmem:[#allocation3 + $0x284] sm:$0xf] %v588_v27  ;;  %v590_v28 = vld [vmem:[%s18663_s18 + $0x284] sm:$0xf]  ;;  %v592_v29 = vld [vmem:[%s18663_s18 + $0x298] sm:$0xf] }
 0x11e   :  { %v594_v30 = vld [vmem:[%s18663_s18 + $0x288] sm:$0xf]  ;;  %591 = vst [vmem:[#allocation3 + $0x288] sm:$0xf] %v590_v28  ;;  %593 = vst [vmem:[#allocation3 + $0x28c] sm:$0xf] %v592_v29 }
 0x11f   :  { %595 = vst [vmem:[#allocation3 + $0x290] sm:$0xf] %v594_v30  ;;  %v596_v31 = vld [vmem:[%s18663_s18 + $0x29c] sm:$0xf]  ;;  %v598_v32 = vld [vmem:[%s18663_s18 + $0x28c] sm:$0xf] }
 0x120   :  { %v600_v33 = vld [vmem:[%s18663_s18 + $0x2a0] sm:$0xf]  ;;  %597 = vst [vmem:[#allocation3 + $0x294] sm:$0xf] %v596_v31  ;;  %599 = vst [vmem:[#allocation3 + $0x298] sm:$0xf] %v598_v32 }
 0x121   :  { %601 = vst [vmem:[#allocation3 + $0x29c] sm:$0xf] %v600_v33  ;;  %v602_v34 = vld [vmem:[%s18663_s18 + $0x290] sm:$0xf]  ;;  %v608_v36 = vld [vmem:[%s18663_s18 + $0x2bc] sm:$0xf] }
 0x122   :  { %603 = vst [vmem:[#allocation3 + $0x2a0] sm:$0xf] %v602_v34  ;;  %605 = vst [vmem:[#allocation3 + $0x2a4] sm:$0xff] %v604_v35   ;;  %v610_v37 = vld [vmem:[%s18663_s18 + $0x2ac] sm:$0xf]  ;;  %v644_v53 = vld [vmem:[%s18663_s18 + $0x2f4] sm:$0xff]  }
 0x123   :  { %609 = vst [vmem:[#allocation3 + $0x2ac] sm:$0xf] %v608_v36  ;;  %v612_v38 = vld [vmem:[%s18663_s18 + $0x2c0] sm:$0xf]  ;;  %v614_v39 = vld [vmem:[%s18663_s18 + $0x2b0] sm:$0xf] }
 0x124   :  { %611 = vst [vmem:[#allocation3 + $0x2b0] sm:$0xf] %v610_v37  ;;  %613 = vst [vmem:[#allocation3 + $0x2b4] sm:$0xf] %v612_v38  ;;  %v616_v40 = vld [vmem:[%s18663_s18 + $0x2c4] sm:$0xf] }
 0x125   :  { %615 = vst [vmem:[#allocation3 + $0x2b8] sm:$0xf] %v614_v39  ;;  %v618_v41 = vld [vmem:[%s18663_s18 + $0x2b4] sm:$0xf]  ;;  %v620_v42 = vld [vmem:[%s18663_s18 + $0x2c8] sm:$0xf] }
 0x126   :  { %617 = vst [vmem:[#allocation3 + $0x2bc] sm:$0xf] %v616_v40  ;;  %619 = vst [vmem:[#allocation3 + $0x2c0] sm:$0xf] %v618_v41  ;;  %v622_v43 = vld [vmem:[%s18663_s18 + $0x2b8] sm:$0xf] }
 0x127   :  { %621 = vst [vmem:[#allocation3 + $0x2c4] sm:$0xf] %v620_v42  ;;  %v628_v45 = vld [vmem:[%s18663_s18 + $0x2e4] sm:$0xf]  ;;  %623 = vst [vmem:[#allocation3 + $0x2c8] sm:$0xf] %v622_v43 }
 0x128   :  { %625 = vst [vmem:[#allocation3 + $0x2cc] sm:$0xff] %v624_v44   ;;  %629 = vst [vmem:[#allocation3 + $0x2d4] sm:$0xf] %v628_v45  ;;  %v630_v46 = vld [vmem:[%s18663_s18 + $0x2d4] sm:$0xf]  ;;  %v664_v62 = vld [vmem:[%s18663_s18 + $0x31c] sm:$0xff]  }
 0x129   :  { %v632_v47 = vld [vmem:[%s18663_s18 + $0x2e8] sm:$0xf]  ;;  %v634_v48 = vld [vmem:[%s18663_s18 + $0x2d8] sm:$0xf]  ;;  %631 = vst [vmem:[#allocation3 + $0x2d8] sm:$0xf] %v630_v46 }
 0x12a   :  { %633 = vst [vmem:[#allocation3 + $0x2dc] sm:$0xf] %v632_v47  ;;  %635 = vst [vmem:[#allocation3 + $0x2e0] sm:$0xf] %v634_v48  ;;  %v636_v49 = vld [vmem:[%s18663_s18 + $0x2ec] sm:$0xf] }
 0x12b   :  { %v638_v50 = vld [vmem:[%s18663_s18 + $0x2dc] sm:$0xf]  ;;  %v640_v51 = vld [vmem:[%s18663_s18 + $0x2f0] sm:$0xf]  ;;  %637 = vst [vmem:[#allocation3 + $0x2e4] sm:$0xf] %v636_v49 }
 0x12c   :  { %639 = vst [vmem:[#allocation3 + $0x2e8] sm:$0xf] %v638_v50  ;;  %641 = vst [vmem:[#allocation3 + $0x2ec] sm:$0xf] %v640_v51  ;;  %v642_v52 = vld [vmem:[%s18663_s18 + $0x2e0] sm:$0xf] }
 0x12d   :  { %v648_v54 = vld [vmem:[%s18663_s18 + $0x30c] sm:$0xf]  ;;  %643 = vst [vmem:[#allocation3 + $0x2f0] sm:$0xf] %v642_v52  ;;  %645 = vst [vmem:[#allocation3 + $0x2f4] sm:$0xff] %v644_v53   ;;  %v684_v25 = vld [vmem:[%s18663_s18 + $0x344] sm:$0xff]  }
 0x12e   :  { %649 = vst [vmem:[#allocation3 + $0x2fc] sm:$0xf] %v648_v54  ;;  %v650_v55 = vld [vmem:[%s18663_s18 + $0x2fc] sm:$0xf]  ;;  %v652_v56 = vld [vmem:[%s18663_s18 + $0x310] sm:$0xf] }
 0x12f   :  { %v654_v57 = vld [vmem:[%s18663_s18 + $0x300] sm:$0xf]  ;;  %651 = vst [vmem:[#allocation3 + $0x300] sm:$0xf] %v650_v55  ;;  %653 = vst [vmem:[#allocation3 + $0x304] sm:$0xf] %v652_v56 }
 0x130   :  { %655 = vst [vmem:[#allocation3 + $0x308] sm:$0xf] %v654_v57  ;;  %v656_v58 = vld [vmem:[%s18663_s18 + $0x314] sm:$0xf]  ;;  %v658_v59 = vld [vmem:[%s18663_s18 + $0x304] sm:$0xf] }
 0x131   :  { %v660_v60 = vld [vmem:[%s18663_s18 + $0x318] sm:$0xf]  ;;  %657 = vst [vmem:[#allocation3 + $0x30c] sm:$0xf] %v656_v58  ;;  %659 = vst [vmem:[#allocation3 + $0x310] sm:$0xf] %v658_v59 }
 0x132   :  { %661 = vst [vmem:[#allocation3 + $0x314] sm:$0xf] %v660_v60  ;;  %v662_v61 = vld [vmem:[%s18663_s18 + $0x308] sm:$0xf]  ;;  %v668_v63 = vld [vmem:[%s18663_s18 + $0x334] sm:$0xf] }
 0x133   :  { %663 = vst [vmem:[#allocation3 + $0x318] sm:$0xf] %v662_v61  ;;  %665 = vst [vmem:[#allocation3 + $0x31c] sm:$0xff] %v664_v62   ;;  %v670_v0 = vld [vmem:[%s18663_s18 + $0x324] sm:$0xf]  ;;  %v704_v34 = vld [vmem:[%s18663_s18 + $0x36c] sm:$0xff]  }
 0x134   :  { %669 = vst [vmem:[#allocation3 + $0x324] sm:$0xf] %v668_v63  ;;  %v672_v1 = vld [vmem:[%s18663_s18 + $0x338] sm:$0xf]  ;;  %v674_v20 = vld [vmem:[%s18663_s18 + $0x328] sm:$0xf] }
 0x135   :  { %671 = vst [vmem:[#allocation3 + $0x328] sm:$0xf] %v670_v0  ;;  %673 = vst [vmem:[#allocation3 + $0x32c] sm:$0xf] %v672_v1  ;;  %v676_v21 = vld [vmem:[%s18663_s18 + $0x33c] sm:$0xf] }
 0x136   :  { %675 = vst [vmem:[#allocation3 + $0x330] sm:$0xf] %v674_v20  ;;  %v678_v22 = vld [vmem:[%s18663_s18 + $0x32c] sm:$0xf]  ;;  %v680_v23 = vld [vmem:[%s18663_s18 + $0x340] sm:$0xf] }
 0x137   :  { %677 = vst [vmem:[#allocation3 + $0x334] sm:$0xf] %v676_v21  ;;  %679 = vst [vmem:[#allocation3 + $0x338] sm:$0xf] %v678_v22  ;;  %v682_v24 = vld [vmem:[%s18663_s18 + $0x330] sm:$0xf] }
 0x138   :  { %681 = vst [vmem:[#allocation3 + $0x33c] sm:$0xf] %v680_v23  ;;  %v688_v26 = vld [vmem:[%s18663_s18 + $0x35c] sm:$0xf]  ;;  %683 = vst [vmem:[#allocation3 + $0x340] sm:$0xf] %v682_v24 }
 0x139   :  { %685 = vst [vmem:[#allocation3 + $0x344] sm:$0xff] %v684_v25   ;;  %689 = vst [vmem:[#allocation3 + $0x34c] sm:$0xf] %v688_v26  ;;  %v690_v27 = vld [vmem:[%s18663_s18 + $0x34c] sm:$0xf]  ;;  %v724_v43 = vld [vmem:[%s18663_s18 + $0x394] sm:$0xff]  }
 0x13a   :  { %v692_v28 = vld [vmem:[%s18663_s18 + $0x360] sm:$0xf]  ;;  %v694_v29 = vld [vmem:[%s18663_s18 + $0x350] sm:$0xf]  ;;  %691 = vst [vmem:[#allocation3 + $0x350] sm:$0xf] %v690_v27 }
 0x13b   :  { %693 = vst [vmem:[#allocation3 + $0x354] sm:$0xf] %v692_v28  ;;  %695 = vst [vmem:[#allocation3 + $0x358] sm:$0xf] %v694_v29  ;;  %v696_v30 = vld [vmem:[%s18663_s18 + $0x364] sm:$0xf] }
 0x13c   :  { %v698_v31 = vld [vmem:[%s18663_s18 + $0x354] sm:$0xf]  ;;  %v700_v32 = vld [vmem:[%s18663_s18 + $0x368] sm:$0xf]  ;;  %697 = vst [vmem:[#allocation3 + $0x35c] sm:$0xf] %v696_v30 }
 0x13d   :  { %699 = vst [vmem:[#allocation3 + $0x360] sm:$0xf] %v698_v31  ;;  %701 = vst [vmem:[#allocation3 + $0x364] sm:$0xf] %v700_v32  ;;  %v702_v33 = vld [vmem:[%s18663_s18 + $0x358] sm:$0xf] }
 0x13e   :  { %v708_v35 = vld [vmem:[%s18663_s18 + $0x384] sm:$0xf]  ;;  %703 = vst [vmem:[#allocation3 + $0x368] sm:$0xf] %v702_v33  ;;  %705 = vst [vmem:[#allocation3 + $0x36c] sm:$0xff] %v704_v34   ;;  %v744_v52 = vld [vmem:[%s18663_s18 + $0x3bc] sm:$0xff]  }
 0x13f   :  { %709 = vst [vmem:[#allocation3 + $0x374] sm:$0xf] %v708_v35  ;;  %v710_v36 = vld [vmem:[%s18663_s18 + $0x374] sm:$0xf]  ;;  %v712_v37 = vld [vmem:[%s18663_s18 + $0x388] sm:$0xf] }
 0x140   :  { %v714_v38 = vld [vmem:[%s18663_s18 + $0x378] sm:$0xf]  ;;  %711 = vst [vmem:[#allocation3 + $0x378] sm:$0xf] %v710_v36  ;;  %713 = vst [vmem:[#allocation3 + $0x37c] sm:$0xf] %v712_v37 }
 0x141   :  { %715 = vst [vmem:[#allocation3 + $0x380] sm:$0xf] %v714_v38  ;;  %v716_v39 = vld [vmem:[%s18663_s18 + $0x38c] sm:$0xf]  ;;  %v718_v40 = vld [vmem:[%s18663_s18 + $0x37c] sm:$0xf] }
 0x142   :  { %v720_v41 = vld [vmem:[%s18663_s18 + $0x390] sm:$0xf]  ;;  %717 = vst [vmem:[#allocation3 + $0x384] sm:$0xf] %v716_v39  ;;  %719 = vst [vmem:[#allocation3 + $0x388] sm:$0xf] %v718_v40 }
 0x143   :  { %721 = vst [vmem:[#allocation3 + $0x38c] sm:$0xf] %v720_v41  ;;  %v722_v42 = vld [vmem:[%s18663_s18 + $0x380] sm:$0xf]  ;;  %v728_v44 = vld [vmem:[%s18663_s18 + $0x3ac] sm:$0xf] }
 0x144   :  { %723 = vst [vmem:[#allocation3 + $0x390] sm:$0xf] %v722_v42  ;;  %725 = vst [vmem:[#allocation3 + $0x394] sm:$0xff] %v724_v43   ;;  %v730_v45 = vld [vmem:[%s18663_s18 + $0x39c] sm:$0xf] }
 0x145   :  { %729 = vst [vmem:[#allocation3 + $0x39c] sm:$0xf] %v728_v44  ;;  %v732_v46 = vld [vmem:[%s18663_s18 + $0x3b0] sm:$0xf]  ;;  %v734_v47 = vld [vmem:[%s18663_s18 + $0x3a0] sm:$0xf] }
 0x146   :  { %731 = vst [vmem:[#allocation3 + $0x3a0] sm:$0xf] %v730_v45  ;;  %733 = vst [vmem:[#allocation3 + $0x3a4] sm:$0xf] %v732_v46  ;;  %v736_v48 = vld [vmem:[%s18663_s18 + $0x3b4] sm:$0xf] }
 0x147   :  { %735 = vst [vmem:[#allocation3 + $0x3a8] sm:$0xf] %v734_v47  ;;  %v738_v49 = vld [vmem:[%s18663_s18 + $0x3a4] sm:$0xf]  ;;  %v740_v50 = vld [vmem:[%s18663_s18 + $0x3b8] sm:$0xf] }
 0x148   :  { %737 = vst [vmem:[#allocation3 + $0x3ac] sm:$0xf] %v736_v48  ;;  %739 = vst [vmem:[#allocation3 + $0x3b0] sm:$0xf] %v738_v49  ;;  %v742_v51 = vld [vmem:[%s18663_s18 + $0x3a8] sm:$0xf] }
 0x149   :  { %741 = vst [vmem:[#allocation3 + $0x3b4] sm:$0xf] %v740_v50  ;;  %v748_v53 = vld [vmem:[%s18663_s18 + $0x3d4] sm:$0xf]  ;;  %743 = vst [vmem:[#allocation3 + $0x3b8] sm:$0xf] %v742_v51 }
 0x14a   :  { %745 = vst [vmem:[#allocation3 + $0x3bc] sm:$0xff] %v744_v52   ;;  %749 = vst [vmem:[#allocation3 + $0x3c4] sm:$0xf] %v748_v53  ;;  %v750_v54 = vld [vmem:[%s18663_s18 + $0x3c4] sm:$0xf] }
 0x14b   :  { %v752_v55 = vld [vmem:[%s18663_s18 + $0x3d8] sm:$0xf]  ;;  %v754_v56 = vld [vmem:[%s18663_s18 + $0x3c8] sm:$0xf]  ;;  %751 = vst [vmem:[#allocation3 + $0x3c8] sm:$0xf] %v750_v54 }
 0x14c   :  { %753 = vst [vmem:[#allocation3 + $0x3cc] sm:$0xf] %v752_v55  ;;  %755 = vst [vmem:[#allocation3 + $0x3d0] sm:$0xf] %v754_v56  ;;  %v756_v57 = vld [vmem:[%s18663_s18 + $0x3dc] sm:$0xf] }
 0x14d   :  { %v758_v58 = vld [vmem:[%s18663_s18 + $0x3cc] sm:$0xf]  ;;  %v760_v59 = vld [vmem:[%s18663_s18 + $0x3e0] sm:$0xf]  ;;  %757 = vst [vmem:[#allocation3 + $0x3d4] sm:$0xf] %v756_v57 }
 0x14e   :  { %759 = vst [vmem:[#allocation3 + $0x3d8] sm:$0xf] %v758_v58  ;;  %761 = vst [vmem:[#allocation3 + $0x3dc] sm:$0xf] %v760_v59  ;;  %v762_v60 = vld [vmem:[%s18663_s18 + $0x3d0] sm:$0xf] }
 0x14f   :  { %v764_v61 = vld [vmem:[%s18663_s18 + $0x3e4] sm:$0xf]  ;;  %763 = vst [vmem:[#allocation3 + $0x3e0] sm:$0xf] %v762_v60 }
 0x150   :  { %765 = vst [vmem:[#allocation3 + $0x3e4] sm:$0xf] %v764_v61 }
 0x151   :  { %1296 = vsyncadd [#allocation11 + $0x1], 16000  ;;  %s18664_s21 = sld [smem:[#allocation66_spill]]  ;;  %s16253_s2 = smov [#allocation4]  }
 0x152   :  { %s1305_s26 = sshll.u32 %s16253_s2, 4  ;;  %s16254_s15 = smov [#allocation5]   ;;  %s1306_s26 = int_to_ptr.vmem [resolvable:$true] %s1305_s26 }
 0x153   :  { %s1317_s29 = sshll.u32 %s16254_s15, 4  ;;  %s18665_s17 = sld [smem:[#allocation63_spill]]  ;;  %s17312_s29 = int_to_ptr.vmem [resolvable:$true] %s1317_s29 }
 0x157   :  { %v17290_v62 = vld [vmem:[%s18664_s21] sm:$0xff]  ;;  %v17295_v63 = vld [vmem:[%s18664_s21 + $0x8] sm:$0xff]  ;;  %v17300_v0 = vld [vmem:[%s18664_s21 + $0x10] sm:$0xff] }
 0x158   :  { %v17305_v1 = vld [vmem:[%s18664_s21 + $0x18] sm:$0xff]  ;;  %v17310_v20 = vld [vmem:[%s18664_s21 + $0x20] sm:$0xff]  ;;  %v17317_v21 = vld [vmem:[%s18664_s21 + $0x28] sm:$0xff] }
 0x159   :  { %v17322_v22 = vld [vmem:[%s18664_s21 + $0x30] sm:$0xff]  ;;  %v17327_v23 = vld [vmem:[%s18664_s21 + $0x38] sm:$0xff]  ;;  %s16106_s16 = scalar_lea.hbm %s18665_s17, 24000 }
 0x15a   :  { %p16107_p2 = scmp.ne.s32.totalorder %s18665_s17, %s16106_s16  ;;  %p16110_p3 = scmp.lt.u32.totalorder %s16106_s16, %s18665_s17 }
 0x15c   :  { %p16112_p4 = pnand %p16110_p3, %p16107_p2 }
 0x15e   :  { %16115 = shalt.err (!%p16112_p4)  }
 0x15f   :  { %s16116_s14 = scalar_lea.vmem %s1306_s26, 24000  ;;  %p16121_p6 = scmp.lt.s32.totalorder %s1306_s26, %s1306_s26 }
 0x160   :  { %p16117_p5 = scmp.ne.s32.totalorder %s1306_s26, %s16116_s14  ;;  %p16122_p7 = scmp.lt.s32.totalorder %s16116_s14, %s16116_s14 }
 0x162   :  { %p16123_p8 = por %p16122_p7, %p16121_p6 }
 0x164   :  { %p16124_p9 = pnand %p16123_p8, %p16117_p5 }
 0x166   :  { %16127 = shalt.err (!%p16124_p9)  }
 0x167   :  { %1308 = dma.hbm_to_vmem [thread:$0]  %s18665_s17, 24000, %s1306_s26, [#allocation11 + $0x2]  ;;  %v17344_v24 = vld [vmem:[%s18664_s21 + $0x40] sm:$0xff]  ;;  %v17349_v25 = vld [vmem:[%s18664_s21 + $0x48] sm:$0xff]  ;;  %v17354_v26 = vld [vmem:[%s18664_s21 + $0x50] sm:$0xff] }
 0x168   :  { %s18666_s22 = sld [smem:[#allocation64_spill]] }
 0x16e   :  { %s16128_s27 = scalar_lea.hbm %s18666_s22, 24000 }
 0x16f   :  { %p16129_p10 = scmp.ne.s32.totalorder %s18666_s22, %s16128_s27  ;;  %p16132_p11 = scmp.lt.u32.totalorder %s16128_s27, %s18666_s22 }
 0x171   :  { %p16134_p12 = pnand %p16132_p11, %p16129_p10 }
 0x173   :  { %16137 = shalt.err (!%p16134_p12)  }
 0x174   :  { %s16138_s7 = scalar_lea.vmem %s17312_s29, 24000  ;;  %p16143_p0 = scmp.lt.s32.totalorder %s17312_s29, %s17312_s29 }
 0x175   :  { %p16139_p13 = scmp.ne.s32.totalorder %s17312_s29, %s16138_s7  ;;  %p16144_p1 = scmp.lt.s32.totalorder %s16138_s7, %s16138_s7 }
 0x177   :  { %p16145_p2 = por %p16144_p1, %p16143_p0 }
 0x179   :  { %p16146_p3 = pnand %p16145_p2, %p16139_p13 }
 0x17b   :  { %16149 = shalt.err (!%p16146_p3)  }
 0x17c   :  { %1320 = dma.hbm_to_vmem [thread:$0]  %s18666_s22, 24000, %s17312_s29, [#allocation11 + $0x3]  ;;  %v17376_v27 = vld [vmem:[%s18664_s21 + $0x58] sm:$0xff]  ;;  %v17381_v28 = vld [vmem:[%s18664_s21 + $0x60] sm:$0xff]  ;;  %v17386_v29 = vld [vmem:[%s18664_s21 + $0x68] sm:$0xff] }
 0x17d   :  { %v17391_v30 = vld [vmem:[%s18664_s21 + $0x70] sm:$0xff]  ;;  %v17396_v31 = vld [vmem:[%s18664_s21 + $0x78] sm:$0xff]  ;;  %v17401_v32 = vld [vmem:[%s18664_s21 + $0x80] sm:$0xff]  ;;  %s16255_s4 = smov [#allocation6]   ;;  %s18667_s26 = sld [smem:[#allocation65_spill]] }
 0x17e   :  { %s1329_s5 = sshll.u32 %s16255_s4, 4  ;;  %v17406_v33 = vld [vmem:[%s18664_s21 + $0x88] sm:$0xff]  ;;  %s1330_s5 = int_to_ptr.vmem [resolvable:$true] %s1329_s5 }
 0x183   :  { %s16150_s6 = scalar_lea.hbm %s18667_s26, 24000 }
 0x184   :  { %p16151_p4 = scmp.ne.s32.totalorder %s18667_s26, %s16150_s6  ;;  %p16154_p5 = scmp.lt.u32.totalorder %s16150_s6, %s18667_s26 }
 0x186   :  { %p16156_p6 = pnand %p16154_p5, %p16151_p4 }
 0x188   :  { %16159 = shalt.err (!%p16156_p6)  }
 0x189   :  { %s16160_s16 = scalar_lea.vmem %s1330_s5, 24000  ;;  %p16165_p8 = scmp.lt.s32.totalorder %s1330_s5, %s1330_s5 }
 0x18a   :  { %p16161_p7 = scmp.ne.s32.totalorder %s1330_s5, %s16160_s16  ;;  %p16166_p9 = scmp.lt.s32.totalorder %s16160_s16, %s16160_s16 }
 0x18c   :  { %p16167_p10 = por %p16166_p9, %p16165_p8 }
 0x18e   :  { %p16168_p11 = pnand %p16167_p10, %p16161_p7 }
 0x190   :  { %16171 = shalt.err (!%p16168_p11)  }
 0x191   :  { %1332 = dma.hbm_to_vmem [thread:$0]  %s18667_s26, 24000, %s1330_s5, [#allocation11 + $0x4] }
 0x192   :  { %1409 = vsyncadd [#allocation11 + $0x5], 2304  ;;  %s1415_s3 = sld [smem:[#allocation0]]   ;;  %s16256_s25 = smov [#allocation8]  }
 0x193   :  { %s1423_s1 = sshll.u32 %s16256_s25, 4  ;;  %s16257_s14 = smov 640   ;;  %s1424_s1 = int_to_ptr.vmem [resolvable:$true] %s1423_s1 }
 0x194   :  { %1427 = sst [smem:[#allocation40]] %s16257_s14  ;;  %s16258_s2 = smov 5  }
 0x195   :  { %1429 = sst [smem:[#allocation40 + $0x1]] %s16257_s14  ;;  %s16259_s15 = smov 64  }
 0x196   :  { %1431 = sst [smem:[#allocation40 + $0x2]] %s16258_s2  ;;  %s16260_s29 = smov 128  }
 0x197   :  { %1433 = sst [smem:[#allocation40 + $0x3]] %s16259_s15  ;;  %s16261_s18 = smov 2  }
 0x198   :  { %s12596_s20 = sshll.u32 %s1415_s3, 26  ;;  %1435 = sst [smem:[#allocation40 + $0x4]] %s16260_s29 }
 0x199   :  { %s12597_s30 = sadd.s32 134217728, %s12596_s20  ;;  %1437 = sst [smem:[#allocation40 + $0x5]] %s16261_s18 }
 0x19a   :  { %s16262_s23 = smov 320   ;;  %1441 = sst [smem:[#allocation40 + $0x7]] %s16259_s15 }
 0x19b   :  { %1439 = sst [smem:[#allocation40 + $0x6]] %s16262_s23  ;;  %s16263_s4 = smov 4  }
 0x19c   :  { %1443 = sst [smem:[#allocation40 + $0x8]] %s16263_s4  ;;  %s16264_s5 = smov [#allocation11 + $0x6]  }
 0x19d   :  { %s16265_s19 = smov [#allocation39]   ;;  %s18668_s27 = sld [smem:[#allocation67_spill]] }
 0x19e   :  { %s16266_s26 = smov [#allocation9]   ;;  %s16267_s13 = smov [#allocation10]  }
 0x19f   :  { %s1454_s6 = sshll.u32 %s16266_s26, 4  ;;  %s1466_s28 = sshll.u32 %s16267_s13, 4  ;;  %s1455_s6 = int_to_ptr.vmem [resolvable:$true] %s1454_s6  ;;  %s1467_s28 = int_to_ptr.vmem [resolvable:$true] %s1466_s28 }
 0x1a0   :  { %s16172_s16 = scalar_lea.hbm %s18629_s9, 24000 }
 0x1a1   :  { %p16173_p12 = scmp.ne.s32.totalorder %s18629_s9, %s16172_s16  ;;  %p16176_p13 = scmp.lt.u32.totalorder %s16172_s16, %s18629_s9 }
 0x1a3   :  { %1445 = dma.general %s18668_s27, 16000, %s1424_s1, %s16264_s5, %s16265_s19, [#allocation40], %s12597_s30, 0  }
 0x1a4   :  { %p16178_p0 = pnand %p16176_p13, %p16173_p12 }
 0x1a6   :  { %16181 = shalt.err (!%p16178_p0)  }
 0x1a7   :  { %s16182_s1 = scalar_lea.vmem %s1455_s6, 24000  ;;  %p16187_p2 = scmp.lt.s32.totalorder %s1455_s6, %s1455_s6 }
 0x1a8   :  { %p16183_p1 = scmp.ne.s32.totalorder %s1455_s6, %s16182_s1  ;;  %p16188_p3 = scmp.lt.s32.totalorder %s16182_s1, %s16182_s1 }
 0x1aa   :  { %p16189_p4 = por %p16188_p3, %p16187_p2 }
 0x1ac   :  { %p16190_p5 = pnand %p16189_p4, %p16183_p1 }
 0x1ae   :  { %16193 = shalt.err (!%p16190_p5)  }
 0x1af   :  { %1457 = dma.hbm_to_vmem [thread:$0]  %s18629_s9, 24000, %s1455_s6, [#allocation11 + $0x7] }
 0x1b0   :  { %s16194_s29 = scalar_lea.hbm %s18630_s10, 24000 }
 0x1b1   :  { %p16195_p6 = scmp.ne.s32.totalorder %s18630_s10, %s16194_s29  ;;  %p16198_p7 = scmp.lt.u32.totalorder %s16194_s29, %s18630_s10 }
 0x1b3   :  { %p16200_p8 = pnand %p16198_p7, %p16195_p6 }
 0x1b5   :  { %16203 = shalt.err (!%p16200_p8)  }
 0x1b6   :  { %s16204_s5 = scalar_lea.vmem %s1467_s28, 24000  ;;  %p16209_p10 = scmp.lt.s32.totalorder %s1467_s28, %s1467_s28 }
 0x1b7   :  { %p16205_p9 = scmp.ne.s32.totalorder %s1467_s28, %s16204_s5  ;;  %p16210_p11 = scmp.lt.s32.totalorder %s16204_s5, %s16204_s5 }
 0x1b9   :  { %p16211_p12 = por %p16210_p11, %p16209_p10 }
 0x1bb   :  { %p16212_p13 = pnand %p16211_p12, %p16205_p9 }
 0x1bd   :  { %16215 = shalt.err (!%p16212_p13)  }
 0x1be   :  { %1469 = dma.hbm_to_vmem [thread:$0]  %s18630_s10, 24000, %s1467_s28, [#allocation11 + $0x8]  ;;  %v16268_v35 = vmov 1   ;;  %v16269_v36 = vmov 0   ;;  %v16270_v39 = vmov 2   ;;  %v16271_v41 = vmov 3  }
 0x1bf   :  { %s18669_s27 = sld [smem:[#allocation59_spill]]  ;;  %14470 = vset.pattern.permute.xlu1 %v16268_v35  ;;  %14469 = vset.pattern.permute.xlu0 %v16269_v36  ;;  %s18670_s28 = sld [smem:[#allocation60_spill]]  ;;  %v16272_v43 = vmov 4   ;;  %v16273_v44 = vmov 5   ;;  %v16274_v46 = vmov 6   ;;  %v16275_v48 = vmov 8  }
 0x1c0   :  { %1956 = vmatprep.subr.bf16.mxu1 %v16269_v36  ;;  %v16276_v57 = vmov 7   ;;  %vm1911_vm0 = vcmask 1040384  }
 0x1c5   :  { %v17450_v34 = vld [vmem:[%s18669_s27] sm:$0xff]  ;;  %v17458_v37 = vld [vmem:[%s18669_s27 + $0x8] sm:$0xff]  ;;  %v14485_v42 = vld [vmem:[%s18670_s28 + $0x90] sm:$0xff]  }
 0x1c6   :  { %1492 = vperm.xlu1 %14470, %v17450_v34   ;;  %1478 = vperm.xlu0 %14469, %v17450_v34   ;;  %v14483_v38 = vld [vmem:[%s18670_s28 + $0x80] sm:$0xff]   ;;  %v14484_v40 = vld [vmem:[%s18670_s28 + $0x88] sm:$0xff]   ;;  %v14486_v45 = vld [vmem:[%s18670_s28 + $0x98] sm:$0xff]  }
 0x1c7   :  { %1957 = vmatpush1.bf16.msra.mxu1 %v14483_v38  ;;  %v14487_v47 = vld [vmem:[%s18670_s28 + $0xa0] sm:$0xff]   ;;  %v14490_v51 = vld [vmem:[%s18670_s28 + $0xa8] sm:$0xff]   ;;  %v14493_v54 = vld [vmem:[%s18670_s28 + $0xb0] sm:$0xff]  }
 0x1c8   :  { %1958 = vmatprep.subr.bf16.mxu1 %v16269_v36  ;;  %v14488_v49 = vld [vmem:[%s18670_s28 + $0x40] sm:$0xff]   ;;  %v14491_v52 = vld [vmem:[%s18670_s28 + $0x48] sm:$0xff]   ;;  %v14494_v55 = vld [vmem:[%s18670_s28 + $0x50] sm:$0xff]  }
 0x1c9   :  { %v14489_v50 = vld [vmem:[%s18670_s28] sm:$0xff]   ;;  %13746 = vmatprep.subr.bf16.mxu0 %v14488_v49  ;;  %v14492_v53 = vld [vmem:[%s18670_s28 + $0x8] sm:$0xff]   ;;  %v14495_v56 = vld [vmem:[%s18670_s28 + $0x10] sm:$0xff]  }
 0x1ca   :  { %1495 = vperm.xlu1 %14470, %v17458_v37   ;;  %1481 = vperm.xlu0 %14469, %v17458_v37   ;;  %v14496_v58 = vld [vmem:[%s18670_s28 + $0xb8] sm:$0xff]   ;;  %v14499_v61 = vld [vmem:[%s18670_s28 + $0xc0] sm:$0xff]   ;;  %v14502_v38 = vld [vmem:[%s18670_s28 + $0xc8] sm:$0xff]  }
 0x1cb   :  { %1959 = vmatpush1.bf16.msra.mxu1 %v14484_v40  ;;  %13747 = vmatpush3.bf16.msra.mxu0 %v14489_v50  ;;  %v14497_v59 = vld [vmem:[%s18670_s28 + $0x58] sm:$0xff]   ;;  %v14500_v35 = vld [vmem:[%s18670_s28 + $0x60] sm:$0xff]   ;;  %v14504_v40 = vld [vmem:[%s18670_s28 + $0x28] sm:$0xff]   ;;  %v1472_v50 = vlaneseq }
 0x1cc   :  { %1960 = vmatprep.subr.bf16.mxu1 %v16269_v36  ;;  %13748 = vmatprep.subr.bf16.mxu0 %v14491_v52  ;;  %v14498_v60 = vld [vmem:[%s18670_s28 + $0x18] sm:$0xff]  }
 0x1cd   :  { %v17577_v52 = vand.u32 127, %v1472_v50 }
 0x1ce   :  { %14472 = vset.pattern.permute.xlu1 %v16270_v39  ;;  %14471 = vset.pattern.permute.xlu0 %v16270_v39  ;;  %v14503_v39 = vld [vmem:[%s18670_s28 + $0x68] sm:$0xff]  }
 0x1cf   :  { %1517 = vperm.xlu1 %14472, %v17458_v37   ;;  %1514 = vperm.xlu0 %14471, %v17450_v34  }
 0x1d0   :  { %1961 = vmatpush1.bf16.msra.mxu1 %v14485_v42  ;;  %13749 = vmatpush3.bf16.msra.mxu0 %v14492_v53  ;;  %v14506_v42 = vld [vmem:[%s18670_s28 + $0x70] sm:$0xff]  }
 0x1d1   :  { %1962 = vmatprep.subr.bf16.mxu1 %v16269_v36  ;;  %13750 = vmatprep.subr.bf16.mxu0 %v14494_v55  ;;  %v17582_v55 = vadd.s32 128, %v17577_v52 }
 0x1d3   :  { %14473 = vset.pattern.permute.xlu1 %v16271_v41  ;;  %14474 = vset.pattern.permute.xlu0 %v16271_v41  ;;  %v14505_v41 = vld [vmem:[%s18670_s28 + $0xd0] sm:$0xff]  }
 0x1d4   :  { %1536 = vperm.xlu1 %14473, %v17450_v34   ;;  %1539 = vperm.xlu0 %14474, %v17458_v37  }
 0x1d5   :  { %1963 = vmatpush1.bf16.msra.mxu1 %v14486_v45  ;;  %13751 = vmatpush3.bf16.msra.mxu0 %v14495_v56  ;;  %v14511_v45 = vld [vmem:[%s18670_s28 + $0xe0] ss:$0 sps:$4 sm:$0x11]   ;;  %v17585_v56 = vadd.s32 256, %v17577_v52 }
 0x1d6   :  { %1964 = vmatprep.subr.bf16.mxu1 %v16269_v36  ;;  %13752 = vmatprep.subr.bf16.mxu0 %v14497_v59 }
 0x1d8   :  { %14475 = vset.pattern.permute.xlu1 %v16272_v43  ;;  %14476 = vset.pattern.permute.xlu0 %v16273_v44  ;;  %v14508_v43 = vld [vmem:[%s18670_s28 + $0xd8] sm:$0xff]  }
 0x1d9   :  { %1558 = vperm.xlu1 %14475, %v17450_v34   ;;  %1580 = vperm.xlu0 %14476, %v17450_v34  }
 0x1da   :  { %1965 = vmatpush1.bf16.msra.mxu1 %v14487_v47  ;;  %13753 = vmatpush3.bf16.msra.mxu0 %v14498_v60  ;;  %v1913_v47 = vsel %vm1911_vm0, %v14511_v45, 0  ;;  %v18671_v60 = vmov 0 }
 0x1db   :  { %1966 = vmatprep.subr.bf16.mxu1 %v16269_v36  ;;  %13754 = vmatprep.subr.bf16.mxu0 %v14500_v35  ;;  %v18673_v35 = vmov 0 }
 0x1dd   :  { %1561 = vperm.xlu1 %14475, %v17458_v37   ;;  %14479 = vset.pattern.permute.xlu0 %v16274_v46 }
 0x1de   :  { %1605 = vperm.xlu0 %14479, %v17458_v37   ;;  %1967 = vmatpush1.bf16.msra.mxu1 %v14490_v51 }
 0x1df   :  { %1968 = vmatprep.subr.bf16.mxu1 %v16269_v36 }
 0x1e1   :  { %14477 = vset.pattern.permute.xlu1 %v16273_v44  ;;  %v14509_v44 = vld [vmem:[%s18670_s28 + $0x78] sm:$0xff]  }
 0x1e2   :  { %1583 = vperm.xlu1 %14477, %v17458_v37   ;;  %14481 = vset.pattern.permute.xlu0 %v16275_v48 }
 0x1e3   :  { %1646 = vperm.xlu0 %14481, %v17450_v34   ;;  %1969 = vmatpush1.bf16.msra.mxu1 %v14493_v54 }
 0x1e4   :  { %1970 = vmatprep.subr.bf16.mxu1 %v16269_v36 }
 0x1e6   :  { %14478 = vset.pattern.permute.xlu1 %v16274_v46  ;;  %v14510_v46 = vld [vmem:[%s18670_s28 + $0x38] sm:$0xff]  }
 0x1e7   :  { %1602 = vperm.xlu1 %14478, %v17450_v34   ;;  %1971 = vmatpush1.bf16.msra.mxu1 %v14496_v58 }
 0x1e8   :  { %1972 = vmatprep.subr.bf16.mxu1 %v16269_v36 }
 0x1eb   :  { %14480 = vset.pattern.permute.xlu1 %v16276_v57  ;;  %1973 = vmatpush1.bf16.msra.mxu1 %v14499_v61  ;;  %v17588_v57 = vadd.s32 384, %v17577_v52 }
 0x1ec   :  { %1624 = vperm.xlu1 %14480, %v17450_v34   ;;  %v14501_v34 = vld [vmem:[%s18670_s28 + $0x20] sm:$0xff]   ;;  %1974 = vmatprep.subr.bf16.mxu1 %v16269_v36 }
 0x1ed   :  { %13755 = vmatpush3.bf16.msra.mxu0 %v14501_v34  ;;  %v18675_v34 = vmov 0 }
 0x1ee   :  { %13756 = vmatprep.subr.bf16.mxu0 %v14503_v39  ;;  %v18679_v39 = vmov 0 }
 0x1ef   :  { %1975 = vmatpush1.bf16.msra.mxu1 %v14502_v38 }
 0x1f0   :  { %1627 = vperm.xlu1 %14480, %v17458_v37   ;;  %1976 = vmatprep.subr.bf16.mxu1 %v16269_v36 }
 0x1f1   :  { %13757 = vmatpush3.bf16.msra.mxu0 %v14504_v40 }
 0x1f2   :  { %13758 = vmatprep.subr.bf16.mxu0 %v14506_v42  ;;  %v18683_v42 = vmov 0 }
 0x1f3   :  { %1977 = vmatpush1.bf16.msra.mxu1 %v14505_v41  ;;  %v18681_v41 = vmov 0 }
 0x1f4   :  { %14482 = vset.pattern.permute.xlu1 %v16275_v48  ;;  %1978 = vmatprep.subr.bf16.mxu1 %v16269_v36 }
 0x1f5   :  { %1649 = vperm.xlu1 %14482, %v17458_v37   ;;  %v14507_v37 = vld [vmem:[%s18670_s28 + $0x30] sm:$0xff]  }
 0x1f6   :  { %13759 = vmatpush3.bf16.msra.mxu0 %v14507_v37 }
 0x1f7   :  { %1979 = vmatpush1.bf16.msra.mxu1 %v14508_v43  ;;  %13760 = vmatprep.subr.bf16.mxu0 %v14509_v44  ;;  %v18685_v43 = vmov 0 }
 0x1f8   :  { %1980 = vmatprep.subr.bf16.mxu1 %v16269_v36 }
 0x1fa   :  { %13761 = vmatpush3.bf16.msra.mxu0 %v14510_v46  ;;  %v18690_v46 = vmov 0 }
 0x1fb   :  { %1981 = vmatpush1.bf16.msra.mxu1 %v1913_v47  ;;  %v18692_v47 = vmov 0 }
 0x245   :  { %v1493_v48 = vpop.permute.xlu1 %1492  ;;  %v1479_v51 = vpop.permute.xlu0 %1478 }
 0x246   :  { %vm1497_vm1 = vcmp.eq.s32.totalorder %v17577_v52, %v1493_v48  ;;  %vm1483_vm2 = vcmp.eq.s32.totalorder %v17577_v52, %v1479_v51  ;;  %vm1498_vm3 = vcmp.eq.s32.totalorder %v17582_v55, %v1493_v48  ;;  %vm1499_vm4 = vcmp.eq.s32.totalorder %v17585_v56, %v1493_v48 }
 0x247   :  { %vm1500_vm5 = vcmp.eq.s32.totalorder %v17588_v57, %v1493_v48  ;;  %vm1485_vm6 = vcmp.eq.s32.totalorder %v17585_v56, %v1479_v51  ;;  %vm1484_vm7 = vcmp.eq.s32.totalorder %v17582_v55, %v1479_v51  ;;  %vm1486_vm8 = vcmp.eq.s32.totalorder %v17588_v57, %v1479_v51  ;;  %vm17602_vm11 = vmor %vm1483_vm2, %vm1497_vm1 }
 0x248   :  { %v18672_v60 = vsel %vm17602_vm11, 4294967295, %v18671_v60  ;;  %vm17610_vm14 = vmor %vm1485_vm6, %vm1499_vm4  ;;  %v18695_v48 = vmov 0  ;;  %v18701_v51 = vmov 0 }
 0x249   :  { %v1496_v49 = vpop.permute.xlu1 %1495  ;;  %v1482_v54 = vpop.permute.xlu0 %1481  ;;  %v18674_v35 = vsel %vm17610_vm14, 4294967295, %v18673_v35  ;;  %vm17618_vm1 = vmor %vm1484_vm7, %vm1498_vm3 }
 0x24a   :  { %vm1501_vm9 = vcmp.eq.s32.totalorder %v17577_v52, %v1496_v49  ;;  %vm1487_vm10 = vcmp.eq.s32.totalorder %v17577_v52, %v1482_v54  ;;  %vm1502_vm12 = vcmp.eq.s32.totalorder %v17582_v55, %v1496_v49  ;;  %vm1488_vm13 = vcmp.eq.s32.totalorder %v17582_v55, %v1482_v54  ;;  %vm17624_vm2 = vmor %vm1486_vm8, %vm1500_vm5 }
 0x24b   :  { %vm1503_vm15 = vcmp.eq.s32.totalorder %v17585_v56, %v1496_v49  ;;  %vm1489_vm0 = vcmp.eq.s32.totalorder %v17585_v56, %v1482_v54  ;;  %v18676_v34 = vsel %vm17618_vm1, 4294967295, %v18675_v34  ;;  %vm1504_vm4 = vcmp.eq.s32.totalorder %v17588_v57, %v1496_v49  ;;  %vm1509_vm14 = vmor %vm1487_vm10, %vm1501_vm9 }
 0x24c   :  { %vm1490_vm6 = vcmp.eq.s32.totalorder %v17588_v57, %v1482_v54  ;;  %vm17632_vm3 = vmor %vm1488_vm13, %vm1502_vm12  ;;  %v18730_v49 = vmov 0  ;;  %v16277_v54 = vmov 0.0  }
 0x24d   :  { %v18680_v39 = vsel %vm17632_vm3, 4294967295, %v18679_v39  ;;  %vm1511_vm1 = vmor %vm1489_vm0, %vm1503_vm15  ;;  %vm18687_vm15 = vnez %v18672_v60 }
 0x24e   :  { %v17579_v53 = vpop.permute.xlu1 %1517  ;;  %v1515_v59 = vpop.permute.xlu0 %1514  ;;  %vm17641_vm8 = vmor %vm1490_vm6, %vm1504_vm4  ;;  %vm18688_vm6 = vnez %v18674_v35  ;;  %v18709_v35 = vmov 0 }
 0x24f   :  { %vm1523_vm11 = vcmp.eq.s32.totalorder %v17577_v52, %v17579_v53  ;;  %vm1525_vm7 = vcmp.eq.s32.totalorder %v17585_v56, %v17579_v53  ;;  %vm1519_vm5 = vcmp.eq.s32.totalorder %v17577_v52, %v1515_v59  ;;  %v18682_v41 = vsel %vm17641_vm8, 4294967295, %v18681_v41 }
 0x250   :  { %vm17645_vm9 = vmor %vm1509_vm14, %vm1523_vm11  ;;  %vm1521_vm10 = vcmp.eq.s32.totalorder %v17585_v56, %v1515_v59  ;;  %vm1520_vm11 = vcmp.eq.s32.totalorder %v17582_v55, %v1515_v59  ;;  %vm1522_vm14 = vcmp.eq.s32.totalorder %v17588_v57, %v1515_v59  ;;  %v18706_v59 = vmov 0 }
 0x251   :  { %v18684_v42 = vsel %vm17645_vm9, 4294967295, %v18683_v42  ;;  %vm17650_vm12 = vmor %vm1511_vm1, %vm1525_vm7  ;;  %vm1524_vm7 = vcmp.eq.s32.totalorder %v17582_v55, %v17579_v53 }
 0x252   :  { %v18686_v43 = vsel %vm17650_vm12, 4294967295, %v18685_v43  ;;  %vm1527_vm0 = vmor %vm18687_vm15, %vm1519_vm5 }
 0x253   :  { %v17590_v58 = vpop.permute.xlu1 %1536  ;;  %v1540_v37 = vpop.permute.xlu0 %1539  ;;  %vm1529_vm8 = vmor %vm18688_vm6, %vm1521_vm10  ;;  %vm1526_vm10 = vcmp.eq.s32.totalorder %v17588_v57, %v17579_v53  ;;  %vm18689_vm6 = vnez %v18676_v34  ;;  %v18712_v34 = vmov 0 }
 0x254   :  { %vm1541_vm13 = vcmp.eq.s32.totalorder %v17577_v52, %v17590_v58  ;;  %vm1543_vm4 = vcmp.eq.s32.totalorder %v17585_v56, %v17590_v58  ;;  %vm1545_vm1 = vcmp.eq.s32.totalorder %v17577_v52, %v1540_v37  ;;  %vm17679_vm9 = vmor %vm18689_vm6, %vm1520_vm11  ;;  %vm18697_vm6 = vnez %v18680_v39 }
 0x255   :  { %vm1549_vm12 = vmor %vm1527_vm0, %vm1541_vm13  ;;  %v18691_v46 = vsel %vm17679_vm9, 4294967295, %v18690_v46  ;;  %vm18694_vm0 = vnez %v18684_v42 }
 0x256   :  { %vm1551_vm5 = vmor %vm1529_vm8, %vm1543_vm4  ;;  %vm1547_vm8 = vcmp.eq.s32.totalorder %v17585_v56, %v1540_v37 }
 0x257   :  { %vm17685_vm13 = vmor %vm17624_vm2, %vm1522_vm14 }
 0x258   :  { %v17608_v61 = vpop.permute.xlu1 %1558  ;;  %v17669_v44 = vpop.permute.xlu0 %1580  ;;  %v18693_v47 = vsel %vm17685_vm13, 4294967295, %v18692_v47  ;;  %vm17692_vm4 = vmor %vm18694_vm0, %vm1545_vm1  ;;  %vm18700_vm0 = vnez %v18682_v41  ;;  %v18719_v41 = vmov 0 }
 0x259   :  { %vm1563_vm3 = vcmp.eq.s32.totalorder %v17577_v52, %v17608_v61  ;;  %vm1565_vm15 = vcmp.eq.s32.totalorder %v17585_v56, %v17608_v61  ;;  %v18696_v48 = vsel %vm17692_vm4, 4294967295, %v18695_v48  ;;  %vm17698_vm11 = vmor %vm18697_vm6, %vm1524_vm7  ;;  %vm1585_vm2 = vcmp.eq.s32.totalorder %v17577_v52, %v17669_v44 }
 0x25a   :  { %vm1571_vm9 = vmor %vm1549_vm12, %vm1563_vm3  ;;  %vm1587_vm13 = vcmp.eq.s32.totalorder %v17585_v56, %v17669_v44  ;;  %vm18703_vm4 = vnez %v18686_v43 }
 0x25b   :  { %vm1573_vm14 = vmor %vm1551_vm5, %vm1565_vm15 }
 0x25c   :  { %v17639_v40 = vpop.permute.xlu1 %1561  ;;  %vm17708_vm1 = vmor %vm18700_vm0, %vm1526_vm10  ;;  %vm1542_vm10 = vcmp.eq.s32.totalorder %v17582_v55, %v17590_v58 }
 0x25d   :  { %v18702_v51 = vsel %vm17708_vm1, 4294967295, %v18701_v51  ;;  %vm1555_vm7 = vmor %vm18703_vm4, %vm1547_vm8  ;;  %vm1567_vm6 = vcmp.eq.s32.totalorder %v17577_v52, %v17639_v40  ;;  %vm1569_vm12 = vcmp.eq.s32.totalorder %v17585_v56, %v17639_v40  ;;  %vm1544_vm8 = vcmp.eq.s32.totalorder %v17588_v57, %v17590_v58  ;;  %v17738_v60 = vpop.permute.xlu0 %1605 }
 0x25e   :  { %vm17718_vm3 = vmor %vm1571_vm9, %vm1585_vm2  ;;  %vm18708_vm9 = vnez %v18696_v48 }
 0x25f   :  { %vm17724_vm5 = vmor %vm1573_vm14, %vm1587_vm13  ;;  %vm1546_vm13 = vcmp.eq.s32.totalorder %v17582_v55, %v1540_v37 }
 0x260   :  { %v18707_v59 = vsel %vm17724_vm5, 4294967295, %v18706_v59  ;;  %vm1575_vm4 = vmor %vm18708_vm9, %vm1567_vm6  ;;  %vm18711_vm6 = vnez %v18691_v46  ;;  %v18726_v46 = vmov 0 }
 0x261   :  { %v17671_v45 = vpop.permute.xlu1 %1583  ;;  %vm1577_vm14 = vmor %vm1555_vm7, %vm1569_vm12  ;;  %vm18714_vm7 = vnez %v18693_v47  ;;  %v18728_v47 = vmov 0 }
 0x262   :  { %vm1589_vm15 = vcmp.eq.s32.totalorder %v17577_v52, %v17671_v45  ;;  %vm1591_vm2 = vcmp.eq.s32.totalorder %v17585_v56, %v17671_v45  ;;  %vm17753_vm9 = vmor %vm18711_vm6, %vm1542_vm10  ;;  %v17784_v42 = vpop.permute.xlu0 %1646 }
 0x263   :  { %vm17743_vm1 = vmor %vm1575_vm4, %vm1589_vm15  ;;  %v18713_v34 = vsel %vm17753_vm9, 4294967295, %v18712_v34  ;;  %vm1548_vm15 = vcmp.eq.s32.totalorder %v17588_v57, %v1540_v37  ;;  %vm18722_vm9 = vnez %v18702_v51  ;;  %v18723_v37 = vmov 0 }
 0x264   :  { %v18710_v35 = vsel %vm17743_vm1, 4294967295, %v18709_v35  ;;  %vm17759_vm12 = vmor %vm18714_vm7, %vm1544_vm8  ;;  %vm1611_vm1 = vcmp.eq.s32.totalorder %v17577_v52, %v17738_v60  ;;  %v18736_v51 = vmov 0 }
 0x265   :  { %vm17764_vm4 = vmor %vm1577_vm14, %vm1591_vm2  ;;  %vm18721_vm14 = vnez %v18707_v59 }
 0x266   :  { %v17716_v53 = vpop.permute.xlu1 %1602  ;;  %vm17772_vm10 = vmor %vm17698_vm11, %vm1546_vm13  ;;  %vm1613_vm13 = vcmp.eq.s32.totalorder %v17585_v56, %v17738_v60 }
 0x267   :  { %vm1607_vm0 = vcmp.eq.s32.totalorder %v17577_v52, %v17716_v53  ;;  %vm1609_vm5 = vcmp.eq.s32.totalorder %v17585_v56, %v17716_v53  ;;  %v18720_v41 = vsel %vm17772_vm10, 4294967295, %v18719_v41  ;;  %vm17788_vm11 = vmor %vm18722_vm9, %vm1548_vm15  ;;  %vm1651_vm9 = vcmp.eq.s32.totalorder %v17577_v52, %v17784_v42 }
 0x268   :  { %vm1615_vm6 = vmor %vm17718_vm3, %vm1607_vm0  ;;  %v18724_v37 = vsel %vm17788_vm11, 4294967295, %v18723_v37  ;;  %vm18725_vm3 = vnez %v18710_v35  ;;  %vm1564_vm11 = vcmp.eq.s32.totalorder %v17582_v55, %v17608_v61 }
 0x269   :  { %vm1617_vm7 = vmor %vm18721_vm14, %vm1609_vm5 }
 0x26a   :  { %vm1619_vm0 = vmor %vm18725_vm3, %vm1611_vm1  ;;  %vm1566_vm1 = vcmp.eq.s32.totalorder %v17588_v57, %v17608_v61  ;;  %v18732_v61 = vmov 0 }
 0x26b   :  { %v17749_v58 = vpop.permute.xlu1 %1624 }
 0x26c   :  { %vm1629_vm8 = vcmp.eq.s32.totalorder %v17577_v52, %v17749_v58  ;;  %vm1631_vm2 = vcmp.eq.s32.totalorder %v17585_v56, %v17749_v58 }
 0x26d   :  { %vm1637_vm10 = vmor %vm1615_vm6, %vm1629_vm8  ;;  %vm1568_vm6 = vcmp.eq.s32.totalorder %v17582_v55, %v17639_v40 }
 0x26e   :  { %vm17800_vm14 = vmor %vm1617_vm7, %vm1631_vm2 }
 0x26f   :  { %v17794_v43 = vpop.permute.xlu1 %1627  ;;  %v18727_v46 = vsel %vm17800_vm14, 4294967295, %v18726_v46  ;;  %vm1621_vm8 = vmor %vm17764_vm4, %vm1613_vm13  ;;  %vm1586_vm4 = vcmp.eq.s32.totalorder %v17582_v55, %v17669_v44 }
 0x270   :  { %vm1633_vm5 = vcmp.eq.s32.totalorder %v17577_v52, %v17794_v43  ;;  %vm1635_vm15 = vcmp.eq.s32.totalorder %v17585_v56, %v17794_v43  ;;  %vm17816_vm7 = vmor %vm1637_vm10, %vm1651_vm9  ;;  %vm1570_vm10 = vcmp.eq.s32.totalorder %v17588_v57, %v17639_v40  ;;  %vm1590_vm9 = vcmp.eq.s32.totalorder %v17582_v55, %v17671_v45 }
 0x271   :  { %vm1641_vm2 = vmor %vm1619_vm0, %vm1633_vm5  ;;  %v18729_v47 = vsel %vm17816_vm7, 4294967295, %v18728_v47  ;;  %vm18734_vm0 = vnez %v18713_v34  ;;  %vm18738_vm7 = vnez %v18724_v37 }
 0x272   :  { %vm17820_vm3 = vmor %vm1621_vm8, %vm1635_vm15  ;;  %vm18735_vm15 = vnez %v18720_v41 }
 0x273   :  { %v18731_v49 = vsel %vm17820_vm3, 4294967295, %v18730_v49  ;;  %vm17826_vm14 = vmor %vm17759_vm12, %vm1566_vm1 }
 0x274   :  { %v1650_v48 = vpop.permute.xlu1 %1649  ;;  %v18733_v61 = vsel %vm17826_vm14, 4294967295, %v18732_v61  ;;  %vm1572_vm5 = vmor %vm18734_vm0, %vm1564_vm11  ;;  %vm1608_vm14 = vcmp.eq.s32.totalorder %v17582_v55, %v17716_v53  ;;  %vm1612_vm0 = vcmp.eq.s32.totalorder %v17582_v55, %v17738_v60 }
 0x275   :  { %vm1655_vm13 = vcmp.eq.s32.totalorder %v17577_v52, %v1650_v48  ;;  %vm1576_vm12 = vmor %vm18735_vm15, %vm1568_vm6  ;;  %vm1657_vm1 = vcmp.eq.s32.totalorder %v17585_v56, %v1650_v48  ;;  %v18739_v52 = vmov 0  ;;  %vm1653_vm6 = vcmp.eq.s32.totalorder %v17585_v56, %v17784_v42 }
 0x276   :  { %vm17842_vm8 = vmor %vm1641_vm2, %vm1655_vm13  ;;  %vm1630_vm13 = vcmp.eq.s32.totalorder %v17582_v55, %v17749_v58  ;;  %vm18741_vm15 = vnez %v18731_v49 }
 0x277   :  { %v18737_v51 = vsel %vm17842_vm8, 4294967295, %v18736_v51  ;;  %vm17850_vm3 = vmor %vm18738_vm7, %vm1570_vm10 }
 0x278   :  { %v18740_v52 = vsel %vm17850_vm3, 4294967295, %v18739_v52  ;;  %vm1594_vm11 = vmor %vm1572_vm5, %vm1586_vm4  ;;  %vm1634_vm4 = vcmp.eq.s32.totalorder %v17582_v55, %v17794_v43  ;;  %vm1652_vm5 = vcmp.eq.s32.totalorder %v17582_v55, %v17784_v42  ;;  %vm18744_vm3 = vnez %v18727_v46 }
 0x279   :  { %vm1598_vm2 = vmor %vm1576_vm12, %vm1590_vm9 }
 0x27a   :  { %vm17862_vm8 = vmor %vm18741_vm15, %vm1657_vm1  ;;  %vm1656_vm1 = vcmp.eq.s32.totalorder %v17582_v55, %v1650_v48  ;;  %vm1588_vm15 = vcmp.eq.s32.totalorder %v17588_v57, %v17669_v44 }
 0x27b   :  { %vm1616_vm7 = vmor %vm1594_vm11, %vm1608_vm14  ;;  %vm18747_vm11 = vnez %v18737_v51 }
 0x27c   :  { %vm1620_vm10 = vmor %vm1598_vm2, %vm1612_vm0  ;;  %v1671_v59 = vsel %vm18747_vm11, 1.0, %v16277_v54  ;;  %vm1592_vm0 = vcmp.eq.s32.totalorder %v17588_v57, %v17671_v45  ;;  %vm1636_vm11 = vcmp.eq.s32.totalorder %v17588_v57, %v17794_v43 }
 0x27d   :  { %vm17872_vm9 = vmor %vm18744_vm3, %vm1653_vm6  ;;  %vm1610_vm3 = vcmp.eq.s32.totalorder %v17588_v57, %v17716_v53  ;;  %v1673_v53 = vsel %vm17862_vm8, 1.0, %v16277_v54 }
 0x27e   :  { %vm1638_vm12 = vmor %vm1616_vm7, %vm1630_vm13  ;;  %vm18748_vm13 = vnez %v18729_v47  ;;  %vm1614_vm7 = vcmp.eq.s32.totalorder %v17588_v57, %v17738_v60  ;;  %v1669_v60 = vsel %vm17872_vm9, 1.0, %v16277_v54 }
 0x27f   :  { %vm1642_vm14 = vmor %vm1620_vm10, %vm1634_vm4  ;;  %v1667_v55 = vsel %vm18748_vm13, 1.0, %v16277_v54  ;;  %vm18749_vm4 = vnez %v18733_v61  ;;  %vm1658_vm13 = vcmp.eq.s32.totalorder %v17588_v57, %v1650_v48  ;;  %v1677_v39 = vpack.c.bf16 %v1673_v53, %v1669_v60 }
 0x280   :  { %vm1660_vm2 = vmor %vm1638_vm12, %vm1652_vm5  ;;  %v1675_v45 = vpack.c.bf16 %v1671_v59, %v1667_v55  ;;  %vm18750_vm5 = vnez %v18740_v52  ;;  %v12629_v59 = vcombine.high %v16522_v2, %v16532_v4  ;;  %v12628_v55 = vcombine.low %v16522_v2, %v16532_v4 }
 0x281   :  { %vm1664_vm6 = vmor %vm1642_vm14, %vm1656_vm1  ;;  %v1668_v44 = vsel %vm1660_vm2, 1.0, %v16277_v54  ;;  %vm1632_vm1 = vcmp.eq.s32.totalorder %v17588_v57, %v17749_v58  ;;  %vm1654_vm2 = vcmp.eq.s32.totalorder %v17588_v57, %v17784_v42 }
 0x282   :  { %v1672_v35 = vsel %vm1664_vm6, 1.0, %v16277_v54  ;;  %vm1596_vm10 = vmor %vm18749_vm4, %vm1588_vm15 }
 0x283   :  { %v1676_v34 = vpack.c.bf16 %v1672_v35, %v1668_v44  ;;  %vm1600_vm12 = vmor %vm18750_vm5, %vm1592_vm0  ;;  %v12633_v44 = vcombine.high %v16542_v6, %v16552_v8 }
 0x284   :  { %vm1618_vm14 = vmor %vm1596_vm10, %vm1610_vm3  ;;  %vm1907_vm3 = vcmask 539648  }
 0x285   :  { %1947 = vmatprep.mubr.bf16.mxu0 %v1676_v34  ;;  %vm1622_vm6 = vmor %vm1600_vm12, %vm1614_vm7 }
 0x286   :  { %vm1640_vm15 = vmor %vm1618_vm14, %vm1632_vm1  ;;  %1948 = vmatmul.mubr.bf16.vlgmr.msra.gmra.mrb[0].mxu0 %v1675_v45 }
 0x287   :  { %vm1644_vm4 = vmor %vm1622_vm6, %vm1636_vm11  ;;  %2184 = vmatprep.mubr.bf16.mxu0 %v16269_v36 }
 0x288   :  { %vm1662_vm0 = vmor %vm1640_vm15, %vm1654_vm2 }
 0x289   :  { %vm1666_vm5 = vmor %vm1644_vm4, %vm1658_vm13  ;;  %v1670_v58 = vsel %vm1662_vm0, 1.0, %v16277_v54 }
 0x28a   :  { %v1674_v38 = vsel %vm1666_vm5, 1.0, %v16277_v54 }
 0x28b   :  { %v1678_v57 = vpack.c.bf16 %v1674_v38, %v1670_v58 }
 0x28d   :  { %12627 = vmatprep.mubr.msk.bf16.mxu1 %vm1907_vm3, %v1678_v57 }
 0x28e   :  { %1989 = vmatmul.mubr.bf16.vlgmr.msra.gmra.mrb[0].mxu1 %v1677_v39 }
 0x359   :  { %v13762_v41 = vpop.f32.mrb[0].mxu0 }
 0x35a   :  { %v13763_v42 = vpop.f32.mrb[1].mxu0 }
 0x35b   :  { %v13764_v37 = vadd.f32 %v13763_v42, %v13762_v41  ;;  %v13765_v43 = vpop.f32.mrb[2].mxu0 }
 0x35c   :  { %v13766_v46 = vpop.f32.mrb[3].mxu0 }
 0x35d   :  { %v13767_v47 = vadd.f32 %v13766_v46, %v13765_v43 }
 0x361   :  { %v1990_v48 = vpop.f32.mrb[0].mxu1 }
 0x362   :  { %v1991_v49 = vadd.f32 %v13764_v37, %v1990_v48  ;;  %v1992_v61 = vpop.f32.mrb[1].mxu1 }
 0x363   :  { %v1993_v51 = vpop.f32.mrb[2].mxu1 }
 0x364   :  { %v1994_v52 = vadd.f32 %v13767_v47, %v1993_v51  ;;  %v1995_v40 = vpop.f32.mrb[3].mxu1 }
 0x366   :  { %v17912_v56 = vpack.c.bf16 %v1994_v52, %v1991_v49 }
 0x367   :  { %16226 = dma.done.wait [#allocation11], 2304 }
 0x368   :  { %16227 = vsyncadd [#allocation11], 4294964992  ;;  %2152 = vmatprep.subr.bf16.mxu0 %v12629_v59  ;;  %v12632_v35 = vcombine.low %v16542_v6, %v16552_v8  ;;  %v12637_v45 = vcombine.high %v16562_v10, %v16572_v12  ;;  %v12636_v2 = vcombine.low %v16562_v10, %v16572_v12  ;;  %v12641_v4 = vcombine.high %v16582_v14, %v16592_v16 }
 0x369   :  { %2153 = vmatpush1.bf16.msra.mxu0 %v12628_v55  ;;  %v12640_v34 = vcombine.low %v16582_v14, %v16592_v16  ;;  %v12645_v6 = vcombine.high %v16602_v18, %v16602_v18  ;;  %v12644_v8 = vcombine.low %v16602_v18, %v16602_v18  ;;  %vm2139_vm8 = vcmask 1043456  }
 0x36a   :  { %2154 = vmatprep.subr.bf16.mxu0 %v12633_v44  ;;  %v12631_v12 = vcombine.high %v16527_v3, %v16537_v5  ;;  %vm2135_vm9 = vcmask 588800   ;;  %v12630_v14 = vcombine.low %v16527_v3, %v16537_v5  ;;  %v12635_v16 = vcombine.high %v16547_v7, %v16557_v9 }
 0x36b   :  { %v2141_v10 = vsel %vm2139_vm8, %v12644_v8, 0  ;;  %v12634_v18 = vcombine.low %v16547_v7, %v16557_v9  ;;  %v12639_v53 = vcombine.high %v16567_v11, %v16577_v13  ;;  %v12638_v3 = vcombine.low %v16567_v11, %v16577_v13 }
 0x36c   :  { %v12643_v5 = vcombine.high %v16587_v15, %v16597_v17  ;;  %v12642_v60 = vcombine.low %v16587_v15, %v16597_v17  ;;  %v12647_v7 = vcombine.high %v16607_v19, %v16607_v19  ;;  %v12646_v9 = vcombine.low %v16607_v19, %v16607_v19  ;;  %v2023_v17 = vld [vmem:[#allocation14] sm:$0xf] }
 0x36d   :  { %2155 = vmatpush1.bf16.msra.mxu0 %v12632_v35  ;;  %v17965_v13 = vshrl.u32 %v1472_v50, 7 }
 0x36e   :  { %2156 = vmatprep.subr.bf16.mxu0 %v12637_v45  ;;  %v2147_v11 = vsel %vm2139_vm8, %v12646_v9, 0 }
 0x36f   :  { %v17968_v15 = vsub.s32 0, %v17965_v13  ;;  %v17971_v58 = vsub.s32 1, %v17965_v13  ;;  %v17980_v40 = vsub.s32 2, %v17965_v13  ;;  %v17983_v59 = vsub.s32 3, %v17965_v13 }
 0x371   :  { %2157 = vmatpush1.bf16.msra.mxu0 %v12636_v2  ;;  %v2028_v19 = vrot.slane %v2023_v17, %v17968_v15  ;;  %v2032_v38 = vrot.slane %v2023_v17, %v17971_v58  ;;  %v2036_v55 = vrot.slane %v2023_v17, %v17980_v40  ;;  %v2040_v44 = vrot.slane %v2023_v17, %v17983_v59 }
 0x372   :  { %2158 = vmatprep.subr.bf16.mxu0 %v12641_v4 }
 0x375   :  { %2159 = vmatpush1.bf16.msra.mxu0 %v12640_v34 }
 0x376   :  { %12648 = vmatprep.subr.msk.bf16.mxu0 %vm2139_vm8, %v12645_v6 }
 0x379   :  { %2161 = vmatpush1.bf16.msra.mxu0 %v2141_v10 }
 0x37a   :  { %2195 = vmatprep.subr.bf16.mxu0 %v12631_v12 }
 0x37c   :  { %12649 = vmatmul.mubr.msk.bf16.vlgmr.msra.gmra.mrb[4].mxu0 %vm2135_vm9, %v17912_v56 }
 0x37d   :  { %2196 = vmatpush1.bf16.msra.mxu0 %v12630_v14  ;;  %2227 = vmatprep.mubr.bf16.mxu0 %v16269_v36 }
 0x37e   :  { %2197 = vmatprep.subr.bf16.mxu0 %v12635_v16 }
 0x381   :  { %2198 = vmatpush1.bf16.msra.mxu0 %v12634_v18 }
 0x382   :  { %2199 = vmatprep.subr.bf16.mxu0 %v12639_v53 }
 0x385   :  { %2200 = vmatpush1.bf16.msra.mxu0 %v12638_v3 }
 0x386   :  { %2201 = vmatprep.subr.bf16.mxu0 %v12643_v5 }
 0x389   :  { %2202 = vmatpush1.bf16.msra.mxu0 %v12642_v60 }
 0x38a   :  { %12650 = vmatprep.subr.msk.bf16.mxu0 %vm2139_vm8, %v12647_v7 }
 0x38d   :  { %2204 = vmatpush1.bf16.msra.mxu0 %v2147_v11 }
 0x390   :  { %12651 = vmatmul.mubr.msk.bf16.vlgmr.msra.gmra.mrb[8].mxu0 %vm2135_vm9, %v17912_v56 }
 0x44f   :  { %v2186_v39 = vpop.f32.mrb[4].mxu0 }
 0x450   :  { %v2187_v57 = vadd.f32 %v2186_v39, %v2028_v19  ;;  %v2188_v41 = vpop.f32.mrb[5].mxu0 }
 0x451   :  { %v2189_v42 = vadd.f32 %v2188_v41, %v2032_v38  ;;  %v2190_v37 = vpop.f32.mrb[6].mxu0 }
 0x452   :  { %v2238_v43 = vmax.f32 %v2187_v57, 0.0  ;;  %v2191_v46 = vadd.f32 %v2190_v37, %v2028_v19  ;;  %v2192_v50 = vpop.f32.mrb[7].mxu0 }
 0x453   :  { %v2193_v47 = vadd.f32 %v2192_v50, %v2032_v38  ;;  %v2239_v49 = vmax.f32 %v2189_v42, 0.0 }
 0x454   :  { %v2242_v48 = vmax.f32 %v2191_v46, 0.0 }
 0x455   :  { %v2243_v61 = vmax.f32 %v2193_v47, 0.0 }
 0x456   :  { %v17975_v51 = vpack.c.bf16 %v2242_v48, %v2238_v43 }
 0x457   :  { %v17977_v52 = vpack.c.bf16 %v2243_v61, %v2239_v49 }
 0x463   :  { %v2229_v35 = vpop.f32.mrb[8].mxu0 }
 0x464   :  { %v2230_v45 = vadd.f32 %v2229_v35, %v2036_v55  ;;  %v2231_v2 = vpop.f32.mrb[9].mxu0 }
 0x465   :  { %v2232_v4 = vadd.f32 %v2231_v2, %v2040_v44  ;;  %v2233_v34 = vpop.f32.mrb[10].mxu0 }
 0x466   :  { %v2234_v6 = vadd.f32 %v2233_v34, %v2036_v55  ;;  %v2235_v8 = vpop.f32.mrb[11].mxu0  ;;  %v2240_v12 = vmax.f32 %v2230_v45, 0.0 }
 0x467   :  { %v2236_v10 = vadd.f32 %v2235_v8, %v2040_v44  ;;  %v2241_v16 = vmax.f32 %v2232_v4, 0.0 }
 0x468   :  { %v2244_v14 = vmax.f32 %v2234_v6, 0.0 }
 0x469   :  { %v2245_v18 = vmax.f32 %v2236_v10, 0.0 }
 0x46a   :  { %v17987_v53 = vpack.c.bf16 %v2244_v14, %v2240_v12 }
 0x46b   :  { %v17989_v3 = vpack.c.bf16 %v2245_v18, %v2241_v16 }
 0x46c   :  { %16228 = dma.done.wait [#allocation11 + $0x1], 16000 }
 0x46d   :  { %16229 = vsyncadd [#allocation11 + $0x1], 4294951296  ;;  %2446 = vmatprep.mubr.bf16.mxu1 %v17977_v52  ;;  %2532 = vmatprep.mubr.bf16.mxu0 %v17977_v52  ;;  %v2259_v5 = vld [vmem:[#allocation3 + $0x8] sm:$0xff]  ;;  %v2261_v60 = vld [vmem:[#allocation3 + $0x18] sm:$0xff]  ;;  %vm2410_vm7 = vcmask 130048  }
 0x46e   :  { %v2258_v7 = vld [vmem:[#allocation3] sm:$0xff]  ;;  %2414 = vmatprep.subr.bf16.mxu1 %v2259_v5  ;;  %2500 = vmatprep.subr.bf16.mxu0 %v2261_v60  ;;  %v2260_v9 = vld [vmem:[#allocation3 + $0x10] sm:$0xff]  ;;  %v2263_v19 = vld [vmem:[#allocation3 + $0x28] sm:$0xff] }
 0x46f   :  { %v2264_v11 = vld [vmem:[#allocation3 + $0x30] sm:$0xff]  ;;  %v2266_v17 = vld [vmem:[#allocation3 + $0x40] sm:$0xff]  ;;  %2415 = vmatpush1.bf16.msra.mxu1 %v2258_v7  ;;  %2501 = vmatpush1.bf16.msra.mxu0 %v2260_v9  ;;  %v2265_v38 = vld [vmem:[#allocation3 + $0x38] sm:$0xff] }
 0x470   :  { %2416 = vmatprep.subr.bf16.mxu1 %v2264_v11  ;;  %2502 = vmatprep.subr.bf16.mxu0 %v2266_v17  ;;  %v2269_v39 = vld [vmem:[#allocation3 + $0x58] sm:$0xff]  ;;  %v2271_v57 = vld [vmem:[#allocation3 + $0x68] sm:$0xff]  ;;  %v2268_v41 = vld [vmem:[#allocation3 + $0x50] sm:$0xff] }
 0x471   :  { %v2270_v42 = vld [vmem:[#allocation3 + $0x60] sm:$0xff]  ;;  %v2276_v43 = vld [vmem:[#allocation3 + $0x90] sm:$0xff]  ;;  %v2273_v46 = vld [vmem:[#allocation3 + $0x78] sm:$0xff] }
 0x472   :  { %v2274_v37 = vld [vmem:[#allocation3 + $0x80] sm:$0xff]  ;;  %v2275_v50 = vld [vmem:[#allocation3 + $0x88] sm:$0xff]  ;;  %v2281_v48 = vld [vmem:[#allocation3 + $0xb8] sm:$0xff] }
 0x473   :  { %2417 = vmatpush1.bf16.msra.mxu1 %v2263_v19  ;;  %2503 = vmatpush1.bf16.msra.mxu0 %v2265_v38  ;;  %v2279_v47 = vld [vmem:[#allocation3 + $0xa8] sm:$0xff]  ;;  %v2278_v49 = vld [vmem:[#allocation3 + $0xa0] sm:$0xff]  ;;  %v2280_v61 = vld [vmem:[#allocation3 + $0xb0] sm:$0xff] }
 0x474   :  { %2418 = vmatprep.subr.bf16.mxu1 %v2269_v39  ;;  %2504 = vmatprep.subr.bf16.mxu0 %v2271_v57  ;;  %v2284_v55 = vld [vmem:[#allocation3 + $0xd0] sm:$0xff]  ;;  %v2286_v44 = vld [vmem:[#allocation3 + $0xe0] sm:$0xff]  ;;  %v2283_v35 = vld [vmem:[#allocation3 + $0xc8] sm:$0xff] }
 0x475   :  { %v2285_v45 = vld [vmem:[#allocation3 + $0xd8] sm:$0xff]  ;;  %v2291_v4 = vld [vmem:[#allocation3 + $0x108] sm:$0xff]  ;;  %v2288_v34 = vld [vmem:[#allocation3 + $0xf0] sm:$0xff] }
 0x476   :  { %v2289_v2 = vld [vmem:[#allocation3 + $0xf8] sm:$0xff]  ;;  %v2290_v6 = vld [vmem:[#allocation3 + $0x100] sm:$0xff]  ;;  %v2296_v10 = vld [vmem:[#allocation3 + $0x130] sm:$0xff] }
 0x477   :  { %2419 = vmatpush1.bf16.msra.mxu1 %v2268_v41  ;;  %2505 = vmatpush1.bf16.msra.mxu0 %v2270_v42  ;;  %v2294_v8 = vld [vmem:[#allocation3 + $0x120] sm:$0xff]  ;;  %v2293_v12 = vld [vmem:[#allocation3 + $0x118] sm:$0xff]  ;;  %v2295_v14 = vld [vmem:[#allocation3 + $0x128] sm:$0xff] }
 0x478   :  { %2420 = vmatprep.subr.bf16.mxu1 %v2274_v37  ;;  %2506 = vmatprep.subr.bf16.mxu0 %v2276_v43  ;;  %v2299_v16 = vld [vmem:[#allocation3 + $0x148] sm:$0xff]  ;;  %v2301_v18 = vld [vmem:[#allocation3 + $0x158] sm:$0xff]  ;;  %v2298_v5 = vld [vmem:[#allocation3 + $0x140] sm:$0xff] }
 0x479   :  { %v2300_v60 = vld [vmem:[#allocation3 + $0x150] sm:$0xff]  ;;  %v2306_v9 = vld [vmem:[#allocation3 + $0x180] sm:$0xff]  ;;  %v2303_v11 = vld [vmem:[#allocation3 + $0x168] sm:$0xff] }
 0x47a   :  { %v2304_v7 = vld [vmem:[#allocation3 + $0x170] sm:$0xff]  ;;  %v2305_v17 = vld [vmem:[#allocation3 + $0x178] sm:$0xff]  ;;  %v2311_v38 = vld [vmem:[#allocation3 + $0x1a8] sm:$0xff] }
 0x47b   :  { %2421 = vmatpush1.bf16.msra.mxu1 %v2273_v46  ;;  %2507 = vmatpush1.bf16.msra.mxu0 %v2275_v50  ;;  %v2309_v19 = vld [vmem:[#allocation3 + $0x198] sm:$0xff]  ;;  %v2308_v39 = vld [vmem:[#allocation3 + $0x190] sm:$0xff]  ;;  %v2310_v57 = vld [vmem:[#allocation3 + $0x1a0] sm:$0xff] }
 0x47c   :  { %2422 = vmatprep.subr.bf16.mxu1 %v2279_v47  ;;  %2508 = vmatprep.subr.bf16.mxu0 %v2281_v48  ;;  %v2314_v41 = vld [vmem:[#allocation3 + $0x1c0] sm:$0xff]  ;;  %v2316_v42 = vld [vmem:[#allocation3 + $0x1d0] sm:$0xff]  ;;  %v2313_v37 = vld [vmem:[#allocation3 + $0x1b8] sm:$0xff] }
 0x47d   :  { %v2315_v43 = vld [vmem:[#allocation3 + $0x1c8] sm:$0xff]  ;;  %v2321_v50 = vld [vmem:[#allocation3 + $0x1f8] sm:$0xff]  ;;  %v2318_v47 = vld [vmem:[#allocation3 + $0x1e0] sm:$0xff] }
 0x47e   :  { %v2319_v46 = vld [vmem:[#allocation3 + $0x1e8] sm:$0xff]  ;;  %v2320_v48 = vld [vmem:[#allocation3 + $0x1f0] sm:$0xff] }
 0x47f   :  { %2423 = vmatpush1.bf16.msra.mxu1 %v2278_v49  ;;  %2509 = vmatpush1.bf16.msra.mxu0 %v2280_v61  ;;  %v2324_v49 = vld [vmem:[#allocation3 + $0x210] sm:$0xff]  ;;  %v2326_v61 = vld [vmem:[#allocation3 + $0x220] sm:$0xff] }
 0x480   :  { %2424 = vmatprep.subr.bf16.mxu1 %v2284_v55  ;;  %2510 = vmatprep.subr.bf16.mxu0 %v2286_v44  ;;  %v2323_v55 = vld [vmem:[#allocation3 + $0x208] sm:$0xff]  ;;  %v2325_v44 = vld [vmem:[#allocation3 + $0x218] sm:$0xff] }
 0x483   :  { %2425 = vmatpush1.bf16.msra.mxu1 %v2283_v35  ;;  %2511 = vmatpush1.bf16.msra.mxu0 %v2285_v45  ;;  %v2329_v35 = vld [vmem:[#allocation3 + $0x238] sm:$0xff]  ;;  %v2331_v45 = vld [vmem:[#allocation3 + $0x248] sm:$0xff] }
 0x484   :  { %2426 = vmatprep.subr.bf16.mxu1 %v2289_v2  ;;  %2512 = vmatprep.subr.bf16.mxu0 %v2291_v4  ;;  %v2328_v2 = vld [vmem:[#allocation3 + $0x230] sm:$0xff]  ;;  %v2330_v4 = vld [vmem:[#allocation3 + $0x240] sm:$0xff] }
 0x487   :  { %2427 = vmatpush1.bf16.msra.mxu1 %v2288_v34  ;;  %2513 = vmatpush1.bf16.msra.mxu0 %v2290_v6  ;;  %v2334_v34 = vld [vmem:[#allocation3 + $0x260] sm:$0xff]  ;;  %v2336_v6 = vld [vmem:[#allocation3 + $0x270] sm:$0xff] }
 0x488   :  { %2428 = vmatprep.subr.bf16.mxu1 %v2294_v8  ;;  %2514 = vmatprep.subr.bf16.mxu0 %v2296_v10  ;;  %v2333_v8 = vld [vmem:[#allocation3 + $0x258] sm:$0xff]  ;;  %v2335_v10 = vld [vmem:[#allocation3 + $0x268] sm:$0xff] }
 0x48b   :  { %2429 = vmatpush1.bf16.msra.mxu1 %v2293_v12  ;;  %2515 = vmatpush1.bf16.msra.mxu0 %v2295_v14  ;;  %v2339_v12 = vld [vmem:[#allocation3 + $0x288] sm:$0xff]  ;;  %v2341_v14 = vld [vmem:[#allocation3 + $0x298] sm:$0xff] }
 0x48c   :  { %2430 = vmatprep.subr.bf16.mxu1 %v2299_v16  ;;  %2516 = vmatprep.subr.bf16.mxu0 %v2301_v18  ;;  %v2338_v16 = vld [vmem:[#allocation3 + $0x280] sm:$0xff]  ;;  %v2340_v18 = vld [vmem:[#allocation3 + $0x290] sm:$0xff] }
 0x48f   :  { %2431 = vmatpush1.bf16.msra.mxu1 %v2298_v5  ;;  %2517 = vmatpush1.bf16.msra.mxu0 %v2300_v60  ;;  %v2344_v5 = vld [vmem:[#allocation3 + $0x2b0] sm:$0xff]  ;;  %v2346_v60 = vld [vmem:[#allocation3 + $0x2c0] sm:$0xff] }
 0x490   :  { %2432 = vmatprep.subr.bf16.mxu1 %v2304_v7  ;;  %2518 = vmatprep.subr.bf16.mxu0 %v2306_v9  ;;  %v2343_v7 = vld [vmem:[#allocation3 + $0x2a8] sm:$0xff]  ;;  %v2345_v9 = vld [vmem:[#allocation3 + $0x2b8] sm:$0xff] }
 0x493   :  { %2433 = vmatpush1.bf16.msra.mxu1 %v2303_v11  ;;  %2519 = vmatpush1.bf16.msra.mxu0 %v2305_v17  ;;  %v2349_v11 = vld [vmem:[#allocation3 + $0x2d8] sm:$0xff]  ;;  %v2351_v17 = vld [vmem:[#allocation3 + $0x2e8] sm:$0xff] }
 0x494   :  { %2434 = vmatprep.subr.bf16.mxu1 %v2309_v19  ;;  %2520 = vmatprep.subr.bf16.mxu0 %v2311_v38  ;;  %v2348_v19 = vld [vmem:[#allocation3 + $0x2d0] sm:$0xff]  ;;  %v2350_v38 = vld [vmem:[#allocation3 + $0x2e0] sm:$0xff] }
 0x497   :  { %2435 = vmatpush1.bf16.msra.mxu1 %v2308_v39  ;;  %2521 = vmatpush1.bf16.msra.mxu0 %v2310_v57  ;;  %v2354_v39 = vld [vmem:[#allocation3 + $0x300] sm:$0xff]  ;;  %v2356_v57 = vld [vmem:[#allocation3 + $0x310] sm:$0xff] }
 0x498   :  { %2436 = vmatprep.subr.bf16.mxu1 %v2314_v41  ;;  %2522 = vmatprep.subr.bf16.mxu0 %v2316_v42  ;;  %v2353_v41 = vld [vmem:[#allocation3 + $0x2f8] sm:$0xff]  ;;  %v2355_v42 = vld [vmem:[#allocation3 + $0x308] sm:$0xff] }
 0x49b   :  { %2437 = vmatpush1.bf16.msra.mxu1 %v2313_v37  ;;  %2523 = vmatpush1.bf16.msra.mxu0 %v2315_v43  ;;  %v2359_v37 = vld [vmem:[#allocation3 + $0x328] sm:$0xff]  ;;  %v2361_v43 = vld [vmem:[#allocation3 + $0x338] sm:$0xff] }
 0x49c   :  { %2438 = vmatprep.subr.bf16.mxu1 %v2319_v46  ;;  %2524 = vmatprep.subr.bf16.mxu0 %v2321_v50  ;;  %v2358_v46 = vld [vmem:[#allocation3 + $0x320] sm:$0xff]  ;;  %v2360_v50 = vld [vmem:[#allocation3 + $0x330] sm:$0xff] }
 0x49f   :  { %2439 = vmatpush1.bf16.msra.mxu1 %v2318_v47  ;;  %2525 = vmatpush1.bf16.msra.mxu0 %v2320_v48  ;;  %v2364_v47 = vld [vmem:[#allocation3 + $0x350] sm:$0xff]  ;;  %v2366_v48 = vld [vmem:[#allocation3 + $0x360] sm:$0xff] }
 0x4a0   :  { %2440 = vmatprep.subr.bf16.mxu1 %v2324_v49  ;;  %2526 = vmatprep.subr.bf16.mxu0 %v2326_v61  ;;  %v2363_v49 = vld [vmem:[#allocation3 + $0x348] sm:$0xff]  ;;  %v2365_v61 = vld [vmem:[#allocation3 + $0x358] sm:$0xff] }
 0x4a3   :  { %2441 = vmatpush1.bf16.msra.mxu1 %v2323_v55  ;;  %2527 = vmatpush1.bf16.msra.mxu0 %v2325_v44  ;;  %v2369_v55 = vld [vmem:[#allocation3 + $0x378] sm:$0xff]  ;;  %v2371_v44 = vld [vmem:[#allocation3 + $0x388] sm:$0xff] }
 0x4a4   :  { %2442 = vmatprep.subr.bf16.mxu1 %v2329_v35  ;;  %2528 = vmatprep.subr.bf16.mxu0 %v2331_v45  ;;  %v2368_v35 = vld [vmem:[#allocation3 + $0x370] sm:$0xff]  ;;  %v2370_v45 = vld [vmem:[#allocation3 + $0x380] sm:$0xff] }
 0x4a7   :  { %2443 = vmatpush1.bf16.msra.mxu1 %v2328_v2  ;;  %2529 = vmatpush1.bf16.msra.mxu0 %v2330_v4  ;;  %v2374_v2 = vld [vmem:[#allocation3 + $0x3a0] sm:$0xff]  ;;  %v2376_v4 = vld [vmem:[#allocation3 + $0x3b0] sm:$0xff] }
 0x4a8   :  { %2444 = vmatprep.subr.bf16.mxu1 %v2334_v34  ;;  %2530 = vmatprep.subr.bf16.mxu0 %v2336_v6  ;;  %v2373_v34 = vld [vmem:[#allocation3 + $0x398] sm:$0xff]  ;;  %v2375_v6 = vld [vmem:[#allocation3 + $0x3a8] sm:$0xff] }
 0x4ab   :  { %2445 = vmatpush1.bf16.msra.mxu1 %v2333_v8  ;;  %2531 = vmatpush1.bf16.msra.mxu0 %v2335_v10  ;;  %v2379_v8 = vld [vmem:[#allocation3 + $0x3c8] sm:$0xff]  ;;  %v2381_v10 = vld [vmem:[#allocation3 + $0x3d8] sm:$0xff] }
 0x4ac   :  { %2457 = vmatprep.subr.bf16.mxu1 %v2339_v12  ;;  %2543 = vmatprep.subr.bf16.mxu0 %v2341_v14  ;;  %v2378_v12 = vld [vmem:[#allocation3 + $0x3c0] sm:$0xff]  ;;  %v2380_v14 = vld [vmem:[#allocation3 + $0x3d0] sm:$0xff] }
 0x4ae   :  { %2447 = vmatmul.mubr.bf16.vlgmr.msra.gmra.mrb[4].mxu1 %v17975_v51  ;;  %2533 = vmatmul.mubr.bf16.vlgmr.msra.gmra.mrb[12].mxu0 %v17975_v51 }
 0x4af   :  { %2458 = vmatpush1.bf16.msra.mxu1 %v2338_v16  ;;  %2544 = vmatpush1.bf16.msra.mxu0 %v2340_v18  ;;  %v2302_v16 = vld [vmem:[#allocation3 + $0x160] sm:$0xff] }
 0x4b0   :  { %2459 = vmatprep.subr.bf16.mxu1 %v2344_v5  ;;  %2545 = vmatprep.subr.bf16.mxu0 %v2346_v60  ;;  %v2262_v18 = vld [vmem:[#allocation3 + $0x20] sm:$0xff]  ;;  %v2307_v60 = vld [vmem:[#allocation3 + $0x188] sm:$0xff] }
 0x4b1   :  { %12652 = vmatprep.mubr.msk.bf16.mxu1 %vm2410_vm7, %v17989_v3  ;;  %12653 = vmatprep.mubr.msk.bf16.mxu0 %vm2410_vm7, %v17989_v3  ;;  %v2342_v5 = vld [vmem:[#allocation3 + $0x2a0] sm:$0xff] }
 0x4b3   :  { %2460 = vmatpush1.bf16.msra.mxu1 %v2343_v7  ;;  %2546 = vmatpush1.bf16.msra.mxu0 %v2345_v9  ;;  %v2267_v7 = vld [vmem:[#allocation3 + $0x48] sm:$0xff] }
 0x4b4   :  { %2461 = vmatprep.subr.bf16.mxu1 %v2349_v11  ;;  %2547 = vmatprep.subr.bf16.mxu0 %v2351_v17  ;;  %v2347_v9 = vld [vmem:[#allocation3 + $0x2c8] sm:$0xff]  ;;  %v2312_v11 = vld [vmem:[#allocation3 + $0x1b0] sm:$0xff] }
 0x4b5   :  { %v2272_v17 = vld [vmem:[#allocation3 + $0x70] sm:$0xff] }
 0x4b7   :  { %2462 = vmatpush1.bf16.msra.mxu1 %v2348_v19  ;;  %2548 = vmatpush1.bf16.msra.mxu0 %v2350_v38  ;;  %v2352_v19 = vld [vmem:[#allocation3 + $0x2f0] sm:$0xff]  ;;  %v2317_v38 = vld [vmem:[#allocation3 + $0x1d8] sm:$0xff] }
 0x4b8   :  { %2463 = vmatprep.subr.bf16.mxu1 %v2354_v39  ;;  %2549 = vmatprep.subr.bf16.mxu0 %v2356_v57  ;;  %v2277_v39 = vld [vmem:[#allocation3 + $0x98] sm:$0xff] }
 0x4b9   :  { %v2357_v57 = vld [vmem:[#allocation3 + $0x318] sm:$0xff] }
 0x4bb   :  { %2464 = vmatpush1.bf16.msra.mxu1 %v2353_v41  ;;  %2550 = vmatpush1.bf16.msra.mxu0 %v2355_v42  ;;  %v2322_v41 = vld [vmem:[#allocation3 + $0x200] sm:$0xff]  ;;  %v2327_v42 = vld [vmem:[#allocation3 + $0x228] sm:$0xff] }
 0x4bc   :  { %2465 = vmatprep.subr.bf16.mxu1 %v2359_v37  ;;  %2551 = vmatprep.subr.bf16.mxu0 %v2361_v43  ;;  %v2287_v37 = vld [vmem:[#allocation3 + $0xe8] sm:$0xff] }
 0x4bd   :  { %v2367_v43 = vld [vmem:[#allocation3 + $0x368] sm:$0xff] }
 0x4bf   :  { %2466 = vmatpush1.bf16.msra.mxu1 %v2358_v46  ;;  %2552 = vmatpush1.bf16.msra.mxu0 %v2360_v50  ;;  %v2332_v46 = vld [vmem:[#allocation3 + $0x250] sm:$0xff] }
 0x4c0   :  { %2467 = vmatprep.subr.bf16.mxu1 %v2364_v47  ;;  %2553 = vmatprep.subr.bf16.mxu0 %v2366_v48  ;;  %v2292_v50 = vld [vmem:[#allocation3 + $0x110] sm:$0xff]  ;;  %v2337_v48 = vld [vmem:[#allocation3 + $0x278] sm:$0xff] }
 0x4c1   :  { %v2372_v47 = vld [vmem:[#allocation3 + $0x390] sm:$0xff] }
 0x4c3   :  { %2468 = vmatpush1.bf16.msra.mxu1 %v2363_v49  ;;  %2554 = vmatpush1.bf16.msra.mxu0 %v2365_v61  ;;  %v2297_v49 = vld [vmem:[#allocation3 + $0x138] sm:$0xff] }
 0x4c4   :  { %2469 = vmatprep.subr.bf16.mxu1 %v2369_v55  ;;  %2555 = vmatprep.subr.bf16.mxu0 %v2371_v44  ;;  %v2377_v61 = vld [vmem:[#allocation3 + $0x3b8] sm:$0xff]  ;;  %v2382_v55 = vld [vmem:[#allocation3 + $0x3e0] sm:$0xff] }
 0x4c5   :  { %v2383_v44 = vld [vmem:[#allocation16] sm:$0x1f] }
 0x4c7   :  { %2470 = vmatpush1.bf16.msra.mxu1 %v2368_v35  ;;  %2556 = vmatpush1.bf16.msra.mxu0 %v2370_v45  ;;  %v2388_v35 = vrot.slane %v2383_v44, %v17968_v15  ;;  %v2396_v45 = vrot.slane %v2383_v44, %v17980_v40 }
 0x4c8   :  { %2471 = vmatprep.subr.bf16.mxu1 %v2374_v2  ;;  %2557 = vmatprep.subr.bf16.mxu0 %v2376_v4  ;;  %v2392_v2 = vrot.slane %v2383_v44, %v17971_v58  ;;  %v2400_v4 = vrot.slane %v2383_v44, %v17983_v59 }
 0x4cb   :  { %2472 = vmatpush1.bf16.msra.mxu1 %v2373_v34  ;;  %2558 = vmatpush1.bf16.msra.mxu0 %v2375_v6 }
 0x4cc   :  { %2473 = vmatprep.subr.bf16.mxu1 %v2379_v8  ;;  %2559 = vmatprep.subr.bf16.mxu0 %v2381_v10 }
 0x4cf   :  { %2474 = vmatpush1.bf16.msra.mxu1 %v2378_v12  ;;  %2560 = vmatpush1.bf16.msra.mxu0 %v2380_v14 }
 0x4d0   :  { %13768 = vmatprep.subr.bf16.mxu1 %v2302_v16  ;;  %2627 = vmatprep.subr.bf16.mxu0 %v16269_v36 }
 0x4d2   :  { %2490 = vmatmul.mubr.bf16.vlgmr.msra.gmra.mrb[4].mxu1 %v17987_v53  ;;  %2576 = vmatmul.mubr.bf16.vlgmr.msra.gmra.mrb[12].mxu0 %v17987_v53 }
 0x4d3   :  { %13769 = vmatpush3.bf16.msra.mxu1 %v2262_v18  ;;  %2628 = vmatpush1.bf16.msra.mxu0 %v2342_v5 }
 0x4d4   :  { %13770 = vmatprep.subr.bf16.mxu1 %v2307_v60  ;;  %2629 = vmatprep.subr.bf16.mxu0 %v16269_v36 }
 0x4d5   :  { %2618 = vmatprep.mubr.bf16.mxu1 %v17977_v52  ;;  %12654 = vmatprep.mubr.msk.bf16.mxu0 %vm2410_vm7, %v17989_v3  ;;  %v2282_v52 = vld [vmem:[#allocation3 + $0xc0] sm:$0xff] }
 0x4d6   :  { %v2362_v3 = vld [vmem:[#allocation3 + $0x340] sm:$0xff] }
 0x4d7   :  { %13771 = vmatpush3.bf16.msra.mxu1 %v2267_v7  ;;  %2630 = vmatpush1.bf16.msra.mxu0 %v2347_v9 }
 0x4d8   :  { %13772 = vmatprep.subr.bf16.mxu1 %v2312_v11  ;;  %2631 = vmatprep.subr.bf16.mxu0 %v16269_v36 }
 0x4db   :  { %13773 = vmatpush3.bf16.msra.mxu1 %v2272_v17  ;;  %2632 = vmatpush1.bf16.msra.mxu0 %v2352_v19 }
 0x4dc   :  { %13774 = vmatprep.subr.bf16.mxu1 %v2317_v38  ;;  %2633 = vmatprep.subr.bf16.mxu0 %v16269_v36 }
 0x4df   :  { %13775 = vmatpush3.bf16.msra.mxu1 %v2277_v39  ;;  %2634 = vmatpush1.bf16.msra.mxu0 %v2357_v57 }
 0x4e0   :  { %13776 = vmatprep.subr.bf16.mxu1 %v2322_v41  ;;  %2635 = vmatprep.subr.bf16.mxu0 %v16269_v36 }
 0x4e3   :  { %13777 = vmatpush3.bf16.msra.mxu1 %v2282_v52  ;;  %2636 = vmatpush1.bf16.msra.mxu0 %v2362_v3 }
 0x4e4   :  { %13778 = vmatprep.subr.bf16.mxu1 %v2327_v42  ;;  %2637 = vmatprep.subr.bf16.mxu0 %v16269_v36 }
 0x4e7   :  { %13779 = vmatpush3.bf16.msra.mxu1 %v2287_v37  ;;  %2638 = vmatpush1.bf16.msra.mxu0 %v2367_v43 }
 0x4e8   :  { %13780 = vmatprep.subr.bf16.mxu1 %v2332_v46  ;;  %2639 = vmatprep.subr.bf16.mxu0 %v16269_v36 }
 0x4eb   :  { %13781 = vmatpush3.bf16.msra.mxu1 %v2292_v50  ;;  %2640 = vmatpush1.bf16.msra.mxu0 %v2372_v47  ;;  %v18028_v47 = vsub.s32 4, %v17965_v13 }
 0x4ec   :  { %13782 = vmatprep.subr.bf16.mxu1 %v2337_v48  ;;  %2641 = vmatprep.subr.bf16.mxu0 %v16269_v36 }
 0x4ef   :  { %13783 = vmatpush3.bf16.msra.mxu1 %v2297_v49  ;;  %2642 = vmatpush1.bf16.msra.mxu0 %v2377_v61  ;;  %v2404_v49 = vrot.slane %v2383_v44, %v18028_v47 }
 0x4f0   :  { %2643 = vmatprep.subr.bf16.mxu0 %v16269_v36 }
 0x4f2   :  { %2619 = vmatmul.mubr.bf16.vlgmr.msra.gmra.mrb[8].mxu1 %v17975_v51 }
 0x4f3   :  { %2644 = vmatpush1.bf16.msra.mxu0 %v2382_v55 }
 0x4f6   :  { %2660 = vmatmul.mubr.bf16.vlgmr.msra.gmra.mrb[16].mxu0 %v17987_v53 }
 0x5a5   :  { %v2491_v34 = vpop.f32.mrb[4].mxu1  ;;  %v2577_v6 = vpop.f32.mrb[12].mxu0 }
 0x5a6   :  { %v14281_v8 = vadd.f32 %v2491_v34, %v2388_v35  ;;  %v14285_v10 = vadd.f32 %v2577_v6, %v2396_v45  ;;  %v2493_v12 = vpop.f32.mrb[5].mxu1  ;;  %v2579_v14 = vpop.f32.mrb[13].mxu0 }
 0x5a7   :  { %v14282_v16 = vadd.f32 %v2493_v12, %v2392_v2  ;;  %v14286_v51 = vadd.f32 %v2579_v14, %v2400_v4  ;;  %v2495_v18 = vpop.f32.mrb[6].mxu1  ;;  %v2581_v5 = vpop.f32.mrb[14].mxu0 }
 0x5a8   :  { %v14283_v53 = vadd.f32 %v2495_v18, %v2388_v35  ;;  %v14287_v60 = vadd.f32 %v2581_v5, %v2396_v45  ;;  %v2497_v7 = vpop.f32.mrb[7].mxu1  ;;  %v2583_v9 = vpop.f32.mrb[15].mxu0  ;;  %v2668_v19 = vmax.f32 %v14281_v8, 0.0  ;;  %v2670_v38 = vmax.f32 %v14285_v10, 0.0 }
 0x5a9   :  { %v14284_v11 = vadd.f32 %v2497_v7, %v2392_v2  ;;  %v14288_v17 = vadd.f32 %v2583_v9, %v2400_v4  ;;  %v2669_v41 = vmax.f32 %v14282_v16, 0.0  ;;  %v2671_v52 = vmax.f32 %v14286_v51, 0.0 }
 0x5aa   :  { %v2673_v39 = vmax.f32 %v14283_v53, 0.0  ;;  %v2675_v57 = vmax.f32 %v14287_v60, 0.0 }
 0x5ab   :  { %v2674_v3 = vmax.f32 %v14284_v11, 0.0  ;;  %v2676_v42 = vmax.f32 %v14288_v17, 0.0 }
 0x5ac   :  { %v18019_v37 = vpack.c.bf16 %v2673_v39, %v2668_v19  ;;  %v18021_v43 = vpack.c.bf16 %v2675_v57, %v2670_v38 }
 0x5ad   :  { %v18023_v46 = vpack.c.bf16 %v2674_v3, %v2669_v41  ;;  %v18025_v50 = vpack.c.bf16 %v2676_v42, %v2671_v52 }
 0x5c5   :  { %v13784_v48 = vpop.f32.mrb[8].mxu1 }
 0x5c6   :  { %v13785_v61 = vpop.f32.mrb[9].mxu1 }
 0x5c7   :  { %v13786_v55 = vadd.f32 %v13785_v61, %v13784_v48  ;;  %v13787_v35 = vpop.f32.mrb[10].mxu1 }
 0x5c8   :  { %v13788_v45 = vpop.f32.mrb[11].mxu1 }
 0x5c9   :  { %v13789_v2 = vadd.f32 %v13788_v45, %v13787_v35  ;;  %v2621_v4 = vadd.f32 %v13786_v55, %v2404_v49  ;;  %v2661_v34 = vpop.f32.mrb[16].mxu0 }
 0x5ca   :  { %v2663_v6 = vpop.f32.mrb[17].mxu0 }
 0x5cb   :  { %v2662_v8 = vadd.f32 %v2661_v34, %v2621_v4  ;;  %v2624_v10 = vadd.f32 %v13789_v2, %v2404_v49  ;;  %v2664_v12 = vpop.f32.mrb[18].mxu0 }
 0x5cc   :  { %v2666_v14 = vpop.f32.mrb[19].mxu0 }
 0x5cd   :  { %v2665_v16 = vadd.f32 %v2664_v12, %v2624_v10  ;;  %v2672_v51 = vmax.f32 %v2662_v8, 0.0 }
 0x5cf   :  { %v2677_v18 = vmax.f32 %v2665_v16, 0.0 }
 0x5d1   :  { %v18031_v13 = vpack.c.bf16 %v2677_v18, %v2672_v51 }
 0x5d2   :  { %16230 = dma.done.wait [#allocation11 + $0x2], 24000 }
 0x5d3   :  { %16231 = vsyncadd [#allocation11 + $0x2], 4294943296  ;;  %3969 = vmatprep.mubr.bf16.mxu1 %v18023_v46  ;;  %4098 = vmatprep.mubr.bf16.mxu0 %v18023_v46  ;;  %v14512_v44 = vld [vmem:[#allocation4 + $0x4] ss:$20 sps:$4 sm:$0xff]   ;;  %v14514_v5 = vld [vmem:[#allocation4 + $0xc] ss:$20 sps:$4 sm:$0xff]  }
 0x5d4   :  { %3937 = vmatprep.subr.bf16.mxu1 %v14512_v44  ;;  %v14516_v53 = vld [vmem:[#allocation4] ss:$20 sps:$4 sm:$0xff]   ;;  %v14517_v60 = vld [vmem:[#allocation4 + $0x8] ss:$20 sps:$4 sm:$0xff]   ;;  %4066 = vmatprep.subr.bf16.mxu0 %v14514_v5  ;;  %v14523_v17 = vld [vmem:[#allocation4 + $0x30] ss:$20 sps:$4 sm:$0xff]  }
 0x5d5   :  { %v14518_v7 = vld [vmem:[#allocation4 + $0x2c] ss:$20 sps:$4 sm:$0xff]   ;;  %3938 = vmatpush1.bf16.msra.mxu1 %v14516_v53  ;;  %4067 = vmatpush1.bf16.msra.mxu0 %v14517_v60  ;;  %v14520_v9 = vld [vmem:[#allocation4 + $0x34] ss:$20 sps:$4 sm:$0xff]   ;;  %v14526_v38 = vld [vmem:[#allocation4 + $0x5c] ss:$20 sps:$4 sm:$0xff]  }
 0x5d6   :  { %v14522_v11 = vld [vmem:[#allocation4 + $0x28] ss:$20 sps:$4 sm:$0xff]   ;;  %3939 = vmatprep.subr.bf16.mxu1 %v14518_v7  ;;  %4068 = vmatprep.subr.bf16.mxu0 %v14520_v9  ;;  %v14528_v39 = vld [vmem:[#allocation4 + $0x50] ss:$20 sps:$4 sm:$0xff]   ;;  %v14529_v57 = vld [vmem:[#allocation4 + $0x58] ss:$20 sps:$4 sm:$0xff]  }
 0x5d7   :  { %v14524_v19 = vld [vmem:[#allocation4 + $0x54] ss:$20 sps:$4 sm:$0xff]   ;;  %v14530_v41 = vld [vmem:[#allocation4 + $0x7c] ss:$20 sps:$4 sm:$0xff]   ;;  %v14532_v52 = vld [vmem:[#allocation4 + $0x84] ss:$20 sps:$4 sm:$0xff]  }
 0x5d8   :  { %v14534_v3 = vld [vmem:[#allocation4 + $0x78] ss:$20 sps:$4 sm:$0xff]   ;;  %v14535_v42 = vld [vmem:[#allocation4 + $0x80] ss:$20 sps:$4 sm:$0xff]   ;;  %v14541_v55 = vld [vmem:[#allocation4 + $0xa8] ss:$20 sps:$4 sm:$0xff]  }
 0x5d9   :  { %3940 = vmatpush1.bf16.msra.mxu1 %v14522_v11  ;;  %4069 = vmatpush1.bf16.msra.mxu0 %v14523_v17  ;;  %v14536_v48 = vld [vmem:[#allocation4 + $0xa4] ss:$20 sps:$4 sm:$0xff]   ;;  %v14538_v49 = vld [vmem:[#allocation4 + $0xac] ss:$20 sps:$4 sm:$0xff]   ;;  %v14544_v45 = vld [vmem:[#allocation4 + $0xd4] ss:$20 sps:$4 sm:$0xff]  }
 0x5da   :  { %3941 = vmatprep.subr.bf16.mxu1 %v14524_v19  ;;  %4070 = vmatprep.subr.bf16.mxu0 %v14526_v38  ;;  %v14540_v61 = vld [vmem:[#allocation4 + $0xa0] ss:$20 sps:$4 sm:$0xff]   ;;  %v14546_v2 = vld [vmem:[#allocation4 + $0xc8] ss:$20 sps:$4 sm:$0xff]   ;;  %v14547_v4 = vld [vmem:[#allocation4 + $0xd0] ss:$20 sps:$4 sm:$0xff]  }
 0x5db   :  { %v14542_v35 = vld [vmem:[#allocation4 + $0xcc] ss:$20 sps:$4 sm:$0xff]   ;;  %v14548_v34 = vld [vmem:[#allocation4 + $0xf4] ss:$20 sps:$4 sm:$0xff]   ;;  %v14550_v6 = vld [vmem:[#allocation4 + $0xfc] ss:$20 sps:$4 sm:$0xff]  }
 0x5dc   :  { %v14552_v8 = vld [vmem:[#allocation4 + $0xf0] ss:$20 sps:$4 sm:$0xff]   ;;  %v14553_v10 = vld [vmem:[#allocation4 + $0xf8] ss:$20 sps:$4 sm:$0xff]   ;;  %v14559_v51 = vld [vmem:[#allocation4 + $0x120] ss:$20 sps:$4 sm:$0xff]  }
 0x5dd   :  { %3942 = vmatpush1.bf16.msra.mxu1 %v14528_v39  ;;  %4071 = vmatpush1.bf16.msra.mxu0 %v14529_v57  ;;  %v14554_v12 = vld [vmem:[#allocation4 + $0x11c] ss:$20 sps:$4 sm:$0xff]   ;;  %v14556_v14 = vld [vmem:[#allocation4 + $0x124] ss:$20 sps:$4 sm:$0xff]   ;;  %v14562_v44 = vld [vmem:[#allocation4 + $0x14c] ss:$20 sps:$4 sm:$0xff]  }
 0x5de   :  { %3943 = vmatprep.subr.bf16.mxu1 %v14530_v41  ;;  %4072 = vmatprep.subr.bf16.mxu0 %v14532_v52  ;;  %v14558_v16 = vld [vmem:[#allocation4 + $0x118] ss:$20 sps:$4 sm:$0xff]   ;;  %v14564_v5 = vld [vmem:[#allocation4 + $0x140] ss:$20 sps:$4 sm:$0xff]   ;;  %v14565_v53 = vld [vmem:[#allocation4 + $0x148] ss:$20 sps:$4 sm:$0xff]  }
 0x5df   :  { %v14560_v18 = vld [vmem:[#allocation4 + $0x144] ss:$20 sps:$4 sm:$0xff]   ;;  %v14566_v60 = vld [vmem:[#allocation4 + $0x16c] ss:$20 sps:$4 sm:$0xff]   ;;  %v14568_v7 = vld [vmem:[#allocation4 + $0x174] ss:$20 sps:$4 sm:$0xff]  }
 0x5e0   :  { %v14570_v9 = vld [vmem:[#allocation4 + $0x168] ss:$20 sps:$4 sm:$0xff]   ;;  %v14571_v11 = vld [vmem:[#allocation4 + $0x170] ss:$20 sps:$4 sm:$0xff]   ;;  %v14577_v39 = vld [vmem:[#allocation4 + $0x198] ss:$20 sps:$4 sm:$0xff]  }
 0x5e1   :  { %3944 = vmatpush1.bf16.msra.mxu1 %v14534_v3  ;;  %4073 = vmatpush1.bf16.msra.mxu0 %v14535_v42  ;;  %v14572_v17 = vld [vmem:[#allocation4 + $0x194] ss:$20 sps:$4 sm:$0xff]   ;;  %v14574_v19 = vld [vmem:[#allocation4 + $0x19c] ss:$20 sps:$4 sm:$0xff]   ;;  %v14580_v41 = vld [vmem:[#allocation4 + $0x1c4] ss:$20 sps:$4 sm:$0xff]  }
 0x5e2   :  { %3945 = vmatprep.subr.bf16.mxu1 %v14536_v48  ;;  %4074 = vmatprep.subr.bf16.mxu0 %v14538_v49  ;;  %v14576_v38 = vld [vmem:[#allocation4 + $0x190] ss:$20 sps:$4 sm:$0xff]   ;;  %v14582_v52 = vld [vmem:[#allocation4 + $0x1b8] ss:$20 sps:$4 sm:$0xff]   ;;  %v14583_v3 = vld [vmem:[#allocation4 + $0x1c0] ss:$20 sps:$4 sm:$0xff]  }
 0x5e3   :  { %v14578_v57 = vld [vmem:[#allocation4 + $0x1bc] ss:$20 sps:$4 sm:$0xff]   ;;  %v14584_v42 = vld [vmem:[#allocation4 + $0x1e4] ss:$20 sps:$4 sm:$0xff]   ;;  %v14586_v48 = vld [vmem:[#allocation4 + $0x1ec] ss:$20 sps:$4 sm:$0xff]  }
 0x5e4   :  { %v14588_v49 = vld [vmem:[#allocation4 + $0x1e0] ss:$20 sps:$4 sm:$0xff]   ;;  %vm3918_vm10 = vcmask 719872   ;;  %vm16278_vm12 = vmmov 0  }
 0x5e5   :  { %3946 = vmatpush1.bf16.msra.mxu1 %v14540_v61  ;;  %4075 = vmatpush1.bf16.msra.mxu0 %v14541_v55  ;;  %v14589_v61 = vld [vmem:[#allocation4 + $0x1e8] ss:$20 sps:$4 sm:$0xff]   ;;  %v14590_v55 = vld [vmem:[#allocation4 + $0x20c] ss:$20 sps:$4 sm:$0xff]  }
 0x5e6   :  { %3947 = vmatprep.subr.bf16.mxu1 %v14542_v35  ;;  %4076 = vmatprep.subr.bf16.mxu0 %v14544_v45  ;;  %v14592_v35 = vld [vmem:[#allocation4 + $0x214] ss:$20 sps:$4 sm:$0xff]  }
 0x5e7   :  { %v14594_v45 = vld [vmem:[#allocation4 + $0x208] ss:$20 sps:$4 sm:$0xff]  }
 0x5e9   :  { %3948 = vmatpush1.bf16.msra.mxu1 %v14546_v2  ;;  %4077 = vmatpush1.bf16.msra.mxu0 %v14547_v4  ;;  %v14595_v2 = vld [vmem:[#allocation4 + $0x210] ss:$20 sps:$4 sm:$0xff]   ;;  %v14596_v4 = vld [vmem:[#allocation4 + $0x234] ss:$20 sps:$4 sm:$0xff]  }
 0x5ea   :  { %3949 = vmatprep.subr.bf16.mxu1 %v14548_v34  ;;  %4078 = vmatprep.subr.bf16.mxu0 %v14550_v6  ;;  %v14598_v34 = vld [vmem:[#allocation4 + $0x23c] ss:$20 sps:$4 sm:$0xff]  }
 0x5eb   :  { %v14600_v6 = vld [vmem:[#allocation4 + $0x230] ss:$20 sps:$4 sm:$0xff]  }
 0x5ed   :  { %3950 = vmatpush1.bf16.msra.mxu1 %v14552_v8  ;;  %4079 = vmatpush1.bf16.msra.mxu0 %v14553_v10  ;;  %v14601_v8 = vld [vmem:[#allocation4 + $0x238] ss:$20 sps:$4 sm:$0xff]   ;;  %v14602_v10 = vld [vmem:[#allocation4 + $0x25c] ss:$20 sps:$4 sm:$0xff]  }
 0x5ee   :  { %3951 = vmatprep.subr.bf16.mxu1 %v14554_v12  ;;  %4080 = vmatprep.subr.bf16.mxu0 %v14556_v14  ;;  %v14604_v12 = vld [vmem:[#allocation4 + $0x264] ss:$20 sps:$4 sm:$0xff]  }
 0x5ef   :  { %v14606_v14 = vld [vmem:[#allocation4 + $0x258] ss:$20 sps:$4 sm:$0xff]  }
 0x5f1   :  { %3952 = vmatpush1.bf16.msra.mxu1 %v14558_v16  ;;  %4081 = vmatpush1.bf16.msra.mxu0 %v14559_v51  ;;  %v14607_v16 = vld [vmem:[#allocation4 + $0x260] ss:$20 sps:$4 sm:$0xff]   ;;  %v14610_v51 = vld [vmem:[#allocation4 + $0x284] ss:$20 sps:$4 sm:$0xff]  }
 0x5f2   :  { %3953 = vmatprep.subr.bf16.mxu1 %v14560_v18  ;;  %4082 = vmatprep.subr.bf16.mxu0 %v14562_v44  ;;  %v14613_v18 = vld [vmem:[#allocation4 + $0x28c] ss:$20 sps:$4 sm:$0xff]  }
 0x5f3   :  { %v14608_v44 = vld [vmem:[#allocation4 + $0x280] ss:$20 sps:$4 sm:$0xff]  }
 0x5f5   :  { %3954 = vmatpush1.bf16.msra.mxu1 %v14564_v5  ;;  %4083 = vmatpush1.bf16.msra.mxu0 %v14565_v53  ;;  %v14611_v5 = vld [vmem:[#allocation4 + $0x288] ss:$20 sps:$4 sm:$0xff]   ;;  %v14616_v53 = vld [vmem:[#allocation4 + $0x2ac] ss:$20 sps:$4 sm:$0xff]  }
 0x5f6   :  { %3955 = vmatprep.subr.bf16.mxu1 %v14566_v60  ;;  %4084 = vmatprep.subr.bf16.mxu0 %v14568_v7  ;;  %v14619_v60 = vld [vmem:[#allocation4 + $0x2b4] ss:$20 sps:$4 sm:$0xff]  }
 0x5f7   :  { %v14614_v7 = vld [vmem:[#allocation4 + $0x2a8] ss:$20 sps:$4 sm:$0xff]  }
 0x5f9   :  { %3956 = vmatpush1.bf16.msra.mxu1 %v14570_v9  ;;  %4085 = vmatpush1.bf16.msra.mxu0 %v14571_v11  ;;  %v14617_v9 = vld [vmem:[#allocation4 + $0x2b0] ss:$20 sps:$4 sm:$0xff]   ;;  %v14622_v11 = vld [vmem:[#allocation4 + $0x2d4] ss:$20 sps:$4 sm:$0xff]  }
 0x5fa   :  { %3957 = vmatprep.subr.bf16.mxu1 %v14572_v17  ;;  %4086 = vmatprep.subr.bf16.mxu0 %v14574_v19  ;;  %v14625_v17 = vld [vmem:[#allocation4 + $0x2dc] ss:$20 sps:$4 sm:$0xff]  }
 0x5fb   :  { %v14620_v19 = vld [vmem:[#allocation4 + $0x2d0] ss:$20 sps:$4 sm:$0xff]  }
 0x5fd   :  { %3958 = vmatpush1.bf16.msra.mxu1 %v14576_v38  ;;  %4087 = vmatpush1.bf16.msra.mxu0 %v14577_v39  ;;  %v14623_v38 = vld [vmem:[#allocation4 + $0x2d8] ss:$20 sps:$4 sm:$0xff]   ;;  %v14628_v39 = vld [vmem:[#allocation4 + $0x2fc] ss:$20 sps:$4 sm:$0xff]  }
 0x5fe   :  { %3959 = vmatprep.subr.bf16.mxu1 %v14578_v57  ;;  %4088 = vmatprep.subr.bf16.mxu0 %v14580_v41  ;;  %v14631_v57 = vld [vmem:[#allocation4 + $0x304] ss:$20 sps:$4 sm:$0xff]  }
 0x5ff   :  { %v14626_v41 = vld [vmem:[#allocation4 + $0x2f8] ss:$20 sps:$4 sm:$0xff]  }
 0x601   :  { %3960 = vmatpush1.bf16.msra.mxu1 %v14582_v52  ;;  %4089 = vmatpush1.bf16.msra.mxu0 %v14583_v3  ;;  %v14629_v52 = vld [vmem:[#allocation4 + $0x300] ss:$20 sps:$4 sm:$0xff]   ;;  %v14634_v3 = vld [vmem:[#allocation4 + $0x324] ss:$20 sps:$4 sm:$0xff]  }
 0x602   :  { %3961 = vmatprep.subr.bf16.mxu1 %v14584_v42  ;;  %4090 = vmatprep.subr.bf16.mxu0 %v14586_v48  ;;  %v14637_v42 = vld [vmem:[#allocation4 + $0x32c] ss:$20 sps:$4 sm:$0xff]  }
 0x603   :  { %v14632_v48 = vld [vmem:[#allocation4 + $0x320] ss:$20 sps:$4 sm:$0xff]  }
 0x605   :  { %3962 = vmatpush1.bf16.msra.mxu1 %v14588_v49  ;;  %4091 = vmatpush1.bf16.msra.mxu0 %v14589_v61  ;;  %v14635_v49 = vld [vmem:[#allocation4 + $0x328] ss:$20 sps:$4 sm:$0xff]   ;;  %v14640_v61 = vld [vmem:[#allocation4 + $0x34c] ss:$20 sps:$4 sm:$0xff]  }
 0x606   :  { %3963 = vmatprep.subr.bf16.mxu1 %v14590_v55  ;;  %4092 = vmatprep.subr.bf16.mxu0 %v14592_v35  ;;  %v14643_v55 = vld [vmem:[#allocation4 + $0x354] ss:$20 sps:$4 sm:$0xff]  }
 0x607   :  { %v14638_v35 = vld [vmem:[#allocation4 + $0x348] ss:$20 sps:$4 sm:$0xff]  }
 0x609   :  { %3964 = vmatpush1.bf16.msra.mxu1 %v14594_v45  ;;  %4093 = vmatpush1.bf16.msra.mxu0 %v14595_v2  ;;  %v14641_v45 = vld [vmem:[#allocation4 + $0x350] ss:$20 sps:$4 sm:$0xff]   ;;  %v14646_v2 = vld [vmem:[#allocation4 + $0x374] ss:$20 sps:$4 sm:$0xff]  }
 0x60a   :  { %3965 = vmatprep.subr.bf16.mxu1 %v14596_v4  ;;  %4094 = vmatprep.subr.bf16.mxu0 %v14598_v34  ;;  %v14649_v4 = vld [vmem:[#allocation4 + $0x37c] ss:$20 sps:$4 sm:$0xff]  }
 0x60b   :  { %v14644_v34 = vld [vmem:[#allocation4 + $0x370] ss:$20 sps:$4 sm:$0xff]  }
 0x60d   :  { %3966 = vmatpush1.bf16.msra.mxu1 %v14600_v6  ;;  %4095 = vmatpush1.bf16.msra.mxu0 %v14601_v8  ;;  %v14647_v6 = vld [vmem:[#allocation4 + $0x378] ss:$20 sps:$4 sm:$0xff]   ;;  %v14652_v8 = vld [vmem:[#allocation4 + $0x39c] ss:$20 sps:$4 sm:$0xff]  }
 0x60e   :  { %3967 = vmatprep.subr.bf16.mxu1 %v14602_v10  ;;  %4096 = vmatprep.subr.bf16.mxu0 %v14604_v12  ;;  %v14655_v10 = vld [vmem:[#allocation4 + $0x3a4] ss:$20 sps:$4 sm:$0xff]  }
 0x60f   :  { %v14650_v12 = vld [vmem:[#allocation4 + $0x398] ss:$20 sps:$4 sm:$0xff]  }
 0x611   :  { %3968 = vmatpush1.bf16.msra.mxu1 %v14606_v14  ;;  %4097 = vmatpush1.bf16.msra.mxu0 %v14607_v16  ;;  %v14653_v14 = vld [vmem:[#allocation4 + $0x3a0] ss:$20 sps:$4 sm:$0xff]   ;;  %v14658_v16 = vld [vmem:[#allocation4 + $0x3c4] ss:$20 sps:$4 sm:$0xff]  }
 0x612   :  { %3980 = vmatprep.subr.bf16.mxu1 %v14610_v51  ;;  %4109 = vmatprep.subr.bf16.mxu0 %v14613_v18  ;;  %v14661_v51 = vld [vmem:[#allocation4 + $0x3cc] ss:$20 sps:$4 sm:$0xff]  }
 0x613   :  { %v14656_v18 = vld [vmem:[#allocation4 + $0x3c0] ss:$20 sps:$4 sm:$0xff]  }
 0x614   :  { %3970 = vmatmul.mubr.bf16.vlgmr.msra.gmra.mrb[12].mxu1 %v18019_v37  ;;  %4099 = vmatmul.mubr.bf16.vlgmr.msra.gmra.mrb[20].mxu0 %v18019_v37 }
 0x615   :  { %3981 = vmatpush1.bf16.msra.mxu1 %v14608_v44  ;;  %4110 = vmatpush1.bf16.msra.mxu0 %v14611_v5  ;;  %v14659_v44 = vld [vmem:[#allocation4 + $0x3c8] ss:$20 sps:$4 sm:$0xff]   ;;  %v14664_v5 = vld [vmem:[#allocation4 + $0x3ec] ss:$20 sps:$4 sm:$0xff]  }
 0x616   :  { %3982 = vmatprep.subr.bf16.mxu1 %v14616_v53  ;;  %4111 = vmatprep.subr.bf16.mxu0 %v14619_v60  ;;  %v14667_v53 = vld [vmem:[#allocation4 + $0x3f4] ss:$20 sps:$4 sm:$0xff]  }
 0x617   :  { %4012 = vmatprep.mubr.bf16.mxu1 %v18025_v50  ;;  %4141 = vmatprep.mubr.bf16.mxu0 %v18025_v50  ;;  %v14662_v60 = vld [vmem:[#allocation4 + $0x3e8] ss:$20 sps:$4 sm:$0xff]  }
 0x619   :  { %3983 = vmatpush1.bf16.msra.mxu1 %v14614_v7  ;;  %4112 = vmatpush1.bf16.msra.mxu0 %v14617_v9  ;;  %v14665_v7 = vld [vmem:[#allocation4 + $0x3f0] ss:$20 sps:$4 sm:$0xff]   ;;  %v14670_v9 = vld [vmem:[#allocation4 + $0x414] ss:$20 sps:$4 sm:$0xff]  }
 0x61a   :  { %3984 = vmatprep.subr.bf16.mxu1 %v14622_v11  ;;  %4113 = vmatprep.subr.bf16.mxu0 %v14625_v17  ;;  %v14673_v11 = vld [vmem:[#allocation4 + $0x41c] ss:$20 sps:$4 sm:$0xff]  }
 0x61b   :  { %v14668_v17 = vld [vmem:[#allocation4 + $0x410] ss:$20 sps:$4 sm:$0xff]  }
 0x61d   :  { %3985 = vmatpush1.bf16.msra.mxu1 %v14620_v19  ;;  %4114 = vmatpush1.bf16.msra.mxu0 %v14623_v38  ;;  %v14671_v19 = vld [vmem:[#allocation4 + $0x418] ss:$20 sps:$4 sm:$0xff]   ;;  %v14676_v38 = vld [vmem:[#allocation4 + $0x43c] ss:$20 sps:$4 sm:$0xff]  }
 0x61e   :  { %3986 = vmatprep.subr.bf16.mxu1 %v14628_v39  ;;  %4115 = vmatprep.subr.bf16.mxu0 %v14631_v57  ;;  %v14679_v39 = vld [vmem:[#allocation4 + $0x444] ss:$20 sps:$4 sm:$0xff]  }
 0x61f   :  { %v14674_v57 = vld [vmem:[#allocation4 + $0x438] ss:$20 sps:$4 sm:$0xff]  }
 0x621   :  { %3987 = vmatpush1.bf16.msra.mxu1 %v14626_v41  ;;  %4116 = vmatpush1.bf16.msra.mxu0 %v14629_v52  ;;  %v14677_v41 = vld [vmem:[#allocation4 + $0x440] ss:$20 sps:$4 sm:$0xff]   ;;  %v14682_v52 = vld [vmem:[#allocation4 + $0x464] ss:$20 sps:$4 sm:$0xff]  }
 0x622   :  { %3988 = vmatprep.subr.bf16.mxu1 %v14634_v3  ;;  %4117 = vmatprep.subr.bf16.mxu0 %v14637_v42  ;;  %v14685_v3 = vld [vmem:[#allocation4 + $0x46c] ss:$20 sps:$4 sm:$0xff]  }
 0x623   :  { %v14680_v42 = vld [vmem:[#allocation4 + $0x460] ss:$20 sps:$4 sm:$0xff]  }
 0x625   :  { %3989 = vmatpush1.bf16.msra.mxu1 %v14632_v48  ;;  %4118 = vmatpush1.bf16.msra.mxu0 %v14635_v49  ;;  %v14683_v48 = vld [vmem:[#allocation4 + $0x468] ss:$20 sps:$4 sm:$0xff]   ;;  %v14688_v49 = vld [vmem:[#allocation4 + $0x48c] ss:$20 sps:$4 sm:$0xff]  }
 0x626   :  { %3990 = vmatprep.subr.bf16.mxu1 %v14640_v61  ;;  %4119 = vmatprep.subr.bf16.mxu0 %v14643_v55  ;;  %v14691_v61 = vld [vmem:[#allocation4 + $0x494] ss:$20 sps:$4 sm:$0xff]  }
 0x627   :  { %v14686_v55 = vld [vmem:[#allocation4 + $0x488] ss:$20 sps:$4 sm:$0xff]  }
 0x629   :  { %3991 = vmatpush1.bf16.msra.mxu1 %v14638_v35  ;;  %4120 = vmatpush1.bf16.msra.mxu0 %v14641_v45  ;;  %v14689_v35 = vld [vmem:[#allocation4 + $0x490] ss:$20 sps:$4 sm:$0xff]   ;;  %v14694_v45 = vld [vmem:[#allocation4 + $0x4b4] ss:$20 sps:$4 sm:$0xff]  }
 0x62a   :  { %3992 = vmatprep.subr.bf16.mxu1 %v14646_v2  ;;  %4121 = vmatprep.subr.bf16.mxu0 %v14649_v4  ;;  %v14697_v2 = vld [vmem:[#allocation4 + $0x4bc] ss:$20 sps:$4 sm:$0xff]  }
 0x62b   :  { %v14692_v4 = vld [vmem:[#allocation4 + $0x4b0] ss:$20 sps:$4 sm:$0xff]  }
 0x62d   :  { %3993 = vmatpush1.bf16.msra.mxu1 %v14644_v34  ;;  %4122 = vmatpush1.bf16.msra.mxu0 %v14647_v6  ;;  %v14695_v34 = vld [vmem:[#allocation4 + $0x4b8] ss:$20 sps:$4 sm:$0xff]   ;;  %v14700_v6 = vld [vmem:[#allocation4 + $0x4dc] ss:$20 sps:$4 sm:$0xff]  }
 0x62e   :  { %3994 = vmatprep.subr.bf16.mxu1 %v14652_v8  ;;  %4123 = vmatprep.subr.bf16.mxu0 %v14655_v10  ;;  %v14703_v8 = vld [vmem:[#allocation4 + $0x4e4] ss:$20 sps:$4 sm:$0xff]  }
 0x62f   :  { %v14698_v10 = vld [vmem:[#allocation4 + $0x4d8] ss:$20 sps:$4 sm:$0xff]  }
 0x631   :  { %3995 = vmatpush1.bf16.msra.mxu1 %v14650_v12  ;;  %4124 = vmatpush1.bf16.msra.mxu0 %v14653_v14  ;;  %v14701_v12 = vld [vmem:[#allocation4 + $0x4e0] ss:$20 sps:$4 sm:$0xff]   ;;  %v14706_v14 = vld [vmem:[#allocation4 + $0x504] ss:$20 sps:$4 sm:$0xff]  }
 0x632   :  { %3996 = vmatprep.subr.bf16.mxu1 %v14658_v16  ;;  %4125 = vmatprep.subr.bf16.mxu0 %v14661_v51  ;;  %v14709_v16 = vld [vmem:[#allocation4 + $0x50c] ss:$20 sps:$4 sm:$0xff]  }
 0x633   :  { %v14704_v51 = vld [vmem:[#allocation4 + $0x500] ss:$20 sps:$4 sm:$0xff]  }
 0x635   :  { %3997 = vmatpush1.bf16.msra.mxu1 %v14656_v18  ;;  %4126 = vmatpush1.bf16.msra.mxu0 %v14659_v44  ;;  %v14707_v18 = vld [vmem:[#allocation4 + $0x508] ss:$20 sps:$4 sm:$0xff]   ;;  %v14712_v44 = vld [vmem:[#allocation4 + $0x52c] ss:$20 sps:$4 sm:$0xff]  }
 0x636   :  { %3998 = vmatprep.subr.bf16.mxu1 %v14664_v5  ;;  %4127 = vmatprep.subr.bf16.mxu0 %v14667_v53  ;;  %v14715_v5 = vld [vmem:[#allocation4 + $0x534] ss:$20 sps:$4 sm:$0xff]  }
 0x637   :  { %v14710_v53 = vld [vmem:[#allocation4 + $0x528] ss:$20 sps:$4 sm:$0xff]  }
 0x639   :  { %3999 = vmatpush1.bf16.msra.mxu1 %v14662_v60  ;;  %4128 = vmatpush1.bf16.msra.mxu0 %v14665_v7  ;;  %v14713_v60 = vld [vmem:[#allocation4 + $0x530] ss:$20 sps:$4 sm:$0xff]   ;;  %v14718_v7 = vld [vmem:[#allocation4 + $0x554] ss:$20 sps:$4 sm:$0xff]  }
 0x63a   :  { %4000 = vmatprep.subr.bf16.mxu1 %v14670_v9  ;;  %4129 = vmatprep.subr.bf16.mxu0 %v14673_v11  ;;  %v14721_v9 = vld [vmem:[#allocation4 + $0x55c] ss:$20 sps:$4 sm:$0xff]  }
 0x63b   :  { %v14716_v11 = vld [vmem:[#allocation4 + $0x550] ss:$20 sps:$4 sm:$0xff]  }
 0x63d   :  { %4001 = vmatpush1.bf16.msra.mxu1 %v14668_v17  ;;  %4130 = vmatpush1.bf16.msra.mxu0 %v14671_v19  ;;  %v14719_v17 = vld [vmem:[#allocation4 + $0x558] ss:$20 sps:$4 sm:$0xff]   ;;  %v14724_v19 = vld [vmem:[#allocation4 + $0x57c] ss:$20 sps:$4 sm:$0xff]  }
 0x63e   :  { %4002 = vmatprep.subr.bf16.mxu1 %v14676_v38  ;;  %4131 = vmatprep.subr.bf16.mxu0 %v14679_v39  ;;  %v14727_v38 = vld [vmem:[#allocation4 + $0x584] ss:$20 sps:$4 sm:$0xff]  }
 0x63f   :  { %v14722_v39 = vld [vmem:[#allocation4 + $0x578] ss:$20 sps:$4 sm:$0xff]  }
 0x641   :  { %4003 = vmatpush1.bf16.msra.mxu1 %v14674_v57  ;;  %4132 = vmatpush1.bf16.msra.mxu0 %v14677_v41  ;;  %v14725_v57 = vld [vmem:[#allocation4 + $0x580] ss:$20 sps:$4 sm:$0xff]   ;;  %v14730_v41 = vld [vmem:[#allocation4 + $0x5a4] ss:$20 sps:$4 sm:$0xff]  }
 0x642   :  { %4004 = vmatprep.subr.bf16.mxu1 %v14682_v52  ;;  %4133 = vmatprep.subr.bf16.mxu0 %v14685_v3  ;;  %v14733_v52 = vld [vmem:[#allocation4 + $0x5ac] ss:$20 sps:$4 sm:$0xff]  }
 0x643   :  { %v2913_v3 = vld [vmem:[#allocation4 + $0x5c8] sm:$0xff] }
 0x645   :  { %4005 = vmatpush1.bf16.msra.mxu1 %v14680_v42  ;;  %4134 = vmatpush1.bf16.msra.mxu0 %v14683_v48  ;;  %v2914_v42 = vld [vmem:[#allocation4 + $0x5d0] sm:$0xff] }
 0x646   :  { %4006 = vmatprep.subr.bf16.mxu1 %v14688_v49  ;;  %4135 = vmatprep.subr.bf16.mxu0 %v14691_v61  ;;  %v14728_v48 = vld [vmem:[#allocation4 + $0x5a0] ss:$20 sps:$4 sm:$0xff]   ;;  %v14731_v49 = vld [vmem:[#allocation4 + $0x5a8] ss:$20 sps:$4 sm:$0xff]   ;;  %v12841_v61 = vcombine.high %v2913_v3, %v2913_v3 }
 0x649   :  { %4007 = vmatpush1.bf16.msra.mxu1 %v14686_v55  ;;  %4136 = vmatpush1.bf16.msra.mxu0 %v14689_v35  ;;  %v12843_v55 = vcombine.high %v2914_v42, %v2914_v42  ;;  %v12840_v35 = vcombine.low %v2913_v3, %v2913_v3  ;;  %v14764_v3 = vld [vmem:[#allocation4 + $0x4c0] ss:$20 sps:$4 sm:$0xff]  }
 0x64a   :  { %4008 = vmatprep.subr.bf16.mxu1 %v14694_v45  ;;  %4137 = vmatprep.subr.bf16.mxu0 %v14697_v2  ;;  %v12842_v45 = vcombine.low %v2914_v42, %v2914_v42  ;;  %v14763_v42 = vld [vmem:[#allocation4 + $0x100] ss:$20 sps:$4 sm:$0xff]  }
 0x64b   :  { %v3923_v2 = vsel %vm2139_vm8, %v12840_v35, 0  ;;  %v14769_v35 = vld [vmem:[#allocation4 + $0x3a8] ss:$20 sps:$4 sm:$0xff]  }
 0x64d   :  { %4009 = vmatpush1.bf16.msra.mxu1 %v14692_v4  ;;  %4138 = vmatpush1.bf16.msra.mxu0 %v14695_v34  ;;  %v3929_v4 = vsel %vm2139_vm8, %v12842_v45, 0  ;;  %v14738_v34 = vld [vmem:[#allocation4 + $0x150] ss:$20 sps:$4 sm:$0xff]  }
 0x64e   :  { %4010 = vmatprep.subr.bf16.mxu1 %v14700_v6  ;;  %4139 = vmatprep.subr.bf16.mxu0 %v14703_v8  ;;  %v14740_v6 = vld [vmem:[#allocation4 + $0x3d0] ss:$20 sps:$4 sm:$0xff]  }
 0x64f   :  { %v14739_v8 = vld [vmem:[#allocation4 + $0x10] ss:$20 sps:$4 sm:$0xff]  }
 0x650   :  { %v14770_v45 = vld [vmem:[#allocation4 + $0x510] ss:$20 sps:$4 sm:$0xff]  }
 0x651   :  { %4011 = vmatpush1.bf16.msra.mxu1 %v14698_v10  ;;  %4140 = vmatpush1.bf16.msra.mxu0 %v14701_v12  ;;  %v14741_v10 = vld [vmem:[#allocation4 + $0x290] ss:$20 sps:$4 sm:$0xff]   ;;  %v14742_v12 = vld [vmem:[#allocation4 + $0x178] ss:$20 sps:$4 sm:$0xff]  }
 0x652   :  { %4023 = vmatprep.subr.bf16.mxu1 %v14706_v14  ;;  %4152 = vmatprep.subr.bf16.mxu0 %v14709_v16  ;;  %v14744_v14 = vld [vmem:[#allocation4 + $0x3f8] ss:$20 sps:$4 sm:$0xff]  }
 0x653   :  { %v14743_v16 = vld [vmem:[#allocation4 + $0x38] ss:$20 sps:$4 sm:$0xff]  }
 0x654   :  { %4013 = vmatmul.mubr.bf16.vlgmr.msra.gmra.mrb[12].mxu1 %v18021_v43  ;;  %4142 = vmatmul.mubr.bf16.vlgmr.msra.gmra.mrb[20].mxu0 %v18021_v43 }
 0x655   :  { %4024 = vmatpush1.bf16.msra.mxu1 %v14704_v51  ;;  %4153 = vmatpush1.bf16.msra.mxu0 %v14707_v18  ;;  %v14745_v51 = vld [vmem:[#allocation4 + $0x2b8] ss:$20 sps:$4 sm:$0xff]   ;;  %v14746_v18 = vld [vmem:[#allocation4 + $0x1a0] ss:$20 sps:$4 sm:$0xff]  }
 0x656   :  { %4025 = vmatprep.subr.bf16.mxu1 %v14712_v44  ;;  %4154 = vmatprep.subr.bf16.mxu0 %v14715_v5  ;;  %v14748_v44 = vld [vmem:[#allocation4 + $0x420] ss:$20 sps:$4 sm:$0xff]  }
 0x657   :  { %4055 = vmatprep.mubr.bf16.mxu1 %v16269_v36  ;;  %4184 = vmatprep.mubr.bf16.mxu0 %v16269_v36  ;;  %v14747_v5 = vld [vmem:[#allocation4 + $0x60] ss:$20 sps:$4 sm:$0xff]  }
 0x659   :  { %4026 = vmatpush1.bf16.msra.mxu1 %v14710_v53  ;;  %4155 = vmatpush1.bf16.msra.mxu0 %v14713_v60  ;;  %v14749_v53 = vld [vmem:[#allocation4 + $0x2e0] ss:$20 sps:$4 sm:$0xff]   ;;  %v14750_v60 = vld [vmem:[#allocation4 + $0x1c8] ss:$20 sps:$4 sm:$0xff]  }
 0x65a   :  { %4027 = vmatprep.subr.bf16.mxu1 %v14718_v7  ;;  %4156 = vmatprep.subr.bf16.mxu0 %v14721_v9  ;;  %v14752_v7 = vld [vmem:[#allocation4 + $0x448] ss:$20 sps:$4 sm:$0xff]  }
 0x65b   :  { %v14751_v9 = vld [vmem:[#allocation4 + $0x88] ss:$20 sps:$4 sm:$0xff]  }
 0x65d   :  { %4028 = vmatpush1.bf16.msra.mxu1 %v14716_v11  ;;  %4157 = vmatpush1.bf16.msra.mxu0 %v14719_v17  ;;  %v14753_v11 = vld [vmem:[#allocation4 + $0x308] ss:$20 sps:$4 sm:$0xff]   ;;  %v14754_v17 = vld [vmem:[#allocation4 + $0x1f0] ss:$20 sps:$4 sm:$0xff]  }
 0x65e   :  { %4029 = vmatprep.subr.bf16.mxu1 %v14724_v19  ;;  %4158 = vmatprep.subr.bf16.mxu0 %v14727_v38  ;;  %v14756_v19 = vld [vmem:[#allocation4 + $0x470] ss:$20 sps:$4 sm:$0xff]   ;;  %v14758_v38 = vld [vmem:[#allocation4 + $0x218] ss:$20 sps:$4 sm:$0xff]  }
 0x661   :  { %4030 = vmatpush1.bf16.msra.mxu1 %v14722_v39  ;;  %4159 = vmatpush1.bf16.msra.mxu0 %v14725_v57  ;;  %v14760_v39 = vld [vmem:[#allocation4 + $0x498] ss:$20 sps:$4 sm:$0xff]  }
 0x662   :  { %4031 = vmatprep.subr.bf16.mxu1 %v14730_v41  ;;  %4160 = vmatprep.subr.bf16.mxu0 %v14733_v52  ;;  %v14759_v57 = vld [vmem:[#allocation4 + $0xd8] ss:$20 sps:$4 sm:$0xff]   ;;  %v14762_v52 = vld [vmem:[#allocation4 + $0x240] ss:$20 sps:$4 sm:$0xff]  }
 0x663   :  { %v14761_v41 = vld [vmem:[#allocation4 + $0x358] ss:$20 sps:$4 sm:$0xff]  }
 0x665   :  { %4032 = vmatpush1.bf16.msra.mxu1 %v14728_v48  ;;  %4161 = vmatpush1.bf16.msra.mxu0 %v14731_v49  ;;  %v14765_v48 = vld [vmem:[#allocation4 + $0x380] ss:$20 sps:$4 sm:$0xff]   ;;  %v14766_v49 = vld [vmem:[#allocation4 + $0x268] ss:$20 sps:$4 sm:$0xff]  }
 0x666   :  { %12845 = vmatprep.subr.msk.bf16.mxu1 %vm2139_vm8, %v12841_v61  ;;  %12847 = vmatprep.subr.msk.bf16.mxu0 %vm2139_vm8, %v12843_v55  ;;  %v14768_v61 = vld [vmem:[#allocation4 + $0x4e8] ss:$20 sps:$4 sm:$0xff]  }
 0x667   :  { %v14767_v55 = vld [vmem:[#allocation4 + $0x128] ss:$20 sps:$4 sm:$0xff]  }
 0x669   :  { %4034 = vmatpush1.bf16.msra.mxu1 %v3923_v2  ;;  %4163 = vmatpush1.bf16.msra.mxu0 %v3929_v4  ;;  %v14771_v2 = vld [vmem:[#allocation4 + $0x538] ss:$20 sps:$4 sm:$0xff]   ;;  %v14772_v4 = vld [vmem:[#allocation4 + $0x560] ss:$20 sps:$4 sm:$0xff]  }
 0x66a   :  { %13790 = vmatprep.subr.bf16.mxu1 %v14738_v34  ;;  %13812 = vmatprep.subr.bf16.mxu0 %v14740_v6  ;;  %v14773_v34 = vld [vmem:[#allocation4 + $0x588] ss:$20 sps:$4 sm:$0xff]  }
 0x66c   :  { %12846 = vmatmul.mubr.msk.bf16.vlgmr.msra.gmra.mrb[12].mxu1 %vm3918_vm10, %v18031_v13  ;;  %12848 = vmatmul.mubr.msk.bf16.vlgmr.msra.gmra.mrb[20].mxu0 %vm3918_vm10, %v18031_v13 }
 0x66d   :  { %13791 = vmatpush3.bf16.msra.mxu1 %v14739_v8  ;;  %13813 = vmatpush3.bf16.msra.mxu0 %v14741_v10  ;;  %v2916_v8 = vld [vmem:[#allocation18] sm:$0x1f] }
 0x66e   :  { %13792 = vmatprep.subr.bf16.mxu1 %v14742_v12  ;;  %13814 = vmatprep.subr.bf16.mxu0 %v14744_v14  ;;  %v2921_v10 = vrot.slane %v2916_v8, %v17968_v15  ;;  %v2929_v12 = vrot.slane %v2916_v8, %v17980_v40  ;;  %v2925_v14 = vrot.slane %v2916_v8, %v17971_v58 }
 0x66f   :  { %4227 = vmatprep.mubr.bf16.mxu1 %v18023_v46  ;;  %4268 = vmatprep.mubr.bf16.mxu0 %v18025_v50  ;;  %v14755_v46 = vld [vmem:[#allocation4 + $0xb0] ss:$20 sps:$4 sm:$0xff]  }
 0x670   :  { %v14757_v50 = vld [vmem:[#allocation4 + $0x330] ss:$20 sps:$4 sm:$0xff]  }
 0x671   :  { %13793 = vmatpush3.bf16.msra.mxu1 %v14743_v16  ;;  %13815 = vmatpush3.bf16.msra.mxu0 %v14745_v51  ;;  %v2933_v16 = vrot.slane %v2916_v8, %v17983_v59 }
 0x672   :  { %13794 = vmatprep.subr.bf16.mxu1 %v14746_v18  ;;  %13816 = vmatprep.subr.bf16.mxu0 %v14748_v44 }
 0x675   :  { %13795 = vmatpush3.bf16.msra.mxu1 %v14747_v5  ;;  %13817 = vmatpush3.bf16.msra.mxu0 %v14749_v53 }
 0x676   :  { %13796 = vmatprep.subr.bf16.mxu1 %v14750_v60  ;;  %13818 = vmatprep.subr.bf16.mxu0 %v14752_v7 }
 0x679   :  { %13797 = vmatpush3.bf16.msra.mxu1 %v14751_v9  ;;  %13819 = vmatpush3.bf16.msra.mxu0 %v14753_v11 }
 0x67a   :  { %13798 = vmatprep.subr.bf16.mxu1 %v14754_v17  ;;  %13820 = vmatprep.subr.bf16.mxu0 %v14756_v19 }
 0x67d   :  { %13799 = vmatpush3.bf16.msra.mxu1 %v14755_v46  ;;  %13821 = vmatpush3.bf16.msra.mxu0 %v14757_v50 }
 0x67e   :  { %13800 = vmatprep.subr.bf16.mxu1 %v14758_v38  ;;  %13822 = vmatprep.subr.bf16.mxu0 %v14760_v39 }
 0x681   :  { %13801 = vmatpush3.bf16.msra.mxu1 %v14759_v57  ;;  %13823 = vmatpush3.bf16.msra.mxu0 %v14761_v41 }
 0x682   :  { %13802 = vmatprep.subr.bf16.mxu1 %v14762_v52  ;;  %13824 = vmatprep.subr.bf16.mxu0 %v14764_v3 }
 0x685   :  { %13803 = vmatpush3.bf16.msra.mxu1 %v14763_v42  ;;  %13825 = vmatpush3.bf16.msra.mxu0 %v14765_v48 }
 0x686   :  { %13804 = vmatprep.subr.bf16.mxu1 %v14766_v49  ;;  %13826 = vmatprep.subr.bf16.mxu0 %v14768_v61 }
 0x689   :  { %13805 = vmatpush3.bf16.msra.mxu1 %v14767_v55  ;;  %13827 = vmatpush3.bf16.msra.mxu0 %v14769_v35 }
 0x68a   :  { %14169 = vmatprep.subr.bf16.mxu1 %v16277_v54 }
 0x68c   :  { %4228 = vmatmul.mubr.bf16.vlgmr.msra.gmra.mrb[16].mxu1 %v18019_v37  ;;  %4269 = vmatmul.mubr.bf16.vlgmr.msra.gmra.mrb[24].mxu0 %v18021_v43  ;;  %v14774_v37 = vld [vmem:[#allocation4 + $0x5b0] ss:$20 sps:$4 sm:$0xff]   ;;  %v14775_v43 = vld [vmem:[#allocation4 + $0x5d8] ss:$0 sps:$4 sm:$0xff]  }
 0x68d   :  { %14170 = vmatpush3.bf16.msra.mxu1 %v14770_v45  ;;  %14181 = vmatprep.mubr.msk.bf16.mxu1 %vm16278_vm12, %v16277_v54  ;;  %v3935_v6 = vsel %vm2139_vm8, %v14775_v43, 0 }
 0x68e   :  { %14171 = vmatprep.subr.bf16.mxu1 %v16277_v54 }
 0x691   :  { %14172 = vmatpush3.bf16.msra.mxu1 %v14771_v2 }
 0x692   :  { %14173 = vmatprep.subr.bf16.mxu1 %v16277_v54 }
 0x695   :  { %14174 = vmatpush3.bf16.msra.mxu1 %v14772_v4 }
 0x696   :  { %14175 = vmatprep.subr.bf16.mxu1 %v16277_v54 }
 0x699   :  { %14176 = vmatpush3.bf16.msra.mxu1 %v14773_v34  ;;  %v2937_v34 = vrot.slane %v2916_v8, %v18028_v47 }
 0x69a   :  { %14177 = vmatprep.subr.bf16.mxu1 %v16277_v54 }
 0x69d   :  { %14178 = vmatpush3.bf16.msra.mxu1 %v14774_v37 }
 0x69e   :  { %14179 = vmatprep.subr.bf16.mxu1 %v16277_v54 }
 0x6a1   :  { %14180 = vmatpush3.bf16.msra.mxu1 %v3935_v6 }
 0x6a4   :  { %14182 = vmatmul.mubr.msk.bf16.vlgmr.msra.gmra.mrb[20].mxu1 %vm3918_vm10, %v18031_v13 }
 0x73f   :  { %v4057_v51 = vpop.f32.mrb[12].mxu1  ;;  %v4186_v18 = vpop.f32.mrb[20].mxu0 }
 0x740   :  { %v14289_v44 = vadd.f32 %v4057_v51, %v2921_v10  ;;  %v14293_v5 = vadd.f32 %v4186_v18, %v2929_v12  ;;  %v4059_v53 = vpop.f32.mrb[13].mxu1  ;;  %v4188_v60 = vpop.f32.mrb[21].mxu0 }
 0x741   :  { %v14290_v7 = vadd.f32 %v4059_v53, %v2925_v14  ;;  %v14294_v9 = vadd.f32 %v4188_v60, %v2933_v16  ;;  %v4061_v11 = vpop.f32.mrb[14].mxu1  ;;  %v4190_v17 = vpop.f32.mrb[22].mxu0 }
 0x742   :  { %v14291_v13 = vadd.f32 %v4061_v11, %v2921_v10  ;;  %v14295_v19 = vadd.f32 %v4190_v17, %v2929_v12  ;;  %v4063_v46 = vpop.f32.mrb[15].mxu1  ;;  %v4192_v50 = vpop.f32.mrb[23].mxu0  ;;  %v4318_v57 = vmax.f32 %v14289_v44, 0.0  ;;  %v4320_v41 = vmax.f32 %v14293_v5, 0.0 }
 0x743   :  { %v14292_v38 = vadd.f32 %v4063_v46, %v2925_v14  ;;  %v14296_v39 = vadd.f32 %v4192_v50, %v2933_v16  ;;  %v4319_v42 = vmax.f32 %v14290_v7, 0.0  ;;  %v4321_v48 = vmax.f32 %v14294_v9, 0.0 }
 0x744   :  { %v4323_v52 = vmax.f32 %v14291_v13, 0.0  ;;  %v4325_v3 = vmax.f32 %v14295_v19, 0.0 }
 0x745   :  { %v4324_v49 = vmax.f32 %v14292_v38, 0.0  ;;  %v4326_v61 = vmax.f32 %v14296_v39, 0.0 }
 0x746   :  { %v18070_v55 = vpack.c.bf16 %v4323_v52, %v4318_v57  ;;  %v18072_v35 = vpack.c.bf16 %v4325_v3, %v4320_v41 }
 0x747   :  { %v18074_v45 = vpack.c.bf16 %v4324_v49, %v4319_v42  ;;  %v18076_v2 = vpack.c.bf16 %v4326_v61, %v4321_v48 }
 0x75f   :  { %v13806_v4 = vpop.f32.mrb[16].mxu1  ;;  %v13828_v37 = vpop.f32.mrb[24].mxu0 }
 0x760   :  { %v13807_v43 = vpop.f32.mrb[17].mxu1  ;;  %v13829_v6 = vpop.f32.mrb[25].mxu0 }
 0x761   :  { %v13808_v10 = vadd.f32 %v13807_v43, %v13806_v4  ;;  %v13809_v12 = vpop.f32.mrb[18].mxu1  ;;  %v13830_v14 = vadd.f32 %v13829_v6, %v13828_v37  ;;  %v13831_v16 = vpop.f32.mrb[26].mxu0 }
 0x762   :  { %v13810_v51 = vpop.f32.mrb[19].mxu1  ;;  %v13832_v18 = vpop.f32.mrb[27].mxu0 }
 0x763   :  { %v4230_v44 = vadd.f32 %v13808_v10, %v2937_v34  ;;  %v13811_v5 = vadd.f32 %v13810_v51, %v13809_v12  ;;  %v13833_v53 = vadd.f32 %v13832_v18, %v13831_v16 }
 0x765   :  { %v4233_v60 = vadd.f32 %v13811_v5, %v2937_v34  ;;  %v4271_v7 = vadd.f32 %v13830_v14, %v4230_v44 }
 0x767   :  { %v4274_v9 = vadd.f32 %v13833_v53, %v4233_v60 }
 0x777   :  { %v4311_v11 = vpop.f32.mrb[20].mxu1 }
 0x778   :  { %v4312_v17 = vadd.f32 %v4311_v11, %v4271_v7  ;;  %v14183_v13 = vpop.f32.mrb[21].mxu1 }
 0x779   :  { %v4314_v19 = vpop.f32.mrb[22].mxu1 }
 0x77a   :  { %v4315_v8 = vadd.f32 %v4314_v19, %v4274_v9  ;;  %v14184_v46 = vpop.f32.mrb[23].mxu1  ;;  %v4322_v50 = vmax.f32 %v4312_v17, 0.0 }
 0x77c   :  { %v4327_v38 = vmax.f32 %v4315_v8, 0.0 }
 0x77e   :  { %v18079_v39 = vpack.c.bf16 %v4327_v38, %v4322_v50 }
 0x77f   :  { %16232 = dma.done.wait [#allocation11 + $0x3], 24000 }
 0x780   :  { %16233 = vsyncadd [#allocation11 + $0x3], 4294943296  ;;  %5618 = vmatprep.mubr.bf16.mxu0 %v18074_v45  ;;  %5747 = vmatprep.mubr.bf16.mxu1 %v18074_v45  ;;  %v14776_v57 = vld [vmem:[#allocation5 + $0x4] ss:$20 sps:$4 sm:$0xff]   ;;  %v14778_v41 = vld [vmem:[#allocation5 + $0xc] ss:$20 sps:$4 sm:$0xff]  }
 0x781   :  { %5586 = vmatprep.subr.bf16.mxu0 %v14776_v57  ;;  %v14780_v52 = vld [vmem:[#allocation5] ss:$20 sps:$4 sm:$0xff]   ;;  %v14781_v3 = vld [vmem:[#allocation5 + $0x8] ss:$20 sps:$4 sm:$0xff]   ;;  %5715 = vmatprep.subr.bf16.mxu1 %v14778_v41  ;;  %v14787_v61 = vld [vmem:[#allocation5 + $0x30] ss:$20 sps:$4 sm:$0xff]  }
 0x782   :  { %v14782_v42 = vld [vmem:[#allocation5 + $0x2c] ss:$20 sps:$4 sm:$0xff]   ;;  %5587 = vmatpush1.bf16.msra.mxu0 %v14780_v52  ;;  %5716 = vmatpush1.bf16.msra.mxu1 %v14781_v3  ;;  %v14784_v48 = vld [vmem:[#allocation5 + $0x34] ss:$20 sps:$4 sm:$0xff]   ;;  %v14790_v34 = vld [vmem:[#allocation5 + $0x5c] ss:$20 sps:$4 sm:$0xff]  }
 0x783   :  { %v14786_v49 = vld [vmem:[#allocation5 + $0x28] ss:$20 sps:$4 sm:$0xff]   ;;  %5588 = vmatprep.subr.bf16.mxu0 %v14782_v42  ;;  %5717 = vmatprep.subr.bf16.mxu1 %v14784_v48  ;;  %v14792_v37 = vld [vmem:[#allocation5 + $0x50] ss:$20 sps:$4 sm:$0xff]   ;;  %v14793_v43 = vld [vmem:[#allocation5 + $0x58] ss:$20 sps:$4 sm:$0xff]  }
 0x784   :  { %v14788_v4 = vld [vmem:[#allocation5 + $0x54] ss:$20 sps:$4 sm:$0xff]   ;;  %v14794_v6 = vld [vmem:[#allocation5 + $0x7c] ss:$20 sps:$4 sm:$0xff]   ;;  %v14796_v10 = vld [vmem:[#allocation5 + $0x84] ss:$20 sps:$4 sm:$0xff]  }
 0x785   :  { %v14798_v12 = vld [vmem:[#allocation5 + $0x78] ss:$20 sps:$4 sm:$0xff]   ;;  %v14799_v14 = vld [vmem:[#allocation5 + $0x80] ss:$20 sps:$4 sm:$0xff]   ;;  %v14805_v44 = vld [vmem:[#allocation5 + $0xa8] ss:$20 sps:$4 sm:$0xff]  }
 0x786   :  { %5589 = vmatpush1.bf16.msra.mxu0 %v14786_v49  ;;  %5718 = vmatpush1.bf16.msra.mxu1 %v14787_v61  ;;  %v14800_v16 = vld [vmem:[#allocation5 + $0xa4] ss:$20 sps:$4 sm:$0xff]   ;;  %v14802_v51 = vld [vmem:[#allocation5 + $0xac] ss:$20 sps:$4 sm:$0xff]   ;;  %v14808_v53 = vld [vmem:[#allocation5 + $0xd4] ss:$20 sps:$4 sm:$0xff]  }
 0x787   :  { %5590 = vmatprep.subr.bf16.mxu0 %v14788_v4  ;;  %5719 = vmatprep.subr.bf16.mxu1 %v14790_v34  ;;  %v14804_v18 = vld [vmem:[#allocation5 + $0xa0] ss:$20 sps:$4 sm:$0xff]   ;;  %v14810_v60 = vld [vmem:[#allocation5 + $0xc8] ss:$20 sps:$4 sm:$0xff]   ;;  %v14811_v7 = vld [vmem:[#allocation5 + $0xd0] ss:$20 sps:$4 sm:$0xff]  }
 0x788   :  { %v14806_v5 = vld [vmem:[#allocation5 + $0xcc] ss:$20 sps:$4 sm:$0xff]   ;;  %v14812_v9 = vld [vmem:[#allocation5 + $0xf4] ss:$20 sps:$4 sm:$0xff]   ;;  %v14814_v11 = vld [vmem:[#allocation5 + $0xfc] ss:$20 sps:$4 sm:$0xff]  }
 0x789   :  { %v14816_v17 = vld [vmem:[#allocation5 + $0xf0] ss:$20 sps:$4 sm:$0xff]   ;;  %v14817_v13 = vld [vmem:[#allocation5 + $0xf8] ss:$20 sps:$4 sm:$0xff]   ;;  %v14823_v50 = vld [vmem:[#allocation5 + $0x120] ss:$20 sps:$4 sm:$0xff]  }
 0x78a   :  { %5591 = vmatpush1.bf16.msra.mxu0 %v14792_v37  ;;  %5720 = vmatpush1.bf16.msra.mxu1 %v14793_v43  ;;  %v14818_v19 = vld [vmem:[#allocation5 + $0x11c] ss:$20 sps:$4 sm:$0xff]   ;;  %v14820_v8 = vld [vmem:[#allocation5 + $0x124] ss:$20 sps:$4 sm:$0xff]   ;;  %v14826_v57 = vld [vmem:[#allocation5 + $0x14c] ss:$20 sps:$4 sm:$0xff]  }
 0x78b   :  { %5592 = vmatprep.subr.bf16.mxu0 %v14794_v6  ;;  %5721 = vmatprep.subr.bf16.mxu1 %v14796_v10  ;;  %v14822_v46 = vld [vmem:[#allocation5 + $0x118] ss:$20 sps:$4 sm:$0xff]   ;;  %v14828_v41 = vld [vmem:[#allocation5 + $0x140] ss:$20 sps:$4 sm:$0xff]   ;;  %v14829_v52 = vld [vmem:[#allocation5 + $0x148] ss:$20 sps:$4 sm:$0xff]  }
 0x78c   :  { %v14824_v38 = vld [vmem:[#allocation5 + $0x144] ss:$20 sps:$4 sm:$0xff]   ;;  %v14830_v3 = vld [vmem:[#allocation5 + $0x16c] ss:$20 sps:$4 sm:$0xff]   ;;  %v14832_v42 = vld [vmem:[#allocation5 + $0x174] ss:$20 sps:$4 sm:$0xff]  }
 0x78d   :  { %v14834_v48 = vld [vmem:[#allocation5 + $0x168] ss:$20 sps:$4 sm:$0xff]   ;;  %v14835_v49 = vld [vmem:[#allocation5 + $0x170] ss:$20 sps:$4 sm:$0xff]   ;;  %v14841_v37 = vld [vmem:[#allocation5 + $0x198] ss:$20 sps:$4 sm:$0xff]  }
 0x78e   :  { %5593 = vmatpush1.bf16.msra.mxu0 %v14798_v12  ;;  %5722 = vmatpush1.bf16.msra.mxu1 %v14799_v14  ;;  %v14836_v61 = vld [vmem:[#allocation5 + $0x194] ss:$20 sps:$4 sm:$0xff]   ;;  %v14838_v4 = vld [vmem:[#allocation5 + $0x19c] ss:$20 sps:$4 sm:$0xff]   ;;  %v14844_v6 = vld [vmem:[#allocation5 + $0x1c4] ss:$20 sps:$4 sm:$0xff]  }
 0x78f   :  { %5594 = vmatprep.subr.bf16.mxu0 %v14800_v16  ;;  %5723 = vmatprep.subr.bf16.mxu1 %v14802_v51  ;;  %v14840_v34 = vld [vmem:[#allocation5 + $0x190] ss:$20 sps:$4 sm:$0xff]   ;;  %v14846_v10 = vld [vmem:[#allocation5 + $0x1b8] ss:$20 sps:$4 sm:$0xff]   ;;  %v14847_v12 = vld [vmem:[#allocation5 + $0x1c0] ss:$20 sps:$4 sm:$0xff]  }
 0x790   :  { %v14842_v43 = vld [vmem:[#allocation5 + $0x1bc] ss:$20 sps:$4 sm:$0xff]   ;;  %v14848_v14 = vld [vmem:[#allocation5 + $0x1e4] ss:$20 sps:$4 sm:$0xff]   ;;  %v14850_v16 = vld [vmem:[#allocation5 + $0x1ec] ss:$20 sps:$4 sm:$0xff]  }
 0x791   :  { %v14852_v51 = vld [vmem:[#allocation5 + $0x1e0] ss:$20 sps:$4 sm:$0xff]  }
 0x792   :  { %5595 = vmatpush1.bf16.msra.mxu0 %v14804_v18  ;;  %5724 = vmatpush1.bf16.msra.mxu1 %v14805_v44  ;;  %v14853_v18 = vld [vmem:[#allocation5 + $0x1e8] ss:$20 sps:$4 sm:$0xff]   ;;  %v14854_v44 = vld [vmem:[#allocation5 + $0x20c] ss:$20 sps:$4 sm:$0xff]  }
 0x793   :  { %5596 = vmatprep.subr.bf16.mxu0 %v14806_v5  ;;  %5725 = vmatprep.subr.bf16.mxu1 %v14808_v53  ;;  %v14856_v5 = vld [vmem:[#allocation5 + $0x214] ss:$20 sps:$4 sm:$0xff]  }
 0x794   :  { %v14858_v53 = vld [vmem:[#allocation5 + $0x208] ss:$20 sps:$4 sm:$0xff]  }
 0x796   :  { %5597 = vmatpush1.bf16.msra.mxu0 %v14810_v60  ;;  %5726 = vmatpush1.bf16.msra.mxu1 %v14811_v7  ;;  %v14859_v60 = vld [vmem:[#allocation5 + $0x210] ss:$20 sps:$4 sm:$0xff]   ;;  %v14860_v7 = vld [vmem:[#allocation5 + $0x234] ss:$20 sps:$4 sm:$0xff]  }
 0x797   :  { %5598 = vmatprep.subr.bf16.mxu0 %v14812_v9  ;;  %5727 = vmatprep.subr.bf16.mxu1 %v14814_v11  ;;  %v14862_v9 = vld [vmem:[#allocation5 + $0x23c] ss:$20 sps:$4 sm:$0xff]  }
 0x798   :  { %v14864_v11 = vld [vmem:[#allocation5 + $0x230] ss:$20 sps:$4 sm:$0xff]  }
 0x79a   :  { %5599 = vmatpush1.bf16.msra.mxu0 %v14816_v17  ;;  %5728 = vmatpush1.bf16.msra.mxu1 %v14817_v13  ;;  %v14865_v17 = vld [vmem:[#allocation5 + $0x238] ss:$20 sps:$4 sm:$0xff]   ;;  %v14866_v13 = vld [vmem:[#allocation5 + $0x25c] ss:$20 sps:$4 sm:$0xff]  }
 0x79b   :  { %5600 = vmatprep.subr.bf16.mxu0 %v14818_v19  ;;  %5729 = vmatprep.subr.bf16.mxu1 %v14820_v8  ;;  %v14868_v19 = vld [vmem:[#allocation5 + $0x264] ss:$20 sps:$4 sm:$0xff]  }
 0x79c   :  { %v14870_v8 = vld [vmem:[#allocation5 + $0x258] ss:$20 sps:$4 sm:$0xff]  }
 0x79e   :  { %5601 = vmatpush1.bf16.msra.mxu0 %v14822_v46  ;;  %5730 = vmatpush1.bf16.msra.mxu1 %v14823_v50  ;;  %v14871_v46 = vld [vmem:[#allocation5 + $0x260] ss:$20 sps:$4 sm:$0xff]   ;;  %v14874_v50 = vld [vmem:[#allocation5 + $0x284] ss:$20 sps:$4 sm:$0xff]  }
 0x79f   :  { %5602 = vmatprep.subr.bf16.mxu0 %v14824_v38  ;;  %5731 = vmatprep.subr.bf16.mxu1 %v14826_v57  ;;  %v14877_v38 = vld [vmem:[#allocation5 + $0x28c] ss:$20 sps:$4 sm:$0xff]  }
 0x7a0   :  { %v14872_v57 = vld [vmem:[#allocation5 + $0x280] ss:$20 sps:$4 sm:$0xff]  }
 0x7a2   :  { %5603 = vmatpush1.bf16.msra.mxu0 %v14828_v41  ;;  %5732 = vmatpush1.bf16.msra.mxu1 %v14829_v52  ;;  %v14875_v41 = vld [vmem:[#allocation5 + $0x288] ss:$20 sps:$4 sm:$0xff]   ;;  %v14880_v52 = vld [vmem:[#allocation5 + $0x2ac] ss:$20 sps:$4 sm:$0xff]  }
 0x7a3   :  { %5604 = vmatprep.subr.bf16.mxu0 %v14830_v3  ;;  %5733 = vmatprep.subr.bf16.mxu1 %v14832_v42  ;;  %v14883_v3 = vld [vmem:[#allocation5 + $0x2b4] ss:$20 sps:$4 sm:$0xff]  }
 0x7a4   :  { %v14878_v42 = vld [vmem:[#allocation5 + $0x2a8] ss:$20 sps:$4 sm:$0xff]  }
 0x7a6   :  { %5605 = vmatpush1.bf16.msra.mxu0 %v14834_v48  ;;  %5734 = vmatpush1.bf16.msra.mxu1 %v14835_v49  ;;  %v14881_v48 = vld [vmem:[#allocation5 + $0x2b0] ss:$20 sps:$4 sm:$0xff]   ;;  %v14886_v49 = vld [vmem:[#allocation5 + $0x2d4] ss:$20 sps:$4 sm:$0xff]  }
 0x7a7   :  { %5606 = vmatprep.subr.bf16.mxu0 %v14836_v61  ;;  %5735 = vmatprep.subr.bf16.mxu1 %v14838_v4  ;;  %v14889_v61 = vld [vmem:[#allocation5 + $0x2dc] ss:$20 sps:$4 sm:$0xff]  }
 0x7a8   :  { %v14884_v4 = vld [vmem:[#allocation5 + $0x2d0] ss:$20 sps:$4 sm:$0xff]  }
 0x7aa   :  { %5607 = vmatpush1.bf16.msra.mxu0 %v14840_v34  ;;  %5736 = vmatpush1.bf16.msra.mxu1 %v14841_v37  ;;  %v14887_v34 = vld [vmem:[#allocation5 + $0x2d8] ss:$20 sps:$4 sm:$0xff]   ;;  %v14892_v37 = vld [vmem:[#allocation5 + $0x2fc] ss:$20 sps:$4 sm:$0xff]  }
 0x7ab   :  { %5608 = vmatprep.subr.bf16.mxu0 %v14842_v43  ;;  %5737 = vmatprep.subr.bf16.mxu1 %v14844_v6  ;;  %v14895_v43 = vld [vmem:[#allocation5 + $0x304] ss:$20 sps:$4 sm:$0xff]  }
 0x7ac   :  { %v14890_v6 = vld [vmem:[#allocation5 + $0x2f8] ss:$20 sps:$4 sm:$0xff]  }
 0x7ae   :  { %5609 = vmatpush1.bf16.msra.mxu0 %v14846_v10  ;;  %5738 = vmatpush1.bf16.msra.mxu1 %v14847_v12  ;;  %v14893_v10 = vld [vmem:[#allocation5 + $0x300] ss:$20 sps:$4 sm:$0xff]   ;;  %v14898_v12 = vld [vmem:[#allocation5 + $0x324] ss:$20 sps:$4 sm:$0xff]  }
 0x7af   :  { %5610 = vmatprep.subr.bf16.mxu0 %v14848_v14  ;;  %5739 = vmatprep.subr.bf16.mxu1 %v14850_v16  ;;  %v14901_v14 = vld [vmem:[#allocation5 + $0x32c] ss:$20 sps:$4 sm:$0xff]  }
 0x7b0   :  { %v14896_v16 = vld [vmem:[#allocation5 + $0x320] ss:$20 sps:$4 sm:$0xff]  }
 0x7b2   :  { %5611 = vmatpush1.bf16.msra.mxu0 %v14852_v51  ;;  %5740 = vmatpush1.bf16.msra.mxu1 %v14853_v18  ;;  %v14899_v51 = vld [vmem:[#allocation5 + $0x328] ss:$20 sps:$4 sm:$0xff]   ;;  %v14904_v18 = vld [vmem:[#allocation5 + $0x34c] ss:$20 sps:$4 sm:$0xff]  }
 0x7b3   :  { %5612 = vmatprep.subr.bf16.mxu0 %v14854_v44  ;;  %5741 = vmatprep.subr.bf16.mxu1 %v14856_v5  ;;  %v14907_v44 = vld [vmem:[#allocation5 + $0x354] ss:$20 sps:$4 sm:$0xff]  }
 0x7b4   :  { %v14902_v5 = vld [vmem:[#allocation5 + $0x348] ss:$20 sps:$4 sm:$0xff]  }
 0x7b6   :  { %5613 = vmatpush1.bf16.msra.mxu0 %v14858_v53  ;;  %5742 = vmatpush1.bf16.msra.mxu1 %v14859_v60  ;;  %v14905_v53 = vld [vmem:[#allocation5 + $0x350] ss:$20 sps:$4 sm:$0xff]   ;;  %v14910_v60 = vld [vmem:[#allocation5 + $0x374] ss:$20 sps:$4 sm:$0xff]  }
 0x7b7   :  { %5614 = vmatprep.subr.bf16.mxu0 %v14860_v7  ;;  %5743 = vmatprep.subr.bf16.mxu1 %v14862_v9  ;;  %v14913_v7 = vld [vmem:[#allocation5 + $0x37c] ss:$20 sps:$4 sm:$0xff]  }
 0x7b8   :  { %v14908_v9 = vld [vmem:[#allocation5 + $0x370] ss:$20 sps:$4 sm:$0xff]  }
 0x7ba   :  { %5615 = vmatpush1.bf16.msra.mxu0 %v14864_v11  ;;  %5744 = vmatpush1.bf16.msra.mxu1 %v14865_v17  ;;  %v14911_v11 = vld [vmem:[#allocation5 + $0x378] ss:$20 sps:$4 sm:$0xff]   ;;  %v14916_v17 = vld [vmem:[#allocation5 + $0x39c] ss:$20 sps:$4 sm:$0xff]  }
 0x7bb   :  { %5616 = vmatprep.subr.bf16.mxu0 %v14866_v13  ;;  %5745 = vmatprep.subr.bf16.mxu1 %v14868_v19  ;;  %v14919_v13 = vld [vmem:[#allocation5 + $0x3a4] ss:$20 sps:$4 sm:$0xff]  }
 0x7bc   :  { %v14914_v19 = vld [vmem:[#allocation5 + $0x398] ss:$20 sps:$4 sm:$0xff]  }
 0x7be   :  { %5617 = vmatpush1.bf16.msra.mxu0 %v14870_v8  ;;  %5746 = vmatpush1.bf16.msra.mxu1 %v14871_v46  ;;  %v14917_v8 = vld [vmem:[#allocation5 + $0x3a0] ss:$20 sps:$4 sm:$0xff]   ;;  %v14922_v46 = vld [vmem:[#allocation5 + $0x3c4] ss:$20 sps:$4 sm:$0xff]  }
 0x7bf   :  { %5629 = vmatprep.subr.bf16.mxu0 %v14874_v50  ;;  %5758 = vmatprep.subr.bf16.mxu1 %v14877_v38  ;;  %v14925_v50 = vld [vmem:[#allocation5 + $0x3cc] ss:$20 sps:$4 sm:$0xff]  }
 0x7c0   :  { %v14920_v38 = vld [vmem:[#allocation5 + $0x3c0] ss:$20 sps:$4 sm:$0xff]  }
 0x7c1   :  { %5619 = vmatmul.mubr.bf16.vlgmr.msra.gmra.mrb[28].mxu0 %v18070_v55  ;;  %5748 = vmatmul.mubr.bf16.vlgmr.msra.gmra.mrb[24].mxu1 %v18070_v55 }
 0x7c2   :  { %5630 = vmatpush1.bf16.msra.mxu0 %v14872_v57  ;;  %5759 = vmatpush1.bf16.msra.mxu1 %v14875_v41  ;;  %v14923_v57 = vld [vmem:[#allocation5 + $0x3c8] ss:$20 sps:$4 sm:$0xff]   ;;  %v14928_v41 = vld [vmem:[#allocation5 + $0x3ec] ss:$20 sps:$4 sm:$0xff]  }
 0x7c3   :  { %5631 = vmatprep.subr.bf16.mxu0 %v14880_v52  ;;  %5760 = vmatprep.subr.bf16.mxu1 %v14883_v3  ;;  %v14931_v52 = vld [vmem:[#allocation5 + $0x3f4] ss:$20 sps:$4 sm:$0xff]  }
 0x7c4   :  { %5661 = vmatprep.mubr.bf16.mxu0 %v18076_v2  ;;  %5790 = vmatprep.mubr.bf16.mxu1 %v18076_v2  ;;  %v14926_v3 = vld [vmem:[#allocation5 + $0x3e8] ss:$20 sps:$4 sm:$0xff]  }
 0x7c6   :  { %5632 = vmatpush1.bf16.msra.mxu0 %v14878_v42  ;;  %5761 = vmatpush1.bf16.msra.mxu1 %v14881_v48  ;;  %v14929_v42 = vld [vmem:[#allocation5 + $0x3f0] ss:$20 sps:$4 sm:$0xff]   ;;  %v14934_v48 = vld [vmem:[#allocation5 + $0x414] ss:$20 sps:$4 sm:$0xff]  }
 0x7c7   :  { %5633 = vmatprep.subr.bf16.mxu0 %v14886_v49  ;;  %5762 = vmatprep.subr.bf16.mxu1 %v14889_v61  ;;  %v14937_v49 = vld [vmem:[#allocation5 + $0x41c] ss:$20 sps:$4 sm:$0xff]  }
 0x7c8   :  { %v14932_v61 = vld [vmem:[#allocation5 + $0x410] ss:$20 sps:$4 sm:$0xff]  }
 0x7ca   :  { %5634 = vmatpush1.bf16.msra.mxu0 %v14884_v4  ;;  %5763 = vmatpush1.bf16.msra.mxu1 %v14887_v34  ;;  %v14935_v4 = vld [vmem:[#allocation5 + $0x418] ss:$20 sps:$4 sm:$0xff]   ;;  %v14940_v34 = vld [vmem:[#allocation5 + $0x43c] ss:$20 sps:$4 sm:$0xff]  }
 0x7cb   :  { %5635 = vmatprep.subr.bf16.mxu0 %v14892_v37  ;;  %5764 = vmatprep.subr.bf16.mxu1 %v14895_v43  ;;  %v14943_v37 = vld [vmem:[#allocation5 + $0x444] ss:$20 sps:$4 sm:$0xff]  }
 0x7cc   :  { %v14938_v43 = vld [vmem:[#allocation5 + $0x438] ss:$20 sps:$4 sm:$0xff]  }
 0x7ce   :  { %5636 = vmatpush1.bf16.msra.mxu0 %v14890_v6  ;;  %5765 = vmatpush1.bf16.msra.mxu1 %v14893_v10  ;;  %v14941_v6 = vld [vmem:[#allocation5 + $0x440] ss:$20 sps:$4 sm:$0xff]   ;;  %v14946_v10 = vld [vmem:[#allocation5 + $0x464] ss:$20 sps:$4 sm:$0xff]  }
 0x7cf   :  { %5637 = vmatprep.subr.bf16.mxu0 %v14898_v12  ;;  %5766 = vmatprep.subr.bf16.mxu1 %v14901_v14  ;;  %v14949_v12 = vld [vmem:[#allocation5 + $0x46c] ss:$20 sps:$4 sm:$0xff]  }
 0x7d0   :  { %v14944_v14 = vld [vmem:[#allocation5 + $0x460] ss:$20 sps:$4 sm:$0xff]  }
 0x7d2   :  { %5638 = vmatpush1.bf16.msra.mxu0 %v14896_v16  ;;  %5767 = vmatpush1.bf16.msra.mxu1 %v14899_v51  ;;  %v14947_v16 = vld [vmem:[#allocation5 + $0x468] ss:$20 sps:$4 sm:$0xff]   ;;  %v14952_v51 = vld [vmem:[#allocation5 + $0x48c] ss:$20 sps:$4 sm:$0xff]  }
 0x7d3   :  { %5639 = vmatprep.subr.bf16.mxu0 %v14904_v18  ;;  %5768 = vmatprep.subr.bf16.mxu1 %v14907_v44  ;;  %v14955_v18 = vld [vmem:[#allocation5 + $0x494] ss:$20 sps:$4 sm:$0xff]  }
 0x7d4   :  { %v14950_v44 = vld [vmem:[#allocation5 + $0x488] ss:$20 sps:$4 sm:$0xff]  }
 0x7d6   :  { %5640 = vmatpush1.bf16.msra.mxu0 %v14902_v5  ;;  %5769 = vmatpush1.bf16.msra.mxu1 %v14905_v53  ;;  %v14953_v5 = vld [vmem:[#allocation5 + $0x490] ss:$20 sps:$4 sm:$0xff]   ;;  %v14958_v53 = vld [vmem:[#allocation5 + $0x4b4] ss:$20 sps:$4 sm:$0xff]  }
 0x7d7   :  { %5641 = vmatprep.subr.bf16.mxu0 %v14910_v60  ;;  %5770 = vmatprep.subr.bf16.mxu1 %v14913_v7  ;;  %v14961_v60 = vld [vmem:[#allocation5 + $0x4bc] ss:$20 sps:$4 sm:$0xff]  }
 0x7d8   :  { %v14956_v7 = vld [vmem:[#allocation5 + $0x4b0] ss:$20 sps:$4 sm:$0xff]  }
 0x7da   :  { %5642 = vmatpush1.bf16.msra.mxu0 %v14908_v9  ;;  %5771 = vmatpush1.bf16.msra.mxu1 %v14911_v11  ;;  %v14959_v9 = vld [vmem:[#allocation5 + $0x4b8] ss:$20 sps:$4 sm:$0xff]   ;;  %v14964_v11 = vld [vmem:[#allocation5 + $0x4dc] ss:$20 sps:$4 sm:$0xff]  }
 0x7db   :  { %5643 = vmatprep.subr.bf16.mxu0 %v14916_v17  ;;  %5772 = vmatprep.subr.bf16.mxu1 %v14919_v13  ;;  %v14967_v17 = vld [vmem:[#allocation5 + $0x4e4] ss:$20 sps:$4 sm:$0xff]  }
 0x7dc   :  { %v14962_v13 = vld [vmem:[#allocation5 + $0x4d8] ss:$20 sps:$4 sm:$0xff]  }
 0x7de   :  { %5644 = vmatpush1.bf16.msra.mxu0 %v14914_v19  ;;  %5773 = vmatpush1.bf16.msra.mxu1 %v14917_v8  ;;  %v14965_v19 = vld [vmem:[#allocation5 + $0x4e0] ss:$20 sps:$4 sm:$0xff]   ;;  %v14970_v8 = vld [vmem:[#allocation5 + $0x504] ss:$20 sps:$4 sm:$0xff]  }
 0x7df   :  { %5645 = vmatprep.subr.bf16.mxu0 %v14922_v46  ;;  %5774 = vmatprep.subr.bf16.mxu1 %v14925_v50  ;;  %v14973_v46 = vld [vmem:[#allocation5 + $0x50c] ss:$20 sps:$4 sm:$0xff]  }
 0x7e0   :  { %v14968_v50 = vld [vmem:[#allocation5 + $0x500] ss:$20 sps:$4 sm:$0xff]  }
 0x7e2   :  { %5646 = vmatpush1.bf16.msra.mxu0 %v14920_v38  ;;  %5775 = vmatpush1.bf16.msra.mxu1 %v14923_v57  ;;  %v14971_v38 = vld [vmem:[#allocation5 + $0x508] ss:$20 sps:$4 sm:$0xff]   ;;  %v14976_v57 = vld [vmem:[#allocation5 + $0x52c] ss:$20 sps:$4 sm:$0xff]  }
 0x7e3   :  { %5647 = vmatprep.subr.bf16.mxu0 %v14928_v41  ;;  %5776 = vmatprep.subr.bf16.mxu1 %v14931_v52  ;;  %v14979_v41 = vld [vmem:[#allocation5 + $0x534] ss:$20 sps:$4 sm:$0xff]  }
 0x7e4   :  { %v14974_v52 = vld [vmem:[#allocation5 + $0x528] ss:$20 sps:$4 sm:$0xff]  }
 0x7e6   :  { %5648 = vmatpush1.bf16.msra.mxu0 %v14926_v3  ;;  %5777 = vmatpush1.bf16.msra.mxu1 %v14929_v42  ;;  %v14977_v3 = vld [vmem:[#allocation5 + $0x530] ss:$20 sps:$4 sm:$0xff]   ;;  %v14982_v42 = vld [vmem:[#allocation5 + $0x554] ss:$20 sps:$4 sm:$0xff]  }
 0x7e7   :  { %5649 = vmatprep.subr.bf16.mxu0 %v14934_v48  ;;  %5778 = vmatprep.subr.bf16.mxu1 %v14937_v49  ;;  %v14985_v48 = vld [vmem:[#allocation5 + $0x55c] ss:$20 sps:$4 sm:$0xff]  }
 0x7e8   :  { %v14980_v49 = vld [vmem:[#allocation5 + $0x550] ss:$20 sps:$4 sm:$0xff]  }
 0x7ea   :  { %5650 = vmatpush1.bf16.msra.mxu0 %v14932_v61  ;;  %5779 = vmatpush1.bf16.msra.mxu1 %v14935_v4  ;;  %v14983_v61 = vld [vmem:[#allocation5 + $0x558] ss:$20 sps:$4 sm:$0xff]   ;;  %v14988_v4 = vld [vmem:[#allocation5 + $0x57c] ss:$20 sps:$4 sm:$0xff]  }
 0x7eb   :  { %5651 = vmatprep.subr.bf16.mxu0 %v14940_v34  ;;  %5780 = vmatprep.subr.bf16.mxu1 %v14943_v37  ;;  %v14991_v34 = vld [vmem:[#allocation5 + $0x584] ss:$20 sps:$4 sm:$0xff]  }
 0x7ec   :  { %v14986_v37 = vld [vmem:[#allocation5 + $0x578] ss:$20 sps:$4 sm:$0xff]  }
 0x7ee   :  { %5652 = vmatpush1.bf16.msra.mxu0 %v14938_v43  ;;  %5781 = vmatpush1.bf16.msra.mxu1 %v14941_v6  ;;  %v14989_v43 = vld [vmem:[#allocation5 + $0x580] ss:$20 sps:$4 sm:$0xff]   ;;  %v14994_v6 = vld [vmem:[#allocation5 + $0x5a4] ss:$20 sps:$4 sm:$0xff]  }
 0x7ef   :  { %5653 = vmatprep.subr.bf16.mxu0 %v14946_v10  ;;  %5782 = vmatprep.subr.bf16.mxu1 %v14949_v12  ;;  %v14997_v10 = vld [vmem:[#allocation5 + $0x5ac] ss:$20 sps:$4 sm:$0xff]  }
 0x7f0   :  { %v4563_v12 = vld [vmem:[#allocation5 + $0x5c8] sm:$0xff] }
 0x7f2   :  { %5654 = vmatpush1.bf16.msra.mxu0 %v14944_v14  ;;  %5783 = vmatpush1.bf16.msra.mxu1 %v14947_v16  ;;  %v4564_v14 = vld [vmem:[#allocation5 + $0x5d0] sm:$0xff] }
 0x7f3   :  { %5655 = vmatprep.subr.bf16.mxu0 %v14952_v51  ;;  %5784 = vmatprep.subr.bf16.mxu1 %v14955_v18  ;;  %v14992_v16 = vld [vmem:[#allocation5 + $0x5a0] ss:$20 sps:$4 sm:$0xff]   ;;  %v14995_v51 = vld [vmem:[#allocation5 + $0x5a8] ss:$20 sps:$4 sm:$0xff]   ;;  %v13036_v18 = vcombine.high %v4563_v12, %v4563_v12 }
 0x7f6   :  { %5656 = vmatpush1.bf16.msra.mxu0 %v14950_v44  ;;  %5785 = vmatpush1.bf16.msra.mxu1 %v14953_v5  ;;  %v13038_v44 = vcombine.high %v4564_v14, %v4564_v14  ;;  %v13035_v5 = vcombine.low %v4563_v12, %v4563_v12  ;;  %v15028_v12 = vld [vmem:[#allocation5 + $0x4c0] ss:$20 sps:$4 sm:$0xff]  }
 0x7f7   :  { %5657 = vmatprep.subr.bf16.mxu0 %v14958_v53  ;;  %5786 = vmatprep.subr.bf16.mxu1 %v14961_v60  ;;  %v13037_v53 = vcombine.low %v4564_v14, %v4564_v14  ;;  %v15027_v14 = vld [vmem:[#allocation5 + $0x100] ss:$20 sps:$4 sm:$0xff]  }
 0x7f8   :  { %v5572_v60 = vsel %vm2139_vm8, %v13035_v5, 0  ;;  %v15033_v5 = vld [vmem:[#allocation5 + $0x3a8] ss:$20 sps:$4 sm:$0xff]  }
 0x7fa   :  { %5658 = vmatpush1.bf16.msra.mxu0 %v14956_v7  ;;  %5787 = vmatpush1.bf16.msra.mxu1 %v14959_v9  ;;  %v5578_v7 = vsel %vm2139_vm8, %v13037_v53, 0  ;;  %v15002_v9 = vld [vmem:[#allocation5 + $0x150] ss:$20 sps:$4 sm:$0xff]  }
 0x7fb   :  { %5659 = vmatprep.subr.bf16.mxu0 %v14964_v11  ;;  %5788 = vmatprep.subr.bf16.mxu1 %v14967_v17  ;;  %v15004_v11 = vld [vmem:[#allocation5 + $0x3d0] ss:$20 sps:$4 sm:$0xff]  }
 0x7fc   :  { %v15003_v17 = vld [vmem:[#allocation5 + $0x10] ss:$20 sps:$4 sm:$0xff]  }
 0x7fd   :  { %v15034_v53 = vld [vmem:[#allocation5 + $0x510] ss:$20 sps:$4 sm:$0xff]  }
 0x7fe   :  { %5660 = vmatpush1.bf16.msra.mxu0 %v14962_v13  ;;  %5789 = vmatpush1.bf16.msra.mxu1 %v14965_v19  ;;  %v15005_v13 = vld [vmem:[#allocation5 + $0x290] ss:$20 sps:$4 sm:$0xff]   ;;  %v15006_v19 = vld [vmem:[#allocation5 + $0x178] ss:$20 sps:$4 sm:$0xff]  }
 0x7ff   :  { %5672 = vmatprep.subr.bf16.mxu0 %v14970_v8  ;;  %5801 = vmatprep.subr.bf16.mxu1 %v14973_v46  ;;  %v15008_v8 = vld [vmem:[#allocation5 + $0x3f8] ss:$20 sps:$4 sm:$0xff]  }
 0x800   :  { %v15007_v46 = vld [vmem:[#allocation5 + $0x38] ss:$20 sps:$4 sm:$0xff]  }
 0x801   :  { %5662 = vmatmul.mubr.bf16.vlgmr.msra.gmra.mrb[28].mxu0 %v18072_v35  ;;  %5791 = vmatmul.mubr.bf16.vlgmr.msra.gmra.mrb[24].mxu1 %v18072_v35 }
 0x802   :  { %5673 = vmatpush1.bf16.msra.mxu0 %v14968_v50  ;;  %5802 = vmatpush1.bf16.msra.mxu1 %v14971_v38  ;;  %v15009_v50 = vld [vmem:[#allocation5 + $0x2b8] ss:$20 sps:$4 sm:$0xff]   ;;  %v15010_v38 = vld [vmem:[#allocation5 + $0x1a0] ss:$20 sps:$4 sm:$0xff]  }
 0x803   :  { %5674 = vmatprep.subr.bf16.mxu0 %v14976_v57  ;;  %5803 = vmatprep.subr.bf16.mxu1 %v14979_v41  ;;  %v15012_v57 = vld [vmem:[#allocation5 + $0x420] ss:$20 sps:$4 sm:$0xff]  }
 0x804   :  { %5704 = vmatprep.mubr.bf16.mxu0 %v16269_v36  ;;  %5833 = vmatprep.mubr.bf16.mxu1 %v16269_v36  ;;  %v15011_v41 = vld [vmem:[#allocation5 + $0x60] ss:$20 sps:$4 sm:$0xff]  }
 0x806   :  { %5675 = vmatpush1.bf16.msra.mxu0 %v14974_v52  ;;  %5804 = vmatpush1.bf16.msra.mxu1 %v14977_v3  ;;  %v15013_v52 = vld [vmem:[#allocation5 + $0x2e0] ss:$20 sps:$4 sm:$0xff]   ;;  %v15014_v3 = vld [vmem:[#allocation5 + $0x1c8] ss:$20 sps:$4 sm:$0xff]  }
 0x807   :  { %5676 = vmatprep.subr.bf16.mxu0 %v14982_v42  ;;  %5805 = vmatprep.subr.bf16.mxu1 %v14985_v48  ;;  %v15016_v42 = vld [vmem:[#allocation5 + $0x448] ss:$20 sps:$4 sm:$0xff]  }
 0x808   :  { %v15015_v48 = vld [vmem:[#allocation5 + $0x88] ss:$20 sps:$4 sm:$0xff]  }
 0x80a   :  { %5677 = vmatpush1.bf16.msra.mxu0 %v14980_v49  ;;  %5806 = vmatpush1.bf16.msra.mxu1 %v14983_v61  ;;  %v15017_v49 = vld [vmem:[#allocation5 + $0x308] ss:$20 sps:$4 sm:$0xff]   ;;  %v15018_v61 = vld [vmem:[#allocation5 + $0x1f0] ss:$20 sps:$4 sm:$0xff]  }
 0x80b   :  { %5678 = vmatprep.subr.bf16.mxu0 %v14988_v4  ;;  %5807 = vmatprep.subr.bf16.mxu1 %v14991_v34  ;;  %v15020_v4 = vld [vmem:[#allocation5 + $0x470] ss:$20 sps:$4 sm:$0xff]   ;;  %v15022_v34 = vld [vmem:[#allocation5 + $0x218] ss:$20 sps:$4 sm:$0xff]  }
 0x80e   :  { %5679 = vmatpush1.bf16.msra.mxu0 %v14986_v37  ;;  %5808 = vmatpush1.bf16.msra.mxu1 %v14989_v43  ;;  %v15024_v37 = vld [vmem:[#allocation5 + $0x498] ss:$20 sps:$4 sm:$0xff]  }
 0x80f   :  { %5680 = vmatprep.subr.bf16.mxu0 %v14994_v6  ;;  %5809 = vmatprep.subr.bf16.mxu1 %v14997_v10  ;;  %v15023_v43 = vld [vmem:[#allocation5 + $0xd8] ss:$20 sps:$4 sm:$0xff]   ;;  %v15026_v10 = vld [vmem:[#allocation5 + $0x240] ss:$20 sps:$4 sm:$0xff]  }
 0x810   :  { %v15025_v6 = vld [vmem:[#allocation5 + $0x358] ss:$20 sps:$4 sm:$0xff]  }
 0x812   :  { %5681 = vmatpush1.bf16.msra.mxu0 %v14992_v16  ;;  %5810 = vmatpush1.bf16.msra.mxu1 %v14995_v51  ;;  %v15029_v16 = vld [vmem:[#allocation5 + $0x380] ss:$20 sps:$4 sm:$0xff]   ;;  %v15030_v51 = vld [vmem:[#allocation5 + $0x268] ss:$20 sps:$4 sm:$0xff]  }
 0x813   :  { %13040 = vmatprep.subr.msk.bf16.mxu0 %vm2139_vm8, %v13036_v18  ;;  %13042 = vmatprep.subr.msk.bf16.mxu1 %vm2139_vm8, %v13038_v44  ;;  %v15032_v18 = vld [vmem:[#allocation5 + $0x4e8] ss:$20 sps:$4 sm:$0xff]  }
 0x814   :  { %v15031_v44 = vld [vmem:[#allocation5 + $0x128] ss:$20 sps:$4 sm:$0xff]  }
 0x816   :  { %5683 = vmatpush1.bf16.msra.mxu0 %v5572_v60  ;;  %5812 = vmatpush1.bf16.msra.mxu1 %v5578_v7  ;;  %v15035_v60 = vld [vmem:[#allocation5 + $0x538] ss:$20 sps:$4 sm:$0xff]   ;;  %v15036_v7 = vld [vmem:[#allocation5 + $0x560] ss:$20 sps:$4 sm:$0xff]  }
 0x817   :  { %13841 = vmatprep.subr.bf16.mxu0 %v15002_v9  ;;  %13863 = vmatprep.subr.bf16.mxu1 %v15004_v11  ;;  %v15037_v9 = vld [vmem:[#allocation5 + $0x588] ss:$20 sps:$4 sm:$0xff]   ;;  %v15038_v11 = vld [vmem:[#allocation5 + $0x5b0] ss:$20 sps:$4 sm:$0xff]  }
 0x819   :  { %13041 = vmatmul.mubr.msk.bf16.vlgmr.msra.gmra.mrb[28].mxu0 %vm3918_vm10, %v18079_v39  ;;  %13043 = vmatmul.mubr.msk.bf16.vlgmr.msra.gmra.mrb[24].mxu1 %vm3918_vm10, %v18079_v39 }
 0x81a   :  { %13842 = vmatpush3.bf16.msra.mxu0 %v15003_v17  ;;  %13864 = vmatpush3.bf16.msra.mxu1 %v15005_v13  ;;  %v4566_v17 = vld [vmem:[#allocation19] sm:$0x1f] }
 0x81b   :  { %13843 = vmatprep.subr.bf16.mxu0 %v15006_v19  ;;  %13865 = vmatprep.subr.bf16.mxu1 %v15008_v8  ;;  %v4571_v13 = vrot.slane %v4566_v17, %v17968_v15  ;;  %v4579_v19 = vrot.slane %v4566_v17, %v17980_v40  ;;  %v4575_v8 = vrot.slane %v4566_v17, %v17971_v58 }
 0x81c   :  { %5876 = vmatprep.mubr.bf16.mxu0 %v18074_v45  ;;  %5917 = vmatprep.mubr.bf16.mxu1 %v18076_v2  ;;  %v15019_v45 = vld [vmem:[#allocation5 + $0xb0] ss:$20 sps:$4 sm:$0xff]  }
 0x81d   :  { %v15021_v2 = vld [vmem:[#allocation5 + $0x330] ss:$20 sps:$4 sm:$0xff]  }
 0x81e   :  { %13844 = vmatpush3.bf16.msra.mxu0 %v15007_v46  ;;  %13866 = vmatpush3.bf16.msra.mxu1 %v15009_v50  ;;  %v4583_v46 = vrot.slane %v4566_v17, %v17983_v59 }
 0x81f   :  { %13845 = vmatprep.subr.bf16.mxu0 %v15010_v38  ;;  %13867 = vmatprep.subr.bf16.mxu1 %v15012_v57 }
 0x822   :  { %13846 = vmatpush3.bf16.msra.mxu0 %v15011_v41  ;;  %13868 = vmatpush3.bf16.msra.mxu1 %v15013_v52 }
 0x823   :  { %13847 = vmatprep.subr.bf16.mxu0 %v15014_v3  ;;  %13869 = vmatprep.subr.bf16.mxu1 %v15016_v42 }
 0x826   :  { %13848 = vmatpush3.bf16.msra.mxu0 %v15015_v48  ;;  %13870 = vmatpush3.bf16.msra.mxu1 %v15017_v49 }
 0x827   :  { %13849 = vmatprep.subr.bf16.mxu0 %v15018_v61  ;;  %13871 = vmatprep.subr.bf16.mxu1 %v15020_v4 }
 0x82a   :  { %13850 = vmatpush3.bf16.msra.mxu0 %v15019_v45  ;;  %13872 = vmatpush3.bf16.msra.mxu1 %v15021_v2 }
 0x82b   :  { %13851 = vmatprep.subr.bf16.mxu0 %v15022_v34  ;;  %13873 = vmatprep.subr.bf16.mxu1 %v15024_v37 }
 0x82e   :  { %13852 = vmatpush3.bf16.msra.mxu0 %v15023_v43  ;;  %13874 = vmatpush3.bf16.msra.mxu1 %v15025_v6 }
 0x82f   :  { %13853 = vmatprep.subr.bf16.mxu0 %v15026_v10  ;;  %13875 = vmatprep.subr.bf16.mxu1 %v15028_v12 }
 0x832   :  { %13854 = vmatpush3.bf16.msra.mxu0 %v15027_v14  ;;  %13876 = vmatpush3.bf16.msra.mxu1 %v15029_v16 }
 0x833   :  { %13855 = vmatprep.subr.bf16.mxu0 %v15030_v51  ;;  %13877 = vmatprep.subr.bf16.mxu1 %v15032_v18 }
 0x836   :  { %13856 = vmatpush3.bf16.msra.mxu0 %v15031_v44  ;;  %13878 = vmatpush3.bf16.msra.mxu1 %v15033_v5 }
 0x837   :  { %14185 = vmatprep.subr.bf16.mxu0 %v16277_v54 }
 0x839   :  { %5877 = vmatmul.mubr.bf16.vlgmr.msra.gmra.mrb[32].mxu0 %v18070_v55  ;;  %5918 = vmatmul.mubr.bf16.vlgmr.msra.gmra.mrb[28].mxu1 %v18072_v35  ;;  %v15039_v55 = vld [vmem:[#allocation5 + $0x5d8] ss:$0 sps:$4 sm:$0xff]  }
 0x83a   :  { %14186 = vmatpush3.bf16.msra.mxu0 %v15034_v53  ;;  %14197 = vmatprep.mubr.msk.bf16.mxu0 %vm16278_vm12, %v16277_v54  ;;  %v5584_v35 = vsel %vm2139_vm8, %v15039_v55, 0 }
 0x83b   :  { %14187 = vmatprep.subr.bf16.mxu0 %v16277_v54 }
 0x83e   :  { %14188 = vmatpush3.bf16.msra.mxu0 %v15035_v60 }
 0x83f   :  { %14189 = vmatprep.subr.bf16.mxu0 %v16277_v54 }
 0x842   :  { %14190 = vmatpush3.bf16.msra.mxu0 %v15036_v7 }
 0x843   :  { %14191 = vmatprep.subr.bf16.mxu0 %v16277_v54 }
 0x846   :  { %14192 = vmatpush3.bf16.msra.mxu0 %v15037_v9  ;;  %v4587_v9 = vrot.slane %v4566_v17, %v18028_v47 }
 0x847   :  { %14193 = vmatprep.subr.bf16.mxu0 %v16277_v54 }
 0x84a   :  { %14194 = vmatpush3.bf16.msra.mxu0 %v15038_v11 }
 0x84b   :  { %14195 = vmatprep.subr.bf16.mxu0 %v16277_v54 }
 0x84e   :  { %14196 = vmatpush3.bf16.msra.mxu0 %v5584_v35 }
 0x851   :  { %14198 = vmatmul.mubr.msk.bf16.vlgmr.msra.gmra.mrb[36].mxu0 %vm3918_vm10, %v18079_v39 }
 0x8ec   :  { %v5706_v50 = vpop.f32.mrb[28].mxu0  ;;  %v5835_v38 = vpop.f32.mrb[24].mxu1 }
 0x8ed   :  { %v14297_v57 = vadd.f32 %v5706_v50, %v4571_v13  ;;  %v14301_v41 = vadd.f32 %v5835_v38, %v4579_v19  ;;  %v5708_v52 = vpop.f32.mrb[29].mxu0  ;;  %v5837_v3 = vpop.f32.mrb[25].mxu1 }
 0x8ee   :  { %v14298_v42 = vadd.f32 %v5708_v52, %v4575_v8  ;;  %v14302_v48 = vadd.f32 %v5837_v3, %v4583_v46  ;;  %v5710_v49 = vpop.f32.mrb[30].mxu0  ;;  %v5839_v61 = vpop.f32.mrb[26].mxu1 }
 0x8ef   :  { %v14299_v39 = vadd.f32 %v5710_v49, %v4571_v13  ;;  %v14303_v4 = vadd.f32 %v5839_v61, %v4579_v19  ;;  %v5712_v45 = vpop.f32.mrb[31].mxu0  ;;  %v5841_v2 = vpop.f32.mrb[27].mxu1  ;;  %v5967_v43 = vmax.f32 %v14297_v57, 0.0  ;;  %v5969_v6 = vmax.f32 %v14301_v41, 0.0 }
 0x8f0   :  { %v14300_v34 = vadd.f32 %v5712_v45, %v4575_v8  ;;  %v14304_v37 = vadd.f32 %v5841_v2, %v4583_v46  ;;  %v5968_v14 = vmax.f32 %v14298_v42, 0.0  ;;  %v5970_v16 = vmax.f32 %v14302_v48, 0.0 }
 0x8f1   :  { %v5972_v10 = vmax.f32 %v14299_v39, 0.0  ;;  %v5974_v12 = vmax.f32 %v14303_v4, 0.0 }
 0x8f2   :  { %v5973_v51 = vmax.f32 %v14300_v34, 0.0  ;;  %v5975_v18 = vmax.f32 %v14304_v37, 0.0 }
 0x8f3   :  { %v18118_v44 = vpack.c.bf16 %v5972_v10, %v5967_v43  ;;  %v18120_v5 = vpack.c.bf16 %v5974_v12, %v5969_v6 }
 0x8f4   :  { %v18122_v53 = vpack.c.bf16 %v5973_v51, %v5968_v14  ;;  %v18124_v60 = vpack.c.bf16 %v5975_v18, %v5970_v16 }
 0x90c   :  { %v13857_v7 = vpop.f32.mrb[32].mxu0  ;;  %v13879_v11 = vpop.f32.mrb[28].mxu1 }
 0x90d   :  { %v13858_v55 = vpop.f32.mrb[33].mxu0  ;;  %v13880_v35 = vpop.f32.mrb[29].mxu1 }
 0x90e   :  { %v13859_v13 = vadd.f32 %v13858_v55, %v13857_v7  ;;  %v13860_v19 = vpop.f32.mrb[34].mxu0  ;;  %v13881_v8 = vadd.f32 %v13880_v35, %v13879_v11  ;;  %v13882_v46 = vpop.f32.mrb[30].mxu1 }
 0x90f   :  { %v13861_v50 = vpop.f32.mrb[35].mxu0  ;;  %v13883_v38 = vpop.f32.mrb[31].mxu1 }
 0x910   :  { %v5879_v57 = vadd.f32 %v13859_v13, %v4587_v9  ;;  %v13862_v41 = vadd.f32 %v13861_v50, %v13860_v19  ;;  %v13884_v52 = vadd.f32 %v13883_v38, %v13882_v46 }
 0x912   :  { %v5882_v3 = vadd.f32 %v13862_v41, %v4587_v9  ;;  %v5920_v42 = vadd.f32 %v13881_v8, %v5879_v57 }
 0x914   :  { %v5923_v48 = vadd.f32 %v13884_v52, %v5882_v3 }
 0x924   :  { %v5960_v49 = vpop.f32.mrb[36].mxu0 }
 0x925   :  { %v5961_v61 = vadd.f32 %v5960_v49, %v5920_v42  ;;  %v14199_v39 = vpop.f32.mrb[37].mxu0 }
 0x926   :  { %v5963_v4 = vpop.f32.mrb[38].mxu0 }
 0x927   :  { %v5964_v17 = vadd.f32 %v5963_v4, %v5923_v48  ;;  %v14200_v45 = vpop.f32.mrb[39].mxu0  ;;  %v5971_v2 = vmax.f32 %v5961_v61, 0.0 }
 0x929   :  { %v5976_v34 = vmax.f32 %v5964_v17, 0.0 }
 0x92b   :  { %v18127_v37 = vpack.c.bf16 %v5976_v34, %v5971_v2 }
 0x92c   :  { %16234 = dma.done.wait [#allocation11 + $0x4], 24000 }
 0x92d   :  { %16235 = vsyncadd [#allocation11 + $0x4], 4294943296  ;;  %7267 = vmatprep.mubr.bf16.mxu1 %v18122_v53  ;;  %7396 = vmatprep.mubr.bf16.mxu0 %v18122_v53  ;;  %v15040_v43 = vld [vmem:[#allocation6 + $0x4] ss:$20 sps:$4 sm:$0xff]   ;;  %v15042_v6 = vld [vmem:[#allocation6 + $0xc] ss:$20 sps:$4 sm:$0xff]  }
 0x92e   :  { %7235 = vmatprep.subr.bf16.mxu1 %v15040_v43  ;;  %v15044_v10 = vld [vmem:[#allocation6] ss:$20 sps:$4 sm:$0xff]   ;;  %v15045_v12 = vld [vmem:[#allocation6 + $0x8] ss:$20 sps:$4 sm:$0xff]   ;;  %7364 = vmatprep.subr.bf16.mxu0 %v15042_v6  ;;  %v15051_v18 = vld [vmem:[#allocation6 + $0x30] ss:$20 sps:$4 sm:$0xff]  }
 0x92f   :  { %v15046_v14 = vld [vmem:[#allocation6 + $0x2c] ss:$20 sps:$4 sm:$0xff]   ;;  %7236 = vmatpush1.bf16.msra.mxu1 %v15044_v10  ;;  %7365 = vmatpush1.bf16.msra.mxu0 %v15045_v12  ;;  %v15048_v16 = vld [vmem:[#allocation6 + $0x34] ss:$20 sps:$4 sm:$0xff]   ;;  %v15054_v9 = vld [vmem:[#allocation6 + $0x5c] ss:$20 sps:$4 sm:$0xff]  }
 0x930   :  { %v15050_v51 = vld [vmem:[#allocation6 + $0x28] ss:$20 sps:$4 sm:$0xff]   ;;  %7237 = vmatprep.subr.bf16.mxu1 %v15046_v14  ;;  %7366 = vmatprep.subr.bf16.mxu0 %v15048_v16  ;;  %v15056_v11 = vld [vmem:[#allocation6 + $0x50] ss:$20 sps:$4 sm:$0xff]   ;;  %v15057_v55 = vld [vmem:[#allocation6 + $0x58] ss:$20 sps:$4 sm:$0xff]  }
 0x931   :  { %v15052_v7 = vld [vmem:[#allocation6 + $0x54] ss:$20 sps:$4 sm:$0xff]   ;;  %v15058_v35 = vld [vmem:[#allocation6 + $0x7c] ss:$20 sps:$4 sm:$0xff]   ;;  %v15060_v13 = vld [vmem:[#allocation6 + $0x84] ss:$20 sps:$4 sm:$0xff]  }
 0x932   :  { %v15062_v19 = vld [vmem:[#allocation6 + $0x78] ss:$20 sps:$4 sm:$0xff]   ;;  %v15063_v8 = vld [vmem:[#allocation6 + $0x80] ss:$20 sps:$4 sm:$0xff]   ;;  %v15069_v57 = vld [vmem:[#allocation6 + $0xa8] ss:$20 sps:$4 sm:$0xff]  }
 0x933   :  { %7238 = vmatpush1.bf16.msra.mxu1 %v15050_v51  ;;  %7367 = vmatpush1.bf16.msra.mxu0 %v15051_v18  ;;  %v15064_v46 = vld [vmem:[#allocation6 + $0xa4] ss:$20 sps:$4 sm:$0xff]   ;;  %v15066_v50 = vld [vmem:[#allocation6 + $0xac] ss:$20 sps:$4 sm:$0xff]   ;;  %v15072_v52 = vld [vmem:[#allocation6 + $0xd4] ss:$20 sps:$4 sm:$0xff]  }
 0x934   :  { %7239 = vmatprep.subr.bf16.mxu1 %v15052_v7  ;;  %7368 = vmatprep.subr.bf16.mxu0 %v15054_v9  ;;  %v15068_v38 = vld [vmem:[#allocation6 + $0xa0] ss:$20 sps:$4 sm:$0xff]   ;;  %v15074_v3 = vld [vmem:[#allocation6 + $0xc8] ss:$20 sps:$4 sm:$0xff]   ;;  %v15075_v42 = vld [vmem:[#allocation6 + $0xd0] ss:$20 sps:$4 sm:$0xff]  }
 0x935   :  { %v15070_v41 = vld [vmem:[#allocation6 + $0xcc] ss:$20 sps:$4 sm:$0xff]   ;;  %v15076_v48 = vld [vmem:[#allocation6 + $0xf4] ss:$20 sps:$4 sm:$0xff]   ;;  %v15078_v49 = vld [vmem:[#allocation6 + $0xfc] ss:$20 sps:$4 sm:$0xff]  }
 0x936   :  { %v15080_v61 = vld [vmem:[#allocation6 + $0xf0] ss:$20 sps:$4 sm:$0xff]   ;;  %v15081_v39 = vld [vmem:[#allocation6 + $0xf8] ss:$20 sps:$4 sm:$0xff]   ;;  %v15087_v2 = vld [vmem:[#allocation6 + $0x120] ss:$20 sps:$4 sm:$0xff]  }
 0x937   :  { %7240 = vmatpush1.bf16.msra.mxu1 %v15056_v11  ;;  %7369 = vmatpush1.bf16.msra.mxu0 %v15057_v55  ;;  %v15082_v4 = vld [vmem:[#allocation6 + $0x11c] ss:$20 sps:$4 sm:$0xff]   ;;  %v15084_v17 = vld [vmem:[#allocation6 + $0x124] ss:$20 sps:$4 sm:$0xff]   ;;  %v15090_v43 = vld [vmem:[#allocation6 + $0x14c] ss:$20 sps:$4 sm:$0xff]  }
 0x938   :  { %7241 = vmatprep.subr.bf16.mxu1 %v15058_v35  ;;  %7370 = vmatprep.subr.bf16.mxu0 %v15060_v13  ;;  %v15086_v45 = vld [vmem:[#allocation6 + $0x118] ss:$20 sps:$4 sm:$0xff]   ;;  %v15092_v6 = vld [vmem:[#allocation6 + $0x140] ss:$20 sps:$4 sm:$0xff]   ;;  %v15093_v10 = vld [vmem:[#allocation6 + $0x148] ss:$20 sps:$4 sm:$0xff]  }
 0x939   :  { %v15088_v34 = vld [vmem:[#allocation6 + $0x144] ss:$20 sps:$4 sm:$0xff]   ;;  %v15094_v12 = vld [vmem:[#allocation6 + $0x16c] ss:$20 sps:$4 sm:$0xff]   ;;  %v15096_v14 = vld [vmem:[#allocation6 + $0x174] ss:$20 sps:$4 sm:$0xff]  }
 0x93a   :  { %v15098_v16 = vld [vmem:[#allocation6 + $0x168] ss:$20 sps:$4 sm:$0xff]   ;;  %v15099_v51 = vld [vmem:[#allocation6 + $0x170] ss:$20 sps:$4 sm:$0xff]   ;;  %v15105_v11 = vld [vmem:[#allocation6 + $0x198] ss:$20 sps:$4 sm:$0xff]  }
 0x93b   :  { %7242 = vmatpush1.bf16.msra.mxu1 %v15062_v19  ;;  %7371 = vmatpush1.bf16.msra.mxu0 %v15063_v8  ;;  %v15100_v18 = vld [vmem:[#allocation6 + $0x194] ss:$20 sps:$4 sm:$0xff]   ;;  %v15102_v7 = vld [vmem:[#allocation6 + $0x19c] ss:$20 sps:$4 sm:$0xff]   ;;  %v15108_v35 = vld [vmem:[#allocation6 + $0x1c4] ss:$20 sps:$4 sm:$0xff]  }
 0x93c   :  { %7243 = vmatprep.subr.bf16.mxu1 %v15064_v46  ;;  %7372 = vmatprep.subr.bf16.mxu0 %v15066_v50  ;;  %v15104_v9 = vld [vmem:[#allocation6 + $0x190] ss:$20 sps:$4 sm:$0xff]   ;;  %v15110_v13 = vld [vmem:[#allocation6 + $0x1b8] ss:$20 sps:$4 sm:$0xff]   ;;  %v15111_v19 = vld [vmem:[#allocation6 + $0x1c0] ss:$20 sps:$4 sm:$0xff]  }
 0x93d   :  { %v15106_v55 = vld [vmem:[#allocation6 + $0x1bc] ss:$20 sps:$4 sm:$0xff]   ;;  %v15112_v8 = vld [vmem:[#allocation6 + $0x1e4] ss:$20 sps:$4 sm:$0xff]   ;;  %v15114_v46 = vld [vmem:[#allocation6 + $0x1ec] ss:$20 sps:$4 sm:$0xff]  }
 0x93e   :  { %v15116_v50 = vld [vmem:[#allocation6 + $0x1e0] ss:$20 sps:$4 sm:$0xff]  }
 0x93f   :  { %7244 = vmatpush1.bf16.msra.mxu1 %v15068_v38  ;;  %7373 = vmatpush1.bf16.msra.mxu0 %v15069_v57  ;;  %v15117_v38 = vld [vmem:[#allocation6 + $0x1e8] ss:$20 sps:$4 sm:$0xff]   ;;  %v15118_v57 = vld [vmem:[#allocation6 + $0x20c] ss:$20 sps:$4 sm:$0xff]  }
 0x940   :  { %7245 = vmatprep.subr.bf16.mxu1 %v15070_v41  ;;  %7374 = vmatprep.subr.bf16.mxu0 %v15072_v52  ;;  %v15120_v41 = vld [vmem:[#allocation6 + $0x214] ss:$20 sps:$4 sm:$0xff]  }
 0x941   :  { %v15122_v52 = vld [vmem:[#allocation6 + $0x208] ss:$20 sps:$4 sm:$0xff]  }
 0x943   :  { %7246 = vmatpush1.bf16.msra.mxu1 %v15074_v3  ;;  %7375 = vmatpush1.bf16.msra.mxu0 %v15075_v42  ;;  %v15123_v3 = vld [vmem:[#allocation6 + $0x210] ss:$20 sps:$4 sm:$0xff]   ;;  %v15124_v42 = vld [vmem:[#allocation6 + $0x234] ss:$20 sps:$4 sm:$0xff]  }
 0x944   :  { %7247 = vmatprep.subr.bf16.mxu1 %v15076_v48  ;;  %7376 = vmatprep.subr.bf16.mxu0 %v15078_v49  ;;  %v15126_v48 = vld [vmem:[#allocation6 + $0x23c] ss:$20 sps:$4 sm:$0xff]  }
 0x945   :  { %v15128_v49 = vld [vmem:[#allocation6 + $0x230] ss:$20 sps:$4 sm:$0xff]  }
 0x947   :  { %7248 = vmatpush1.bf16.msra.mxu1 %v15080_v61  ;;  %7377 = vmatpush1.bf16.msra.mxu0 %v15081_v39  ;;  %v15129_v61 = vld [vmem:[#allocation6 + $0x238] ss:$20 sps:$4 sm:$0xff]   ;;  %v15130_v39 = vld [vmem:[#allocation6 + $0x25c] ss:$20 sps:$4 sm:$0xff]  }
 0x948   :  { %7249 = vmatprep.subr.bf16.mxu1 %v15082_v4  ;;  %7378 = vmatprep.subr.bf16.mxu0 %v15084_v17  ;;  %v15132_v4 = vld [vmem:[#allocation6 + $0x264] ss:$20 sps:$4 sm:$0xff]  }
 0x949   :  { %v15134_v17 = vld [vmem:[#allocation6 + $0x258] ss:$20 sps:$4 sm:$0xff]  }
 0x94b   :  { %7250 = vmatpush1.bf16.msra.mxu1 %v15086_v45  ;;  %7379 = vmatpush1.bf16.msra.mxu0 %v15087_v2  ;;  %v15135_v45 = vld [vmem:[#allocation6 + $0x260] ss:$20 sps:$4 sm:$0xff]   ;;  %v15138_v2 = vld [vmem:[#allocation6 + $0x284] ss:$20 sps:$4 sm:$0xff]  }
 0x94c   :  { %7251 = vmatprep.subr.bf16.mxu1 %v15088_v34  ;;  %7380 = vmatprep.subr.bf16.mxu0 %v15090_v43  ;;  %v15141_v34 = vld [vmem:[#allocation6 + $0x28c] ss:$20 sps:$4 sm:$0xff]  }
 0x94d   :  { %v15136_v43 = vld [vmem:[#allocation6 + $0x280] ss:$20 sps:$4 sm:$0xff]  }
 0x94f   :  { %7252 = vmatpush1.bf16.msra.mxu1 %v15092_v6  ;;  %7381 = vmatpush1.bf16.msra.mxu0 %v15093_v10  ;;  %v15139_v6 = vld [vmem:[#allocation6 + $0x288] ss:$20 sps:$4 sm:$0xff]   ;;  %v15144_v10 = vld [vmem:[#allocation6 + $0x2ac] ss:$20 sps:$4 sm:$0xff]  }
 0x950   :  { %7253 = vmatprep.subr.bf16.mxu1 %v15094_v12  ;;  %7382 = vmatprep.subr.bf16.mxu0 %v15096_v14  ;;  %v15147_v12 = vld [vmem:[#allocation6 + $0x2b4] ss:$20 sps:$4 sm:$0xff]  }
 0x951   :  { %v15142_v14 = vld [vmem:[#allocation6 + $0x2a8] ss:$20 sps:$4 sm:$0xff]  }
 0x953   :  { %7254 = vmatpush1.bf16.msra.mxu1 %v15098_v16  ;;  %7383 = vmatpush1.bf16.msra.mxu0 %v15099_v51  ;;  %v15145_v16 = vld [vmem:[#allocation6 + $0x2b0] ss:$20 sps:$4 sm:$0xff]   ;;  %v15150_v51 = vld [vmem:[#allocation6 + $0x2d4] ss:$20 sps:$4 sm:$0xff]  }
 0x954   :  { %7255 = vmatprep.subr.bf16.mxu1 %v15100_v18  ;;  %7384 = vmatprep.subr.bf16.mxu0 %v15102_v7  ;;  %v15153_v18 = vld [vmem:[#allocation6 + $0x2dc] ss:$20 sps:$4 sm:$0xff]  }
 0x955   :  { %v15148_v7 = vld [vmem:[#allocation6 + $0x2d0] ss:$20 sps:$4 sm:$0xff]  }
 0x957   :  { %7256 = vmatpush1.bf16.msra.mxu1 %v15104_v9  ;;  %7385 = vmatpush1.bf16.msra.mxu0 %v15105_v11  ;;  %v15151_v9 = vld [vmem:[#allocation6 + $0x2d8] ss:$20 sps:$4 sm:$0xff]   ;;  %v15156_v11 = vld [vmem:[#allocation6 + $0x2fc] ss:$20 sps:$4 sm:$0xff]  }
 0x958   :  { %7257 = vmatprep.subr.bf16.mxu1 %v15106_v55  ;;  %7386 = vmatprep.subr.bf16.mxu0 %v15108_v35  ;;  %v15159_v55 = vld [vmem:[#allocation6 + $0x304] ss:$20 sps:$4 sm:$0xff]  }
 0x959   :  { %v15154_v35 = vld [vmem:[#allocation6 + $0x2f8] ss:$20 sps:$4 sm:$0xff]  }
 0x95b   :  { %7258 = vmatpush1.bf16.msra.mxu1 %v15110_v13  ;;  %7387 = vmatpush1.bf16.msra.mxu0 %v15111_v19  ;;  %v15157_v13 = vld [vmem:[#allocation6 + $0x300] ss:$20 sps:$4 sm:$0xff]   ;;  %v15162_v19 = vld [vmem:[#allocation6 + $0x324] ss:$20 sps:$4 sm:$0xff]  }
 0x95c   :  { %7259 = vmatprep.subr.bf16.mxu1 %v15112_v8  ;;  %7388 = vmatprep.subr.bf16.mxu0 %v15114_v46  ;;  %v15165_v8 = vld [vmem:[#allocation6 + $0x32c] ss:$20 sps:$4 sm:$0xff]  }
 0x95d   :  { %v15160_v46 = vld [vmem:[#allocation6 + $0x320] ss:$20 sps:$4 sm:$0xff]  }
 0x95f   :  { %7260 = vmatpush1.bf16.msra.mxu1 %v15116_v50  ;;  %7389 = vmatpush1.bf16.msra.mxu0 %v15117_v38  ;;  %v15163_v50 = vld [vmem:[#allocation6 + $0x328] ss:$20 sps:$4 sm:$0xff]   ;;  %v15168_v38 = vld [vmem:[#allocation6 + $0x34c] ss:$20 sps:$4 sm:$0xff]  }
 0x960   :  { %7261 = vmatprep.subr.bf16.mxu1 %v15118_v57  ;;  %7390 = vmatprep.subr.bf16.mxu0 %v15120_v41  ;;  %v15171_v57 = vld [vmem:[#allocation6 + $0x354] ss:$20 sps:$4 sm:$0xff]  }
 0x961   :  { %v15166_v41 = vld [vmem:[#allocation6 + $0x348] ss:$20 sps:$4 sm:$0xff]  }
 0x963   :  { %7262 = vmatpush1.bf16.msra.mxu1 %v15122_v52  ;;  %7391 = vmatpush1.bf16.msra.mxu0 %v15123_v3  ;;  %v15169_v52 = vld [vmem:[#allocation6 + $0x350] ss:$20 sps:$4 sm:$0xff]   ;;  %v15174_v3 = vld [vmem:[#allocation6 + $0x374] ss:$20 sps:$4 sm:$0xff]  }
 0x964   :  { %7263 = vmatprep.subr.bf16.mxu1 %v15124_v42  ;;  %7392 = vmatprep.subr.bf16.mxu0 %v15126_v48  ;;  %v15177_v42 = vld [vmem:[#allocation6 + $0x37c] ss:$20 sps:$4 sm:$0xff]  }
 0x965   :  { %v15172_v48 = vld [vmem:[#allocation6 + $0x370] ss:$20 sps:$4 sm:$0xff]  }
 0x967   :  { %7264 = vmatpush1.bf16.msra.mxu1 %v15128_v49  ;;  %7393 = vmatpush1.bf16.msra.mxu0 %v15129_v61  ;;  %v15175_v49 = vld [vmem:[#allocation6 + $0x378] ss:$20 sps:$4 sm:$0xff]   ;;  %v15180_v61 = vld [vmem:[#allocation6 + $0x39c] ss:$20 sps:$4 sm:$0xff]  }
 0x968   :  { %7265 = vmatprep.subr.bf16.mxu1 %v15130_v39  ;;  %7394 = vmatprep.subr.bf16.mxu0 %v15132_v4  ;;  %v15183_v39 = vld [vmem:[#allocation6 + $0x3a4] ss:$20 sps:$4 sm:$0xff]  }
 0x969   :  { %v15178_v4 = vld [vmem:[#allocation6 + $0x398] ss:$20 sps:$4 sm:$0xff]  }
 0x96b   :  { %7266 = vmatpush1.bf16.msra.mxu1 %v15134_v17  ;;  %7395 = vmatpush1.bf16.msra.mxu0 %v15135_v45  ;;  %v15181_v17 = vld [vmem:[#allocation6 + $0x3a0] ss:$20 sps:$4 sm:$0xff]   ;;  %v15186_v45 = vld [vmem:[#allocation6 + $0x3c4] ss:$20 sps:$4 sm:$0xff]  }
 0x96c   :  { %7278 = vmatprep.subr.bf16.mxu1 %v15138_v2  ;;  %7407 = vmatprep.subr.bf16.mxu0 %v15141_v34  ;;  %v15189_v2 = vld [vmem:[#allocation6 + $0x3cc] ss:$20 sps:$4 sm:$0xff]  }
 0x96d   :  { %v15184_v34 = vld [vmem:[#allocation6 + $0x3c0] ss:$20 sps:$4 sm:$0xff]  }
 0x96e   :  { %7268 = vmatmul.mubr.bf16.vlgmr.msra.gmra.mrb[32].mxu1 %v18118_v44  ;;  %7397 = vmatmul.mubr.bf16.vlgmr.msra.gmra.mrb[40].mxu0 %v18118_v44 }
 0x96f   :  { %7279 = vmatpush1.bf16.msra.mxu1 %v15136_v43  ;;  %7408 = vmatpush1.bf16.msra.mxu0 %v15139_v6  ;;  %v15187_v43 = vld [vmem:[#allocation6 + $0x3c8] ss:$20 sps:$4 sm:$0xff]   ;;  %v15192_v6 = vld [vmem:[#allocation6 + $0x3ec] ss:$20 sps:$4 sm:$0xff]  }
 0x970   :  { %7280 = vmatprep.subr.bf16.mxu1 %v15144_v10  ;;  %7409 = vmatprep.subr.bf16.mxu0 %v15147_v12  ;;  %v15195_v10 = vld [vmem:[#allocation6 + $0x3f4] ss:$20 sps:$4 sm:$0xff]  }
 0x971   :  { %7310 = vmatprep.mubr.bf16.mxu1 %v18124_v60  ;;  %7439 = vmatprep.mubr.bf16.mxu0 %v18124_v60  ;;  %v15190_v12 = vld [vmem:[#allocation6 + $0x3e8] ss:$20 sps:$4 sm:$0xff]  }
 0x973   :  { %7281 = vmatpush1.bf16.msra.mxu1 %v15142_v14  ;;  %7410 = vmatpush1.bf16.msra.mxu0 %v15145_v16  ;;  %v15193_v14 = vld [vmem:[#allocation6 + $0x3f0] ss:$20 sps:$4 sm:$0xff]   ;;  %v15198_v16 = vld [vmem:[#allocation6 + $0x414] ss:$20 sps:$4 sm:$0xff]  }
 0x974   :  { %7282 = vmatprep.subr.bf16.mxu1 %v15150_v51  ;;  %7411 = vmatprep.subr.bf16.mxu0 %v15153_v18  ;;  %v15201_v51 = vld [vmem:[#allocation6 + $0x41c] ss:$20 sps:$4 sm:$0xff]  }
 0x975   :  { %v15196_v18 = vld [vmem:[#allocation6 + $0x410] ss:$20 sps:$4 sm:$0xff]  }
 0x977   :  { %7283 = vmatpush1.bf16.msra.mxu1 %v15148_v7  ;;  %7412 = vmatpush1.bf16.msra.mxu0 %v15151_v9  ;;  %v15199_v7 = vld [vmem:[#allocation6 + $0x418] ss:$20 sps:$4 sm:$0xff]   ;;  %v15204_v9 = vld [vmem:[#allocation6 + $0x43c] ss:$20 sps:$4 sm:$0xff]  }
 0x978   :  { %7284 = vmatprep.subr.bf16.mxu1 %v15156_v11  ;;  %7413 = vmatprep.subr.bf16.mxu0 %v15159_v55  ;;  %v15207_v11 = vld [vmem:[#allocation6 + $0x444] ss:$20 sps:$4 sm:$0xff]  }
 0x979   :  { %v15202_v55 = vld [vmem:[#allocation6 + $0x438] ss:$20 sps:$4 sm:$0xff]  }
 0x97b   :  { %7285 = vmatpush1.bf16.msra.mxu1 %v15154_v35  ;;  %7414 = vmatpush1.bf16.msra.mxu0 %v15157_v13  ;;  %v15205_v35 = vld [vmem:[#allocation6 + $0x440] ss:$20 sps:$4 sm:$0xff]   ;;  %v15210_v13 = vld [vmem:[#allocation6 + $0x464] ss:$20 sps:$4 sm:$0xff]  }
 0x97c   :  { %7286 = vmatprep.subr.bf16.mxu1 %v15162_v19  ;;  %7415 = vmatprep.subr.bf16.mxu0 %v15165_v8  ;;  %v15213_v19 = vld [vmem:[#allocation6 + $0x46c] ss:$20 sps:$4 sm:$0xff]  }
 0x97d   :  { %v15208_v8 = vld [vmem:[#allocation6 + $0x460] ss:$20 sps:$4 sm:$0xff]  }
 0x97f   :  { %7287 = vmatpush1.bf16.msra.mxu1 %v15160_v46  ;;  %7416 = vmatpush1.bf16.msra.mxu0 %v15163_v50  ;;  %v15211_v46 = vld [vmem:[#allocation6 + $0x468] ss:$20 sps:$4 sm:$0xff]   ;;  %v15216_v50 = vld [vmem:[#allocation6 + $0x48c] ss:$20 sps:$4 sm:$0xff]  }
 0x980   :  { %7288 = vmatprep.subr.bf16.mxu1 %v15168_v38  ;;  %7417 = vmatprep.subr.bf16.mxu0 %v15171_v57  ;;  %v15219_v38 = vld [vmem:[#allocation6 + $0x494] ss:$20 sps:$4 sm:$0xff]  }
 0x981   :  { %v15214_v57 = vld [vmem:[#allocation6 + $0x488] ss:$20 sps:$4 sm:$0xff]  }
 0x983   :  { %7289 = vmatpush1.bf16.msra.mxu1 %v15166_v41  ;;  %7418 = vmatpush1.bf16.msra.mxu0 %v15169_v52  ;;  %v15217_v41 = vld [vmem:[#allocation6 + $0x490] ss:$20 sps:$4 sm:$0xff]   ;;  %v15222_v52 = vld [vmem:[#allocation6 + $0x4b4] ss:$20 sps:$4 sm:$0xff]  }
 0x984   :  { %7290 = vmatprep.subr.bf16.mxu1 %v15174_v3  ;;  %7419 = vmatprep.subr.bf16.mxu0 %v15177_v42  ;;  %v15225_v3 = vld [vmem:[#allocation6 + $0x4bc] ss:$20 sps:$4 sm:$0xff]  }
 0x985   :  { %v15220_v42 = vld [vmem:[#allocation6 + $0x4b0] ss:$20 sps:$4 sm:$0xff]  }
 0x987   :  { %7291 = vmatpush1.bf16.msra.mxu1 %v15172_v48  ;;  %7420 = vmatpush1.bf16.msra.mxu0 %v15175_v49  ;;  %v15223_v48 = vld [vmem:[#allocation6 + $0x4b8] ss:$20 sps:$4 sm:$0xff]   ;;  %v15228_v49 = vld [vmem:[#allocation6 + $0x4dc] ss:$20 sps:$4 sm:$0xff]  }
 0x988   :  { %7292 = vmatprep.subr.bf16.mxu1 %v15180_v61  ;;  %7421 = vmatprep.subr.bf16.mxu0 %v15183_v39  ;;  %v15231_v61 = vld [vmem:[#allocation6 + $0x4e4] ss:$20 sps:$4 sm:$0xff]  }
 0x989   :  { %v15226_v39 = vld [vmem:[#allocation6 + $0x4d8] ss:$20 sps:$4 sm:$0xff]  }
 0x98b   :  { %7293 = vmatpush1.bf16.msra.mxu1 %v15178_v4  ;;  %7422 = vmatpush1.bf16.msra.mxu0 %v15181_v17  ;;  %v15229_v4 = vld [vmem:[#allocation6 + $0x4e0] ss:$20 sps:$4 sm:$0xff]   ;;  %v15234_v17 = vld [vmem:[#allocation6 + $0x504] ss:$20 sps:$4 sm:$0xff]  }
 0x98c   :  { %7294 = vmatprep.subr.bf16.mxu1 %v15186_v45  ;;  %7423 = vmatprep.subr.bf16.mxu0 %v15189_v2  ;;  %v15237_v45 = vld [vmem:[#allocation6 + $0x50c] ss:$20 sps:$4 sm:$0xff]  }
 0x98d   :  { %v15232_v2 = vld [vmem:[#allocation6 + $0x500] ss:$20 sps:$4 sm:$0xff]  }
 0x98f   :  { %7295 = vmatpush1.bf16.msra.mxu1 %v15184_v34  ;;  %7424 = vmatpush1.bf16.msra.mxu0 %v15187_v43  ;;  %v15235_v34 = vld [vmem:[#allocation6 + $0x508] ss:$20 sps:$4 sm:$0xff]   ;;  %v15240_v43 = vld [vmem:[#allocation6 + $0x52c] ss:$20 sps:$4 sm:$0xff]  }
 0x990   :  { %7296 = vmatprep.subr.bf16.mxu1 %v15192_v6  ;;  %7425 = vmatprep.subr.bf16.mxu0 %v15195_v10  ;;  %v15243_v6 = vld [vmem:[#allocation6 + $0x534] ss:$20 sps:$4 sm:$0xff]  }
 0x991   :  { %v15238_v10 = vld [vmem:[#allocation6 + $0x528] ss:$20 sps:$4 sm:$0xff]  }
 0x993   :  { %7297 = vmatpush1.bf16.msra.mxu1 %v15190_v12  ;;  %7426 = vmatpush1.bf16.msra.mxu0 %v15193_v14  ;;  %v15241_v12 = vld [vmem:[#allocation6 + $0x530] ss:$20 sps:$4 sm:$0xff]   ;;  %v15246_v14 = vld [vmem:[#allocation6 + $0x554] ss:$20 sps:$4 sm:$0xff]  }
 0x994   :  { %7298 = vmatprep.subr.bf16.mxu1 %v15198_v16  ;;  %7427 = vmatprep.subr.bf16.mxu0 %v15201_v51  ;;  %v15249_v16 = vld [vmem:[#allocation6 + $0x55c] ss:$20 sps:$4 sm:$0xff]  }
 0x995   :  { %v15244_v51 = vld [vmem:[#allocation6 + $0x550] ss:$20 sps:$4 sm:$0xff]  }
 0x997   :  { %7299 = vmatpush1.bf16.msra.mxu1 %v15196_v18  ;;  %7428 = vmatpush1.bf16.msra.mxu0 %v15199_v7  ;;  %v15247_v18 = vld [vmem:[#allocation6 + $0x558] ss:$20 sps:$4 sm:$0xff]   ;;  %v15252_v7 = vld [vmem:[#allocation6 + $0x57c] ss:$20 sps:$4 sm:$0xff]  }
 0x998   :  { %7300 = vmatprep.subr.bf16.mxu1 %v15204_v9  ;;  %7429 = vmatprep.subr.bf16.mxu0 %v15207_v11  ;;  %v15255_v9 = vld [vmem:[#allocation6 + $0x584] ss:$20 sps:$4 sm:$0xff]  }
 0x999   :  { %v15250_v11 = vld [vmem:[#allocation6 + $0x578] ss:$20 sps:$4 sm:$0xff]  }
 0x99b   :  { %7301 = vmatpush1.bf16.msra.mxu1 %v15202_v55  ;;  %7430 = vmatpush1.bf16.msra.mxu0 %v15205_v35  ;;  %v15253_v55 = vld [vmem:[#allocation6 + $0x580] ss:$20 sps:$4 sm:$0xff]   ;;  %v15258_v35 = vld [vmem:[#allocation6 + $0x5a4] ss:$20 sps:$4 sm:$0xff]  }
 0x99c   :  { %7302 = vmatprep.subr.bf16.mxu1 %v15210_v13  ;;  %7431 = vmatprep.subr.bf16.mxu0 %v15213_v19  ;;  %v15261_v13 = vld [vmem:[#allocation6 + $0x5ac] ss:$20 sps:$4 sm:$0xff]  }
 0x99d   :  { %v6212_v19 = vld [vmem:[#allocation6 + $0x5c8] sm:$0xff] }
 0x99f   :  { %7303 = vmatpush1.bf16.msra.mxu1 %v15208_v8  ;;  %7432 = vmatpush1.bf16.msra.mxu0 %v15211_v46  ;;  %v6213_v8 = vld [vmem:[#allocation6 + $0x5d0] sm:$0xff] }
 0x9a0   :  { %7304 = vmatprep.subr.bf16.mxu1 %v15216_v50  ;;  %7433 = vmatprep.subr.bf16.mxu0 %v15219_v38  ;;  %v15256_v46 = vld [vmem:[#allocation6 + $0x5a0] ss:$20 sps:$4 sm:$0xff]   ;;  %v15259_v50 = vld [vmem:[#allocation6 + $0x5a8] ss:$20 sps:$4 sm:$0xff]   ;;  %v13230_v38 = vcombine.low %v6212_v19, %v6212_v19 }
 0x9a3   :  { %7305 = vmatpush1.bf16.msra.mxu1 %v15214_v57  ;;  %7434 = vmatpush1.bf16.msra.mxu0 %v15217_v41  ;;  %v13232_v57 = vcombine.low %v6213_v8, %v6213_v8  ;;  %v13231_v41 = vcombine.high %v6212_v19, %v6212_v19  ;;  %v15292_v19 = vld [vmem:[#allocation6 + $0x4c0] ss:$20 sps:$4 sm:$0xff]  }
 0x9a4   :  { %7306 = vmatprep.subr.bf16.mxu1 %v15222_v52  ;;  %7435 = vmatprep.subr.bf16.mxu0 %v15225_v3  ;;  %v13233_v52 = vcombine.high %v6213_v8, %v6213_v8  ;;  %v15266_v3 = vld [vmem:[#allocation6 + $0x150] ss:$20 sps:$4 sm:$0xff]   ;;  %v15291_v8 = vld [vmem:[#allocation6 + $0x100] ss:$20 sps:$4 sm:$0xff]  }
 0x9a7   :  { %7307 = vmatpush1.bf16.msra.mxu1 %v15220_v42  ;;  %7436 = vmatpush1.bf16.msra.mxu0 %v15223_v48  ;;  %v7221_v42 = vsel %vm2139_vm8, %v13230_v38, 0  ;;  %v7227_v48 = vsel %vm2139_vm8, %v13232_v57, 0  ;;  %v15296_v38 = vld [vmem:[#allocation6 + $0x4e8] ss:$20 sps:$4 sm:$0xff]  }
 0x9a8   :  { %7308 = vmatprep.subr.bf16.mxu1 %v15228_v49  ;;  %7437 = vmatprep.subr.bf16.mxu0 %v15231_v61  ;;  %v15268_v49 = vld [vmem:[#allocation6 + $0x3d0] ss:$20 sps:$4 sm:$0xff]   ;;  %v15295_v57 = vld [vmem:[#allocation6 + $0x128] ss:$20 sps:$4 sm:$0xff]  }
 0x9a9   :  { %v15267_v61 = vld [vmem:[#allocation6 + $0x10] ss:$20 sps:$4 sm:$0xff]  }
 0x9ab   :  { %7309 = vmatpush1.bf16.msra.mxu1 %v15226_v39  ;;  %7438 = vmatpush1.bf16.msra.mxu0 %v15229_v4  ;;  %v15269_v39 = vld [vmem:[#allocation6 + $0x290] ss:$20 sps:$4 sm:$0xff]   ;;  %v15270_v4 = vld [vmem:[#allocation6 + $0x178] ss:$20 sps:$4 sm:$0xff]  }
 0x9ac   :  { %7321 = vmatprep.subr.bf16.mxu1 %v15234_v17  ;;  %7450 = vmatprep.subr.bf16.mxu0 %v15237_v45  ;;  %v15272_v17 = vld [vmem:[#allocation6 + $0x3f8] ss:$20 sps:$4 sm:$0xff]  }
 0x9ad   :  { %v15271_v45 = vld [vmem:[#allocation6 + $0x38] ss:$20 sps:$4 sm:$0xff]  }
 0x9ae   :  { %7311 = vmatmul.mubr.bf16.vlgmr.msra.gmra.mrb[32].mxu1 %v18120_v5  ;;  %7440 = vmatmul.mubr.bf16.vlgmr.msra.gmra.mrb[40].mxu0 %v18120_v5 }
 0x9af   :  { %7322 = vmatpush1.bf16.msra.mxu1 %v15232_v2  ;;  %7451 = vmatpush1.bf16.msra.mxu0 %v15235_v34  ;;  %v15273_v2 = vld [vmem:[#allocation6 + $0x2b8] ss:$20 sps:$4 sm:$0xff]   ;;  %v15274_v34 = vld [vmem:[#allocation6 + $0x1a0] ss:$20 sps:$4 sm:$0xff]  }
 0x9b0   :  { %7323 = vmatprep.subr.bf16.mxu1 %v15240_v43  ;;  %7452 = vmatprep.subr.bf16.mxu0 %v15243_v6  ;;  %v15276_v43 = vld [vmem:[#allocation6 + $0x420] ss:$20 sps:$4 sm:$0xff]  }
 0x9b1   :  { %7353 = vmatprep.mubr.bf16.mxu1 %v16269_v36  ;;  %7482 = vmatprep.mubr.bf16.mxu0 %v16269_v36  ;;  %v15275_v6 = vld [vmem:[#allocation6 + $0x60] ss:$20 sps:$4 sm:$0xff]  }
 0x9b3   :  { %7324 = vmatpush1.bf16.msra.mxu1 %v15238_v10  ;;  %7453 = vmatpush1.bf16.msra.mxu0 %v15241_v12  ;;  %v15277_v10 = vld [vmem:[#allocation6 + $0x2e0] ss:$20 sps:$4 sm:$0xff]   ;;  %v15278_v12 = vld [vmem:[#allocation6 + $0x1c8] ss:$20 sps:$4 sm:$0xff]  }
 0x9b4   :  { %7325 = vmatprep.subr.bf16.mxu1 %v15246_v14  ;;  %7454 = vmatprep.subr.bf16.mxu0 %v15249_v16  ;;  %v15280_v14 = vld [vmem:[#allocation6 + $0x448] ss:$20 sps:$4 sm:$0xff]  }
 0x9b5   :  { %v15279_v16 = vld [vmem:[#allocation6 + $0x88] ss:$20 sps:$4 sm:$0xff]  }
 0x9b7   :  { %7326 = vmatpush1.bf16.msra.mxu1 %v15244_v51  ;;  %7455 = vmatpush1.bf16.msra.mxu0 %v15247_v18  ;;  %v15281_v51 = vld [vmem:[#allocation6 + $0x308] ss:$20 sps:$4 sm:$0xff]   ;;  %v15282_v18 = vld [vmem:[#allocation6 + $0x1f0] ss:$20 sps:$4 sm:$0xff]  }
 0x9b8   :  { %7327 = vmatprep.subr.bf16.mxu1 %v15252_v7  ;;  %7456 = vmatprep.subr.bf16.mxu0 %v15255_v9  ;;  %v15284_v7 = vld [vmem:[#allocation6 + $0x470] ss:$20 sps:$4 sm:$0xff]  }
 0x9b9   :  { %v15283_v9 = vld [vmem:[#allocation6 + $0xb0] ss:$20 sps:$4 sm:$0xff]  }
 0x9bb   :  { %7328 = vmatpush1.bf16.msra.mxu1 %v15250_v11  ;;  %7457 = vmatpush1.bf16.msra.mxu0 %v15253_v55  ;;  %v15285_v11 = vld [vmem:[#allocation6 + $0x330] ss:$20 sps:$4 sm:$0xff]   ;;  %v15286_v55 = vld [vmem:[#allocation6 + $0x218] ss:$20 sps:$4 sm:$0xff]  }
 0x9bc   :  { %7329 = vmatprep.subr.bf16.mxu1 %v15258_v35  ;;  %7458 = vmatprep.subr.bf16.mxu0 %v15261_v13  ;;  %v15289_v35 = vld [vmem:[#allocation6 + $0x358] ss:$20 sps:$4 sm:$0xff]   ;;  %v15290_v13 = vld [vmem:[#allocation6 + $0x240] ss:$20 sps:$4 sm:$0xff]  }
 0x9bf   :  { %7330 = vmatpush1.bf16.msra.mxu1 %v15256_v46  ;;  %7459 = vmatpush1.bf16.msra.mxu0 %v15259_v50  ;;  %v15293_v46 = vld [vmem:[#allocation6 + $0x380] ss:$20 sps:$4 sm:$0xff]   ;;  %v15294_v50 = vld [vmem:[#allocation6 + $0x268] ss:$20 sps:$4 sm:$0xff]  }
 0x9c0   :  { %13235 = vmatprep.subr.msk.bf16.mxu1 %vm2139_vm8, %v13231_v41  ;;  %13237 = vmatprep.subr.msk.bf16.mxu0 %vm2139_vm8, %v13233_v52  ;;  %v15297_v41 = vld [vmem:[#allocation6 + $0x3a8] ss:$20 sps:$4 sm:$0xff]   ;;  %v15304_v52 = vld [vmem:[%s18631_s11 + $0x40] sm:$0xff]  }
 0x9c3   :  { %7332 = vmatpush1.bf16.msra.mxu1 %v7221_v42  ;;  %7461 = vmatpush1.bf16.msra.mxu0 %v7227_v48  ;;  %v15306_v42 = vld [vmem:[%s18631_s11] sm:$0xff]   ;;  %v15308_v48 = vld [vmem:[%s18631_s11 + $0x48] sm:$0xff]  }
 0x9c4   :  { %13892 = vmatprep.subr.bf16.mxu1 %v15266_v3  ;;  %13914 = vmatprep.subr.bf16.mxu0 %v15268_v49  ;;  %v15298_v3 = vld [vmem:[#allocation6 + $0x510] ss:$20 sps:$4 sm:$0xff]   ;;  %v15299_v49 = vld [vmem:[#allocation6 + $0x538] ss:$20 sps:$4 sm:$0xff]  }
 0x9c6   :  { %13236 = vmatmul.mubr.msk.bf16.vlgmr.msra.gmra.mrb[32].mxu1 %vm3918_vm10, %v18127_v37  ;;  %13238 = vmatmul.mubr.msk.bf16.vlgmr.msra.gmra.mrb[40].mxu0 %vm3918_vm10, %v18127_v37 }
 0x9c7   :  { %13893 = vmatpush3.bf16.msra.mxu1 %v15267_v61  ;;  %13915 = vmatpush3.bf16.msra.mxu0 %v15269_v39  ;;  %v15310_v61 = vld [vmem:[%s18631_s11 + $0x8] sm:$0xff]   ;;  %v15312_v39 = vld [vmem:[%s18631_s11 + $0x50] sm:$0xff]  }
 0x9c8   :  { %13894 = vmatprep.subr.bf16.mxu1 %v15270_v4  ;;  %13916 = vmatprep.subr.bf16.mxu0 %v15272_v17  ;;  %v15316_v4 = vld [vmem:[%s18631_s11 + $0x58] sm:$0xff]  }
 0x9c9   :  { %7525 = vmatprep.mubr.bf16.mxu1 %v18122_v53  ;;  %7566 = vmatprep.mubr.bf16.mxu0 %v18124_v60  ;;  %v15288_v53 = vld [vmem:[#allocation6 + $0x498] ss:$20 sps:$4 sm:$0xff]   ;;  %v15301_v17 = vld [vmem:[#allocation6 + $0x588] ss:$20 sps:$4 sm:$0xff]  }
 0x9ca   :  { %v15287_v60 = vld [vmem:[#allocation6 + $0xd8] ss:$20 sps:$4 sm:$0xff]  }
 0x9cb   :  { %13895 = vmatpush3.bf16.msra.mxu1 %v15271_v45  ;;  %13917 = vmatpush3.bf16.msra.mxu0 %v15273_v2  ;;  %v15318_v45 = vld [vmem:[%s18631_s11 + $0x18] sm:$0xff]   ;;  %v15320_v2 = vld [vmem:[%s18631_s11 + $0x60] sm:$0xff]  }
 0x9cc   :  { %13896 = vmatprep.subr.bf16.mxu1 %v15274_v34  ;;  %13918 = vmatprep.subr.bf16.mxu0 %v15276_v43  ;;  %v15302_v34 = vld [vmem:[#allocation6 + $0x5b0] ss:$20 sps:$4 sm:$0xff]   ;;  %v15303_v43 = vld [vmem:[#allocation6 + $0x5d8] ss:$0 sps:$4 sm:$0xff]  }
 0x9cf   :  { %13897 = vmatpush3.bf16.msra.mxu1 %v15275_v6  ;;  %13919 = vmatpush3.bf16.msra.mxu0 %v15277_v10  ;;  %v15322_v6 = vld [vmem:[%s18631_s11 + $0x20] sm:$0xff]   ;;  %v15324_v10 = vld [vmem:[%s18631_s11 + $0x68] sm:$0xff]  }
 0x9d0   :  { %13898 = vmatprep.subr.bf16.mxu1 %v15278_v12  ;;  %13920 = vmatprep.subr.bf16.mxu0 %v15280_v14  ;;  %v7233_v12 = vsel %vm2139_vm8, %v15303_v43, 0  ;;  %v15305_v14 = vld [vmem:[%s18631_s11 + $0xc0] sm:$0xff]  }
 0x9d3   :  { %13899 = vmatpush3.bf16.msra.mxu1 %v15279_v16  ;;  %13921 = vmatpush3.bf16.msra.mxu0 %v15281_v51  ;;  %v15307_v16 = vld [vmem:[%s18631_s11 + $0x80] sm:$0xff]   ;;  %v15309_v51 = vld [vmem:[%s18631_s11 + $0xc8] sm:$0xff]  }
 0x9d4   :  { %13900 = vmatprep.subr.bf16.mxu1 %v15282_v18  ;;  %13922 = vmatprep.subr.bf16.mxu0 %v15284_v7  ;;  %v15311_v18 = vld [vmem:[%s18631_s11 + $0x88] sm:$0xff]   ;;  %v15313_v7 = vld [vmem:[%s18631_s11 + $0xd0] sm:$0xff]  }
 0x9d7   :  { %13901 = vmatpush3.bf16.msra.mxu1 %v15283_v9  ;;  %13923 = vmatpush3.bf16.msra.mxu0 %v15285_v11  ;;  %v15315_v9 = vld [vmem:[%s18631_s11 + $0x90] sm:$0xff]   ;;  %v15319_v11 = vld [vmem:[%s18631_s11 + $0x98] sm:$0xff]  }
 0x9d8   :  { %13902 = vmatprep.subr.bf16.mxu1 %v15286_v55  ;;  %13924 = vmatprep.subr.bf16.mxu0 %v15288_v53  ;;  %v15321_v55 = vld [vmem:[%s18631_s11 + $0xe0] sm:$0xff]  }
 0x9d9   :  { %v15323_v53 = vld [vmem:[%s18631_s11 + $0xa0] sm:$0xff]  }
 0x9db   :  { %13903 = vmatpush3.bf16.msra.mxu1 %v15287_v60  ;;  %13925 = vmatpush3.bf16.msra.mxu0 %v15289_v35  ;;  %v15325_v60 = vld [vmem:[%s18631_s11 + $0xe8] sm:$0xff]  }
 0x9dc   :  { %13904 = vmatprep.subr.bf16.mxu1 %v15290_v13  ;;  %13926 = vmatprep.subr.bf16.mxu0 %v15292_v19  ;;  %v15326_v35 = vld [vmem:[%s18631_s11 + $0x28] sm:$0xff]   ;;  %v15328_v19 = vld [vmem:[%s18631_s11 + $0x70] sm:$0xff]  }
 0x9dd   :  { %v15327_v13 = vld [vmem:[%s18631_s11 + $0xa8] sm:$0xff]  }
 0x9df   :  { %13905 = vmatpush3.bf16.msra.mxu1 %v15291_v8  ;;  %13927 = vmatpush3.bf16.msra.mxu0 %v15293_v46  ;;  %v15329_v8 = vld [vmem:[%s18631_s11 + $0xf0] sm:$0xff]  }
 0x9e0   :  { %13906 = vmatprep.subr.bf16.mxu1 %v15294_v50  ;;  %13928 = vmatprep.subr.bf16.mxu0 %v15296_v38  ;;  %v15330_v46 = vld [vmem:[%s18631_s11 + $0x30] sm:$0xff]   ;;  %v15332_v38 = vld [vmem:[%s18631_s11 + $0x78] sm:$0xff]  }
 0x9e1   :  { %v15331_v50 = vld [vmem:[%s18631_s11 + $0xb0] sm:$0xff]  }
 0x9e3   :  { %13907 = vmatpush3.bf16.msra.mxu1 %v15295_v57  ;;  %13929 = vmatpush3.bf16.msra.mxu0 %v15297_v41  ;;  %v15333_v57 = vld [vmem:[%s18631_s11 + $0xf8] sm:$0xff]  }
 0x9e4   :  { %14201 = vmatprep.subr.bf16.mxu1 %v16277_v54  ;;  %13943 = vmatprep.subr.bf16.mxu0 %v15304_v52  ;;  %v15334_v41 = vld [vmem:[%s18631_s11 + $0x38] sm:$0xff]  }
 0x9e5   :  { %v15335_v52 = vld [vmem:[%s18631_s11 + $0xb8] sm:$0xff]  }
 0x9e6   :  { %7526 = vmatmul.mubr.bf16.vlgmr.msra.gmra.mrb[36].mxu1 %v18118_v44  ;;  %7567 = vmatmul.mubr.bf16.vlgmr.msra.gmra.mrb[44].mxu0 %v18120_v5  ;;  %v15300_v44 = vld [vmem:[#allocation6 + $0x560] ss:$20 sps:$4 sm:$0xff]  }
 0x9e7   :  { %14202 = vmatpush3.bf16.msra.mxu1 %v15298_v3  ;;  %14213 = vmatprep.mubr.msk.bf16.mxu1 %vm16278_vm12, %v16277_v54  ;;  %v15314_v5 = vld [vmem:[%s18631_s11 + $0x10] sm:$0xff]  }
 0x9e8   :  { %14203 = vmatprep.subr.bf16.mxu1 %v16277_v54  ;;  %13944 = vmatpush3.bf16.msra.mxu0 %v15306_v42  ;;  %v6215_v3 = vld [vmem:[#allocation21] sm:$0x1f] }
 0x9e9   :  { %13945 = vmatprep.subr.bf16.mxu0 %v15308_v48  ;;  %v6220_v42 = vrot.slane %v6215_v3, %v17968_v15  ;;  %v6228_v48 = vrot.slane %v6215_v3, %v17980_v40 }
 0x9eb   :  { %14204 = vmatpush3.bf16.msra.mxu1 %v15299_v49  ;;  %v6224_v49 = vrot.slane %v6215_v3, %v17971_v58 }
 0x9ec   :  { %14205 = vmatprep.subr.bf16.mxu1 %v16277_v54  ;;  %13946 = vmatpush3.bf16.msra.mxu0 %v15310_v61  ;;  %v6232_v61 = vrot.slane %v6215_v3, %v17983_v59 }
 0x9ed   :  { %13947 = vmatprep.subr.bf16.mxu0 %v15312_v39 }
 0x9ef   :  { %14206 = vmatpush3.bf16.msra.mxu1 %v15300_v44 }
 0x9f0   :  { %14207 = vmatprep.subr.bf16.mxu1 %v16277_v54  ;;  %13948 = vmatpush3.bf16.msra.mxu0 %v15314_v5 }
 0x9f1   :  { %13949 = vmatprep.subr.bf16.mxu0 %v15316_v4 }
 0x9f3   :  { %14208 = vmatpush3.bf16.msra.mxu1 %v15301_v17 }
 0x9f4   :  { %14209 = vmatprep.subr.bf16.mxu1 %v16277_v54  ;;  %13950 = vmatpush3.bf16.msra.mxu0 %v15318_v45 }
 0x9f5   :  { %13951 = vmatprep.subr.bf16.mxu0 %v15320_v2 }
 0x9f7   :  { %14210 = vmatpush3.bf16.msra.mxu1 %v15302_v34 }
 0x9f8   :  { %14211 = vmatprep.subr.bf16.mxu1 %v16277_v54  ;;  %13952 = vmatpush3.bf16.msra.mxu0 %v15322_v6 }
 0x9f9   :  { %13953 = vmatprep.subr.bf16.mxu0 %v15324_v10 }
 0x9fb   :  { %14212 = vmatpush3.bf16.msra.mxu1 %v7233_v12 }
 0x9fc   :  { %13965 = vmatprep.subr.bf16.mxu1 %v15305_v14  ;;  %13954 = vmatpush3.bf16.msra.mxu0 %v15326_v35 }
 0x9fd   :  { %13955 = vmatprep.subr.bf16.mxu0 %v15328_v19 }
 0x9fe   :  { %14214 = vmatmul.mubr.msk.bf16.vlgmr.msra.gmra.mrb[40].mxu1 %vm3918_vm10, %v18127_v37  ;;  %v15317_v37 = vld [vmem:[%s18631_s11 + $0xd8] sm:$0xff]  }
 0x9ff   :  { %13966 = vmatpush3.bf16.msra.mxu1 %v15307_v16 }
 0xa00   :  { %13967 = vmatprep.subr.bf16.mxu1 %v15309_v51  ;;  %13956 = vmatpush3.bf16.msra.mxu0 %v15330_v46 }
 0xa01   :  { %13957 = vmatprep.subr.bf16.mxu0 %v15332_v38  ;;  %v15337_v38 = vld [vmem:[%s18631_s11 + $0x108] sm:$0xff]  }
 0xa03   :  { %13968 = vmatpush3.bf16.msra.mxu1 %v15311_v18 }
 0xa04   :  { %13969 = vmatprep.subr.bf16.mxu1 %v15313_v7  ;;  %13958 = vmatpush3.bf16.msra.mxu0 %v15334_v41  ;;  %v15339_v41 = vld [vmem:[%s18631_s11 + $0x118] sm:$0xff]  }
 0xa05   :  { %14217 = vmatprep.subr.bf16.mxu0 %v16277_v54 }
 0xa07   :  { %13970 = vmatpush3.bf16.msra.mxu1 %v15315_v9 }
 0xa08   :  { %13971 = vmatprep.subr.bf16.mxu1 %v15317_v37 }
 0xa0b   :  { %13972 = vmatpush3.bf16.msra.mxu1 %v15319_v11 }
 0xa0c   :  { %13973 = vmatprep.subr.bf16.mxu1 %v15321_v55 }
 0xa0f   :  { %13974 = vmatpush3.bf16.msra.mxu1 %v15323_v53 }
 0xa10   :  { %13975 = vmatprep.subr.bf16.mxu1 %v15325_v60 }
 0xa13   :  { %13976 = vmatpush3.bf16.msra.mxu1 %v15327_v13 }
 0xa14   :  { %13977 = vmatprep.subr.bf16.mxu1 %v15329_v8 }
 0xa17   :  { %13978 = vmatpush3.bf16.msra.mxu1 %v15331_v50  ;;  %v15336_v50 = vld [vmem:[%s18631_s11 + $0x100] sm:$0xff]  }
 0xa18   :  { %13979 = vmatprep.subr.bf16.mxu1 %v15333_v57  ;;  %v15338_v57 = vld [vmem:[%s18631_s11 + $0x110] sm:$0xff]  }
 0xa1b   :  { %13980 = vmatpush3.bf16.msra.mxu1 %v15335_v52  ;;  %v15340_v52 = vld [vmem:[%s18631_s11 + $0x120] sm:$0xff]  }
 0xa99   :  { %v7355_v39 = vpop.f32.mrb[32].mxu1  ;;  %v7484_v44 = vpop.f32.mrb[40].mxu0 }
 0xa9a   :  { %v14305_v5 = vadd.f32 %v7355_v39, %v6220_v42  ;;  %v14309_v4 = vadd.f32 %v7484_v44, %v6228_v48  ;;  %v7357_v17 = vpop.f32.mrb[33].mxu1  ;;  %v7486_v45 = vpop.f32.mrb[41].mxu0 }
 0xa9b   :  { %v14306_v2 = vadd.f32 %v7357_v17, %v6224_v49  ;;  %v14310_v34 = vadd.f32 %v7486_v45, %v6232_v61  ;;  %v7359_v43 = vpop.f32.mrb[34].mxu1  ;;  %v7488_v6 = vpop.f32.mrb[42].mxu0 }
 0xa9c   :  { %v14307_v10 = vadd.f32 %v7359_v43, %v6220_v42  ;;  %v14311_v12 = vadd.f32 %v7488_v6, %v6228_v48  ;;  %v7361_v14 = vpop.f32.mrb[35].mxu1  ;;  %v7490_v16 = vpop.f32.mrb[43].mxu0  ;;  %v7616_v7 = vmax.f32 %v14305_v5, 0.0  ;;  %v7618_v9 = vmax.f32 %v14309_v4, 0.0  ;;  %v15341_v42 = vld [vmem:[%s18631_s11 + $0x128] ss:$0 sps:$4 sm:$0xff]  }
 0xa9d   :  { %v14308_v51 = vadd.f32 %v7361_v14, %v6224_v49  ;;  %v14312_v18 = vadd.f32 %v7490_v16, %v6232_v61  ;;  %v7617_v55 = vmax.f32 %v14306_v2, 0.0  ;;  %v7619_v53 = vmax.f32 %v14310_v34, 0.0 }
 0xa9e   :  { %v7621_v37 = vmax.f32 %v14307_v10, 0.0  ;;  %v7623_v11 = vmax.f32 %v14311_v12, 0.0  ;;  %v7942_v48 = vsel %vm2139_vm8, %v15341_v42, 0  ;;  %v6236_v61 = vrot.slane %v6215_v3, %v18028_v47 }
 0xa9f   :  { %v7622_v60 = vmax.f32 %v14308_v51, 0.0  ;;  %v7624_v35 = vmax.f32 %v14312_v18, 0.0 }
 0xaa0   :  { %v7626_v13 = vpack.c.bf16 %v7621_v37, %v7616_v7  ;;  %v7628_v19 = vpack.c.bf16 %v7623_v11, %v7618_v9 }
 0xaa1   :  { %v7627_v8 = vpack.c.bf16 %v7622_v60, %v7617_v55  ;;  %v7629_v46 = vpack.c.bf16 %v7624_v35, %v7619_v53 }
 0xaa3   :  { %7976 = vmatprep.mubr.bf16.mxu0 %v7627_v8  ;;  %8017 = vmatprep.mubr.bf16.mxu1 %v7629_v46 }
 0xaa4   :  { %7977 = vmatmul.mubr.bf16.vlgmr.msra.gmra.mrb[48].mxu0 %v7626_v13  ;;  %8018 = vmatmul.mubr.bf16.vlgmr.msra.gmra.mrb[44].mxu1 %v7628_v19  ;;  %v13240_v19 = vld [vmem:[#allocation12] ss:$0 sm:$0xff] }
 0xaa5   :  { %14218 = vmatpush3.bf16.msra.mxu0 %v15336_v50  ;;  %14229 = vmatprep.mubr.msk.bf16.mxu0 %vm16278_vm12, %v16277_v54 }
 0xaa6   :  { %14219 = vmatprep.subr.bf16.mxu0 %v16277_v54  ;;  %8249 = vmatprep.mubr.bf16.mxu1 %v16269_v36 }
 0xaa9   :  { %14220 = vmatpush3.bf16.msra.mxu0 %v15337_v38 }
 0xaaa   :  { %14221 = vmatprep.subr.bf16.mxu0 %v16277_v54 }
 0xaad   :  { %14222 = vmatpush3.bf16.msra.mxu0 %v15338_v57 }
 0xaae   :  { %14223 = vmatprep.subr.bf16.mxu0 %v16277_v54 }
 0xab1   :  { %14224 = vmatpush3.bf16.msra.mxu0 %v15339_v41 }
 0xab2   :  { %14225 = vmatprep.subr.bf16.mxu0 %v16277_v54 }
 0xab5   :  { %14226 = vmatpush3.bf16.msra.mxu0 %v15340_v52 }
 0xab6   :  { %14227 = vmatprep.subr.bf16.mxu0 %v16277_v54 }
 0xab9   :  { %v13908_v49 = vpop.f32.mrb[36].mxu1  ;;  %v13930_v39 = vpop.f32.mrb[44].mxu0  ;;  %14228 = vmatpush3.bf16.msra.mxu0 %v7942_v48 }
 0xaba   :  { %v13909_v44 = vpop.f32.mrb[37].mxu1  ;;  %v13931_v5 = vpop.f32.mrb[45].mxu0 }
 0xabb   :  { %v13910_v4 = vadd.f32 %v13909_v44, %v13908_v49  ;;  %v13911_v17 = vpop.f32.mrb[38].mxu1  ;;  %v13932_v45 = vadd.f32 %v13931_v5, %v13930_v39  ;;  %v13933_v2 = vpop.f32.mrb[46].mxu0 }
 0xabc   :  { %v13912_v34 = vpop.f32.mrb[39].mxu1  ;;  %v13934_v43 = vpop.f32.mrb[47].mxu0 }
 0xabd   :  { %v7528_v6 = vadd.f32 %v13910_v4, %v6236_v61  ;;  %v13913_v10 = vadd.f32 %v13912_v34, %v13911_v17  ;;  %v13935_v12 = vadd.f32 %v13934_v43, %v13933_v2 }
 0xabf   :  { %v7531_v14 = vadd.f32 %v13913_v10, %v6236_v61  ;;  %v7569_v16 = vadd.f32 %v13932_v45, %v7528_v6  ;;  %v13281_v6 = vcombine.high %v17290_v62, %v17300_v0  ;;  %v13280_v10 = vcombine.low %v17290_v62, %v17300_v0 }
 0xac1   :  { %v7572_v51 = vadd.f32 %v13935_v12, %v7531_v14  ;;  %v13285_v12 = vcombine.high %v17310_v20, %v17322_v22 }
 0xad1   :  { %v7609_v18 = vpop.f32.mrb[40].mxu1 }
 0xad2   :  { %v7610_v7 = vadd.f32 %v7609_v18, %v7569_v16  ;;  %v14215_v9 = vpop.f32.mrb[41].mxu1 }
 0xad3   :  { %v7612_v3 = vpop.f32.mrb[42].mxu1 }
 0xad4   :  { %v7613_v37 = vadd.f32 %v7612_v3, %v7572_v51  ;;  %v14216_v11 = vpop.f32.mrb[43].mxu1  ;;  %v7620_v55 = vmax.f32 %v7610_v7, 0.0 }
 0xad6   :  { %v7625_v53 = vmax.f32 %v7613_v37, 0.0 }
 0xad8   :  { %v7630_v60 = vpack.c.bf16 %v7625_v53, %v7620_v55 }
 0xada   :  { %14230 = vmatmul.mubr.msk.bf16.vlgmr.msra.gmra.mrb[52].mxu0 %vm3918_vm10, %v7630_v60 }
 0xb77   :  { %v13959_v35 = vpop.f32.mrb[48].mxu0  ;;  %v13981_v13 = vpop.f32.mrb[44].mxu1 }
 0xb78   :  { %v13960_v8 = vpop.f32.mrb[49].mxu0  ;;  %v13982_v46 = vpop.f32.mrb[45].mxu1 }
 0xb79   :  { %v13961_v50 = vadd.f32 %v13960_v8, %v13959_v35  ;;  %v13983_v38 = vadd.f32 %v13982_v46, %v13981_v13  ;;  %v13962_v57 = vpop.f32.mrb[50].mxu0  ;;  %v13984_v41 = vpop.f32.mrb[46].mxu1 }
 0xb7a   :  { %v13963_v52 = vpop.f32.mrb[51].mxu0  ;;  %v13985_v42 = vpop.f32.mrb[47].mxu1 }
 0xb7b   :  { %v7979_v48 = vadd.f32 %v13961_v50, %v13240_v19  ;;  %v13964_v49 = vadd.f32 %v13963_v52, %v13962_v57  ;;  %v13986_v61 = vadd.f32 %v13985_v42, %v13984_v41 }
 0xb7d   :  { %v7982_v39 = vadd.f32 %v13964_v49, %v13240_v19  ;;  %v8020_v44 = vadd.f32 %v13983_v38, %v7979_v48 }
 0xb7f   :  { %v8023_v5 = vadd.f32 %v13986_v61, %v7982_v39 }
 0xbad   :  { %v8060_v4 = vpop.f32.mrb[52].mxu0 }
 0xbae   :  { %v18291_v17 = vadd.f32 %v8060_v4, %v8020_v44  ;;  %v14231_v45 = vpop.f32.mrb[53].mxu0 }
 0xbaf   :  { %v8063_v2 = vpop.f32.mrb[54].mxu0 }
 0xbb0   :  { %v18293_v34 = vadd.f32 %v8063_v2, %v8023_v5  ;;  %v14232_v43 = vpop.f32.mrb[55].mxu0 }
 0xbb1   :  { %16236 = dma.done.wait [#allocation11 + $0x5], 2304 }
 0xbb2   :  { %16237 = vsyncadd [#allocation11 + $0x5], 4294964992  ;;  %8217 = vmatprep.subr.bf16.mxu1 %v13281_v6  ;;  %v13284_v14 = vcombine.low %v17310_v20, %v17322_v22  ;;  %v13289_v16 = vcombine.high %v17344_v24, %v17354_v26  ;;  %v13288_v62 = vcombine.low %v17344_v24, %v17354_v26  ;;  %v13293_v0 = vcombine.high %v17381_v28, %v17391_v30 }
 0xbb3   :  { %8218 = vmatpush1.bf16.msra.mxu1 %v13280_v10  ;;  %v13292_v51 = vcombine.low %v17381_v28, %v17391_v30  ;;  %v13297_v20 = vcombine.high %v17401_v32, %v17401_v32  ;;  %v13296_v22 = vcombine.low %v17401_v32, %v17401_v32  ;;  %v13283_v26 = vcombine.high %v17295_v63, %v17305_v1 }
 0xbb4   :  { %8219 = vmatprep.subr.bf16.mxu1 %v13285_v12  ;;  %v13282_v18 = vcombine.low %v17295_v63, %v17305_v1  ;;  %v13287_v28 = vcombine.high %v17317_v21, %v17327_v23  ;;  %v13286_v30 = vcombine.low %v17317_v21, %v17327_v23  ;;  %v13291_v32 = vcombine.high %v17349_v25, %v17376_v27 }
 0xbb5   :  { %v8206_v24 = vsel %vm2139_vm8, %v13296_v22, 0  ;;  %v13290_v63 = vcombine.low %v17349_v25, %v17376_v27  ;;  %v13295_v1 = vcombine.high %v17386_v29, %v17396_v31  ;;  %v13294_v7 = vcombine.low %v17386_v29, %v17396_v31  ;;  %v8093_v27 = vld [vmem:[#allocation22] sm:$0xf] }
 0xbb6   :  { %v13299_v21 = vcombine.high %v17406_v33, %v17406_v33  ;;  %v13298_v23 = vcombine.low %v17406_v33, %v17406_v33  ;;  %v8098_v9 = vrot.slane %v8093_v27, %v17968_v15  ;;  %v8102_v29 = vrot.slane %v8093_v27, %v17971_v58 }
 0xbb7   :  { %8220 = vmatpush1.bf16.msra.mxu1 %v13284_v14  ;;  %v8106_v50 = vrot.slane %v8093_v27, %v17980_v40  ;;  %v8110_v38 = vrot.slane %v8093_v27, %v17983_v59 }
 0xbb8   :  { %8221 = vmatprep.subr.bf16.mxu1 %v13289_v16  ;;  %v8212_v25 = vsel %vm2139_vm8, %v13298_v23, 0 }
 0xbbb   :  { %8222 = vmatpush1.bf16.msra.mxu1 %v13288_v62 }
 0xbbc   :  { %8223 = vmatprep.subr.bf16.mxu1 %v13293_v0 }
 0xbbf   :  { %8224 = vmatpush1.bf16.msra.mxu1 %v13292_v51 }
 0xbc0   :  { %13300 = vmatprep.subr.msk.bf16.mxu1 %vm2139_vm8, %v13297_v20 }
 0xbc3   :  { %8226 = vmatpush1.bf16.msra.mxu1 %v8206_v24 }
 0xbc4   :  { %8260 = vmatprep.subr.bf16.mxu1 %v13283_v26 }
 0xbc6   :  { %13301 = vmatmul.mubr.msk.bf16.vlgmr.msra.gmra.mrb[48].mxu1 %vm2135_vm9, %v17912_v56 }
 0xbc7   :  { %8261 = vmatpush1.bf16.msra.mxu1 %v13282_v18  ;;  %8292 = vmatprep.mubr.bf16.mxu1 %v16269_v36 }
 0xbc8   :  { %8262 = vmatprep.subr.bf16.mxu1 %v13287_v28 }
 0xbcb   :  { %8263 = vmatpush1.bf16.msra.mxu1 %v13286_v30 }
 0xbcc   :  { %8264 = vmatprep.subr.bf16.mxu1 %v13291_v32 }
 0xbcf   :  { %8265 = vmatpush1.bf16.msra.mxu1 %v13290_v63 }
 0xbd0   :  { %8266 = vmatprep.subr.bf16.mxu1 %v13295_v1 }
 0xbd3   :  { %8267 = vmatpush1.bf16.msra.mxu1 %v13294_v7 }
 0xbd4   :  { %13302 = vmatprep.subr.msk.bf16.mxu1 %vm2139_vm8, %v13299_v21 }
 0xbd7   :  { %8269 = vmatpush1.bf16.msra.mxu1 %v8212_v25 }
 0xbda   :  { %13303 = vmatmul.mubr.msk.bf16.vlgmr.msra.gmra.mrb[52].mxu1 %vm2135_vm9, %v17912_v56 }
 0xc99   :  { %v8251_v31 = vpop.f32.mrb[48].mxu1 }
 0xc9a   :  { %v8252_v3 = vadd.f32 %v8251_v31, %v8098_v9  ;;  %v8253_v37 = vpop.f32.mrb[49].mxu1 }
 0xc9b   :  { %v8254_v11 = vadd.f32 %v8253_v37, %v8102_v29  ;;  %v8255_v55 = vpop.f32.mrb[50].mxu1 }
 0xc9c   :  { %v8303_v33 = vmax.f32 %v8252_v3, 0.0  ;;  %v8256_v53 = vadd.f32 %v8255_v55, %v8098_v9  ;;  %v8257_v60 = vpop.f32.mrb[51].mxu1 }
 0xc9d   :  { %v8258_v35 = vadd.f32 %v8257_v60, %v8102_v29  ;;  %v8304_v19 = vmax.f32 %v8254_v11, 0.0 }
 0xc9e   :  { %v8307_v13 = vmax.f32 %v8256_v53, 0.0 }
 0xc9f   :  { %v8308_v8 = vmax.f32 %v8258_v35, 0.0 }
 0xca0   :  { %v18347_v46 = vpack.c.bf16 %v8307_v13, %v8303_v33 }
 0xca1   :  { %v18349_v56 = vpack.c.bf16 %v8308_v8, %v8304_v19 }
 0xcad   :  { %v8294_v57 = vpop.f32.mrb[52].mxu1 }
 0xcae   :  { %v8295_v41 = vadd.f32 %v8294_v57, %v8106_v50  ;;  %v8296_v52 = vpop.f32.mrb[53].mxu1 }
 0xcaf   :  { %v8297_v42 = vadd.f32 %v8296_v52, %v8110_v38  ;;  %v8298_v48 = vpop.f32.mrb[54].mxu1 }
 0xcb0   :  { %v8299_v49 = vadd.f32 %v8298_v48, %v8106_v50  ;;  %v8300_v61 = vpop.f32.mrb[55].mxu1  ;;  %v8305_v44 = vmax.f32 %v8295_v41, 0.0 }
 0xcb1   :  { %v8301_v39 = vadd.f32 %v8300_v61, %v8110_v38  ;;  %v8306_v4 = vmax.f32 %v8297_v42, 0.0 }
 0xcb2   :  { %v8309_v5 = vmax.f32 %v8299_v49, 0.0 }
 0xcb3   :  { %v8310_v45 = vmax.f32 %v8301_v39, 0.0 }
 0xcb4   :  { %v18353_v2 = vpack.c.bf16 %v8309_v5, %v8305_v44 }
 0xcb5   :  { %v18355_v43 = vpack.c.bf16 %v8310_v45, %v8306_v4 }
 0xcb6   :  { %16238 = dma.done.wait [#allocation11 + $0x6], 16000 }
 0xcb7   :  { %16239 = vsyncadd [#allocation11 + $0x6], 4294951296  ;;  %8510 = vmatprep.mubr.bf16.mxu0 %v18349_v56  ;;  %8596 = vmatprep.mubr.bf16.mxu1 %v18349_v56  ;;  %v8324_v6 = vld [vmem:[#allocation8 + $0x8] sm:$0xff]  ;;  %v8326_v10 = vld [vmem:[#allocation8 + $0x18] sm:$0xff] }
 0xcb8   :  { %v8323_v12 = vld [vmem:[#allocation8] sm:$0xff]  ;;  %8478 = vmatprep.subr.bf16.mxu0 %v8324_v6  ;;  %8564 = vmatprep.subr.bf16.mxu1 %v8326_v10  ;;  %v8325_v14 = vld [vmem:[#allocation8 + $0x10] sm:$0xff]  ;;  %v8328_v0 = vld [vmem:[#allocation8 + $0x28] sm:$0xff] }
 0xcb9   :  { %v8329_v16 = vld [vmem:[#allocation8 + $0x30] sm:$0xff]  ;;  %v8331_v62 = vld [vmem:[#allocation8 + $0x40] sm:$0xff]  ;;  %8479 = vmatpush1.bf16.msra.mxu0 %v8323_v12  ;;  %8565 = vmatpush1.bf16.msra.mxu1 %v8325_v14  ;;  %v8330_v51 = vld [vmem:[#allocation8 + $0x38] sm:$0xff] }
 0xcba   :  { %8480 = vmatprep.subr.bf16.mxu0 %v8329_v16  ;;  %8566 = vmatprep.subr.bf16.mxu1 %v8331_v62  ;;  %v8334_v20 = vld [vmem:[#allocation8 + $0x58] sm:$0xff]  ;;  %v8336_v22 = vld [vmem:[#allocation8 + $0x68] sm:$0xff]  ;;  %v8333_v24 = vld [vmem:[#allocation8 + $0x50] sm:$0xff] }
 0xcbb   :  { %v8335_v26 = vld [vmem:[#allocation8 + $0x60] sm:$0xff]  ;;  %v8341_v28 = vld [vmem:[#allocation8 + $0x90] sm:$0xff]  ;;  %v8338_v30 = vld [vmem:[#allocation8 + $0x78] sm:$0xff] }
 0xcbc   :  { %v8339_v18 = vld [vmem:[#allocation8 + $0x80] sm:$0xff]  ;;  %v8340_v32 = vld [vmem:[#allocation8 + $0x88] sm:$0xff]  ;;  %v8346_v1 = vld [vmem:[#allocation8 + $0xb8] sm:$0xff] }
 0xcbd   :  { %8481 = vmatpush1.bf16.msra.mxu0 %v8328_v0  ;;  %8567 = vmatpush1.bf16.msra.mxu1 %v8330_v51  ;;  %v8344_v63 = vld [vmem:[#allocation8 + $0xa8] sm:$0xff]  ;;  %v8343_v7 = vld [vmem:[#allocation8 + $0xa0] sm:$0xff]  ;;  %v8345_v21 = vld [vmem:[#allocation8 + $0xb0] sm:$0xff] }
 0xcbe   :  { %8482 = vmatprep.subr.bf16.mxu0 %v8334_v20  ;;  %8568 = vmatprep.subr.bf16.mxu1 %v8336_v22  ;;  %v8349_v23 = vld [vmem:[#allocation8 + $0xd0] sm:$0xff]  ;;  %v8351_v25 = vld [vmem:[#allocation8 + $0xe0] sm:$0xff]  ;;  %v8348_v27 = vld [vmem:[#allocation8 + $0xc8] sm:$0xff] }
 0xcbf   :  { %v8350_v9 = vld [vmem:[#allocation8 + $0xd8] sm:$0xff]  ;;  %v8356_v31 = vld [vmem:[#allocation8 + $0x108] sm:$0xff]  ;;  %v8353_v3 = vld [vmem:[#allocation8 + $0xf0] sm:$0xff] }
 0xcc0   :  { %v8354_v29 = vld [vmem:[#allocation8 + $0xf8] sm:$0xff]  ;;  %v8355_v37 = vld [vmem:[#allocation8 + $0x100] sm:$0xff]  ;;  %v8361_v55 = vld [vmem:[#allocation8 + $0x130] sm:$0xff] }
 0xcc1   :  { %8483 = vmatpush1.bf16.msra.mxu0 %v8333_v24  ;;  %8569 = vmatpush1.bf16.msra.mxu1 %v8335_v26  ;;  %v8359_v11 = vld [vmem:[#allocation8 + $0x120] sm:$0xff]  ;;  %v8358_v33 = vld [vmem:[#allocation8 + $0x118] sm:$0xff]  ;;  %v8360_v53 = vld [vmem:[#allocation8 + $0x128] sm:$0xff] }
 0xcc2   :  { %8484 = vmatprep.subr.bf16.mxu0 %v8339_v18  ;;  %8570 = vmatprep.subr.bf16.mxu1 %v8341_v28  ;;  %v8364_v60 = vld [vmem:[#allocation8 + $0x148] sm:$0xff]  ;;  %v8366_v35 = vld [vmem:[#allocation8 + $0x158] sm:$0xff]  ;;  %v8363_v13 = vld [vmem:[#allocation8 + $0x140] sm:$0xff] }
 0xcc3   :  { %v8365_v19 = vld [vmem:[#allocation8 + $0x150] sm:$0xff]  ;;  %v8371_v50 = vld [vmem:[#allocation8 + $0x180] sm:$0xff]  ;;  %v8368_v38 = vld [vmem:[#allocation8 + $0x168] sm:$0xff] }
 0xcc4   :  { %v8369_v8 = vld [vmem:[#allocation8 + $0x170] sm:$0xff]  ;;  %v8370_v57 = vld [vmem:[#allocation8 + $0x178] sm:$0xff]  ;;  %v8376_v52 = vld [vmem:[#allocation8 + $0x1a8] sm:$0xff] }
 0xcc5   :  { %8485 = vmatpush1.bf16.msra.mxu0 %v8338_v30  ;;  %8571 = vmatpush1.bf16.msra.mxu1 %v8340_v32  ;;  %v8374_v41 = vld [vmem:[#allocation8 + $0x198] sm:$0xff]  ;;  %v8373_v42 = vld [vmem:[#allocation8 + $0x190] sm:$0xff]  ;;  %v8375_v48 = vld [vmem:[#allocation8 + $0x1a0] sm:$0xff] }
 0xcc6   :  { %8486 = vmatprep.subr.bf16.mxu0 %v8344_v63  ;;  %8572 = vmatprep.subr.bf16.mxu1 %v8346_v1  ;;  %v8379_v49 = vld [vmem:[#allocation8 + $0x1c0] sm:$0xff]  ;;  %v8381_v61 = vld [vmem:[#allocation8 + $0x1d0] sm:$0xff]  ;;  %v8378_v39 = vld [vmem:[#allocation8 + $0x1b8] sm:$0xff] }
 0xcc7   :  { %v8380_v44 = vld [vmem:[#allocation8 + $0x1c8] sm:$0xff]  ;;  %v8386_v4 = vld [vmem:[#allocation8 + $0x1f8] sm:$0xff]  ;;  %v8383_v45 = vld [vmem:[#allocation8 + $0x1e0] sm:$0xff] }
 0xcc8   :  { %v8384_v5 = vld [vmem:[#allocation8 + $0x1e8] sm:$0xff]  ;;  %v8385_v6 = vld [vmem:[#allocation8 + $0x1f0] sm:$0xff]  ;;  %v8391_v12 = vld [vmem:[#allocation8 + $0x220] sm:$0xff] }
 0xcc9   :  { %8487 = vmatpush1.bf16.msra.mxu0 %v8343_v7  ;;  %8573 = vmatpush1.bf16.msra.mxu1 %v8345_v21  ;;  %v8389_v10 = vld [vmem:[#allocation8 + $0x210] sm:$0xff]  ;;  %v8388_v14 = vld [vmem:[#allocation8 + $0x208] sm:$0xff]  ;;  %v8390_v16 = vld [vmem:[#allocation8 + $0x218] sm:$0xff] }
 0xcca   :  { %8488 = vmatprep.subr.bf16.mxu0 %v8349_v23  ;;  %8574 = vmatprep.subr.bf16.mxu1 %v8351_v25  ;;  %v8394_v62 = vld [vmem:[#allocation8 + $0x238] sm:$0xff]  ;;  %v8396_v0 = vld [vmem:[#allocation8 + $0x248] sm:$0xff]  ;;  %v8393_v51 = vld [vmem:[#allocation8 + $0x230] sm:$0xff] }
 0xccb   :  { %v8395_v20 = vld [vmem:[#allocation8 + $0x240] sm:$0xff]  ;;  %v8401_v24 = vld [vmem:[#allocation8 + $0x270] sm:$0xff]  ;;  %v8398_v26 = vld [vmem:[#allocation8 + $0x258] sm:$0xff] }
 0xccc   :  { %v8399_v22 = vld [vmem:[#allocation8 + $0x260] sm:$0xff]  ;;  %v8400_v18 = vld [vmem:[#allocation8 + $0x268] sm:$0xff]  ;;  %v8406_v30 = vld [vmem:[#allocation8 + $0x298] sm:$0xff] }
 0xccd   :  { %8489 = vmatpush1.bf16.msra.mxu0 %v8348_v27  ;;  %8575 = vmatpush1.bf16.msra.mxu1 %v8350_v9  ;;  %v8404_v28 = vld [vmem:[#allocation8 + $0x288] sm:$0xff]  ;;  %v8403_v32 = vld [vmem:[#allocation8 + $0x280] sm:$0xff]  ;;  %v8405_v63 = vld [vmem:[#allocation8 + $0x290] sm:$0xff] }
 0xcce   :  { %8490 = vmatprep.subr.bf16.mxu0 %v8354_v29  ;;  %8576 = vmatprep.subr.bf16.mxu1 %v8356_v31  ;;  %v8409_v1 = vld [vmem:[#allocation8 + $0x2b0] sm:$0xff]  ;;  %v8411_v7 = vld [vmem:[#allocation8 + $0x2c0] sm:$0xff]  ;;  %v8408_v21 = vld [vmem:[#allocation8 + $0x2a8] sm:$0xff] }
 0xccf   :  { %v8410_v23 = vld [vmem:[#allocation8 + $0x2b8] sm:$0xff]  ;;  %v8416_v27 = vld [vmem:[#allocation8 + $0x2e8] sm:$0xff]  ;;  %v8413_v9 = vld [vmem:[#allocation8 + $0x2d0] sm:$0xff] }
 0xcd0   :  { %v8414_v25 = vld [vmem:[#allocation8 + $0x2d8] sm:$0xff]  ;;  %v8415_v29 = vld [vmem:[#allocation8 + $0x2e0] sm:$0xff] }
 0xcd1   :  { %8491 = vmatpush1.bf16.msra.mxu0 %v8353_v3  ;;  %8577 = vmatpush1.bf16.msra.mxu1 %v8355_v37  ;;  %v8419_v31 = vld [vmem:[#allocation8 + $0x300] sm:$0xff]  ;;  %v8421_v3 = vld [vmem:[#allocation8 + $0x310] sm:$0xff]  ;;  %v8418_v37 = vld [vmem:[#allocation8 + $0x2f8] sm:$0xff] }
 0xcd2   :  { %8492 = vmatprep.subr.bf16.mxu0 %v8359_v11  ;;  %8578 = vmatprep.subr.bf16.mxu1 %v8361_v55  ;;  %v8420_v11 = vld [vmem:[#allocation8 + $0x308] sm:$0xff] }
 0xcd3   :  { %v8424_v55 = vld [vmem:[#allocation8 + $0x328] sm:$0xff] }
 0xcd5   :  { %8493 = vmatpush1.bf16.msra.mxu0 %v8358_v33  ;;  %8579 = vmatpush1.bf16.msra.mxu1 %v8360_v53  ;;  %v8426_v33 = vld [vmem:[#allocation8 + $0x338] sm:$0xff]  ;;  %v8423_v53 = vld [vmem:[#allocation8 + $0x320] sm:$0xff] }
 0xcd6   :  { %8494 = vmatprep.subr.bf16.mxu0 %v8364_v60  ;;  %8580 = vmatprep.subr.bf16.mxu1 %v8366_v35  ;;  %v8425_v60 = vld [vmem:[#allocation8 + $0x330] sm:$0xff] }
 0xcd7   :  { %v8429_v35 = vld [vmem:[#allocation8 + $0x350] sm:$0xff] }
 0xcd9   :  { %8495 = vmatpush1.bf16.msra.mxu0 %v8363_v13  ;;  %8581 = vmatpush1.bf16.msra.mxu1 %v8365_v19  ;;  %v8431_v13 = vld [vmem:[#allocation8 + $0x360] sm:$0xff]  ;;  %v8428_v19 = vld [vmem:[#allocation8 + $0x348] sm:$0xff] }
 0xcda   :  { %8496 = vmatprep.subr.bf16.mxu0 %v8369_v8  ;;  %8582 = vmatprep.subr.bf16.mxu1 %v8371_v50  ;;  %v8430_v8 = vld [vmem:[#allocation8 + $0x358] sm:$0xff] }
 0xcdb   :  { %v8434_v50 = vld [vmem:[#allocation8 + $0x378] sm:$0xff] }
 0xcdd   :  { %8497 = vmatpush1.bf16.msra.mxu0 %v8368_v38  ;;  %8583 = vmatpush1.bf16.msra.mxu1 %v8370_v57  ;;  %v8436_v38 = vld [vmem:[#allocation8 + $0x388] sm:$0xff]  ;;  %v8433_v57 = vld [vmem:[#allocation8 + $0x370] sm:$0xff] }
 0xcde   :  { %8498 = vmatprep.subr.bf16.mxu0 %v8374_v41  ;;  %8584 = vmatprep.subr.bf16.mxu1 %v8376_v52  ;;  %v8435_v41 = vld [vmem:[#allocation8 + $0x380] sm:$0xff] }
 0xcdf   :  { %v8439_v52 = vld [vmem:[#allocation8 + $0x3a0] sm:$0xff] }
 0xce1   :  { %8499 = vmatpush1.bf16.msra.mxu0 %v8373_v42  ;;  %8585 = vmatpush1.bf16.msra.mxu1 %v8375_v48  ;;  %v8441_v42 = vld [vmem:[#allocation8 + $0x3b0] sm:$0xff]  ;;  %v8438_v48 = vld [vmem:[#allocation8 + $0x398] sm:$0xff] }
 0xce2   :  { %8500 = vmatprep.subr.bf16.mxu0 %v8379_v49  ;;  %8586 = vmatprep.subr.bf16.mxu1 %v8381_v61  ;;  %v8440_v49 = vld [vmem:[#allocation8 + $0x3a8] sm:$0xff] }
 0xce3   :  { %v8444_v61 = vld [vmem:[#allocation8 + $0x3c8] sm:$0xff] }
 0xce5   :  { %8501 = vmatpush1.bf16.msra.mxu0 %v8378_v39  ;;  %8587 = vmatpush1.bf16.msra.mxu1 %v8380_v44  ;;  %v8446_v39 = vld [vmem:[#allocation8 + $0x3d8] sm:$0xff]  ;;  %v8443_v44 = vld [vmem:[#allocation8 + $0x3c0] sm:$0xff] }
 0xce6   :  { %8502 = vmatprep.subr.bf16.mxu0 %v8384_v5  ;;  %8588 = vmatprep.subr.bf16.mxu1 %v8386_v4  ;;  %v8445_v5 = vld [vmem:[#allocation8 + $0x3d0] sm:$0xff]  ;;  %v8367_v4 = vld [vmem:[#allocation8 + $0x160] sm:$0xff] }
 0xce9   :  { %8503 = vmatpush1.bf16.msra.mxu0 %v8383_v45  ;;  %8589 = vmatpush1.bf16.msra.mxu1 %v8385_v6  ;;  %v8327_v45 = vld [vmem:[#allocation8 + $0x20] sm:$0xff] }
 0xcea   :  { %8504 = vmatprep.subr.bf16.mxu0 %v8389_v10  ;;  %8590 = vmatprep.subr.bf16.mxu1 %v8391_v12  ;;  %v8407_v6 = vld [vmem:[#allocation8 + $0x2a0] sm:$0xff]  ;;  %v8372_v10 = vld [vmem:[#allocation8 + $0x188] sm:$0xff] }
 0xceb   :  { %v8332_v12 = vld [vmem:[#allocation8 + $0x48] sm:$0xff] }
 0xced   :  { %8505 = vmatpush1.bf16.msra.mxu0 %v8388_v14  ;;  %8591 = vmatpush1.bf16.msra.mxu1 %v8390_v16  ;;  %v8412_v14 = vld [vmem:[#allocation8 + $0x2c8] sm:$0xff]  ;;  %v8377_v16 = vld [vmem:[#allocation8 + $0x1b0] sm:$0xff] }
 0xcee   :  { %8506 = vmatprep.subr.bf16.mxu0 %v8394_v62  ;;  %8592 = vmatprep.subr.bf16.mxu1 %v8396_v0  ;;  %v8337_v62 = vld [vmem:[#allocation8 + $0x70] sm:$0xff] }
 0xcef   :  { %v8417_v0 = vld [vmem:[#allocation8 + $0x2f0] sm:$0xff] }
 0xcf1   :  { %8507 = vmatpush1.bf16.msra.mxu0 %v8393_v51  ;;  %8593 = vmatpush1.bf16.msra.mxu1 %v8395_v20  ;;  %v8382_v51 = vld [vmem:[#allocation8 + $0x1d8] sm:$0xff] }
 0xcf2   :  { %8508 = vmatprep.subr.bf16.mxu0 %v8399_v22  ;;  %8594 = vmatprep.subr.bf16.mxu1 %v8401_v24  ;;  %v8342_v20 = vld [vmem:[#allocation8 + $0x98] sm:$0xff]  ;;  %v8387_v24 = vld [vmem:[#allocation8 + $0x200] sm:$0xff] }
 0xcf3   :  { %v8422_v22 = vld [vmem:[#allocation8 + $0x318] sm:$0xff] }
 0xcf5   :  { %8509 = vmatpush1.bf16.msra.mxu0 %v8398_v26  ;;  %8595 = vmatpush1.bf16.msra.mxu1 %v8400_v18  ;;  %v8392_v26 = vld [vmem:[#allocation8 + $0x228] sm:$0xff] }
 0xcf6   :  { %8521 = vmatprep.subr.bf16.mxu0 %v8404_v28  ;;  %8607 = vmatprep.subr.bf16.mxu1 %v8406_v30  ;;  %v8352_v18 = vld [vmem:[#allocation8 + $0xe8] sm:$0xff]  ;;  %v8397_v30 = vld [vmem:[#allocation8 + $0x250] sm:$0xff] }
 0xcf7   :  { %v8432_v28 = vld [vmem:[#allocation8 + $0x368] sm:$0xff] }
 0xcf8   :  { %8511 = vmatmul.mubr.bf16.vlgmr.msra.gmra.mrb[56].mxu0 %v18347_v46  ;;  %8597 = vmatmul.mubr.bf16.vlgmr.msra.gmra.mrb[56].mxu1 %v18347_v46 }
 0xcf9   :  { %8522 = vmatpush1.bf16.msra.mxu0 %v8403_v32  ;;  %8608 = vmatpush1.bf16.msra.mxu1 %v8405_v63  ;;  %v8357_v32 = vld [vmem:[#allocation8 + $0x110] sm:$0xff] }
 0xcfa   :  { %8523 = vmatprep.subr.bf16.mxu0 %v8409_v1  ;;  %8609 = vmatprep.subr.bf16.mxu1 %v8411_v7  ;;  %v8437_v63 = vld [vmem:[#allocation8 + $0x390] sm:$0xff]  ;;  %v8402_v1 = vld [vmem:[#allocation8 + $0x278] sm:$0xff] }
 0xcfb   :  { %13304 = vmatprep.mubr.msk.bf16.mxu0 %vm2410_vm7, %v18355_v43  ;;  %13305 = vmatprep.mubr.msk.bf16.mxu1 %vm2410_vm7, %v18355_v43  ;;  %v8362_v7 = vld [vmem:[#allocation8 + $0x138] sm:$0xff] }
 0xcfd   :  { %8524 = vmatpush1.bf16.msra.mxu0 %v8408_v21  ;;  %8610 = vmatpush1.bf16.msra.mxu1 %v8410_v23  ;;  %v8442_v21 = vld [vmem:[#allocation8 + $0x3b8] sm:$0xff]  ;;  %v8447_v23 = vld [vmem:[#allocation8 + $0x3e0] sm:$0xff] }
 0xcfe   :  { %8525 = vmatprep.subr.bf16.mxu0 %v8414_v25  ;;  %8611 = vmatprep.subr.bf16.mxu1 %v8416_v27  ;;  %v8448_v25 = vld [vmem:[#allocation24] sm:$0x1f] }
 0xcff   :  { %v8453_v27 = vrot.slane %v8448_v25, %v17968_v15 }
 0xd01   :  { %8526 = vmatpush1.bf16.msra.mxu0 %v8413_v9  ;;  %8612 = vmatpush1.bf16.msra.mxu1 %v8415_v29  ;;  %v8461_v9 = vrot.slane %v8448_v25, %v17980_v40  ;;  %v8457_v29 = vrot.slane %v8448_v25, %v17971_v58 }
 0xd02   :  { %8527 = vmatprep.subr.bf16.mxu0 %v8419_v31  ;;  %8613 = vmatprep.subr.bf16.mxu1 %v8421_v3  ;;  %v8465_v31 = vrot.slane %v8448_v25, %v17983_v59 }
 0xd05   :  { %8528 = vmatpush1.bf16.msra.mxu0 %v8418_v37  ;;  %8614 = vmatpush1.bf16.msra.mxu1 %v8420_v11 }
 0xd06   :  { %8529 = vmatprep.subr.bf16.mxu0 %v8424_v55  ;;  %8615 = vmatprep.subr.bf16.mxu1 %v8426_v33 }
 0xd09   :  { %8530 = vmatpush1.bf16.msra.mxu0 %v8423_v53  ;;  %8616 = vmatpush1.bf16.msra.mxu1 %v8425_v60 }
 0xd0a   :  { %8531 = vmatprep.subr.bf16.mxu0 %v8429_v35  ;;  %8617 = vmatprep.subr.bf16.mxu1 %v8431_v13 }
 0xd0d   :  { %8532 = vmatpush1.bf16.msra.mxu0 %v8428_v19  ;;  %8618 = vmatpush1.bf16.msra.mxu1 %v8430_v8 }
 0xd0e   :  { %8533 = vmatprep.subr.bf16.mxu0 %v8434_v50  ;;  %8619 = vmatprep.subr.bf16.mxu1 %v8436_v38 }
 0xd11   :  { %8534 = vmatpush1.bf16.msra.mxu0 %v8433_v57  ;;  %8620 = vmatpush1.bf16.msra.mxu1 %v8435_v41 }
 0xd12   :  { %8535 = vmatprep.subr.bf16.mxu0 %v8439_v52  ;;  %8621 = vmatprep.subr.bf16.mxu1 %v8441_v42 }
 0xd15   :  { %8536 = vmatpush1.bf16.msra.mxu0 %v8438_v48  ;;  %8622 = vmatpush1.bf16.msra.mxu1 %v8440_v49 }
 0xd16   :  { %8537 = vmatprep.subr.bf16.mxu0 %v8444_v61  ;;  %8623 = vmatprep.subr.bf16.mxu1 %v8446_v39 }
 0xd19   :  { %8538 = vmatpush1.bf16.msra.mxu0 %v8443_v44  ;;  %8624 = vmatpush1.bf16.msra.mxu1 %v8445_v5 }
 0xd1a   :  { %13994 = vmatprep.subr.bf16.mxu0 %v8367_v4  ;;  %8691 = vmatprep.subr.bf16.mxu1 %v16269_v36 }
 0xd1c   :  { %8554 = vmatmul.mubr.bf16.vlgmr.msra.gmra.mrb[56].mxu0 %v18353_v2  ;;  %8640 = vmatmul.mubr.bf16.vlgmr.msra.gmra.mrb[56].mxu1 %v18353_v2 }
 0xd1d   :  { %13995 = vmatpush3.bf16.msra.mxu0 %v8327_v45  ;;  %8692 = vmatpush1.bf16.msra.mxu1 %v8407_v6 }
 0xd1e   :  { %13996 = vmatprep.subr.bf16.mxu0 %v8372_v10  ;;  %8693 = vmatprep.subr.bf16.mxu1 %v16269_v36 }
 0xd1f   :  { %8682 = vmatprep.mubr.bf16.mxu0 %v18349_v56  ;;  %13306 = vmatprep.mubr.msk.bf16.mxu1 %vm2410_vm7, %v18355_v43  ;;  %v8347_v56 = vld [vmem:[#allocation8 + $0xc0] sm:$0xff] }
 0xd20   :  { %v8427_v43 = vld [vmem:[#allocation8 + $0x340] sm:$0xff] }
 0xd21   :  { %13997 = vmatpush3.bf16.msra.mxu0 %v8332_v12  ;;  %8694 = vmatpush1.bf16.msra.mxu1 %v8412_v14  ;;  %v8469_v12 = vrot.slane %v8448_v25, %v18028_v47 }
 0xd22   :  { %13998 = vmatprep.subr.bf16.mxu0 %v8377_v16  ;;  %8695 = vmatprep.subr.bf16.mxu1 %v16269_v36 }
 0xd25   :  { %13999 = vmatpush3.bf16.msra.mxu0 %v8337_v62  ;;  %8696 = vmatpush1.bf16.msra.mxu1 %v8417_v0 }
 0xd26   :  { %14000 = vmatprep.subr.bf16.mxu0 %v8382_v51  ;;  %8697 = vmatprep.subr.bf16.mxu1 %v16269_v36 }
 0xd29   :  { %14001 = vmatpush3.bf16.msra.mxu0 %v8342_v20  ;;  %8698 = vmatpush1.bf16.msra.mxu1 %v8422_v22 }
 0xd2a   :  { %14002 = vmatprep.subr.bf16.mxu0 %v8387_v24  ;;  %8699 = vmatprep.subr.bf16.mxu1 %v16269_v36 }
 0xd2d   :  { %14003 = vmatpush3.bf16.msra.mxu0 %v8347_v56  ;;  %8700 = vmatpush1.bf16.msra.mxu1 %v8427_v43 }
 0xd2e   :  { %14004 = vmatprep.subr.bf16.mxu0 %v8392_v26  ;;  %8701 = vmatprep.subr.bf16.mxu1 %v16269_v36 }
 0xd31   :  { %14005 = vmatpush3.bf16.msra.mxu0 %v8352_v18  ;;  %8702 = vmatpush1.bf16.msra.mxu1 %v8432_v28 }
 0xd32   :  { %14006 = vmatprep.subr.bf16.mxu0 %v8397_v30  ;;  %8703 = vmatprep.subr.bf16.mxu1 %v16269_v36 }
 0xd35   :  { %14007 = vmatpush3.bf16.msra.mxu0 %v8357_v32  ;;  %8704 = vmatpush1.bf16.msra.mxu1 %v8437_v63 }
 0xd36   :  { %14008 = vmatprep.subr.bf16.mxu0 %v8402_v1  ;;  %8705 = vmatprep.subr.bf16.mxu1 %v16269_v36 }
 0xd39   :  { %14009 = vmatpush3.bf16.msra.mxu0 %v8362_v7  ;;  %8706 = vmatpush1.bf16.msra.mxu1 %v8442_v21 }
 0xd3a   :  { %8707 = vmatprep.subr.bf16.mxu1 %v16269_v36 }
 0xd3c   :  { %8683 = vmatmul.mubr.bf16.vlgmr.msra.gmra.mrb[60].mxu0 %v18347_v46 }
 0xd3d   :  { %8708 = vmatpush1.bf16.msra.mxu1 %v8447_v23 }
 0xd40   :  { %8724 = vmatmul.mubr.bf16.vlgmr.msra.gmra.mrb[60].mxu1 %v18353_v2 }
 0xdef   :  { %v8555_v3 = vpop.f32.mrb[56].mxu0  ;;  %v8641_v37 = vpop.f32.mrb[56].mxu1 }
 0xdf0   :  { %v14313_v11 = vadd.f32 %v8555_v3, %v8453_v27  ;;  %v14317_v55 = vadd.f32 %v8641_v37, %v8461_v9  ;;  %v8557_v33 = vpop.f32.mrb[57].mxu0  ;;  %v8643_v53 = vpop.f32.mrb[57].mxu1 }
 0xdf1   :  { %v14314_v60 = vadd.f32 %v8557_v33, %v8457_v29  ;;  %v14318_v46 = vadd.f32 %v8643_v53, %v8465_v31  ;;  %v8559_v35 = vpop.f32.mrb[58].mxu0  ;;  %v8645_v13 = vpop.f32.mrb[58].mxu1 }
 0xdf2   :  { %v14315_v2 = vadd.f32 %v8559_v35, %v8453_v27  ;;  %v14319_v19 = vadd.f32 %v8645_v13, %v8461_v9  ;;  %v8561_v8 = vpop.f32.mrb[59].mxu0  ;;  %v8647_v50 = vpop.f32.mrb[59].mxu1  ;;  %v8732_v41 = vmax.f32 %v14313_v11, 0.0  ;;  %v8734_v52 = vmax.f32 %v14317_v55, 0.0 }
 0xdf3   :  { %v14316_v38 = vadd.f32 %v8561_v8, %v8457_v29  ;;  %v14320_v57 = vadd.f32 %v8647_v50, %v8465_v31  ;;  %v8733_v49 = vmax.f32 %v14314_v60, 0.0  ;;  %v8735_v61 = vmax.f32 %v14318_v46, 0.0 }
 0xdf4   :  { %v8737_v42 = vmax.f32 %v14315_v2, 0.0  ;;  %v8739_v48 = vmax.f32 %v14319_v19, 0.0 }
 0xdf5   :  { %v8738_v39 = vmax.f32 %v14316_v38, 0.0  ;;  %v8740_v44 = vmax.f32 %v14320_v57, 0.0 }
 0xdf6   :  { %v18385_v5 = vpack.c.bf16 %v8737_v42, %v8732_v41  ;;  %v18387_v4 = vpack.c.bf16 %v8739_v48, %v8734_v52 }
 0xdf7   :  { %v18389_v45 = vpack.c.bf16 %v8738_v39, %v8733_v49  ;;  %v18391_v6 = vpack.c.bf16 %v8740_v44, %v8735_v61 }
 0xe0f   :  { %v14010_v10 = vpop.f32.mrb[60].mxu0 }
 0xe10   :  { %v14011_v14 = vpop.f32.mrb[61].mxu0 }
 0xe11   :  { %v14012_v16 = vadd.f32 %v14011_v14, %v14010_v10  ;;  %v14013_v62 = vpop.f32.mrb[62].mxu0 }
 0xe12   :  { %v14014_v0 = vpop.f32.mrb[63].mxu0 }
 0xe13   :  { %v14015_v51 = vadd.f32 %v14014_v0, %v14013_v62  ;;  %v8685_v20 = vadd.f32 %v14012_v16, %v8469_v12  ;;  %v8725_v22 = vpop.f32.mrb[60].mxu1 }
 0xe14   :  { %v8727_v24 = vpop.f32.mrb[61].mxu1 }
 0xe15   :  { %v8726_v56 = vadd.f32 %v8725_v22, %v8685_v20  ;;  %v8688_v43 = vadd.f32 %v14015_v51, %v8469_v12  ;;  %v8728_v26 = vpop.f32.mrb[62].mxu1 }
 0xe16   :  { %v8730_v18 = vpop.f32.mrb[63].mxu1 }
 0xe17   :  { %v8729_v28 = vadd.f32 %v8728_v26, %v8688_v43  ;;  %v8736_v30 = vmax.f32 %v8726_v56, 0.0 }
 0xe19   :  { %v8741_v32 = vmax.f32 %v8729_v28, 0.0 }
 0xe1b   :  { %v18394_v63 = vpack.c.bf16 %v8741_v32, %v8736_v30 }
 0xe1c   :  { %16240 = dma.done.wait [#allocation11 + $0x7], 24000 }
 0xe1d   :  { %16241 = vsyncadd [#allocation11 + $0x7], 4294943296  ;;  %10032 = vmatprep.mubr.bf16.mxu0 %v18389_v45  ;;  %10161 = vmatprep.mubr.bf16.mxu1 %v18389_v45  ;;  %v15342_v1 = vld [vmem:[#allocation9 + $0x4] ss:$20 sps:$4 sm:$0xff]   ;;  %v15344_v7 = vld [vmem:[#allocation9 + $0xc] ss:$20 sps:$4 sm:$0xff]  }
 0xe1e   :  { %10000 = vmatprep.subr.bf16.mxu0 %v15342_v1  ;;  %v15346_v21 = vld [vmem:[#allocation9] ss:$20 sps:$4 sm:$0xff]   ;;  %v15347_v23 = vld [vmem:[#allocation9 + $0x8] ss:$20 sps:$4 sm:$0xff]   ;;  %10129 = vmatprep.subr.bf16.mxu1 %v15344_v7  ;;  %v15353_v29 = vld [vmem:[#allocation9 + $0x30] ss:$20 sps:$4 sm:$0xff]  }
 0xe1f   :  { %v15348_v25 = vld [vmem:[#allocation9 + $0x2c] ss:$20 sps:$4 sm:$0xff]   ;;  %10001 = vmatpush1.bf16.msra.mxu0 %v15346_v21  ;;  %10130 = vmatpush1.bf16.msra.mxu1 %v15347_v23  ;;  %v15350_v27 = vld [vmem:[#allocation9 + $0x34] ss:$20 sps:$4 sm:$0xff]   ;;  %v15356_v3 = vld [vmem:[#allocation9 + $0x5c] ss:$20 sps:$4 sm:$0xff]  }
 0xe20   :  { %v15352_v9 = vld [vmem:[#allocation9 + $0x28] ss:$20 sps:$4 sm:$0xff]   ;;  %10002 = vmatprep.subr.bf16.mxu0 %v15348_v25  ;;  %10131 = vmatprep.subr.bf16.mxu1 %v15350_v27  ;;  %v15358_v37 = vld [vmem:[#allocation9 + $0x50] ss:$20 sps:$4 sm:$0xff]   ;;  %v15359_v11 = vld [vmem:[#allocation9 + $0x58] ss:$20 sps:$4 sm:$0xff]  }
 0xe21   :  { %v15354_v31 = vld [vmem:[#allocation9 + $0x54] ss:$20 sps:$4 sm:$0xff]   ;;  %v15360_v55 = vld [vmem:[#allocation9 + $0x7c] ss:$20 sps:$4 sm:$0xff]   ;;  %v15362_v33 = vld [vmem:[#allocation9 + $0x84] ss:$20 sps:$4 sm:$0xff]  }
 0xe22   :  { %v15364_v53 = vld [vmem:[#allocation9 + $0x78] ss:$20 sps:$4 sm:$0xff]   ;;  %v15365_v60 = vld [vmem:[#allocation9 + $0x80] ss:$20 sps:$4 sm:$0xff]   ;;  %v15371_v2 = vld [vmem:[#allocation9 + $0xa8] ss:$20 sps:$4 sm:$0xff]  }
 0xe23   :  { %10003 = vmatpush1.bf16.msra.mxu0 %v15352_v9  ;;  %10132 = vmatpush1.bf16.msra.mxu1 %v15353_v29  ;;  %v15366_v46 = vld [vmem:[#allocation9 + $0xa4] ss:$20 sps:$4 sm:$0xff]   ;;  %v15368_v35 = vld [vmem:[#allocation9 + $0xac] ss:$20 sps:$4 sm:$0xff]   ;;  %v15374_v8 = vld [vmem:[#allocation9 + $0xd4] ss:$20 sps:$4 sm:$0xff]  }
 0xe24   :  { %10004 = vmatprep.subr.bf16.mxu0 %v15354_v31  ;;  %10133 = vmatprep.subr.bf16.mxu1 %v15356_v3  ;;  %v15370_v13 = vld [vmem:[#allocation9 + $0xa0] ss:$20 sps:$4 sm:$0xff]   ;;  %v15376_v50 = vld [vmem:[#allocation9 + $0xc8] ss:$20 sps:$4 sm:$0xff]   ;;  %v15377_v38 = vld [vmem:[#allocation9 + $0xd0] ss:$20 sps:$4 sm:$0xff]  }
 0xe25   :  { %v15372_v19 = vld [vmem:[#allocation9 + $0xcc] ss:$20 sps:$4 sm:$0xff]   ;;  %v15378_v57 = vld [vmem:[#allocation9 + $0xf4] ss:$20 sps:$4 sm:$0xff]   ;;  %v15380_v41 = vld [vmem:[#allocation9 + $0xfc] ss:$20 sps:$4 sm:$0xff]  }
 0xe26   :  { %v15382_v52 = vld [vmem:[#allocation9 + $0xf0] ss:$20 sps:$4 sm:$0xff]   ;;  %v15383_v42 = vld [vmem:[#allocation9 + $0xf8] ss:$20 sps:$4 sm:$0xff]   ;;  %v15389_v39 = vld [vmem:[#allocation9 + $0x120] ss:$20 sps:$4 sm:$0xff]  }
 0xe27   :  { %10005 = vmatpush1.bf16.msra.mxu0 %v15358_v37  ;;  %10134 = vmatpush1.bf16.msra.mxu1 %v15359_v11  ;;  %v15384_v48 = vld [vmem:[#allocation9 + $0x11c] ss:$20 sps:$4 sm:$0xff]   ;;  %v15386_v49 = vld [vmem:[#allocation9 + $0x124] ss:$20 sps:$4 sm:$0xff]   ;;  %v15392_v10 = vld [vmem:[#allocation9 + $0x14c] ss:$20 sps:$4 sm:$0xff]  }
 0xe28   :  { %10006 = vmatprep.subr.bf16.mxu0 %v15360_v55  ;;  %10135 = vmatprep.subr.bf16.mxu1 %v15362_v33  ;;  %v15388_v61 = vld [vmem:[#allocation9 + $0x118] ss:$20 sps:$4 sm:$0xff]   ;;  %v15394_v12 = vld [vmem:[#allocation9 + $0x140] ss:$20 sps:$4 sm:$0xff]   ;;  %v15395_v14 = vld [vmem:[#allocation9 + $0x148] ss:$20 sps:$4 sm:$0xff]  }
 0xe29   :  { %v15390_v44 = vld [vmem:[#allocation9 + $0x144] ss:$20 sps:$4 sm:$0xff]   ;;  %v15396_v16 = vld [vmem:[#allocation9 + $0x16c] ss:$20 sps:$4 sm:$0xff]   ;;  %v15398_v62 = vld [vmem:[#allocation9 + $0x174] ss:$20 sps:$4 sm:$0xff]  }
 0xe2a   :  { %v15400_v0 = vld [vmem:[#allocation9 + $0x168] ss:$20 sps:$4 sm:$0xff]   ;;  %v15401_v51 = vld [vmem:[#allocation9 + $0x170] ss:$20 sps:$4 sm:$0xff]   ;;  %v15407_v56 = vld [vmem:[#allocation9 + $0x198] ss:$20 sps:$4 sm:$0xff]  }
 0xe2b   :  { %10007 = vmatpush1.bf16.msra.mxu0 %v15364_v53  ;;  %10136 = vmatpush1.bf16.msra.mxu1 %v15365_v60  ;;  %v15402_v20 = vld [vmem:[#allocation9 + $0x194] ss:$20 sps:$4 sm:$0xff]   ;;  %v15404_v22 = vld [vmem:[#allocation9 + $0x19c] ss:$20 sps:$4 sm:$0xff]   ;;  %v15410_v26 = vld [vmem:[#allocation9 + $0x1c4] ss:$20 sps:$4 sm:$0xff]  }
 0xe2c   :  { %10008 = vmatprep.subr.bf16.mxu0 %v15366_v46  ;;  %10137 = vmatprep.subr.bf16.mxu1 %v15368_v35  ;;  %v15406_v24 = vld [vmem:[#allocation9 + $0x190] ss:$20 sps:$4 sm:$0xff]   ;;  %v15412_v18 = vld [vmem:[#allocation9 + $0x1b8] ss:$20 sps:$4 sm:$0xff]   ;;  %v15413_v28 = vld [vmem:[#allocation9 + $0x1c0] ss:$20 sps:$4 sm:$0xff]  }
 0xe2d   :  { %v15408_v43 = vld [vmem:[#allocation9 + $0x1bc] ss:$20 sps:$4 sm:$0xff]   ;;  %v15414_v30 = vld [vmem:[#allocation9 + $0x1e4] ss:$20 sps:$4 sm:$0xff]   ;;  %v15416_v32 = vld [vmem:[#allocation9 + $0x1ec] ss:$20 sps:$4 sm:$0xff]  }
 0xe2e   :  { %v15418_v1 = vld [vmem:[#allocation9 + $0x1e0] ss:$20 sps:$4 sm:$0xff]   ;;  %v15419_v7 = vld [vmem:[#allocation9 + $0x1e8] ss:$20 sps:$4 sm:$0xff]   ;;  %v15425_v27 = vld [vmem:[#allocation9 + $0x210] ss:$20 sps:$4 sm:$0xff]  }
 0xe2f   :  { %10009 = vmatpush1.bf16.msra.mxu0 %v15370_v13  ;;  %10138 = vmatpush1.bf16.msra.mxu1 %v15371_v2  ;;  %v15420_v21 = vld [vmem:[#allocation9 + $0x20c] ss:$20 sps:$4 sm:$0xff]   ;;  %v15422_v23 = vld [vmem:[#allocation9 + $0x214] ss:$20 sps:$4 sm:$0xff]   ;;  %v15428_v29 = vld [vmem:[#allocation9 + $0x23c] ss:$20 sps:$4 sm:$0xff]  }
 0xe30   :  { %10010 = vmatprep.subr.bf16.mxu0 %v15372_v19  ;;  %10139 = vmatprep.subr.bf16.mxu1 %v15374_v8  ;;  %v15424_v25 = vld [vmem:[#allocation9 + $0x208] ss:$20 sps:$4 sm:$0xff]   ;;  %v15430_v31 = vld [vmem:[#allocation9 + $0x230] ss:$20 sps:$4 sm:$0xff]   ;;  %v15431_v3 = vld [vmem:[#allocation9 + $0x238] ss:$20 sps:$4 sm:$0xff]  }
 0xe31   :  { %v15426_v9 = vld [vmem:[#allocation9 + $0x234] ss:$20 sps:$4 sm:$0xff]   ;;  %v15432_v37 = vld [vmem:[#allocation9 + $0x25c] ss:$20 sps:$4 sm:$0xff]   ;;  %v15434_v11 = vld [vmem:[#allocation9 + $0x264] ss:$20 sps:$4 sm:$0xff]  }
 0xe32   :  { %v15436_v55 = vld [vmem:[#allocation9 + $0x258] ss:$20 sps:$4 sm:$0xff]   ;;  %v15437_v33 = vld [vmem:[#allocation9 + $0x260] ss:$20 sps:$4 sm:$0xff]   ;;  %v15441_v35 = vld [vmem:[#allocation9 + $0x288] ss:$20 sps:$4 sm:$0xff]  }
 0xe33   :  { %10011 = vmatpush1.bf16.msra.mxu0 %v15376_v50  ;;  %10140 = vmatpush1.bf16.msra.mxu1 %v15377_v38  ;;  %v15440_v53 = vld [vmem:[#allocation9 + $0x284] ss:$20 sps:$4 sm:$0xff]   ;;  %v15443_v60 = vld [vmem:[#allocation9 + $0x28c] ss:$20 sps:$4 sm:$0xff]   ;;  %v15449_v2 = vld [vmem:[#allocation9 + $0x2b4] ss:$20 sps:$4 sm:$0xff]  }
 0xe34   :  { %10012 = vmatprep.subr.bf16.mxu0 %v15378_v57  ;;  %10141 = vmatprep.subr.bf16.mxu1 %v15380_v41  ;;  %v15438_v46 = vld [vmem:[#allocation9 + $0x280] ss:$20 sps:$4 sm:$0xff]   ;;  %v15444_v19 = vld [vmem:[#allocation9 + $0x2a8] ss:$20 sps:$4 sm:$0xff]   ;;  %v15447_v8 = vld [vmem:[#allocation9 + $0x2b0] ss:$20 sps:$4 sm:$0xff]  }
 0xe35   :  { %v15446_v13 = vld [vmem:[#allocation9 + $0x2ac] ss:$20 sps:$4 sm:$0xff]   ;;  %v15452_v50 = vld [vmem:[#allocation9 + $0x2d4] ss:$20 sps:$4 sm:$0xff]   ;;  %v15455_v38 = vld [vmem:[#allocation9 + $0x2dc] ss:$20 sps:$4 sm:$0xff]  }
 0xe36   :  { %v15450_v57 = vld [vmem:[#allocation9 + $0x2d0] ss:$20 sps:$4 sm:$0xff]   ;;  %v15453_v41 = vld [vmem:[#allocation9 + $0x2d8] ss:$20 sps:$4 sm:$0xff]  }
 0xe37   :  { %10013 = vmatpush1.bf16.msra.mxu0 %v15382_v52  ;;  %10142 = vmatpush1.bf16.msra.mxu1 %v15383_v42  ;;  %v15458_v52 = vld [vmem:[#allocation9 + $0x2fc] ss:$20 sps:$4 sm:$0xff]   ;;  %v15461_v42 = vld [vmem:[#allocation9 + $0x304] ss:$20 sps:$4 sm:$0xff]  }
 0xe38   :  { %10014 = vmatprep.subr.bf16.mxu0 %v15384_v48  ;;  %10143 = vmatprep.subr.bf16.mxu1 %v15386_v49  ;;  %v15456_v48 = vld [vmem:[#allocation9 + $0x2f8] ss:$20 sps:$4 sm:$0xff]   ;;  %v15459_v49 = vld [vmem:[#allocation9 + $0x300] ss:$20 sps:$4 sm:$0xff]  }
 0xe3b   :  { %10015 = vmatpush1.bf16.msra.mxu0 %v15388_v61  ;;  %10144 = vmatpush1.bf16.msra.mxu1 %v15389_v39  ;;  %v15464_v61 = vld [vmem:[#allocation9 + $0x324] ss:$20 sps:$4 sm:$0xff]   ;;  %v15467_v39 = vld [vmem:[#allocation9 + $0x32c] ss:$20 sps:$4 sm:$0xff]  }
 0xe3c   :  { %10016 = vmatprep.subr.bf16.mxu0 %v15390_v44  ;;  %10145 = vmatprep.subr.bf16.mxu1 %v15392_v10  ;;  %v15462_v44 = vld [vmem:[#allocation9 + $0x320] ss:$20 sps:$4 sm:$0xff]   ;;  %v15465_v10 = vld [vmem:[#allocation9 + $0x328] ss:$20 sps:$4 sm:$0xff]  }
 0xe3f   :  { %10017 = vmatpush1.bf16.msra.mxu0 %v15394_v12  ;;  %10146 = vmatpush1.bf16.msra.mxu1 %v15395_v14  ;;  %v15470_v12 = vld [vmem:[#allocation9 + $0x34c] ss:$20 sps:$4 sm:$0xff]   ;;  %v15473_v14 = vld [vmem:[#allocation9 + $0x354] ss:$20 sps:$4 sm:$0xff]  }
 0xe40   :  { %10018 = vmatprep.subr.bf16.mxu0 %v15396_v16  ;;  %10147 = vmatprep.subr.bf16.mxu1 %v15398_v62  ;;  %v15468_v16 = vld [vmem:[#allocation9 + $0x348] ss:$20 sps:$4 sm:$0xff]   ;;  %v15471_v62 = vld [vmem:[#allocation9 + $0x350] ss:$20 sps:$4 sm:$0xff]  }
 0xe43   :  { %10019 = vmatpush1.bf16.msra.mxu0 %v15400_v0  ;;  %10148 = vmatpush1.bf16.msra.mxu1 %v15401_v51  ;;  %v15476_v0 = vld [vmem:[#allocation9 + $0x374] ss:$20 sps:$4 sm:$0xff]   ;;  %v15479_v51 = vld [vmem:[#allocation9 + $0x37c] ss:$20 sps:$4 sm:$0xff]  }
 0xe44   :  { %10020 = vmatprep.subr.bf16.mxu0 %v15402_v20  ;;  %10149 = vmatprep.subr.bf16.mxu1 %v15404_v22  ;;  %v15474_v20 = vld [vmem:[#allocation9 + $0x370] ss:$20 sps:$4 sm:$0xff]   ;;  %v15477_v22 = vld [vmem:[#allocation9 + $0x378] ss:$20 sps:$4 sm:$0xff]  }
 0xe47   :  { %10021 = vmatpush1.bf16.msra.mxu0 %v15406_v24  ;;  %10150 = vmatpush1.bf16.msra.mxu1 %v15407_v56  ;;  %v15482_v24 = vld [vmem:[#allocation9 + $0x39c] ss:$20 sps:$4 sm:$0xff]   ;;  %v15485_v56 = vld [vmem:[#allocation9 + $0x3a4] ss:$20 sps:$4 sm:$0xff]  }
 0xe48   :  { %10022 = vmatprep.subr.bf16.mxu0 %v15408_v43  ;;  %10151 = vmatprep.subr.bf16.mxu1 %v15410_v26  ;;  %v15480_v43 = vld [vmem:[#allocation9 + $0x398] ss:$20 sps:$4 sm:$0xff]   ;;  %v15483_v26 = vld [vmem:[#allocation9 + $0x3a0] ss:$20 sps:$4 sm:$0xff]  }
 0xe4b   :  { %10023 = vmatpush1.bf16.msra.mxu0 %v15412_v18  ;;  %10152 = vmatpush1.bf16.msra.mxu1 %v15413_v28  ;;  %v15488_v18 = vld [vmem:[#allocation9 + $0x3c4] ss:$20 sps:$4 sm:$0xff]   ;;  %v15491_v28 = vld [vmem:[#allocation9 + $0x3cc] ss:$20 sps:$4 sm:$0xff]  }
 0xe4c   :  { %10024 = vmatprep.subr.bf16.mxu0 %v15414_v30  ;;  %10153 = vmatprep.subr.bf16.mxu1 %v15416_v32  ;;  %v15486_v30 = vld [vmem:[#allocation9 + $0x3c0] ss:$20 sps:$4 sm:$0xff]   ;;  %v15489_v32 = vld [vmem:[#allocation9 + $0x3c8] ss:$20 sps:$4 sm:$0xff]  }
 0xe4f   :  { %10025 = vmatpush1.bf16.msra.mxu0 %v15418_v1  ;;  %10154 = vmatpush1.bf16.msra.mxu1 %v15419_v7  ;;  %v15494_v1 = vld [vmem:[#allocation9 + $0x3ec] ss:$20 sps:$4 sm:$0xff]   ;;  %v15497_v7 = vld [vmem:[#allocation9 + $0x3f4] ss:$20 sps:$4 sm:$0xff]  }
 0xe50   :  { %10026 = vmatprep.subr.bf16.mxu0 %v15420_v21  ;;  %10155 = vmatprep.subr.bf16.mxu1 %v15422_v23  ;;  %v15492_v21 = vld [vmem:[#allocation9 + $0x3e8] ss:$20 sps:$4 sm:$0xff]   ;;  %v15495_v23 = vld [vmem:[#allocation9 + $0x3f0] ss:$20 sps:$4 sm:$0xff]  }
 0xe53   :  { %10027 = vmatpush1.bf16.msra.mxu0 %v15424_v25  ;;  %10156 = vmatpush1.bf16.msra.mxu1 %v15425_v27  ;;  %v15500_v25 = vld [vmem:[#allocation9 + $0x414] ss:$20 sps:$4 sm:$0xff]   ;;  %v15503_v27 = vld [vmem:[#allocation9 + $0x41c] ss:$20 sps:$4 sm:$0xff]  }
 0xe54   :  { %10028 = vmatprep.subr.bf16.mxu0 %v15426_v9  ;;  %10157 = vmatprep.subr.bf16.mxu1 %v15428_v29  ;;  %v15498_v9 = vld [vmem:[#allocation9 + $0x410] ss:$20 sps:$4 sm:$0xff]   ;;  %v15501_v29 = vld [vmem:[#allocation9 + $0x418] ss:$20 sps:$4 sm:$0xff]  }
 0xe57   :  { %10029 = vmatpush1.bf16.msra.mxu0 %v15430_v31  ;;  %10158 = vmatpush1.bf16.msra.mxu1 %v15431_v3  ;;  %v15506_v31 = vld [vmem:[#allocation9 + $0x43c] ss:$20 sps:$4 sm:$0xff]   ;;  %v15509_v3 = vld [vmem:[#allocation9 + $0x444] ss:$20 sps:$4 sm:$0xff]  }
 0xe58   :  { %10030 = vmatprep.subr.bf16.mxu0 %v15432_v37  ;;  %10159 = vmatprep.subr.bf16.mxu1 %v15434_v11  ;;  %v15504_v37 = vld [vmem:[#allocation9 + $0x438] ss:$20 sps:$4 sm:$0xff]   ;;  %v15507_v11 = vld [vmem:[#allocation9 + $0x440] ss:$20 sps:$4 sm:$0xff]  }
 0xe5b   :  { %10031 = vmatpush1.bf16.msra.mxu0 %v15436_v55  ;;  %10160 = vmatpush1.bf16.msra.mxu1 %v15437_v33  ;;  %v15512_v55 = vld [vmem:[#allocation9 + $0x464] ss:$20 sps:$4 sm:$0xff]   ;;  %v15515_v33 = vld [vmem:[#allocation9 + $0x46c] ss:$20 sps:$4 sm:$0xff]  }
 0xe5c   :  { %10043 = vmatprep.subr.bf16.mxu0 %v15440_v53  ;;  %10172 = vmatprep.subr.bf16.mxu1 %v15443_v60  ;;  %v15510_v53 = vld [vmem:[#allocation9 + $0x460] ss:$20 sps:$4 sm:$0xff]   ;;  %v15513_v60 = vld [vmem:[#allocation9 + $0x468] ss:$20 sps:$4 sm:$0xff]  }
 0xe5e   :  { %10033 = vmatmul.mubr.bf16.vlgmr.msra.gmra.mrb[64].mxu0 %v18385_v5  ;;  %10162 = vmatmul.mubr.bf16.vlgmr.msra.gmra.mrb[64].mxu1 %v18385_v5 }
 0xe5f   :  { %10044 = vmatpush1.bf16.msra.mxu0 %v15438_v46  ;;  %10173 = vmatpush1.bf16.msra.mxu1 %v15441_v35  ;;  %v15518_v46 = vld [vmem:[#allocation9 + $0x48c] ss:$20 sps:$4 sm:$0xff]   ;;  %v15521_v35 = vld [vmem:[#allocation9 + $0x494] ss:$20 sps:$4 sm:$0xff]  }
 0xe60   :  { %10045 = vmatprep.subr.bf16.mxu0 %v15446_v13  ;;  %10174 = vmatprep.subr.bf16.mxu1 %v15449_v2  ;;  %v15516_v13 = vld [vmem:[#allocation9 + $0x488] ss:$20 sps:$4 sm:$0xff]   ;;  %v15519_v2 = vld [vmem:[#allocation9 + $0x490] ss:$20 sps:$4 sm:$0xff]  }
 0xe61   :  { %10075 = vmatprep.mubr.bf16.mxu0 %v18391_v6  ;;  %10204 = vmatprep.mubr.bf16.mxu1 %v18391_v6 }
 0xe63   :  { %10046 = vmatpush1.bf16.msra.mxu0 %v15444_v19  ;;  %10175 = vmatpush1.bf16.msra.mxu1 %v15447_v8  ;;  %v15524_v19 = vld [vmem:[#allocation9 + $0x4b4] ss:$20 sps:$4 sm:$0xff]   ;;  %v15527_v8 = vld [vmem:[#allocation9 + $0x4bc] ss:$20 sps:$4 sm:$0xff]  }
 0xe64   :  { %10047 = vmatprep.subr.bf16.mxu0 %v15452_v50  ;;  %10176 = vmatprep.subr.bf16.mxu1 %v15455_v38  ;;  %v15522_v50 = vld [vmem:[#allocation9 + $0x4b0] ss:$20 sps:$4 sm:$0xff]   ;;  %v15525_v38 = vld [vmem:[#allocation9 + $0x4b8] ss:$20 sps:$4 sm:$0xff]  }
 0xe67   :  { %10048 = vmatpush1.bf16.msra.mxu0 %v15450_v57  ;;  %10177 = vmatpush1.bf16.msra.mxu1 %v15453_v41  ;;  %v15530_v57 = vld [vmem:[#allocation9 + $0x4dc] ss:$20 sps:$4 sm:$0xff]   ;;  %v15533_v41 = vld [vmem:[#allocation9 + $0x4e4] ss:$20 sps:$4 sm:$0xff]  }
 0xe68   :  { %10049 = vmatprep.subr.bf16.mxu0 %v15458_v52  ;;  %10178 = vmatprep.subr.bf16.mxu1 %v15461_v42  ;;  %v15528_v52 = vld [vmem:[#allocation9 + $0x4d8] ss:$20 sps:$4 sm:$0xff]   ;;  %v15531_v42 = vld [vmem:[#allocation9 + $0x4e0] ss:$20 sps:$4 sm:$0xff]  }
 0xe6b   :  { %10050 = vmatpush1.bf16.msra.mxu0 %v15456_v48  ;;  %10179 = vmatpush1.bf16.msra.mxu1 %v15459_v49  ;;  %v15536_v48 = vld [vmem:[#allocation9 + $0x504] ss:$20 sps:$4 sm:$0xff]   ;;  %v15539_v49 = vld [vmem:[#allocation9 + $0x50c] ss:$20 sps:$4 sm:$0xff]  }
 0xe6c   :  { %10051 = vmatprep.subr.bf16.mxu0 %v15464_v61  ;;  %10180 = vmatprep.subr.bf16.mxu1 %v15467_v39  ;;  %v15534_v61 = vld [vmem:[#allocation9 + $0x500] ss:$20 sps:$4 sm:$0xff]   ;;  %v15537_v39 = vld [vmem:[#allocation9 + $0x508] ss:$20 sps:$4 sm:$0xff]  }
 0xe6f   :  { %10052 = vmatpush1.bf16.msra.mxu0 %v15462_v44  ;;  %10181 = vmatpush1.bf16.msra.mxu1 %v15465_v10  ;;  %v15542_v44 = vld [vmem:[#allocation9 + $0x52c] ss:$20 sps:$4 sm:$0xff]   ;;  %v15545_v10 = vld [vmem:[#allocation9 + $0x534] ss:$20 sps:$4 sm:$0xff]  }
 0xe70   :  { %10053 = vmatprep.subr.bf16.mxu0 %v15470_v12  ;;  %10182 = vmatprep.subr.bf16.mxu1 %v15473_v14  ;;  %v15540_v12 = vld [vmem:[#allocation9 + $0x528] ss:$20 sps:$4 sm:$0xff]   ;;  %v15543_v14 = vld [vmem:[#allocation9 + $0x530] ss:$20 sps:$4 sm:$0xff]  }
 0xe73   :  { %10054 = vmatpush1.bf16.msra.mxu0 %v15468_v16  ;;  %10183 = vmatpush1.bf16.msra.mxu1 %v15471_v62  ;;  %v15548_v16 = vld [vmem:[#allocation9 + $0x554] ss:$20 sps:$4 sm:$0xff]   ;;  %v15551_v62 = vld [vmem:[#allocation9 + $0x55c] ss:$20 sps:$4 sm:$0xff]  }
 0xe74   :  { %10055 = vmatprep.subr.bf16.mxu0 %v15476_v0  ;;  %10184 = vmatprep.subr.bf16.mxu1 %v15479_v51  ;;  %v15546_v0 = vld [vmem:[#allocation9 + $0x550] ss:$20 sps:$4 sm:$0xff]   ;;  %v15549_v51 = vld [vmem:[#allocation9 + $0x558] ss:$20 sps:$4 sm:$0xff]  }
 0xe77   :  { %10056 = vmatpush1.bf16.msra.mxu0 %v15474_v20  ;;  %10185 = vmatpush1.bf16.msra.mxu1 %v15477_v22  ;;  %v15554_v20 = vld [vmem:[#allocation9 + $0x57c] ss:$20 sps:$4 sm:$0xff]   ;;  %v15557_v22 = vld [vmem:[#allocation9 + $0x584] ss:$20 sps:$4 sm:$0xff]  }
 0xe78   :  { %10057 = vmatprep.subr.bf16.mxu0 %v15482_v24  ;;  %10186 = vmatprep.subr.bf16.mxu1 %v15485_v56  ;;  %v15552_v24 = vld [vmem:[#allocation9 + $0x578] ss:$20 sps:$4 sm:$0xff]   ;;  %v15555_v56 = vld [vmem:[#allocation9 + $0x580] ss:$20 sps:$4 sm:$0xff]  }
 0xe7b   :  { %10058 = vmatpush1.bf16.msra.mxu0 %v15480_v43  ;;  %10187 = vmatpush1.bf16.msra.mxu1 %v15483_v26  ;;  %v15560_v43 = vld [vmem:[#allocation9 + $0x5a4] ss:$20 sps:$4 sm:$0xff]   ;;  %v15563_v26 = vld [vmem:[#allocation9 + $0x5ac] ss:$20 sps:$4 sm:$0xff]  }
 0xe7c   :  { %10059 = vmatprep.subr.bf16.mxu0 %v15488_v18  ;;  %10188 = vmatprep.subr.bf16.mxu1 %v15491_v28  ;;  %v8977_v18 = vld [vmem:[#allocation9 + $0x5c8] sm:$0xff]  ;;  %v8978_v28 = vld [vmem:[#allocation9 + $0x5d0] sm:$0xff] }
 0xe7f   :  { %10060 = vmatpush1.bf16.msra.mxu0 %v15486_v30  ;;  %10189 = vmatpush1.bf16.msra.mxu1 %v15489_v32  ;;  %v15558_v30 = vld [vmem:[#allocation9 + $0x5a0] ss:$20 sps:$4 sm:$0xff]   ;;  %v15561_v32 = vld [vmem:[#allocation9 + $0x5a8] ss:$20 sps:$4 sm:$0xff]  }
 0xe80   :  { %10061 = vmatprep.subr.bf16.mxu0 %v15494_v1  ;;  %10190 = vmatprep.subr.bf16.mxu1 %v15497_v7  ;;  %v13493_v1 = vcombine.high %v8977_v18, %v8977_v18  ;;  %v13495_v7 = vcombine.high %v8978_v28, %v8978_v28 }
 0xe83   :  { %10062 = vmatpush1.bf16.msra.mxu0 %v15492_v21  ;;  %10191 = vmatpush1.bf16.msra.mxu1 %v15495_v23  ;;  %v13492_v21 = vcombine.low %v8977_v18, %v8977_v18  ;;  %v13494_v23 = vcombine.low %v8978_v28, %v8978_v28 }
 0xe84   :  { %10063 = vmatprep.subr.bf16.mxu0 %v15500_v25  ;;  %10192 = vmatprep.subr.bf16.mxu1 %v15503_v27 }
 0xe85   :  { %v9986_v25 = vsel %vm2139_vm8, %v13492_v21, 0  ;;  %v9992_v27 = vsel %vm2139_vm8, %v13494_v23, 0 }
 0xe87   :  { %10064 = vmatpush1.bf16.msra.mxu0 %v15498_v9  ;;  %10193 = vmatpush1.bf16.msra.mxu1 %v15501_v29  ;;  %v15568_v9 = vld [vmem:[#allocation9 + $0x150] ss:$20 sps:$4 sm:$0xff]  }
 0xe88   :  { %10065 = vmatprep.subr.bf16.mxu0 %v15506_v31  ;;  %10194 = vmatprep.subr.bf16.mxu1 %v15509_v3  ;;  %v15570_v29 = vld [vmem:[#allocation9 + $0x3d0] ss:$20 sps:$4 sm:$0xff]  }
 0xe89   :  { %v15569_v31 = vld [vmem:[#allocation9 + $0x10] ss:$20 sps:$4 sm:$0xff]  }
 0xe8a   :  { %v15571_v3 = vld [vmem:[#allocation9 + $0x290] ss:$20 sps:$4 sm:$0xff]  }
 0xe8b   :  { %10066 = vmatpush1.bf16.msra.mxu0 %v15504_v37  ;;  %10195 = vmatpush1.bf16.msra.mxu1 %v15507_v11  ;;  %v15572_v37 = vld [vmem:[#allocation9 + $0x178] ss:$20 sps:$4 sm:$0xff]  }
 0xe8c   :  { %10067 = vmatprep.subr.bf16.mxu0 %v15512_v55  ;;  %10196 = vmatprep.subr.bf16.mxu1 %v15515_v33  ;;  %v15574_v11 = vld [vmem:[#allocation9 + $0x3f8] ss:$20 sps:$4 sm:$0xff]  }
 0xe8d   :  { %v15573_v55 = vld [vmem:[#allocation9 + $0x38] ss:$20 sps:$4 sm:$0xff]  }
 0xe8e   :  { %v15575_v33 = vld [vmem:[#allocation9 + $0x2b8] ss:$20 sps:$4 sm:$0xff]  }
 0xe8f   :  { %10068 = vmatpush1.bf16.msra.mxu0 %v15510_v53  ;;  %10197 = vmatpush1.bf16.msra.mxu1 %v15513_v60  ;;  %v15576_v53 = vld [vmem:[#allocation9 + $0x1a0] ss:$20 sps:$4 sm:$0xff]  }
 0xe90   :  { %10069 = vmatprep.subr.bf16.mxu0 %v15518_v46  ;;  %10198 = vmatprep.subr.bf16.mxu1 %v15521_v35  ;;  %v15578_v60 = vld [vmem:[#allocation9 + $0x420] ss:$20 sps:$4 sm:$0xff]  }
 0xe91   :  { %v15577_v46 = vld [vmem:[#allocation9 + $0x60] ss:$20 sps:$4 sm:$0xff]  }
 0xe92   :  { %v15579_v35 = vld [vmem:[#allocation9 + $0x2e0] ss:$20 sps:$4 sm:$0xff]  }
 0xe93   :  { %10070 = vmatpush1.bf16.msra.mxu0 %v15516_v13  ;;  %10199 = vmatpush1.bf16.msra.mxu1 %v15519_v2  ;;  %v15580_v13 = vld [vmem:[#allocation9 + $0x1c8] ss:$20 sps:$4 sm:$0xff]  }
 0xe94   :  { %10071 = vmatprep.subr.bf16.mxu0 %v15524_v19  ;;  %10200 = vmatprep.subr.bf16.mxu1 %v15527_v8  ;;  %v15582_v2 = vld [vmem:[#allocation9 + $0x448] ss:$20 sps:$4 sm:$0xff]  }
 0xe95   :  { %v15581_v19 = vld [vmem:[#allocation9 + $0x88] ss:$20 sps:$4 sm:$0xff]  }
 0xe96   :  { %v15583_v8 = vld [vmem:[#allocation9 + $0x308] ss:$20 sps:$4 sm:$0xff]  }
 0xe97   :  { %10072 = vmatpush1.bf16.msra.mxu0 %v15522_v50  ;;  %10201 = vmatpush1.bf16.msra.mxu1 %v15525_v38  ;;  %v15584_v50 = vld [vmem:[#allocation9 + $0x1f0] ss:$20 sps:$4 sm:$0xff]  }
 0xe98   :  { %10073 = vmatprep.subr.bf16.mxu0 %v15530_v57  ;;  %10202 = vmatprep.subr.bf16.mxu1 %v15533_v41  ;;  %v15586_v38 = vld [vmem:[#allocation9 + $0x470] ss:$20 sps:$4 sm:$0xff]   ;;  %v15588_v57 = vld [vmem:[#allocation9 + $0x218] ss:$20 sps:$4 sm:$0xff]  }
 0xe99   :  { %v15590_v41 = vld [vmem:[#allocation9 + $0x498] ss:$20 sps:$4 sm:$0xff]  }
 0xe9b   :  { %10074 = vmatpush1.bf16.msra.mxu0 %v15528_v52  ;;  %10203 = vmatpush1.bf16.msra.mxu1 %v15531_v42  ;;  %v15589_v52 = vld [vmem:[#allocation9 + $0xd8] ss:$20 sps:$4 sm:$0xff]  }
 0xe9c   :  { %10086 = vmatprep.subr.bf16.mxu0 %v15536_v48  ;;  %10215 = vmatprep.subr.bf16.mxu1 %v15539_v49  ;;  %v15591_v42 = vld [vmem:[#allocation9 + $0x358] ss:$20 sps:$4 sm:$0xff]   ;;  %v15592_v48 = vld [vmem:[#allocation9 + $0x240] ss:$20 sps:$4 sm:$0xff]  }
 0xe9d   :  { %v15594_v49 = vld [vmem:[#allocation9 + $0x4c0] ss:$20 sps:$4 sm:$0xff]  }
 0xe9e   :  { %10076 = vmatmul.mubr.bf16.vlgmr.msra.gmra.mrb[64].mxu0 %v18387_v4  ;;  %10205 = vmatmul.mubr.bf16.vlgmr.msra.gmra.mrb[64].mxu1 %v18387_v4 }
 0xe9f   :  { %10087 = vmatpush1.bf16.msra.mxu0 %v15534_v61  ;;  %10216 = vmatpush1.bf16.msra.mxu1 %v15537_v39  ;;  %v15593_v61 = vld [vmem:[#allocation9 + $0x100] ss:$20 sps:$4 sm:$0xff]  }
 0xea0   :  { %10088 = vmatprep.subr.bf16.mxu0 %v15542_v44  ;;  %10217 = vmatprep.subr.bf16.mxu1 %v15545_v10  ;;  %v15595_v39 = vld [vmem:[#allocation9 + $0x380] ss:$20 sps:$4 sm:$0xff]   ;;  %v15596_v44 = vld [vmem:[#allocation9 + $0x268] ss:$20 sps:$4 sm:$0xff]  }
 0xea1   :  { %10118 = vmatprep.mubr.bf16.mxu0 %v16269_v36  ;;  %10247 = vmatprep.mubr.bf16.mxu1 %v16269_v36  ;;  %v15598_v10 = vld [vmem:[#allocation9 + $0x4e8] ss:$20 sps:$4 sm:$0xff]  }
 0xea3   :  { %10089 = vmatpush1.bf16.msra.mxu0 %v15540_v12  ;;  %10218 = vmatpush1.bf16.msra.mxu1 %v15543_v14  ;;  %v15597_v12 = vld [vmem:[#allocation9 + $0x128] ss:$20 sps:$4 sm:$0xff]  }
 0xea4   :  { %10090 = vmatprep.subr.bf16.mxu0 %v15548_v16  ;;  %10219 = vmatprep.subr.bf16.mxu1 %v15551_v62  ;;  %v15599_v14 = vld [vmem:[#allocation9 + $0x3a8] ss:$20 sps:$4 sm:$0xff]   ;;  %v15600_v16 = vld [vmem:[#allocation9 + $0x510] ss:$20 sps:$4 sm:$0xff]   ;;  %v15601_v62 = vld [vmem:[#allocation9 + $0x538] ss:$20 sps:$4 sm:$0xff]  }
 0xea7   :  { %10091 = vmatpush1.bf16.msra.mxu0 %v15546_v0  ;;  %10220 = vmatpush1.bf16.msra.mxu1 %v15549_v51  ;;  %v15602_v0 = vld [vmem:[#allocation9 + $0x560] ss:$20 sps:$4 sm:$0xff]   ;;  %v15603_v51 = vld [vmem:[#allocation9 + $0x588] ss:$20 sps:$4 sm:$0xff]  }
 0xea8   :  { %10092 = vmatprep.subr.bf16.mxu0 %v15554_v20  ;;  %10221 = vmatprep.subr.bf16.mxu1 %v15557_v22  ;;  %v15604_v20 = vld [vmem:[#allocation9 + $0x5b0] ss:$20 sps:$4 sm:$0xff]  }
 0xea9   :  { %v8980_v22 = vld [vmem:[#allocation25] sm:$0x1f] }
 0xeab   :  { %10093 = vmatpush1.bf16.msra.mxu0 %v15552_v24  ;;  %10222 = vmatpush1.bf16.msra.mxu1 %v15555_v56  ;;  %v8985_v24 = vrot.slane %v8980_v22, %v17968_v15  ;;  %v8993_v56 = vrot.slane %v8980_v22, %v17980_v40 }
 0xeac   :  { %10094 = vmatprep.subr.bf16.mxu0 %v15560_v43  ;;  %10223 = vmatprep.subr.bf16.mxu1 %v15563_v26  ;;  %v8989_v43 = vrot.slane %v8980_v22, %v17971_v58  ;;  %v8997_v26 = vrot.slane %v8980_v22, %v17983_v59 }
 0xeaf   :  { %10095 = vmatpush1.bf16.msra.mxu0 %v15558_v30  ;;  %10224 = vmatpush1.bf16.msra.mxu1 %v15561_v32 }
 0xeb0   :  { %13497 = vmatprep.subr.msk.bf16.mxu0 %vm2139_vm8, %v13493_v1  ;;  %13499 = vmatprep.subr.msk.bf16.mxu1 %vm2139_vm8, %v13495_v7 }
 0xeb3   :  { %10097 = vmatpush1.bf16.msra.mxu0 %v9986_v25  ;;  %10226 = vmatpush1.bf16.msra.mxu1 %v9992_v27 }
 0xeb4   :  { %14016 = vmatprep.subr.bf16.mxu0 %v15568_v9  ;;  %14038 = vmatprep.subr.bf16.mxu1 %v15570_v29 }
 0xeb6   :  { %13498 = vmatmul.mubr.msk.bf16.vlgmr.msra.gmra.mrb[64].mxu0 %vm3918_vm10, %v18394_v63  ;;  %13500 = vmatmul.mubr.msk.bf16.vlgmr.msra.gmra.mrb[64].mxu1 %vm3918_vm10, %v18394_v63 }
 0xeb7   :  { %14017 = vmatpush3.bf16.msra.mxu0 %v15569_v31  ;;  %14039 = vmatpush3.bf16.msra.mxu1 %v15571_v3 }
 0xeb8   :  { %14018 = vmatprep.subr.bf16.mxu0 %v15572_v37  ;;  %14040 = vmatprep.subr.bf16.mxu1 %v15574_v11 }
 0xeb9   :  { %10290 = vmatprep.mubr.bf16.mxu0 %v18389_v45  ;;  %10331 = vmatprep.mubr.bf16.mxu1 %v18391_v6  ;;  %v15585_v45 = vld [vmem:[#allocation9 + $0xb0] ss:$20 sps:$4 sm:$0xff]  }
 0xeba   :  { %v15587_v6 = vld [vmem:[#allocation9 + $0x330] ss:$20 sps:$4 sm:$0xff]  }
 0xebb   :  { %14019 = vmatpush3.bf16.msra.mxu0 %v15573_v55  ;;  %14041 = vmatpush3.bf16.msra.mxu1 %v15575_v33 }
 0xebc   :  { %14020 = vmatprep.subr.bf16.mxu0 %v15576_v53  ;;  %14042 = vmatprep.subr.bf16.mxu1 %v15578_v60 }
 0xebf   :  { %14021 = vmatpush3.bf16.msra.mxu0 %v15577_v46  ;;  %14043 = vmatpush3.bf16.msra.mxu1 %v15579_v35 }
 0xec0   :  { %14022 = vmatprep.subr.bf16.mxu0 %v15580_v13  ;;  %14044 = vmatprep.subr.bf16.mxu1 %v15582_v2 }
 0xec3   :  { %14023 = vmatpush3.bf16.msra.mxu0 %v15581_v19  ;;  %14045 = vmatpush3.bf16.msra.mxu1 %v15583_v8 }
 0xec4   :  { %14024 = vmatprep.subr.bf16.mxu0 %v15584_v50  ;;  %14046 = vmatprep.subr.bf16.mxu1 %v15586_v38 }
 0xec7   :  { %14025 = vmatpush3.bf16.msra.mxu0 %v15585_v45  ;;  %14047 = vmatpush3.bf16.msra.mxu1 %v15587_v6  ;;  %v9001_v45 = vrot.slane %v8980_v22, %v18028_v47 }
 0xec8   :  { %14026 = vmatprep.subr.bf16.mxu0 %v15588_v57  ;;  %14048 = vmatprep.subr.bf16.mxu1 %v15590_v41 }
 0xecb   :  { %14027 = vmatpush3.bf16.msra.mxu0 %v15589_v52  ;;  %14049 = vmatpush3.bf16.msra.mxu1 %v15591_v42 }
 0xecc   :  { %14028 = vmatprep.subr.bf16.mxu0 %v15592_v48  ;;  %14050 = vmatprep.subr.bf16.mxu1 %v15594_v49 }
 0xecf   :  { %14029 = vmatpush3.bf16.msra.mxu0 %v15593_v61  ;;  %14051 = vmatpush3.bf16.msra.mxu1 %v15595_v39 }
 0xed0   :  { %14030 = vmatprep.subr.bf16.mxu0 %v15596_v44  ;;  %14052 = vmatprep.subr.bf16.mxu1 %v15598_v10 }
 0xed3   :  { %14031 = vmatpush3.bf16.msra.mxu0 %v15597_v12  ;;  %14053 = vmatpush3.bf16.msra.mxu1 %v15599_v14 }
 0xed4   :  { %14233 = vmatprep.subr.bf16.mxu0 %v16277_v54 }
 0xed6   :  { %10291 = vmatmul.mubr.bf16.vlgmr.msra.gmra.mrb[68].mxu0 %v18385_v5  ;;  %10332 = vmatmul.mubr.bf16.vlgmr.msra.gmra.mrb[68].mxu1 %v18387_v4  ;;  %v15605_v5 = vld [vmem:[#allocation9 + $0x5d8] ss:$0 sps:$4 sm:$0xff]  }
 0xed7   :  { %14234 = vmatpush3.bf16.msra.mxu0 %v15600_v16  ;;  %14245 = vmatprep.mubr.msk.bf16.mxu0 %vm16278_vm12, %v16277_v54  ;;  %v9998_v4 = vsel %vm2139_vm8, %v15605_v5, 0 }
 0xed8   :  { %14235 = vmatprep.subr.bf16.mxu0 %v16277_v54 }
 0xedb   :  { %14236 = vmatpush3.bf16.msra.mxu0 %v15601_v62 }
 0xedc   :  { %14237 = vmatprep.subr.bf16.mxu0 %v16277_v54 }
 0xedf   :  { %14238 = vmatpush3.bf16.msra.mxu0 %v15602_v0 }
 0xee0   :  { %14239 = vmatprep.subr.bf16.mxu0 %v16277_v54 }
 0xee3   :  { %14240 = vmatpush3.bf16.msra.mxu0 %v15603_v51 }
 0xee4   :  { %14241 = vmatprep.subr.bf16.mxu0 %v16277_v54 }
 0xee7   :  { %14242 = vmatpush3.bf16.msra.mxu0 %v15604_v20 }
 0xee8   :  { %14243 = vmatprep.subr.bf16.mxu0 %v16277_v54 }
 0xeeb   :  { %14244 = vmatpush3.bf16.msra.mxu0 %v9998_v4 }
 0xeee   :  { %14246 = vmatmul.mubr.msk.bf16.vlgmr.msra.gmra.mrb[72].mxu0 %vm3918_vm10, %v18394_v63 }
 0xf89   :  { %v10120_v18 = vpop.f32.mrb[64].mxu0  ;;  %v10249_v28 = vpop.f32.mrb[64].mxu1 }
 0xf8a   :  { %v14321_v30 = vadd.f32 %v10120_v18, %v8985_v24  ;;  %v14325_v32 = vadd.f32 %v10249_v28, %v8993_v56  ;;  %v10122_v1 = vpop.f32.mrb[65].mxu0  ;;  %v10251_v7 = vpop.f32.mrb[65].mxu1 }
 0xf8b   :  { %v14322_v21 = vadd.f32 %v10122_v1, %v8989_v43  ;;  %v14326_v23 = vadd.f32 %v10251_v7, %v8997_v26  ;;  %v10124_v25 = vpop.f32.mrb[66].mxu0  ;;  %v10253_v27 = vpop.f32.mrb[66].mxu1 }
 0xf8c   :  { %v14323_v63 = vadd.f32 %v10124_v25, %v8985_v24  ;;  %v14327_v9 = vadd.f32 %v10253_v27, %v8993_v56  ;;  %v10126_v29 = vpop.f32.mrb[67].mxu0  ;;  %v10255_v31 = vpop.f32.mrb[67].mxu1  ;;  %v10381_v11 = vmax.f32 %v14321_v30, 0.0  ;;  %v10383_v55 = vmax.f32 %v14325_v32, 0.0 }
 0xf8d   :  { %v14324_v3 = vadd.f32 %v10126_v29, %v8989_v43  ;;  %v14328_v37 = vadd.f32 %v10255_v31, %v8997_v26  ;;  %v10382_v60 = vmax.f32 %v14322_v21, 0.0  ;;  %v10384_v46 = vmax.f32 %v14326_v23, 0.0 }
 0xf8e   :  { %v10386_v33 = vmax.f32 %v14323_v63, 0.0  ;;  %v10388_v53 = vmax.f32 %v14327_v9, 0.0 }
 0xf8f   :  { %v10387_v35 = vmax.f32 %v14324_v3, 0.0  ;;  %v10389_v13 = vmax.f32 %v14328_v37, 0.0 }
 0xf90   :  { %v18433_v2 = vpack.c.bf16 %v10386_v33, %v10381_v11  ;;  %v18435_v19 = vpack.c.bf16 %v10388_v53, %v10383_v55 }
 0xf91   :  { %v18437_v8 = vpack.c.bf16 %v10387_v35, %v10382_v60  ;;  %v18439_v50 = vpack.c.bf16 %v10389_v13, %v10384_v46 }
 0xfa9   :  { %v14032_v38 = vpop.f32.mrb[68].mxu0  ;;  %v14054_v6 = vpop.f32.mrb[68].mxu1 }
 0xfaa   :  { %v14033_v57 = vpop.f32.mrb[69].mxu0  ;;  %v14055_v41 = vpop.f32.mrb[69].mxu1 }
 0xfab   :  { %v14034_v52 = vadd.f32 %v14033_v57, %v14032_v38  ;;  %v14035_v42 = vpop.f32.mrb[70].mxu0  ;;  %v14056_v48 = vadd.f32 %v14055_v41, %v14054_v6  ;;  %v14057_v49 = vpop.f32.mrb[70].mxu1 }
 0xfac   :  { %v14036_v61 = vpop.f32.mrb[71].mxu0  ;;  %v14058_v39 = vpop.f32.mrb[71].mxu1 }
 0xfad   :  { %v10293_v44 = vadd.f32 %v14034_v52, %v9001_v45  ;;  %v14037_v10 = vadd.f32 %v14036_v61, %v14035_v42  ;;  %v14059_v12 = vadd.f32 %v14058_v39, %v14057_v49 }
 0xfaf   :  { %v10296_v14 = vadd.f32 %v14037_v10, %v9001_v45  ;;  %v10334_v16 = vadd.f32 %v14056_v48, %v10293_v44 }
 0xfb1   :  { %v10337_v62 = vadd.f32 %v14059_v12, %v10296_v14 }
 0xfc1   :  { %v10374_v0 = vpop.f32.mrb[72].mxu0 }
 0xfc2   :  { %v10375_v51 = vadd.f32 %v10374_v0, %v10334_v16  ;;  %v14247_v20 = vpop.f32.mrb[73].mxu0 }
 0xfc3   :  { %v10377_v5 = vpop.f32.mrb[74].mxu0 }
 0xfc4   :  { %v10378_v4 = vadd.f32 %v10377_v5, %v10337_v62  ;;  %v14248_v22 = vpop.f32.mrb[75].mxu0  ;;  %v10385_v24 = vmax.f32 %v10375_v51, 0.0 }
 0xfc6   :  { %v10390_v56 = vmax.f32 %v10378_v4, 0.0 }
 0xfc8   :  { %v18442_v43 = vpack.c.bf16 %v10390_v56, %v10385_v24 }
 0xfc9   :  { %16242 = dma.done.wait [#allocation11 + $0x8], 24000 }
 0xfca   :  { %16243 = vsyncadd [#allocation11 + $0x8], 4294943296  ;;  %11681 = vmatprep.mubr.bf16.mxu1 %v18437_v8  ;;  %11810 = vmatprep.mubr.bf16.mxu0 %v18437_v8  ;;  %v15606_v26 = vld [vmem:[#allocation10 + $0x4] ss:$20 sps:$4 sm:$0xff]   ;;  %v15608_v18 = vld [vmem:[#allocation10 + $0xc] ss:$20 sps:$4 sm:$0xff]  }
 0xfcb   :  { %11649 = vmatprep.subr.bf16.mxu1 %v15606_v26  ;;  %v15610_v28 = vld [vmem:[#allocation10] ss:$20 sps:$4 sm:$0xff]   ;;  %v15611_v30 = vld [vmem:[#allocation10 + $0x8] ss:$20 sps:$4 sm:$0xff]   ;;  %11778 = vmatprep.subr.bf16.mxu0 %v15608_v18  ;;  %v15617_v21 = vld [vmem:[#allocation10 + $0x30] ss:$20 sps:$4 sm:$0xff]  }
 0xfcc   :  { %v15612_v32 = vld [vmem:[#allocation10 + $0x2c] ss:$20 sps:$4 sm:$0xff]   ;;  %11650 = vmatpush1.bf16.msra.mxu1 %v15610_v28  ;;  %11779 = vmatpush1.bf16.msra.mxu0 %v15611_v30  ;;  %v15614_v1 = vld [vmem:[#allocation10 + $0x34] ss:$20 sps:$4 sm:$0xff]   ;;  %v15620_v25 = vld [vmem:[#allocation10 + $0x5c] ss:$20 sps:$4 sm:$0xff]  }
 0xfcd   :  { %v15616_v7 = vld [vmem:[#allocation10 + $0x28] ss:$20 sps:$4 sm:$0xff]   ;;  %11651 = vmatprep.subr.bf16.mxu1 %v15612_v32  ;;  %11780 = vmatprep.subr.bf16.mxu0 %v15614_v1  ;;  %v15622_v27 = vld [vmem:[#allocation10 + $0x50] ss:$20 sps:$4 sm:$0xff]   ;;  %v15623_v63 = vld [vmem:[#allocation10 + $0x58] ss:$20 sps:$4 sm:$0xff]  }
 0xfce   :  { %v15618_v23 = vld [vmem:[#allocation10 + $0x54] ss:$20 sps:$4 sm:$0xff]   ;;  %v15624_v9 = vld [vmem:[#allocation10 + $0x7c] ss:$20 sps:$4 sm:$0xff]   ;;  %v15626_v29 = vld [vmem:[#allocation10 + $0x84] ss:$20 sps:$4 sm:$0xff]  }
 0xfcf   :  { %v15628_v31 = vld [vmem:[#allocation10 + $0x78] ss:$20 sps:$4 sm:$0xff]   ;;  %v15629_v3 = vld [vmem:[#allocation10 + $0x80] ss:$20 sps:$4 sm:$0xff]   ;;  %v15635_v33 = vld [vmem:[#allocation10 + $0xa8] ss:$20 sps:$4 sm:$0xff]  }
 0xfd0   :  { %11652 = vmatpush1.bf16.msra.mxu1 %v15616_v7  ;;  %11781 = vmatpush1.bf16.msra.mxu0 %v15617_v21  ;;  %v15630_v37 = vld [vmem:[#allocation10 + $0xa4] ss:$20 sps:$4 sm:$0xff]   ;;  %v15632_v11 = vld [vmem:[#allocation10 + $0xac] ss:$20 sps:$4 sm:$0xff]   ;;  %v15638_v60 = vld [vmem:[#allocation10 + $0xd4] ss:$20 sps:$4 sm:$0xff]  }
 0xfd1   :  { %11653 = vmatprep.subr.bf16.mxu1 %v15618_v23  ;;  %11782 = vmatprep.subr.bf16.mxu0 %v15620_v25  ;;  %v15634_v55 = vld [vmem:[#allocation10 + $0xa0] ss:$20 sps:$4 sm:$0xff]   ;;  %v15640_v46 = vld [vmem:[#allocation10 + $0xc8] ss:$20 sps:$4 sm:$0xff]   ;;  %v15641_v35 = vld [vmem:[#allocation10 + $0xd0] ss:$20 sps:$4 sm:$0xff]  }
 0xfd2   :  { %v15636_v53 = vld [vmem:[#allocation10 + $0xcc] ss:$20 sps:$4 sm:$0xff]   ;;  %v15642_v13 = vld [vmem:[#allocation10 + $0xf4] ss:$20 sps:$4 sm:$0xff]   ;;  %v15644_v38 = vld [vmem:[#allocation10 + $0xfc] ss:$20 sps:$4 sm:$0xff]  }
 0xfd3   :  { %v15646_v45 = vld [vmem:[#allocation10 + $0xf0] ss:$20 sps:$4 sm:$0xff]   ;;  %v15647_v6 = vld [vmem:[#allocation10 + $0xf8] ss:$20 sps:$4 sm:$0xff]   ;;  %v15653_v42 = vld [vmem:[#allocation10 + $0x120] ss:$20 sps:$4 sm:$0xff]  }
 0xfd4   :  { %11654 = vmatpush1.bf16.msra.mxu1 %v15622_v27  ;;  %11783 = vmatpush1.bf16.msra.mxu0 %v15623_v63  ;;  %v15648_v57 = vld [vmem:[#allocation10 + $0x11c] ss:$20 sps:$4 sm:$0xff]   ;;  %v15650_v41 = vld [vmem:[#allocation10 + $0x124] ss:$20 sps:$4 sm:$0xff]   ;;  %v15656_v49 = vld [vmem:[#allocation10 + $0x14c] ss:$20 sps:$4 sm:$0xff]  }
 0xfd5   :  { %11655 = vmatprep.subr.bf16.mxu1 %v15624_v9  ;;  %11784 = vmatprep.subr.bf16.mxu0 %v15626_v29  ;;  %v15652_v52 = vld [vmem:[#allocation10 + $0x118] ss:$20 sps:$4 sm:$0xff]   ;;  %v15658_v61 = vld [vmem:[#allocation10 + $0x140] ss:$20 sps:$4 sm:$0xff]   ;;  %v15659_v39 = vld [vmem:[#allocation10 + $0x148] ss:$20 sps:$4 sm:$0xff]  }
 0xfd6   :  { %v15654_v48 = vld [vmem:[#allocation10 + $0x144] ss:$20 sps:$4 sm:$0xff]   ;;  %v15660_v44 = vld [vmem:[#allocation10 + $0x16c] ss:$20 sps:$4 sm:$0xff]   ;;  %v15662_v10 = vld [vmem:[#allocation10 + $0x174] ss:$20 sps:$4 sm:$0xff]  }
 0xfd7   :  { %v15664_v12 = vld [vmem:[#allocation10 + $0x168] ss:$20 sps:$4 sm:$0xff]   ;;  %v15665_v14 = vld [vmem:[#allocation10 + $0x170] ss:$20 sps:$4 sm:$0xff]   ;;  %v15671_v51 = vld [vmem:[#allocation10 + $0x198] ss:$20 sps:$4 sm:$0xff]  }
 0xfd8   :  { %11656 = vmatpush1.bf16.msra.mxu1 %v15628_v31  ;;  %11785 = vmatpush1.bf16.msra.mxu0 %v15629_v3  ;;  %v15666_v16 = vld [vmem:[#allocation10 + $0x194] ss:$20 sps:$4 sm:$0xff]   ;;  %v15668_v62 = vld [vmem:[#allocation10 + $0x19c] ss:$20 sps:$4 sm:$0xff]   ;;  %v15674_v5 = vld [vmem:[#allocation10 + $0x1c4] ss:$20 sps:$4 sm:$0xff]  }
 0xfd9   :  { %11657 = vmatprep.subr.bf16.mxu1 %v15630_v37  ;;  %11786 = vmatprep.subr.bf16.mxu0 %v15632_v11  ;;  %v15670_v0 = vld [vmem:[#allocation10 + $0x190] ss:$20 sps:$4 sm:$0xff]   ;;  %v15676_v4 = vld [vmem:[#allocation10 + $0x1b8] ss:$20 sps:$4 sm:$0xff]   ;;  %v15677_v22 = vld [vmem:[#allocation10 + $0x1c0] ss:$20 sps:$4 sm:$0xff]  }
 0xfda   :  { %v15672_v20 = vld [vmem:[#allocation10 + $0x1bc] ss:$20 sps:$4 sm:$0xff]   ;;  %v15678_v24 = vld [vmem:[#allocation10 + $0x1e4] ss:$20 sps:$4 sm:$0xff]   ;;  %v15680_v56 = vld [vmem:[#allocation10 + $0x1ec] ss:$20 sps:$4 sm:$0xff]  }
 0xfdb   :  { %v15682_v26 = vld [vmem:[#allocation10 + $0x1e0] ss:$20 sps:$4 sm:$0xff]   ;;  %v15683_v18 = vld [vmem:[#allocation10 + $0x1e8] ss:$20 sps:$4 sm:$0xff]   ;;  %v15689_v1 = vld [vmem:[#allocation10 + $0x210] ss:$20 sps:$4 sm:$0xff]  }
 0xfdc   :  { %11658 = vmatpush1.bf16.msra.mxu1 %v15634_v55  ;;  %11787 = vmatpush1.bf16.msra.mxu0 %v15635_v33  ;;  %v15684_v28 = vld [vmem:[#allocation10 + $0x20c] ss:$20 sps:$4 sm:$0xff]   ;;  %v15686_v30 = vld [vmem:[#allocation10 + $0x214] ss:$20 sps:$4 sm:$0xff]   ;;  %v15692_v21 = vld [vmem:[#allocation10 + $0x23c] ss:$20 sps:$4 sm:$0xff]  }
 0xfdd   :  { %11659 = vmatprep.subr.bf16.mxu1 %v15636_v53  ;;  %11788 = vmatprep.subr.bf16.mxu0 %v15638_v60  ;;  %v15688_v32 = vld [vmem:[#allocation10 + $0x208] ss:$20 sps:$4 sm:$0xff]   ;;  %v15694_v23 = vld [vmem:[#allocation10 + $0x230] ss:$20 sps:$4 sm:$0xff]   ;;  %v15695_v25 = vld [vmem:[#allocation10 + $0x238] ss:$20 sps:$4 sm:$0xff]  }
 0xfde   :  { %v15690_v7 = vld [vmem:[#allocation10 + $0x234] ss:$20 sps:$4 sm:$0xff]   ;;  %v15696_v27 = vld [vmem:[#allocation10 + $0x25c] ss:$20 sps:$4 sm:$0xff]   ;;  %v15698_v63 = vld [vmem:[#allocation10 + $0x264] ss:$20 sps:$4 sm:$0xff]  }
 0xfdf   :  { %v15700_v9 = vld [vmem:[#allocation10 + $0x258] ss:$20 sps:$4 sm:$0xff]   ;;  %v15701_v29 = vld [vmem:[#allocation10 + $0x260] ss:$20 sps:$4 sm:$0xff]   ;;  %v15705_v11 = vld [vmem:[#allocation10 + $0x288] ss:$20 sps:$4 sm:$0xff]  }
 0xfe0   :  { %11660 = vmatpush1.bf16.msra.mxu1 %v15640_v46  ;;  %11789 = vmatpush1.bf16.msra.mxu0 %v15641_v35  ;;  %v15704_v31 = vld [vmem:[#allocation10 + $0x284] ss:$20 sps:$4 sm:$0xff]   ;;  %v15707_v3 = vld [vmem:[#allocation10 + $0x28c] ss:$20 sps:$4 sm:$0xff]   ;;  %v15713_v33 = vld [vmem:[#allocation10 + $0x2b4] ss:$20 sps:$4 sm:$0xff]  }
 0xfe1   :  { %11661 = vmatprep.subr.bf16.mxu1 %v15642_v13  ;;  %11790 = vmatprep.subr.bf16.mxu0 %v15644_v38  ;;  %v15702_v37 = vld [vmem:[#allocation10 + $0x280] ss:$20 sps:$4 sm:$0xff]   ;;  %v15708_v53 = vld [vmem:[#allocation10 + $0x2a8] ss:$20 sps:$4 sm:$0xff]   ;;  %v15711_v60 = vld [vmem:[#allocation10 + $0x2b0] ss:$20 sps:$4 sm:$0xff]  }
 0xfe2   :  { %v15710_v55 = vld [vmem:[#allocation10 + $0x2ac] ss:$20 sps:$4 sm:$0xff]   ;;  %v15716_v46 = vld [vmem:[#allocation10 + $0x2d4] ss:$20 sps:$4 sm:$0xff]   ;;  %v15719_v35 = vld [vmem:[#allocation10 + $0x2dc] ss:$20 sps:$4 sm:$0xff]  }
 0xfe3   :  { %v15714_v13 = vld [vmem:[#allocation10 + $0x2d0] ss:$20 sps:$4 sm:$0xff]   ;;  %v15717_v38 = vld [vmem:[#allocation10 + $0x2d8] ss:$20 sps:$4 sm:$0xff]   ;;  %vm12481_vm1 = vcmask 7168   ;;  %s16279_s30 = smov 1  }
 0xfe4   :  { %11662 = vmatpush1.bf16.msra.mxu1 %v15646_v45  ;;  %11791 = vmatpush1.bf16.msra.mxu0 %v15647_v6  ;;  %v15722_v45 = vld [vmem:[#allocation10 + $0x2fc] ss:$20 sps:$4 sm:$0xff]   ;;  %v15725_v6 = vld [vmem:[#allocation10 + $0x304] ss:$20 sps:$4 sm:$0xff]   ;;  %12482 = vst.msk [vmem:[%s18643_s24] sm:$0xff] %vm12481_vm1, %v18291_v17  ;;  %12483 = vst.msk [vmem:[%s18643_s24 + $0x8] sm:$0xff] %vm12481_vm1, %v18293_v34 }
 0xfe5   :  { %11663 = vmatprep.subr.bf16.mxu1 %v15648_v57  ;;  %11792 = vmatprep.subr.bf16.mxu0 %v15650_v41  ;;  %v15720_v57 = vld [vmem:[#allocation10 + $0x2f8] ss:$20 sps:$4 sm:$0xff]   ;;  %v15723_v41 = vld [vmem:[#allocation10 + $0x300] ss:$20 sps:$4 sm:$0xff]   ;;  %vm12492_vm14 = vcmask 15368  }
 0xfe8   :  { %11664 = vmatpush1.bf16.msra.mxu1 %v15652_v52  ;;  %11793 = vmatpush1.bf16.msra.mxu0 %v15653_v42  ;;  %v15728_v52 = vld [vmem:[#allocation10 + $0x324] ss:$20 sps:$4 sm:$0xff]   ;;  %v15731_v42 = vld [vmem:[#allocation10 + $0x32c] ss:$20 sps:$4 sm:$0xff]  }
 0xfe9   :  { %11665 = vmatprep.subr.bf16.mxu1 %v15654_v48  ;;  %11794 = vmatprep.subr.bf16.mxu0 %v15656_v49  ;;  %v15726_v48 = vld [vmem:[#allocation10 + $0x320] ss:$20 sps:$4 sm:$0xff]   ;;  %v15729_v49 = vld [vmem:[#allocation10 + $0x328] ss:$20 sps:$4 sm:$0xff]  }
 0xfec   :  { %11666 = vmatpush1.bf16.msra.mxu1 %v15658_v61  ;;  %11795 = vmatpush1.bf16.msra.mxu0 %v15659_v39  ;;  %v15734_v61 = vld [vmem:[#allocation10 + $0x34c] ss:$20 sps:$4 sm:$0xff]   ;;  %v15737_v39 = vld [vmem:[#allocation10 + $0x354] ss:$20 sps:$4 sm:$0xff]  }
 0xfed   :  { %11667 = vmatprep.subr.bf16.mxu1 %v15660_v44  ;;  %11796 = vmatprep.subr.bf16.mxu0 %v15662_v10  ;;  %v15732_v44 = vld [vmem:[#allocation10 + $0x348] ss:$20 sps:$4 sm:$0xff]   ;;  %v15735_v10 = vld [vmem:[#allocation10 + $0x350] ss:$20 sps:$4 sm:$0xff]  }
 0xff0   :  { %11668 = vmatpush1.bf16.msra.mxu1 %v15664_v12  ;;  %11797 = vmatpush1.bf16.msra.mxu0 %v15665_v14  ;;  %v15740_v12 = vld [vmem:[#allocation10 + $0x374] ss:$20 sps:$4 sm:$0xff]   ;;  %v15743_v14 = vld [vmem:[#allocation10 + $0x37c] ss:$20 sps:$4 sm:$0xff]  }
 0xff1   :  { %11669 = vmatprep.subr.bf16.mxu1 %v15666_v16  ;;  %11798 = vmatprep.subr.bf16.mxu0 %v15668_v62  ;;  %v15738_v16 = vld [vmem:[#allocation10 + $0x370] ss:$20 sps:$4 sm:$0xff]   ;;  %v15741_v62 = vld [vmem:[#allocation10 + $0x378] ss:$20 sps:$4 sm:$0xff]  }
 0xff4   :  { %11670 = vmatpush1.bf16.msra.mxu1 %v15670_v0  ;;  %11799 = vmatpush1.bf16.msra.mxu0 %v15671_v51  ;;  %v15746_v0 = vld [vmem:[#allocation10 + $0x39c] ss:$20 sps:$4 sm:$0xff]   ;;  %v15749_v51 = vld [vmem:[#allocation10 + $0x3a4] ss:$20 sps:$4 sm:$0xff]  }
 0xff5   :  { %11671 = vmatprep.subr.bf16.mxu1 %v15672_v20  ;;  %11800 = vmatprep.subr.bf16.mxu0 %v15674_v5  ;;  %v15744_v20 = vld [vmem:[#allocation10 + $0x398] ss:$20 sps:$4 sm:$0xff]   ;;  %v15747_v5 = vld [vmem:[#allocation10 + $0x3a0] ss:$20 sps:$4 sm:$0xff]  }
 0xff8   :  { %11672 = vmatpush1.bf16.msra.mxu1 %v15676_v4  ;;  %11801 = vmatpush1.bf16.msra.mxu0 %v15677_v22  ;;  %v15752_v4 = vld [vmem:[#allocation10 + $0x3c4] ss:$20 sps:$4 sm:$0xff]   ;;  %v15755_v22 = vld [vmem:[#allocation10 + $0x3cc] ss:$20 sps:$4 sm:$0xff]  }
 0xff9   :  { %11673 = vmatprep.subr.bf16.mxu1 %v15678_v24  ;;  %11802 = vmatprep.subr.bf16.mxu0 %v15680_v56  ;;  %v15750_v24 = vld [vmem:[#allocation10 + $0x3c0] ss:$20 sps:$4 sm:$0xff]   ;;  %v15753_v56 = vld [vmem:[#allocation10 + $0x3c8] ss:$20 sps:$4 sm:$0xff]  }
 0xffc   :  { %11674 = vmatpush1.bf16.msra.mxu1 %v15682_v26  ;;  %11803 = vmatpush1.bf16.msra.mxu0 %v15683_v18  ;;  %v15758_v26 = vld [vmem:[#allocation10 + $0x3ec] ss:$20 sps:$4 sm:$0xff]   ;;  %v15761_v18 = vld [vmem:[#allocation10 + $0x3f4] ss:$20 sps:$4 sm:$0xff]  }
 0xffd   :  { %11675 = vmatprep.subr.bf16.mxu1 %v15684_v28  ;;  %11804 = vmatprep.subr.bf16.mxu0 %v15686_v30  ;;  %v15756_v28 = vld [vmem:[#allocation10 + $0x3e8] ss:$20 sps:$4 sm:$0xff]   ;;  %v15759_v30 = vld [vmem:[#allocation10 + $0x3f0] ss:$20 sps:$4 sm:$0xff]  }
0x1000   :  { %11676 = vmatpush1.bf16.msra.mxu1 %v15688_v32  ;;  %11805 = vmatpush1.bf16.msra.mxu0 %v15689_v1  ;;  %v15764_v32 = vld [vmem:[#allocation10 + $0x414] ss:$20 sps:$4 sm:$0xff]   ;;  %v15767_v1 = vld [vmem:[#allocation10 + $0x41c] ss:$20 sps:$4 sm:$0xff]  }
0x1001   :  { %11677 = vmatprep.subr.bf16.mxu1 %v15690_v7  ;;  %11806 = vmatprep.subr.bf16.mxu0 %v15692_v21  ;;  %v15762_v7 = vld [vmem:[#allocation10 + $0x410] ss:$20 sps:$4 sm:$0xff]   ;;  %v15765_v21 = vld [vmem:[#allocation10 + $0x418] ss:$20 sps:$4 sm:$0xff]  }
0x1004   :  { %11678 = vmatpush1.bf16.msra.mxu1 %v15694_v23  ;;  %11807 = vmatpush1.bf16.msra.mxu0 %v15695_v25  ;;  %v15770_v23 = vld [vmem:[#allocation10 + $0x43c] ss:$20 sps:$4 sm:$0xff]   ;;  %v15773_v25 = vld [vmem:[#allocation10 + $0x444] ss:$20 sps:$4 sm:$0xff]  }
0x1005   :  { %11679 = vmatprep.subr.bf16.mxu1 %v15696_v27  ;;  %11808 = vmatprep.subr.bf16.mxu0 %v15698_v63  ;;  %v15768_v27 = vld [vmem:[#allocation10 + $0x438] ss:$20 sps:$4 sm:$0xff]   ;;  %v15771_v63 = vld [vmem:[#allocation10 + $0x440] ss:$20 sps:$4 sm:$0xff]  }
0x1008   :  { %11680 = vmatpush1.bf16.msra.mxu1 %v15700_v9  ;;  %11809 = vmatpush1.bf16.msra.mxu0 %v15701_v29  ;;  %v15776_v9 = vld [vmem:[#allocation10 + $0x464] ss:$20 sps:$4 sm:$0xff]   ;;  %v15779_v29 = vld [vmem:[#allocation10 + $0x46c] ss:$20 sps:$4 sm:$0xff]  }
0x1009   :  { %11692 = vmatprep.subr.bf16.mxu1 %v15704_v31  ;;  %11821 = vmatprep.subr.bf16.mxu0 %v15707_v3  ;;  %v15774_v31 = vld [vmem:[#allocation10 + $0x460] ss:$20 sps:$4 sm:$0xff]   ;;  %v15777_v3 = vld [vmem:[#allocation10 + $0x468] ss:$20 sps:$4 sm:$0xff]  }
0x100b   :  { %11682 = vmatmul.mubr.bf16.vlgmr.msra.gmra.mrb[72].mxu1 %v18433_v2  ;;  %11811 = vmatmul.mubr.bf16.vlgmr.msra.gmra.mrb[76].mxu0 %v18433_v2 }
0x100c   :  { %11693 = vmatpush1.bf16.msra.mxu1 %v15702_v37  ;;  %11822 = vmatpush1.bf16.msra.mxu0 %v15705_v11  ;;  %v15782_v37 = vld [vmem:[#allocation10 + $0x48c] ss:$20 sps:$4 sm:$0xff]   ;;  %v15785_v11 = vld [vmem:[#allocation10 + $0x494] ss:$20 sps:$4 sm:$0xff]  }
0x100d   :  { %11694 = vmatprep.subr.bf16.mxu1 %v15710_v55  ;;  %11823 = vmatprep.subr.bf16.mxu0 %v15713_v33  ;;  %v15780_v55 = vld [vmem:[#allocation10 + $0x488] ss:$20 sps:$4 sm:$0xff]   ;;  %v15783_v33 = vld [vmem:[#allocation10 + $0x490] ss:$20 sps:$4 sm:$0xff]  }
0x100e   :  { %11724 = vmatprep.mubr.bf16.mxu1 %v18439_v50  ;;  %11853 = vmatprep.mubr.bf16.mxu0 %v18439_v50 }
0x1010   :  { %11695 = vmatpush1.bf16.msra.mxu1 %v15708_v53  ;;  %11824 = vmatpush1.bf16.msra.mxu0 %v15711_v60  ;;  %v15788_v53 = vld [vmem:[#allocation10 + $0x4b4] ss:$20 sps:$4 sm:$0xff]   ;;  %v15791_v60 = vld [vmem:[#allocation10 + $0x4bc] ss:$20 sps:$4 sm:$0xff]  }
0x1011   :  { %11696 = vmatprep.subr.bf16.mxu1 %v15716_v46  ;;  %11825 = vmatprep.subr.bf16.mxu0 %v15719_v35  ;;  %v15786_v46 = vld [vmem:[#allocation10 + $0x4b0] ss:$20 sps:$4 sm:$0xff]   ;;  %v15789_v35 = vld [vmem:[#allocation10 + $0x4b8] ss:$20 sps:$4 sm:$0xff]  }
0x1014   :  { %11697 = vmatpush1.bf16.msra.mxu1 %v15714_v13  ;;  %11826 = vmatpush1.bf16.msra.mxu0 %v15717_v38  ;;  %v15794_v13 = vld [vmem:[#allocation10 + $0x4dc] ss:$20 sps:$4 sm:$0xff]   ;;  %v15797_v38 = vld [vmem:[#allocation10 + $0x4e4] ss:$20 sps:$4 sm:$0xff]  }
0x1015   :  { %11698 = vmatprep.subr.bf16.mxu1 %v15722_v45  ;;  %11827 = vmatprep.subr.bf16.mxu0 %v15725_v6  ;;  %v15792_v45 = vld [vmem:[#allocation10 + $0x4d8] ss:$20 sps:$4 sm:$0xff]   ;;  %v15795_v6 = vld [vmem:[#allocation10 + $0x4e0] ss:$20 sps:$4 sm:$0xff]  }
0x1018   :  { %11699 = vmatpush1.bf16.msra.mxu1 %v15720_v57  ;;  %11828 = vmatpush1.bf16.msra.mxu0 %v15723_v41  ;;  %v15800_v57 = vld [vmem:[#allocation10 + $0x504] ss:$20 sps:$4 sm:$0xff]   ;;  %v15803_v41 = vld [vmem:[#allocation10 + $0x50c] ss:$20 sps:$4 sm:$0xff]  }
0x1019   :  { %11700 = vmatprep.subr.bf16.mxu1 %v15728_v52  ;;  %11829 = vmatprep.subr.bf16.mxu0 %v15731_v42  ;;  %v15798_v52 = vld [vmem:[#allocation10 + $0x500] ss:$20 sps:$4 sm:$0xff]   ;;  %v15801_v42 = vld [vmem:[#allocation10 + $0x508] ss:$20 sps:$4 sm:$0xff]  }
0x101c   :  { %11701 = vmatpush1.bf16.msra.mxu1 %v15726_v48  ;;  %11830 = vmatpush1.bf16.msra.mxu0 %v15729_v49  ;;  %v15806_v48 = vld [vmem:[#allocation10 + $0x52c] ss:$20 sps:$4 sm:$0xff]   ;;  %v15809_v49 = vld [vmem:[#allocation10 + $0x534] ss:$20 sps:$4 sm:$0xff]  }
0x101d   :  { %11702 = vmatprep.subr.bf16.mxu1 %v15734_v61  ;;  %11831 = vmatprep.subr.bf16.mxu0 %v15737_v39  ;;  %v15804_v61 = vld [vmem:[#allocation10 + $0x528] ss:$20 sps:$4 sm:$0xff]   ;;  %v15807_v39 = vld [vmem:[#allocation10 + $0x530] ss:$20 sps:$4 sm:$0xff]  }
0x1020   :  { %11703 = vmatpush1.bf16.msra.mxu1 %v15732_v44  ;;  %11832 = vmatpush1.bf16.msra.mxu0 %v15735_v10  ;;  %v15812_v44 = vld [vmem:[#allocation10 + $0x554] ss:$20 sps:$4 sm:$0xff]   ;;  %v15815_v10 = vld [vmem:[#allocation10 + $0x55c] ss:$20 sps:$4 sm:$0xff]  }
0x1021   :  { %11704 = vmatprep.subr.bf16.mxu1 %v15740_v12  ;;  %11833 = vmatprep.subr.bf16.mxu0 %v15743_v14  ;;  %v15810_v12 = vld [vmem:[#allocation10 + $0x550] ss:$20 sps:$4 sm:$0xff]   ;;  %v15813_v14 = vld [vmem:[#allocation10 + $0x558] ss:$20 sps:$4 sm:$0xff]  }
0x1024   :  { %11705 = vmatpush1.bf16.msra.mxu1 %v15738_v16  ;;  %11834 = vmatpush1.bf16.msra.mxu0 %v15741_v62  ;;  %v15818_v16 = vld [vmem:[#allocation10 + $0x57c] ss:$20 sps:$4 sm:$0xff]   ;;  %v15821_v62 = vld [vmem:[#allocation10 + $0x584] ss:$20 sps:$4 sm:$0xff]  }
0x1025   :  { %11706 = vmatprep.subr.bf16.mxu1 %v15746_v0  ;;  %11835 = vmatprep.subr.bf16.mxu0 %v15749_v51  ;;  %v15816_v0 = vld [vmem:[#allocation10 + $0x578] ss:$20 sps:$4 sm:$0xff]   ;;  %v15819_v51 = vld [vmem:[#allocation10 + $0x580] ss:$20 sps:$4 sm:$0xff]  }
0x1028   :  { %11707 = vmatpush1.bf16.msra.mxu1 %v15744_v20  ;;  %11836 = vmatpush1.bf16.msra.mxu0 %v15747_v5  ;;  %v15824_v20 = vld [vmem:[#allocation10 + $0x5a4] ss:$20 sps:$4 sm:$0xff]   ;;  %v15827_v5 = vld [vmem:[#allocation10 + $0x5ac] ss:$20 sps:$4 sm:$0xff]  }
0x1029   :  { %11708 = vmatprep.subr.bf16.mxu1 %v15752_v4  ;;  %11837 = vmatprep.subr.bf16.mxu0 %v15755_v22  ;;  %v10626_v4 = vld [vmem:[#allocation10 + $0x5c8] sm:$0xff]  ;;  %v10627_v22 = vld [vmem:[#allocation10 + $0x5d0] sm:$0xff] }
0x102c   :  { %11709 = vmatpush1.bf16.msra.mxu1 %v15750_v24  ;;  %11838 = vmatpush1.bf16.msra.mxu0 %v15753_v56  ;;  %v15822_v24 = vld [vmem:[#allocation10 + $0x5a0] ss:$20 sps:$4 sm:$0xff]   ;;  %v13687_v56 = vcombine.low %v10626_v4, %v10626_v4 }
0x102d   :  { %11710 = vmatprep.subr.bf16.mxu1 %v15758_v26  ;;  %11839 = vmatprep.subr.bf16.mxu0 %v15761_v18  ;;  %v13689_v26 = vcombine.low %v10627_v22, %v10627_v22  ;;  %v13688_v18 = vcombine.high %v10626_v4, %v10626_v4  ;;  %v15868_v4 = vld [vmem:[#allocation10 + $0x5b0] ss:$20 sps:$4 sm:$0xff]  }
0x1030   :  { %11711 = vmatpush1.bf16.msra.mxu1 %v15756_v28  ;;  %11840 = vmatpush1.bf16.msra.mxu0 %v15759_v30  ;;  %v13690_v28 = vcombine.high %v10627_v22, %v10627_v22  ;;  %v15832_v30 = vld [vmem:[#allocation10 + $0x150] ss:$20 sps:$4 sm:$0xff]   ;;  %v15869_v22 = vld [vmem:[#allocation10 + $0x5d8] ss:$0 sps:$4 sm:$0xff]  }
0x1031   :  { %11712 = vmatprep.subr.bf16.mxu1 %v15764_v32  ;;  %11841 = vmatprep.subr.bf16.mxu0 %v15767_v1  ;;  %v11635_v32 = vsel %vm2139_vm8, %v13687_v56, 0  ;;  %v11641_v1 = vsel %vm2139_vm8, %v13689_v26, 0  ;;  %v11647_v56 = vsel %vm2139_vm8, %v15869_v22, 0  ;;  %v15871_v26 = vld [vmem:[%s18632_s12 + $0xc0] sm:$0xff]   ;;  %v15904_v22 = vld [vmem:[%s18632_s12 + $0x110] sm:$0xff]  }
0x1034   :  { %11713 = vmatpush1.bf16.msra.mxu1 %v15762_v7  ;;  %11842 = vmatpush1.bf16.msra.mxu0 %v15765_v21  ;;  %v15834_v7 = vld [vmem:[#allocation10 + $0x3d0] ss:$20 sps:$4 sm:$0xff]  }
0x1035   :  { %11714 = vmatprep.subr.bf16.mxu1 %v15770_v23  ;;  %11843 = vmatprep.subr.bf16.mxu0 %v15773_v25  ;;  %v15833_v21 = vld [vmem:[#allocation10 + $0x10] ss:$20 sps:$4 sm:$0xff]   ;;  %v15836_v25 = vld [vmem:[#allocation10 + $0x178] ss:$20 sps:$4 sm:$0xff]  }
0x1036   :  { %v15835_v23 = vld [vmem:[#allocation10 + $0x290] ss:$20 sps:$4 sm:$0xff]  }
0x1038   :  { %11715 = vmatpush1.bf16.msra.mxu1 %v15768_v27  ;;  %11844 = vmatpush1.bf16.msra.mxu0 %v15771_v63  ;;  %v15838_v27 = vld [vmem:[#allocation10 + $0x3f8] ss:$20 sps:$4 sm:$0xff]  }
0x1039   :  { %11716 = vmatprep.subr.bf16.mxu1 %v15776_v9  ;;  %11845 = vmatprep.subr.bf16.mxu0 %v15779_v29  ;;  %v15837_v63 = vld [vmem:[#allocation10 + $0x38] ss:$20 sps:$4 sm:$0xff]   ;;  %v15840_v29 = vld [vmem:[#allocation10 + $0x1a0] ss:$20 sps:$4 sm:$0xff]  }
0x103a   :  { %v15839_v9 = vld [vmem:[#allocation10 + $0x2b8] ss:$20 sps:$4 sm:$0xff]  }
0x103c   :  { %11717 = vmatpush1.bf16.msra.mxu1 %v15774_v31  ;;  %11846 = vmatpush1.bf16.msra.mxu0 %v15777_v3  ;;  %v15842_v31 = vld [vmem:[#allocation10 + $0x420] ss:$20 sps:$4 sm:$0xff]  }
0x103d   :  { %11718 = vmatprep.subr.bf16.mxu1 %v15782_v37  ;;  %11847 = vmatprep.subr.bf16.mxu0 %v15785_v11  ;;  %v15841_v3 = vld [vmem:[#allocation10 + $0x60] ss:$20 sps:$4 sm:$0xff]   ;;  %v15844_v11 = vld [vmem:[#allocation10 + $0x1c8] ss:$20 sps:$4 sm:$0xff]  }
0x103e   :  { %v15843_v37 = vld [vmem:[#allocation10 + $0x2e0] ss:$20 sps:$4 sm:$0xff]  }
0x1040   :  { %11719 = vmatpush1.bf16.msra.mxu1 %v15780_v55  ;;  %11848 = vmatpush1.bf16.msra.mxu0 %v15783_v33  ;;  %v15846_v55 = vld [vmem:[#allocation10 + $0x448] ss:$20 sps:$4 sm:$0xff]  }
0x1041   :  { %11720 = vmatprep.subr.bf16.mxu1 %v15788_v53  ;;  %11849 = vmatprep.subr.bf16.mxu0 %v15791_v60  ;;  %v15845_v33 = vld [vmem:[#allocation10 + $0x88] ss:$20 sps:$4 sm:$0xff]   ;;  %v15848_v60 = vld [vmem:[#allocation10 + $0x1f0] ss:$20 sps:$4 sm:$0xff]  }
0x1042   :  { %v15847_v53 = vld [vmem:[#allocation10 + $0x308] ss:$20 sps:$4 sm:$0xff]  }
0x1044   :  { %11721 = vmatpush1.bf16.msra.mxu1 %v15786_v46  ;;  %11850 = vmatpush1.bf16.msra.mxu0 %v15789_v35  ;;  %v15850_v46 = vld [vmem:[#allocation10 + $0x470] ss:$20 sps:$4 sm:$0xff]  }
0x1045   :  { %11722 = vmatprep.subr.bf16.mxu1 %v15794_v13  ;;  %11851 = vmatprep.subr.bf16.mxu0 %v15797_v38  ;;  %v15849_v35 = vld [vmem:[#allocation10 + $0xb0] ss:$20 sps:$4 sm:$0xff]   ;;  %v15852_v38 = vld [vmem:[#allocation10 + $0x218] ss:$20 sps:$4 sm:$0xff]  }
0x1046   :  { %v15851_v13 = vld [vmem:[#allocation10 + $0x330] ss:$20 sps:$4 sm:$0xff]  }
0x1048   :  { %11723 = vmatpush1.bf16.msra.mxu1 %v15792_v45  ;;  %11852 = vmatpush1.bf16.msra.mxu0 %v15795_v6  ;;  %v15855_v45 = vld [vmem:[#allocation10 + $0x358] ss:$20 sps:$4 sm:$0xff]   ;;  %v15856_v6 = vld [vmem:[#allocation10 + $0x240] ss:$20 sps:$4 sm:$0xff]  }
0x1049   :  { %11735 = vmatprep.subr.bf16.mxu1 %v15800_v57  ;;  %11864 = vmatprep.subr.bf16.mxu0 %v15803_v41  ;;  %v15858_v57 = vld [vmem:[#allocation10 + $0x4c0] ss:$20 sps:$4 sm:$0xff]  }
0x104a   :  { %v15857_v41 = vld [vmem:[#allocation10 + $0x100] ss:$20 sps:$4 sm:$0xff]  }
0x104b   :  { %11725 = vmatmul.mubr.bf16.vlgmr.msra.gmra.mrb[72].mxu1 %v18435_v19  ;;  %11854 = vmatmul.mubr.bf16.vlgmr.msra.gmra.mrb[76].mxu0 %v18435_v19 }
0x104c   :  { %11736 = vmatpush1.bf16.msra.mxu1 %v15798_v52  ;;  %11865 = vmatpush1.bf16.msra.mxu0 %v15801_v42  ;;  %v15859_v52 = vld [vmem:[#allocation10 + $0x380] ss:$20 sps:$4 sm:$0xff]   ;;  %v15860_v42 = vld [vmem:[#allocation10 + $0x268] ss:$20 sps:$4 sm:$0xff]  }
0x104d   :  { %11737 = vmatprep.subr.bf16.mxu1 %v15806_v48  ;;  %11866 = vmatprep.subr.bf16.mxu0 %v15809_v49  ;;  %v15862_v48 = vld [vmem:[#allocation10 + $0x4e8] ss:$20 sps:$4 sm:$0xff]  }
0x104e   :  { %11767 = vmatprep.mubr.bf16.mxu1 %v16269_v36  ;;  %11896 = vmatprep.mubr.bf16.mxu0 %v16269_v36  ;;  %v15825_v36 = vld [vmem:[#allocation10 + $0x5a8] ss:$20 sps:$4 sm:$0xff]  }
0x104f   :  { %v15861_v49 = vld [vmem:[#allocation10 + $0x128] ss:$20 sps:$4 sm:$0xff]  }
0x1050   :  { %11738 = vmatpush1.bf16.msra.mxu1 %v15804_v61  ;;  %11867 = vmatpush1.bf16.msra.mxu0 %v15807_v39  ;;  %v15863_v61 = vld [vmem:[#allocation10 + $0x3a8] ss:$20 sps:$4 sm:$0xff]   ;;  %v15870_v39 = vld [vmem:[%s18632_s12 + $0x40] sm:$0xff]  }
0x1051   :  { %11739 = vmatprep.subr.bf16.mxu1 %v15812_v44  ;;  %11868 = vmatprep.subr.bf16.mxu0 %v15815_v10  ;;  %v15864_v44 = vld [vmem:[#allocation10 + $0x510] ss:$20 sps:$4 sm:$0xff]  }
0x1052   :  { %v15872_v10 = vld [vmem:[%s18632_s12] sm:$0xff]  }
0x1054   :  { %11740 = vmatpush1.bf16.msra.mxu1 %v15810_v12  ;;  %11869 = vmatpush1.bf16.msra.mxu0 %v15813_v14  ;;  %v15874_v12 = vld [vmem:[%s18632_s12 + $0x48] sm:$0xff]  }
0x1055   :  { %11741 = vmatprep.subr.bf16.mxu1 %v15818_v16  ;;  %11870 = vmatprep.subr.bf16.mxu0 %v15821_v62  ;;  %v15865_v14 = vld [vmem:[#allocation10 + $0x538] ss:$20 sps:$4 sm:$0xff]   ;;  %v15878_v62 = vld [vmem:[%s18632_s12 + $0x50] sm:$0xff]  }
0x1056   :  { %v15876_v16 = vld [vmem:[%s18632_s12 + $0x8] sm:$0xff]  }
0x1058   :  { %11742 = vmatpush1.bf16.msra.mxu1 %v15816_v0  ;;  %11871 = vmatpush1.bf16.msra.mxu0 %v15819_v51  ;;  %v15882_v0 = vld [vmem:[%s18632_s12 + $0x58] sm:$0xff]  }
0x1059   :  { %11743 = vmatprep.subr.bf16.mxu1 %v15824_v20  ;;  %11872 = vmatprep.subr.bf16.mxu0 %v15827_v5  ;;  %v15867_v51 = vld [vmem:[#allocation10 + $0x588] ss:$20 sps:$4 sm:$0xff]   ;;  %v15886_v5 = vld [vmem:[%s18632_s12 + $0x60] sm:$0xff]  }
0x105a   :  { %v15884_v20 = vld [vmem:[%s18632_s12 + $0x18] sm:$0xff]  }
0x105c   :  { %11744 = vmatpush1.bf16.msra.mxu1 %v15822_v24  ;;  %11873 = vmatpush1.bf16.msra.mxu0 %v15825_v36  ;;  %v15888_v24 = vld [vmem:[%s18632_s12 + $0x20] sm:$0xff]   ;;  %v15890_v36 = vld [vmem:[%s18632_s12 + $0x68] sm:$0xff]  }
0x105d   :  { %13692 = vmatprep.subr.msk.bf16.mxu1 %vm2139_vm8, %v13688_v18  ;;  %13694 = vmatprep.subr.msk.bf16.mxu0 %vm2139_vm8, %v13690_v28  ;;  %v15873_v18 = vld [vmem:[%s18632_s12 + $0x80] sm:$0xff]   ;;  %v15875_v28 = vld [vmem:[%s18632_s12 + $0xc8] sm:$0xff]  }
0x1060   :  { %11746 = vmatpush1.bf16.msra.mxu1 %v11635_v32  ;;  %11875 = vmatpush1.bf16.msra.mxu0 %v11641_v1  ;;  %v15879_v32 = vld [vmem:[%s18632_s12 + $0xd0] sm:$0xff]  }
0x1061   :  { %14067 = vmatprep.subr.bf16.mxu1 %v15832_v30  ;;  %14089 = vmatprep.subr.bf16.mxu0 %v15834_v7  ;;  %v15877_v30 = vld [vmem:[%s18632_s12 + $0x88] sm:$0xff]   ;;  %v15881_v1 = vld [vmem:[%s18632_s12 + $0x90] sm:$0xff]   ;;  %v15885_v7 = vld [vmem:[%s18632_s12 + $0x98] sm:$0xff]  }
0x1063   :  { %13693 = vmatmul.mubr.msk.bf16.vlgmr.msra.gmra.mrb[72].mxu1 %vm3918_vm10, %v18442_v43  ;;  %13695 = vmatmul.mubr.msk.bf16.vlgmr.msra.gmra.mrb[76].mxu0 %vm3918_vm10, %v18442_v43 }
0x1064   :  { %14068 = vmatpush3.bf16.msra.mxu1 %v15833_v21  ;;  %14090 = vmatpush3.bf16.msra.mxu0 %v15835_v23  ;;  %v15887_v21 = vld [vmem:[%s18632_s12 + $0xe0] sm:$0xff]  }
0x1065   :  { %14069 = vmatprep.subr.bf16.mxu1 %v15836_v25  ;;  %14091 = vmatprep.subr.bf16.mxu0 %v15838_v27  ;;  %v15889_v23 = vld [vmem:[%s18632_s12 + $0xa0] sm:$0xff]   ;;  %v15891_v25 = vld [vmem:[%s18632_s12 + $0xe8] sm:$0xff]  }
0x1066   :  { %11939 = vmatprep.mubr.bf16.mxu1 %v18437_v8  ;;  %11980 = vmatprep.mubr.bf16.mxu0 %v18439_v50  ;;  %v15854_v8 = vld [vmem:[#allocation10 + $0x498] ss:$20 sps:$4 sm:$0xff]  }
0x1067   :  { %v15853_v50 = vld [vmem:[#allocation10 + $0xd8] ss:$20 sps:$4 sm:$0xff]  }
0x1068   :  { %14070 = vmatpush3.bf16.msra.mxu1 %v15837_v63  ;;  %14092 = vmatpush3.bf16.msra.mxu0 %v15839_v9  ;;  %v15892_v27 = vld [vmem:[%s18632_s12 + $0x28] sm:$0xff]   ;;  %v15894_v9 = vld [vmem:[%s18632_s12 + $0x70] sm:$0xff]  }
0x1069   :  { %14071 = vmatprep.subr.bf16.mxu1 %v15840_v29  ;;  %14093 = vmatprep.subr.bf16.mxu0 %v15842_v31  ;;  %v15893_v63 = vld [vmem:[%s18632_s12 + $0xa8] sm:$0xff]   ;;  %v15895_v29 = vld [vmem:[%s18632_s12 + $0xf0] sm:$0xff]  }
0x106a   :  { %v15896_v31 = vld [vmem:[%s18632_s12 + $0x30] sm:$0xff]  }
0x106c   :  { %14072 = vmatpush3.bf16.msra.mxu1 %v15841_v3  ;;  %14094 = vmatpush3.bf16.msra.mxu0 %v15843_v37  ;;  %v15897_v3 = vld [vmem:[%s18632_s12 + $0xb0] sm:$0xff]   ;;  %v15898_v37 = vld [vmem:[%s18632_s12 + $0x78] sm:$0xff]  }
0x106d   :  { %14073 = vmatprep.subr.bf16.mxu1 %v15844_v11  ;;  %14095 = vmatprep.subr.bf16.mxu0 %v15846_v55  ;;  %v15899_v11 = vld [vmem:[%s18632_s12 + $0xf8] sm:$0xff]  }
0x106e   :  { %v15900_v55 = vld [vmem:[%s18632_s12 + $0x38] sm:$0xff]  }
0x1070   :  { %14074 = vmatpush3.bf16.msra.mxu1 %v15845_v33  ;;  %14096 = vmatpush3.bf16.msra.mxu0 %v15847_v53  ;;  %v15901_v33 = vld [vmem:[%s18632_s12 + $0xb8] sm:$0xff]   ;;  %v10629_v53 = vld [vmem:[#allocation27] sm:$0x1f] }
0x1071   :  { %14075 = vmatprep.subr.bf16.mxu1 %v15848_v60  ;;  %14097 = vmatprep.subr.bf16.mxu0 %v15850_v46  ;;  %v10634_v60 = vrot.slane %v10629_v53, %v17968_v15  ;;  %v10642_v46 = vrot.slane %v10629_v53, %v17980_v40 }
0x1074   :  { %14076 = vmatpush3.bf16.msra.mxu1 %v15849_v35  ;;  %14098 = vmatpush3.bf16.msra.mxu0 %v15851_v13  ;;  %v10638_v35 = vrot.slane %v10629_v53, %v17971_v58  ;;  %v10646_v13 = vrot.slane %v10629_v53, %v17983_v59 }
0x1075   :  { %14077 = vmatprep.subr.bf16.mxu1 %v15852_v38  ;;  %14099 = vmatprep.subr.bf16.mxu0 %v15854_v8 }
0x1078   :  { %14078 = vmatpush3.bf16.msra.mxu1 %v15853_v50  ;;  %14100 = vmatpush3.bf16.msra.mxu0 %v15855_v45 }
0x1079   :  { %14079 = vmatprep.subr.bf16.mxu1 %v15856_v6  ;;  %14101 = vmatprep.subr.bf16.mxu0 %v15858_v57 }
0x107c   :  { %14080 = vmatpush3.bf16.msra.mxu1 %v15857_v41  ;;  %14102 = vmatpush3.bf16.msra.mxu0 %v15859_v52 }
0x107d   :  { %14081 = vmatprep.subr.bf16.mxu1 %v15860_v42  ;;  %14103 = vmatprep.subr.bf16.mxu0 %v15862_v48 }
0x1080   :  { %14082 = vmatpush3.bf16.msra.mxu1 %v15861_v49  ;;  %14104 = vmatpush3.bf16.msra.mxu0 %v15863_v61 }
0x1081   :  { %14249 = vmatprep.subr.bf16.mxu1 %v16277_v54  ;;  %14118 = vmatprep.subr.bf16.mxu0 %v15870_v39 }
0x1083   :  { %11940 = vmatmul.mubr.bf16.vlgmr.msra.gmra.mrb[76].mxu1 %v18433_v2  ;;  %11981 = vmatmul.mubr.bf16.vlgmr.msra.gmra.mrb[80].mxu0 %v18435_v19  ;;  %v15866_v2 = vld [vmem:[#allocation10 + $0x560] ss:$20 sps:$4 sm:$0xff]  }
0x1084   :  { %14250 = vmatpush3.bf16.msra.mxu1 %v15864_v44  ;;  %14261 = vmatprep.mubr.msk.bf16.mxu1 %vm16278_vm12, %v16277_v54  ;;  %v15880_v19 = vld [vmem:[%s18632_s12 + $0x10] sm:$0xff]  }
0x1085   :  { %14251 = vmatprep.subr.bf16.mxu1 %v16277_v54  ;;  %14119 = vmatpush3.bf16.msra.mxu0 %v15872_v10 }
0x1086   :  { %14120 = vmatprep.subr.bf16.mxu0 %v15874_v12 }
0x1088   :  { %14252 = vmatpush3.bf16.msra.mxu1 %v15865_v14 }
0x1089   :  { %14253 = vmatprep.subr.bf16.mxu1 %v16277_v54  ;;  %14121 = vmatpush3.bf16.msra.mxu0 %v15876_v16 }
0x108a   :  { %14122 = vmatprep.subr.bf16.mxu0 %v15878_v62 }
0x108c   :  { %14254 = vmatpush3.bf16.msra.mxu1 %v15866_v2 }
0x108d   :  { %14255 = vmatprep.subr.bf16.mxu1 %v16277_v54  ;;  %14123 = vmatpush3.bf16.msra.mxu0 %v15880_v19 }
0x108e   :  { %14124 = vmatprep.subr.bf16.mxu0 %v15882_v0 }
0x1090   :  { %14256 = vmatpush3.bf16.msra.mxu1 %v15867_v51 }
0x1091   :  { %14257 = vmatprep.subr.bf16.mxu1 %v16277_v54  ;;  %14125 = vmatpush3.bf16.msra.mxu0 %v15884_v20 }
0x1092   :  { %14126 = vmatprep.subr.bf16.mxu0 %v15886_v5  ;;  %v15902_v5 = vld [vmem:[%s18632_s12 + $0x100] sm:$0xff]  }
0x1094   :  { %14258 = vmatpush3.bf16.msra.mxu1 %v15868_v4  ;;  %v15903_v4 = vld [vmem:[%s18632_s12 + $0x108] sm:$0xff]  }
0x1095   :  { %14259 = vmatprep.subr.bf16.mxu1 %v16277_v54  ;;  %14127 = vmatpush3.bf16.msra.mxu0 %v15888_v24  ;;  %v15905_v24 = vld [vmem:[%s18632_s12 + $0x118] sm:$0xff]  }
0x1096   :  { %14128 = vmatprep.subr.bf16.mxu0 %v15890_v36  ;;  %v15906_v36 = vld [vmem:[%s18632_s12 + $0x120] sm:$0xff]  }
0x1098   :  { %14260 = vmatpush3.bf16.msra.mxu1 %v11647_v56  ;;  %v15907_v56 = vld [vmem:[%s18632_s12 + $0x128] ss:$0 sps:$4 sm:$0xff]  }
0x1099   :  { %14140 = vmatprep.subr.bf16.mxu1 %v15871_v26  ;;  %14129 = vmatpush3.bf16.msra.mxu0 %v15892_v27  ;;  %v12356_v26 = vsel %vm2139_vm8, %v15907_v56, 0 }
0x109a   :  { %14130 = vmatprep.subr.bf16.mxu0 %v15894_v9 }
0x109b   :  { %14262 = vmatmul.mubr.msk.bf16.vlgmr.msra.gmra.mrb[80].mxu1 %vm3918_vm10, %v18442_v43  ;;  %v15883_v43 = vld [vmem:[%s18632_s12 + $0xd8] sm:$0xff]  }
0x109c   :  { %14141 = vmatpush3.bf16.msra.mxu1 %v15873_v18 }
0x109d   :  { %14142 = vmatprep.subr.bf16.mxu1 %v15875_v28  ;;  %14131 = vmatpush3.bf16.msra.mxu0 %v15896_v31  ;;  %v10650_v28 = vrot.slane %v10629_v53, %v18028_v47 }
0x109e   :  { %14132 = vmatprep.subr.bf16.mxu0 %v15898_v37 }
0x10a0   :  { %14143 = vmatpush3.bf16.msra.mxu1 %v15877_v30 }
0x10a1   :  { %14144 = vmatprep.subr.bf16.mxu1 %v15879_v32  ;;  %14133 = vmatpush3.bf16.msra.mxu0 %v15900_v55 }
0x10a2   :  { %14265 = vmatprep.subr.bf16.mxu0 %v16277_v54 }
0x10a4   :  { %14145 = vmatpush3.bf16.msra.mxu1 %v15881_v1 }
0x10a5   :  { %14146 = vmatprep.subr.bf16.mxu1 %v15883_v43 }
0x10a8   :  { %14147 = vmatpush3.bf16.msra.mxu1 %v15885_v7 }
0x10a9   :  { %14148 = vmatprep.subr.bf16.mxu1 %v15887_v21 }
0x10ac   :  { %14149 = vmatpush3.bf16.msra.mxu1 %v15889_v23 }
0x10ad   :  { %14150 = vmatprep.subr.bf16.mxu1 %v15891_v25 }
0x10b0   :  { %14151 = vmatpush3.bf16.msra.mxu1 %v15893_v63 }
0x10b1   :  { %14152 = vmatprep.subr.bf16.mxu1 %v15895_v29 }
0x10b4   :  { %14153 = vmatpush3.bf16.msra.mxu1 %v15897_v3 }
0x10b5   :  { %14154 = vmatprep.subr.bf16.mxu1 %v15899_v11 }
0x10b8   :  { %14155 = vmatpush3.bf16.msra.mxu1 %v15901_v33 }
0x1136   :  { %v11769_v38 = vpop.f32.mrb[72].mxu1  ;;  %v11898_v8 = vpop.f32.mrb[76].mxu0 }
0x1137   :  { %v14329_v50 = vadd.f32 %v11769_v38, %v10634_v60  ;;  %v14333_v45 = vadd.f32 %v11898_v8, %v10642_v46  ;;  %v11771_v6 = vpop.f32.mrb[73].mxu1  ;;  %v11900_v57 = vpop.f32.mrb[77].mxu0  ;;  %v13697_v8 = vld [vmem:[#allocation13] ss:$0 sm:$0xff] }
0x1138   :  { %v14330_v41 = vadd.f32 %v11771_v6, %v10638_v35  ;;  %v14334_v52 = vadd.f32 %v11900_v57, %v10646_v13  ;;  %v11773_v42 = vpop.f32.mrb[74].mxu1  ;;  %v11902_v48 = vpop.f32.mrb[78].mxu0 }
0x1139   :  { %v14331_v49 = vadd.f32 %v11773_v42, %v10634_v60  ;;  %v14335_v61 = vadd.f32 %v11902_v48, %v10642_v46  ;;  %v11775_v39 = vpop.f32.mrb[75].mxu1  ;;  %v11904_v15 = vpop.f32.mrb[79].mxu0  ;;  %v12030_v10 = vmax.f32 %v14329_v50, 0.0  ;;  %v12032_v58 = vmax.f32 %v14333_v45, 0.0 }
0x113a   :  { %v14332_v44 = vadd.f32 %v11775_v39, %v10638_v35  ;;  %v14336_v40 = vadd.f32 %v11904_v15, %v10646_v13  ;;  %v12031_v14 = vmax.f32 %v14330_v41, 0.0  ;;  %v12033_v16 = vmax.f32 %v14334_v52, 0.0 }
0x113b   :  { %v12035_v12 = vmax.f32 %v14331_v49, 0.0  ;;  %v12037_v59 = vmax.f32 %v14335_v61, 0.0 }
0x113c   :  { %v12036_v62 = vmax.f32 %v14332_v44, 0.0  ;;  %v12038_v2 = vmax.f32 %v14336_v40, 0.0 }
0x113d   :  { %v12040_v19 = vpack.c.bf16 %v12035_v12, %v12030_v10  ;;  %v12042_v0 = vpack.c.bf16 %v12037_v59, %v12032_v58 }
0x113e   :  { %v12041_v51 = vpack.c.bf16 %v12036_v62, %v12031_v14  ;;  %v12043_v20 = vpack.c.bf16 %v12038_v2, %v12033_v16 }
0x1140   :  { %12390 = vmatprep.mubr.bf16.mxu0 %v12041_v51  ;;  %12431 = vmatprep.mubr.bf16.mxu1 %v12043_v20 }
0x1141   :  { %12391 = vmatmul.mubr.bf16.vlgmr.msra.gmra.mrb[84].mxu0 %v12040_v19  ;;  %12432 = vmatmul.mubr.bf16.vlgmr.msra.gmra.mrb[84].mxu1 %v12042_v0 }
0x1142   :  { %14266 = vmatpush3.bf16.msra.mxu0 %v15902_v5  ;;  %14277 = vmatprep.mubr.msk.bf16.mxu0 %vm16278_vm12, %v16277_v54 }
0x1143   :  { %14267 = vmatprep.subr.bf16.mxu0 %v16277_v54 }
0x1146   :  { %14268 = vmatpush3.bf16.msra.mxu0 %v15903_v4 }
0x1147   :  { %14269 = vmatprep.subr.bf16.mxu0 %v16277_v54 }
0x114a   :  { %14270 = vmatpush3.bf16.msra.mxu0 %v15904_v22 }
0x114b   :  { %14271 = vmatprep.subr.bf16.mxu0 %v16277_v54 }
0x114e   :  { %14272 = vmatpush3.bf16.msra.mxu0 %v15905_v24 }
0x114f   :  { %14273 = vmatprep.subr.bf16.mxu0 %v16277_v54 }
0x1152   :  { %14274 = vmatpush3.bf16.msra.mxu0 %v15906_v36 }
0x1153   :  { %14275 = vmatprep.subr.bf16.mxu0 %v16277_v54 }
0x1156   :  { %v14083_v18 = vpop.f32.mrb[76].mxu1  ;;  %v14105_v30 = vpop.f32.mrb[80].mxu0  ;;  %14276 = vmatpush3.bf16.msra.mxu0 %v12356_v26 }
0x1157   :  { %v14084_v32 = vpop.f32.mrb[77].mxu1  ;;  %v14106_v1 = vpop.f32.mrb[81].mxu0 }
0x1158   :  { %v14085_v43 = vadd.f32 %v14084_v32, %v14083_v18  ;;  %v14086_v7 = vpop.f32.mrb[78].mxu1  ;;  %v14107_v21 = vadd.f32 %v14106_v1, %v14105_v30  ;;  %v14108_v23 = vpop.f32.mrb[82].mxu0 }
0x1159   :  { %v14087_v25 = vpop.f32.mrb[79].mxu1  ;;  %v14109_v27 = vpop.f32.mrb[83].mxu0 }
0x115a   :  { %v11942_v63 = vadd.f32 %v14085_v43, %v10650_v28  ;;  %v14088_v9 = vadd.f32 %v14087_v25, %v14086_v7  ;;  %v14110_v29 = vadd.f32 %v14109_v27, %v14108_v23 }
0x115c   :  { %v11945_v31 = vadd.f32 %v14088_v9, %v10650_v28  ;;  %v11983_v54 = vadd.f32 %v14107_v21, %v11942_v63 }
0x115e   :  { %v11986_v3 = vadd.f32 %v14110_v29, %v11945_v31 }
0x116e   :  { %v12023_v37 = vpop.f32.mrb[80].mxu1 }
0x116f   :  { %v12024_v11 = vadd.f32 %v12023_v37, %v11983_v54  ;;  %v14263_v55 = vpop.f32.mrb[81].mxu1 }
0x1170   :  { %v12026_v47 = vpop.f32.mrb[82].mxu1 }
0x1171   :  { %v12027_v33 = vadd.f32 %v12026_v47, %v11986_v3  ;;  %v14264_v53 = vpop.f32.mrb[83].mxu1  ;;  %v12034_v60 = vmax.f32 %v12024_v11, 0.0 }
0x1173   :  { %v12039_v46 = vmax.f32 %v12027_v33, 0.0 }
0x1175   :  { %v12044_v35 = vpack.c.bf16 %v12039_v46, %v12034_v60 }
0x1177   :  { %14278 = vmatmul.mubr.msk.bf16.vlgmr.msra.gmra.mrb[88].mxu0 %vm3918_vm10, %v12044_v35 }
0x1214   :  { %v14134_v13 = vpop.f32.mrb[84].mxu0  ;;  %v14156_v38 = vpop.f32.mrb[84].mxu1 }
0x1215   :  { %v14135_v50 = vpop.f32.mrb[85].mxu0  ;;  %v14157_v45 = vpop.f32.mrb[85].mxu1 }
0x1216   :  { %v14136_v6 = vadd.f32 %v14135_v50, %v14134_v13  ;;  %v14158_v57 = vadd.f32 %v14157_v45, %v14156_v38  ;;  %v14137_v41 = vpop.f32.mrb[86].mxu0  ;;  %v14159_v52 = vpop.f32.mrb[86].mxu1 }
0x1217   :  { %v14138_v42 = vpop.f32.mrb[87].mxu0  ;;  %v14160_v48 = vpop.f32.mrb[87].mxu1 }
0x1218   :  { %v12393_v49 = vadd.f32 %v14136_v6, %v13697_v8  ;;  %v14139_v61 = vadd.f32 %v14138_v42, %v14137_v41  ;;  %v14161_v39 = vadd.f32 %v14160_v48, %v14159_v52 }
0x121a   :  { %v12396_v17 = vadd.f32 %v14139_v61, %v13697_v8  ;;  %v12434_v15 = vadd.f32 %v14158_v57, %v12393_v49 }
0x121c   :  { %v12437_v44 = vadd.f32 %v14161_v39, %v12396_v17 }
0x124a   :  { %v12474_v40 = vpop.f32.mrb[88].mxu0 }
0x124b   :  { %v12475_v10 = vadd.f32 %v12474_v40, %v12434_v15  ;;  %v14279_v34 = vpop.f32.mrb[89].mxu0 }
0x124c   :  { %v12477_v58 = vpop.f32.mrb[90].mxu0 }
0x124d   :  { %v12478_v12 = vadd.f32 %v12477_v58, %v12437_v44  ;;  %v14280_v59 = vpop.f32.mrb[91].mxu0  ;;  %12486 = vrot.lane.b32.xlu0 %v12475_v10, %s16279_s30 }
0x1251   :  { %12488 = vrot.lane.b32.xlu0 %v12478_v12, %s16279_s30 }
0x12bf   :  { %v12487_v14 = vpop.permute.xlu0 %12486 }
0x12c0   :  { %12493 = vst.msk [vmem:[%s18643_s24] sm:$0xff] %vm12492_vm14, %v12487_v14 }
0x12c3   :  { %v12489_v16 = vpop.permute.xlu0 %12488 }
0x12c4   :  { %12494 = vst.msk [vmem:[%s18643_s24 + $0x8] sm:$0xff] %vm12492_vm14, %v12489_v16 }
0x12c5   :  { %12499 = vsyncpa [#allocation15], 1 }
0x12c6   :  { %12500 = vsyncpa [#allocation17], 1 }
0x12c7   :  { %12501 = vsyncpa [#allocation20], 1 }
0x12c8   :  { %12502 = vsyncpa [#allocation23], 1 }
0x12c9   :  { %12503 = vsyncpa [#allocation26], 1 }
0x12ca   :  { %12504 = vsyncmov [#allocation11] }
0x12cd   :  { %s12505_s9 = vpop.sfrf %12504 }
0x12ce   :  { %p13737_p0 = scmp.ne.s32.totalorder %s12505_s9, 0 }
0x12d0   :  { %12509 = shalt.err (%p13737_p0)  }
0x12d1   :  { %12511 = vsyncmov [#allocation11 + $0x1] }
0x12d4   :  { %s12512_s19 = vpop.sfrf %12511 }
0x12d5   :  { %p13738_p1 = scmp.ne.s32.totalorder %s12512_s19, 0 }
0x12d7   :  { %12516 = shalt.err (%p13738_p1)  }
0x12d8   :  { %12518 = vsyncmov [#allocation11 + $0x2] }
0x12db   :  { %s12519_s8 = vpop.sfrf %12518 }
0x12dc   :  { %p13739_p2 = scmp.ne.s32.totalorder %s12519_s8, 0 }
0x12de   :  { %12523 = shalt.err (%p13739_p2)  }
0x12df   :  { %12525 = vsyncmov [#allocation11 + $0x3] }
0x12e2   :  { %s12526_s11 = vpop.sfrf %12525 }
0x12e3   :  { %p13740_p3 = scmp.ne.s32.totalorder %s12526_s11, 0 }
0x12e5   :  { %12530 = shalt.err (%p13740_p3)  }
0x12e6   :  { %12532 = vsyncmov [#allocation11 + $0x4] }
0x12e9   :  { %s12533_s24 = vpop.sfrf %12532 }
0x12ea   :  { %p13741_p4 = scmp.ne.s32.totalorder %s12533_s24, 0 }
0x12ec   :  { %12537 = shalt.err (%p13741_p4)  }
0x12ed   :  { %12539 = vsyncmov [#allocation11 + $0x5] }
0x12f0   :  { %s12540_s22 = vpop.sfrf %12539 }
0x12f1   :  { %p13742_p5 = scmp.ne.s32.totalorder %s12540_s22, 0 }
0x12f3   :  { %12544 = shalt.err (%p13742_p5)  }
0x12f4   :  { %12546 = vsyncmov [#allocation11 + $0x6] }
0x12f7   :  { %s12547_s27 = vpop.sfrf %12546 }
0x12f8   :  { %p13743_p6 = scmp.ne.s32.totalorder %s12547_s27, 0 }
0x12fa   :  { %12551 = shalt.err (%p13743_p6)  }
0x12fb   :  { %12553 = vsyncmov [#allocation11 + $0x7] }
0x12fe   :  { %s12554_s26 = vpop.sfrf %12553 }
0x12ff   :  { %p13744_p7 = scmp.ne.s32.totalorder %s12554_s26, 0 }
0x1301   :  { %12558 = shalt.err (%p13744_p7)  }
0x1302   :  { %12560 = vsyncmov [#allocation11 + $0x8] }
0x1305   :  { %s12561_s6 = vpop.sfrf %12560 }
0x1306   :  { %p13745_p8 = scmp.ne.s32.totalorder %s12561_s6, 0 }
0x1308   :  { %12565 = shalt.err (%p13745_p8)  }

</bundles_post_ra>
